<compile_context>
chip_gen: v5e
topology: v5e:2x2
jax: 0.10.0
libtpu: 0.0.40
codegen_flags: <defaults>
</compile_context>

<pallas_src>
import jax
import jax.numpy as jnp
from jax.experimental import pallas as pl
from jax.experimental.pallas import tpu as pltpu

TAPS = [(dy, dx) for dy in range(3) for dx in range(3)]  # 3x3 taps, tap-major


# ----------------------------------------------------------------------------
# Fused kernel: conv1 + ReLU + pool  ->  conv2 + ReLU + pool   (one image / step)
# ----------------------------------------------------------------------------
def _conv_stage_kernel(a1_ref, w1_ref, b1_ref, w2_ref, b2_ref, o_ref,
                       c1p_ref, p2_ref):
    # a1_ref : (1, 2304, 9)  im2col of the padded 48x48 image; pixel p ordered
    #          (h2, h&1, w&1, w2) so that the 2x2 max-pool reduces leading axes only.
    # w1_ref : (9, 32)       conv1 weights (tap-major);  b1_ref: (1, 32)
    # w2_ref : (288, 64)     conv2 weights ((dy,dx,ci)-major);  b2_ref: (1, 64)
    # o_ref  : (1, 12, 12, 64)  pooled conv2 output (NHWC), bf16
    # c1p_ref: (26, 26, 32)  scratch: zero-padded pooled conv1 output
    # p2_ref : (24, 24, 64)  scratch: conv2 output before pooling

    # ---- Conv1 (1->32, 3x3, pad=1) as one MXU matmul, + bias + ReLU -----------------
    y1 = jnp.dot(a1_ref[0], w1_ref[...], preferred_element_type=jnp.float32)   # (2304,32)
    y1 = jnp.maximum(y1 + b1_ref[...], 0.0)

    # ---- MaxPool2d(2): layout-free reshape, leading-axis maxima ---------------------
    y1r = y1.reshape(24, 2, 2, 24, 32)           # (h2, hpar, wpar, w2, c)
    c1 = jnp.maximum(jnp.maximum(y1r[:, 0, 0], y1r[:, 0, 1]),
                     jnp.maximum(y1r[:, 1, 0], y1r[:, 1, 1]))                   # (24,24,32)

    # ---- zero-pad to (26,26,32) for conv2 (padding=1) -------------------------------
    c1p_ref[...] = jnp.zeros_like(c1p_ref)
    c1p_ref[1:25, 1:25, :] = c1

    # ---- Conv2 (32->64, 3x3, pad=1): im2col (576,288) and ONE MXU matmul ------------
    a2 = jnp.concatenate(
        [c1p_ref[dy:dy + 24, dx:dx + 24, :].reshape(576, 32) for dy, dx in TAPS],
        axis=-1)                                                                # (576,288)
    y2 = jnp.dot(a2, w2_ref[...], preferred_element_type=jnp.float32)           # (576, 64)
    y2 = jnp.maximum(y2 + b2_ref[...], 0.0)

    # ---- MaxPool2d(2) on (24,24,64): W via strided sublane reads, H via leading axis -
    p2_ref[...] = y2.reshape(24, 24, 64)
    wpool = jnp.maximum(p2_ref[:, pl.ds(0, 12, 2), :],
                        p2_ref[:, pl.ds(1, 12, 2), :])                          # (24,12,64)
    wr = wpool.reshape(12, 2, 12, 64)
    feat = jnp.maximum(wr[:, 0], wr[:, 1])                                      # (12,12,64)

    o_ref[...] = feat.reshape(1, 12, 12, 64).astype(o_ref.dtype)


def conv_stage(a1, w1, b1, w2, b2):
    B = a1.shape[0]
    return pl.pallas_call(
        _conv_stage_kernel,
        out_shape=jax.ShapeDtypeStruct((B, 12, 12, 64), jnp.bfloat16),
        grid=(B,),
        in_specs=[
            pl.BlockSpec((1, 2304, 9), lambda b: (b, 0, 0)),
            pl.BlockSpec((9, 32), lambda b: (0, 0)),
            pl.BlockSpec((1, 32), lambda b: (0, 0)),
            pl.BlockSpec((288, 64), lambda b: (0, 0)),
            pl.BlockSpec((1, 64), lambda b: (0, 0)),
        ],
        out_specs=pl.BlockSpec((1, 12, 12, 64), lambda b: (b, 0, 0, 0)),
        scratch_shapes=[pltpu.VMEM((26, 26, 32), jnp.float32),
                        pltpu.VMEM((24, 24, 64), jnp.float32)],
        compiler_params=pltpu.CompilerParams(
            dimension_semantics=("parallel",),
            vmem_limit_bytes=32 * 1024 * 1024),
    )(a1, w1, b1, w2, b2)


# ----------------------------------------------------------------------------
# FC kernel: Linear(9216,128)+ReLU+Dropout(eval)+Linear(128,7), whole batch at once.
# fw1 is bf16 (halves the dominant HBM stream) and loaded once for the batch.
# ----------------------------------------------------------------------------
def _fc_kernel(x_ref, w1_ref, b1_ref, w2_ref, b2_ref, o_ref):
    h = jnp.dot(x_ref[...], w1_ref[...], preferred_element_type=jnp.float32)    # (B,128)
    h = jnp.maximum(h + b1_ref[...], 0.0)
    # TODO(synk): nn.Dropout(0.3) is identity in eval/inference mode; the torch-RNG
    # training-time mask is not reproduced here.
    o_ref[...] = jnp.dot(h, w2_ref[...], preferred_element_type=jnp.float32) + b2_ref[...]


def fc_stage(feat, fw1, fb1, fw2, fb2):
    B, F = feat.shape
    return pl.pallas_call(
        _fc_kernel,
        out_shape=jax.ShapeDtypeStruct((B, 7), jnp.float32),
        grid=(1,),
        in_specs=[
            pl.BlockSpec((B, F), lambda i: (0, 0)),
            pl.BlockSpec((F, 128), lambda i: (0, 0)),
            pl.BlockSpec((1, 128), lambda i: (0, 0)),
            pl.BlockSpec((128, 7), lambda i: (0, 0)),
            pl.BlockSpec((1, 7), lambda i: (0, 0)),
        ],
        out_specs=pl.BlockSpec((B, 7), lambda i: (0, 0)),
        compiler_params=pltpu.CompilerParams(
            dimension_semantics=("arbitrary",),
            vmem_limit_bytes=16 * 1024 * 1024),
    )(feat, fw1, fb1, fw2, fb2)


# ----------------------------------------------------------------------------
# Parameters: synthetic torch-layout weights, then rearranged to kernel layouts.
# ----------------------------------------------------------------------------
def init_torch_params(key):
    ks = jax.random.split(key, 8)
    s = 0.05
    return dict(
        w1=s * jax.random.normal(ks[0], (32, 1, 3, 3), jnp.float32),    # (Cout,Cin,kh,kw)
        b1=s * jax.random.normal(ks[1], (32,), jnp.float32),
        w2=s * jax.random.normal(ks[2], (64, 32, 3, 3), jnp.float32),
        b2=s * jax.random.normal(ks[3], (64,), jnp.float32),
        fw1=s * jax.random.normal(ks[4], (128, 64 * 12 * 12), jnp.float32),   # (out,in)
        fb1=s * jax.random.normal(ks[5], (128,), jnp.float32),
        fw2=s * jax.random.normal(ks[6], (7, 128), jnp.float32),
        fb2=s * jax.random.normal(ks[7], (7,), jnp.float32),
    )


def prepare_kernel_params(tp):
    w1 = jnp.transpose(tp["w1"].reshape(32, 9), (1, 0))                 # (tap, Cout)
    w2 = jnp.transpose(tp["w2"], (2, 3, 1, 0)).reshape(288, 64)         # ((dy,dx,ci), co)
    # Fold torch's NCHW flatten into fw1 so it consumes the NHWC-flattened feature,
    # and store it in bf16 (FC stage is HBM-bound on this weight).
    fw1 = (tp["fw1"].reshape(128, 64, 12, 12)
           .transpose(2, 3, 1, 0).reshape(64 * 12 * 12, 128).astype(jnp.bfloat16))
    return dict(
        w1=w1, b1=tp["b1"].reshape(1, 32),
        w2=w2, b2=tp["b2"].reshape(1, 64),
        fw1=fw1, fb1=tp["fb1"].reshape(1, 128),
        fw2=jnp.transpose(tp["fw2"], (1, 0)), fb2=tp["fb2"].reshape(1, 7),
    )


# ----------------------------------------------------------------------------
# Full forward (NCHW interface, like the PyTorch module)
# ----------------------------------------------------------------------------
def _im2col_conv1(x_nchw):
    """conv1 im2col slab (B, 2304, 9); pixel order (h2, h&1, w&1, w2) -> free pooling."""
    B = x_nchw.shape[0]
    x = x_nchw.reshape(B, 48, 48).astype(jnp.float32)
    xp = jnp.pad(x, ((0, 0), (1, 1), (1, 1)))                            # zero pad=1
    cols = jnp.stack([xp[:, dy:dy + 48, dx:dx + 48] for dy, dx in TAPS], axis=-1)
    cols = cols.reshape(B, 24, 2, 24, 2, 9).transpose(0, 1, 2, 4, 3, 5)  # (b,h2,hp,wp,w2,t)
    return cols.reshape(B, 2304, 9)


@jax.jit
def cnn_emotion_forward(x_nchw, kparams):
    B = x_nchw.shape[0]
    a1 = _im2col_conv1(x_nchw)
    feat = conv_stage(a1, kparams["w1"], kparams["b1"],
                      kparams["w2"], kparams["b2"])          # (B,12,12,64) bf16, NHWC
    feat = feat.reshape(B, 12 * 12 * 64)                     # free row-major flatten
    return fc_stage(feat, kparams["fw1"], kparams["fb1"],
                    kparams["fw2"], kparams["fb2"])          # (B, 7) f32


# ----------------------------------------------------------------------------
# Pure-JAX reference (torch semantics) for correctness check
# ----------------------------------------------------------------------------
def reference_forward(x_nchw, tp):
    dn = ("NCHW", "OIHW", "NCHW")
    y = jax.lax.conv_general_dilated(x_nchw.astype(jnp.float32), tp["w1"], (1, 1),
                                     ((1, 1), (1, 1)), dimension_numbers=dn)
    y = jnp.maximum(y + tp["b1"].reshape(1, 32, 1, 1), 0.0)
    y = jax.lax.reduce_window(y, -jnp.inf, jax.lax.max, (1, 1, 2, 2), (1, 1, 2, 2), "VALID")
    y = jax.lax.conv_general_dilated(y, tp["w2"], (1, 1),
                                     ((1, 1), (1, 1)), dimension_numbers=dn)
    y = jnp.maximum(y + tp["b2"].reshape(1, 64, 1, 1), 0.0)
    y = jax.lax.reduce_window(y, -jnp.inf, jax.lax.max, (1, 1, 2, 2), (1, 1, 2, 2), "VALID")
    f = y.reshape(y.shape[0], -1)                                        # NCHW flatten
    h = jnp.maximum(f @ tp["fw1"].T + tp["fb1"], 0.0)
    return h @ tp["fw2"].T + tp["fb2"]


if __name__ == "__main__":
    key = jax.random.PRNGKey(0)
    pkey, xkey = jax.random.split(key)
    tparams = init_torch_params(pkey)
    kparams = prepare_kernel_params(tparams)
    # FC dims (64*12*12) imply 48x48 single-channel inputs.
    x = jax.random.normal(xkey, (2, 1, 48, 48), jnp.float32)

    out = jax.block_until_ready(cnn_emotion_forward(x, kparams))
    ref = jax.block_until_ready(reference_forward(x, tparams))

    assert out.shape == (2, 7)
    assert bool(jnp.all(jnp.isfinite(out)))
    err = float(jnp.max(jnp.abs(out - ref)))
    assert err < 5e-2, f"mismatch vs pure-JAX reference: max abs err {err}"
    print("KERNEL_OK")
</pallas_src>

<mosaic_0001>
module attributes {stable_mosaic.version = 11 : i64} {
  func.func @_conv_stage_kernel(%arg0: i32, %arg1: memref<1x2304x9xf32, #tpu.memory_space<vmem>>, %arg2: memref<9x32xf32, #tpu.memory_space<vmem>>, %arg3: memref<1x32xf32, #tpu.memory_space<vmem>>, %arg4: memref<288x64xf32, #tpu.memory_space<vmem>>, %arg5: memref<1x64xf32, #tpu.memory_space<vmem>>, %arg6: memref<1x12x12x64xbf16, #tpu.memory_space<vmem>>, %arg7: memref<26x26x32xf32, #tpu.memory_space<vmem>>, %arg8: memref<24x24x64xf32, #tpu.memory_space<vmem>>) attributes {dimension_semantics = [#tpu.dimension_semantics<parallel>], iteration_bounds = array<i64: 2>, scalar_prefetch = 0 : i64, scratch_operands = 2 : i64, tpu.core_type = #tpu.core_type<tc>, window_params = [{transform_indices = @transform_0, window_bounds = array<i64: 1, 2304, 9>}, {pipeline_mode = #tpu.pipeline_mode<synchronous>, transform_indices = @transform_1, window_bounds = array<i64: 9, 32>}, {pipeline_mode = #tpu.pipeline_mode<synchronous>, transform_indices = @transform_2, window_bounds = array<i64: 1, 32>}, {pipeline_mode = #tpu.pipeline_mode<synchronous>, transform_indices = @transform_3, window_bounds = array<i64: 288, 64>}, {pipeline_mode = #tpu.pipeline_mode<synchronous>, transform_indices = @transform_4, window_bounds = array<i64: 1, 64>}, {transform_indices = @transform_5, window_bounds = array<i64: 1, 12, 12, 64>}]} {
    %c0 = arith.constant 0 : index
    %c0_0 = arith.constant 0 : index
    %c0_1 = arith.constant 0 : index
    %0 = vector.load %arg1[%c0, %c0_0, %c0_1] : memref<1x2304x9xf32, #tpu.memory_space<vmem>>, vector<1x2304x9xf32>
    %1 = vector.shape_cast %0 : vector<1x2304x9xf32> to vector<2304x9xf32>
    %c0_2 = arith.constant 0 : index
    %c0_3 = arith.constant 0 : index
    %2 = vector.load %arg2[%c0_2, %c0_3] : memref<9x32xf32, #tpu.memory_space<vmem>>, vector<9x32xf32>
    %cst = arith.constant dense<0.000000e+00> : vector<2304x32xf32>
    %3 = tpu.matmul %1, %2, %cst {dimension_numbers = #tpu.dot_dimension_numbers<[1], [0], [0], [1], [0, 0, 1, 1], [], []>} : vector<2304x9xf32>, vector<9x32xf32>, vector<2304x32xf32> -> vector<2304x32xf32>
    %c0_4 = arith.constant 0 : index
    %c0_5 = arith.constant 0 : index
    %4 = vector.load %arg3[%c0_4, %c0_5] : memref<1x32xf32, #tpu.memory_space<vmem>>, vector<1x32xf32>
    %5 = vector.broadcast %4 : vector<1x32xf32> to vector<2304x32xf32>
    %6 = arith.addf %3, %5 : vector<2304x32xf32>
    %cst_6 = arith.constant 0.000000e+00 : f32
    %7 = vector.broadcast %cst_6 : f32 to vector<2304x32xf32>
    %8 = arith.maximumf %6, %7 : vector<2304x32xf32>
    %9 = vector.shape_cast %8 : vector<2304x32xf32> to vector<24x2x2x24x32xf32>
    %10 = vector.extract_strided_slice %9 {offsets = [0, 0, 0, 0, 0], sizes = [24, 1, 1, 24, 32], strides = [1, 1, 1, 1, 1]} : vector<24x2x2x24x32xf32> to vector<24x1x1x24x32xf32>
    %11 = vector.shape_cast %10 : vector<24x1x1x24x32xf32> to vector<24x24x32xf32>
    %12 = vector.extract_strided_slice %9 {offsets = [0, 0, 1, 0, 0], sizes = [24, 1, 1, 24, 32], strides = [1, 1, 1, 1, 1]} : vector<24x2x2x24x32xf32> to vector<24x1x1x24x32xf32>
    %13 = vector.shape_cast %12 : vector<24x1x1x24x32xf32> to vector<24x24x32xf32>
    %14 = arith.maximumf %11, %13 : vector<24x24x32xf32>
    %15 = vector.extract_strided_slice %9 {offsets = [0, 1, 0, 0, 0], sizes = [24, 1, 1, 24, 32], strides = [1, 1, 1, 1, 1]} : vector<24x2x2x24x32xf32> to vector<24x1x1x24x32xf32>
    %16 = vector.shape_cast %15 : vector<24x1x1x24x32xf32> to vector<24x24x32xf32>
    %17 = vector.extract_strided_slice %9 {offsets = [0, 1, 1, 0, 0], sizes = [24, 1, 1, 24, 32], strides = [1, 1, 1, 1, 1]} : vector<24x2x2x24x32xf32> to vector<24x1x1x24x32xf32>
    %18 = vector.shape_cast %17 : vector<24x1x1x24x32xf32> to vector<24x24x32xf32>
    %19 = arith.maximumf %16, %18 : vector<24x24x32xf32>
    %20 = arith.maximumf %14, %19 : vector<24x24x32xf32>
    %cst_7 = arith.constant 0.000000e+00 : f32
    %21 = vector.broadcast %cst_7 : f32 to vector<26x26x32xf32>
    %c0_8 = arith.constant 0 : index
    %c0_9 = arith.constant 0 : index
    %c0_10 = arith.constant 0 : index
    %22 = vector.load %arg7[%c0_8, %c0_9, %c0_10] : memref<26x26x32xf32, #tpu.memory_space<vmem>>, vector<26x26x32xf32>
    tpu.vector_store %arg7[%c0_8, %c0_9, %c0_10], %21 {strides = array<i32>} : memref<26x26x32xf32, #tpu.memory_space<vmem>>, vector<26x26x32xf32>,
    %c1 = arith.constant 1 : index
    %c1_11 = arith.constant 1 : index
    %c0_12 = arith.constant 0 : index
    %23 = vector.load %arg7[%c1, %c1_11, %c0_12] : memref<26x26x32xf32, #tpu.memory_space<vmem>>, vector<24x24x32xf32>
    tpu.vector_store %arg7[%c1, %c1_11, %c0_12], %20 {strides = array<i32>} : memref<26x26x32xf32, #tpu.memory_space<vmem>>, vector<24x24x32xf32>,
    %c0_13 = arith.constant 0 : index
    %c0_14 = arith.constant 0 : index
    %c0_15 = arith.constant 0 : index
    %24 = vector.load %arg7[%c0_13, %c0_14, %c0_15] : memref<26x26x32xf32, #tpu.memory_space<vmem>>, vector<24x24x32xf32>
    %25 = vector.shape_cast %24 : vector<24x24x32xf32> to vector<576x32xf32>
    %c0_16 = arith.constant 0 : index
    %c1_17 = arith.constant 1 : index
    %c0_18 = arith.constant 0 : index
    %26 = vector.load %arg7[%c0_16, %c1_17, %c0_18] : memref<26x26x32xf32, #tpu.memory_space<vmem>>, vector<24x24x32xf32>
    %27 = vector.shape_cast %26 : vector<24x24x32xf32> to vector<576x32xf32>
    %c0_19 = arith.constant 0 : index
    %c2 = arith.constant 2 : index
    %c0_20 = arith.constant 0 : index
    %28 = vector.load %arg7[%c0_19, %c2, %c0_20] : memref<26x26x32xf32, #tpu.memory_space<vmem>>, vector<24x24x32xf32>
    %29 = vector.shape_cast %28 : vector<24x24x32xf32> to vector<576x32xf32>
    %c1_21 = arith.constant 1 : index
    %c0_22 = arith.constant 0 : index
    %c0_23 = arith.constant 0 : index
    %30 = vector.load %arg7[%c1_21, %c0_22, %c0_23] : memref<26x26x32xf32, #tpu.memory_space<vmem>>, vector<24x24x32xf32>
    %31 = vector.shape_cast %30 : vector<24x24x32xf32> to vector<576x32xf32>
    %c1_24 = arith.constant 1 : index
    %c1_25 = arith.constant 1 : index
    %c0_26 = arith.constant 0 : index
    %32 = vector.load %arg7[%c1_24, %c1_25, %c0_26] : memref<26x26x32xf32, #tpu.memory_space<vmem>>, vector<24x24x32xf32>
    %33 = vector.shape_cast %32 : vector<24x24x32xf32> to vector<576x32xf32>
    %c1_27 = arith.constant 1 : index
    %c2_28 = arith.constant 2 : index
    %c0_29 = arith.constant 0 : index
    %34 = vector.load %arg7[%c1_27, %c2_28, %c0_29] : memref<26x26x32xf32, #tpu.memory_space<vmem>>, vector<24x24x32xf32>
    %35 = vector.shape_cast %34 : vector<24x24x32xf32> to vector<576x32xf32>
    %c2_30 = arith.constant 2 : index
    %c0_31 = arith.constant 0 : index
    %c0_32 = arith.constant 0 : index
    %36 = vector.load %arg7[%c2_30, %c0_31, %c0_32] : memref<26x26x32xf32, #tpu.memory_space<vmem>>, vector<24x24x32xf32>
    %37 = vector.shape_cast %36 : vector<24x24x32xf32> to vector<576x32xf32>
    %c2_33 = arith.constant 2 : index
    %c1_34 = arith.constant 1 : index
    %c0_35 = arith.constant 0 : index
    %38 = vector.load %arg7[%c2_33, %c1_34, %c0_35] : memref<26x26x32xf32, #tpu.memory_space<vmem>>, vector<24x24x32xf32>
    %39 = vector.shape_cast %38 : vector<24x24x32xf32> to vector<576x32xf32>
    %c2_36 = arith.constant 2 : index
    %c2_37 = arith.constant 2 : index
    %c0_38 = arith.constant 0 : index
    %40 = vector.load %arg7[%c2_36, %c2_37, %c0_38] : memref<26x26x32xf32, #tpu.memory_space<vmem>>, vector<24x24x32xf32>
    %41 = vector.shape_cast %40 : vector<24x24x32xf32> to vector<576x32xf32>
    %42 = tpu.concatenate %25, %27, %29, %31, %33, %35, %37, %39, %41 in 1 : vector<576x32xf32>, vector<576x32xf32>, vector<576x32xf32>, vector<576x32xf32>, vector<576x32xf32>, vector<576x32xf32>, vector<576x32xf32>, vector<576x32xf32>, vector<576x32xf32> -> vector<576x288xf32>
    %c0_39 = arith.constant 0 : index
    %c0_40 = arith.constant 0 : index
    %43 = vector.load %arg4[%c0_39, %c0_40] : memref<288x64xf32, #tpu.memory_space<vmem>>, vector<288x64xf32>
    %cst_41 = arith.constant dense<0.000000e+00> : vector<576x64xf32>
    %44 = tpu.matmul %42, %43, %cst_41 {dimension_numbers = #tpu.dot_dimension_numbers<[1], [0], [0], [1], [0, 0, 1, 1], [], []>} : vector<576x288xf32>, vector<288x64xf32>, vector<576x64xf32> -> vector<576x64xf32>
    %c0_42 = arith.constant 0 : index
    %c0_43 = arith.constant 0 : index
    %45 = vector.load %arg5[%c0_42, %c0_43] : memref<1x64xf32, #tpu.memory_space<vmem>>, vector<1x64xf32>
    %46 = vector.broadcast %45 : vector<1x64xf32> to vector<576x64xf32>
    %47 = arith.addf %44, %46 : vector<576x64xf32>
    %cst_44 = arith.constant 0.000000e+00 : f32
    %48 = vector.broadcast %cst_44 : f32 to vector<576x64xf32>
    %49 = arith.maximumf %47, %48 : vector<576x64xf32>
    %50 = vector.shape_cast %49 : vector<576x64xf32> to vector<24x24x64xf32>
    %c0_45 = arith.constant 0 : index
    %c0_46 = arith.constant 0 : index
    %c0_47 = arith.constant 0 : index
    %51 = vector.load %arg8[%c0_45, %c0_46, %c0_47] : memref<24x24x64xf32, #tpu.memory_space<vmem>>, vector<24x24x64xf32>
    tpu.vector_store %arg8[%c0_45, %c0_46, %c0_47], %50 {strides = array<i32>} : memref<24x24x64xf32, #tpu.memory_space<vmem>>, vector<24x24x64xf32>,
    %c0_48 = arith.constant 0 : index
    %c0_49 = arith.constant 0 : index
    %c0_50 = arith.constant 0 : index
    %52 = tpu.strided_load %arg8[%c0_48, %c0_49, %c0_50] {strides = array<i32: 1, 2, 1>} : memref<24x24x64xf32, #tpu.memory_space<vmem>>, vector<24x12x64xf32>
    %c0_51 = arith.constant 0 : index
    %c1_52 = arith.constant 1 : index
    %c0_53 = arith.constant 0 : index
    %53 = tpu.strided_load %arg8[%c0_51, %c1_52, %c0_53] {strides = array<i32: 1, 2, 1>} : memref<24x24x64xf32, #tpu.memory_space<vmem>>, vector<24x12x64xf32>
    %54 = arith.maximumf %52, %53 : vector<24x12x64xf32>
    %55 = vector.shape_cast %54 : vector<24x12x64xf32> to vector<12x2x12x64xf32>
    %56 = vector.extract_strided_slice %55 {offsets = [0, 0, 0, 0], sizes = [12, 1, 12, 64], strides = [1, 1, 1, 1]} : vector<12x2x12x64xf32> to vector<12x1x12x64xf32>
    %57 = vector.shape_cast %56 : vector<12x1x12x64xf32> to vector<12x12x64xf32>
    %58 = vector.extract_strided_slice %55 {offsets = [0, 1, 0, 0], sizes = [12, 1, 12, 64], strides = [1, 1, 1, 1]} : vector<12x2x12x64xf32> to vector<12x1x12x64xf32>
    %59 = vector.shape_cast %58 : vector<12x1x12x64xf32> to vector<12x12x64xf32>
    %60 = arith.maximumf %57, %59 : vector<12x12x64xf32>
    %61 = vector.shape_cast %60 : vector<12x12x64xf32> to vector<1x12x12x64xf32>
    %62 = arith.truncf %61 : vector<1x12x12x64xf32> to vector<1x12x12x64xbf16>
    %c0_54 = arith.constant 0 : index
    %c0_55 = arith.constant 0 : index
    %c0_56 = arith.constant 0 : index
    %c0_57 = arith.constant 0 : index
    %63 = vector.load %arg6[%c0_54, %c0_55, %c0_56, %c0_57] : memref<1x12x12x64xbf16, #tpu.memory_space<vmem>>, vector<1x12x12x64xbf16>
    tpu.vector_store %arg6[%c0_54, %c0_55, %c0_56, %c0_57], %62 {strides = array<i32>} : memref<1x12x12x64xbf16, #tpu.memory_space<vmem>>, vector<1x12x12x64xbf16>,
    return
  }
  func.func @transform_0(%arg0: i32) -> (i32, i32, i32) {
    %c0_i32 = arith.constant 0 : i32
    %c0_i32_0 = arith.constant 0 : i32
    %c0_i32_1 = arith.constant 0 : i32
    return %arg0, %c0_i32, %c0_i32_0 : i32, i32, i32
  }
  func.func @transform_1(%arg0: i32) -> (i32, i32) {
    %c0_i32 = arith.constant 0 : i32
    %c0_i32_0 = arith.constant 0 : i32
    %c0_i32_1 = arith.constant 0 : i32
    return %c0_i32, %c0_i32_0 : i32, i32
  }
  func.func @transform_2(%arg0: i32) -> (i32, i32) {
    %c0_i32 = arith.constant 0 : i32
    %c0_i32_0 = arith.constant 0 : i32
    %c0_i32_1 = arith.constant 0 : i32
    return %c0_i32, %c0_i32_0 : i32, i32
  }
  func.func @transform_3(%arg0: i32) -> (i32, i32) {
    %c0_i32 = arith.constant 0 : i32
    %c0_i32_0 = arith.constant 0 : i32
    %c0_i32_1 = arith.constant 0 : i32
    return %c0_i32, %c0_i32_0 : i32, i32
  }
  func.func @transform_4(%arg0: i32) -> (i32, i32) {
    %c0_i32 = arith.constant 0 : i32
    %c0_i32_0 = arith.constant 0 : i32
    %c0_i32_1 = arith.constant 0 : i32
    return %c0_i32, %c0_i32_0 : i32, i32
  }
  func.func @transform_5(%arg0: i32) -> (i32, i32, i32, i32) {
    %c0_i32 = arith.constant 0 : i32
    %c0_i32_0 = arith.constant 0 : i32
    %c0_i32_1 = arith.constant 0 : i32
    %c0_i32_2 = arith.constant 0 : i32
    return %arg0, %c0_i32, %c0_i32_0, %c0_i32_1 : i32, i32, i32, i32
  }
}

module attributes {stable_mosaic.version = 11 : i64} {
  func.func @_fc_kernel(%arg0: i32, %arg1: memref<2x9216xbf16, #tpu.memory_space<vmem>>, %arg2: memref<9216x128xbf16, #tpu.memory_space<vmem>>, %arg3: memref<1x128xf32, #tpu.memory_space<vmem>>, %arg4: memref<128x7xf32, #tpu.memory_space<vmem>>, %arg5: memref<1x7xf32, #tpu.memory_space<vmem>>, %arg6: memref<2x7xf32, #tpu.memory_space<vmem>>) attributes {dimension_semantics = [#tpu.dimension_semantics<arbitrary>], iteration_bounds = array<i64: 1>, scalar_prefetch = 0 : i64, scratch_operands = 0 : i64, tpu.core_type = #tpu.core_type<tc>, window_params = [{pipeline_mode = #tpu.pipeline_mode<synchronous>, transform_indices = @transform_0, window_bounds = array<i64: 2, 9216>}, {pipeline_mode = #tpu.pipeline_mode<synchronous>, transform_indices = @transform_1, window_bounds = array<i64: 9216, 128>}, {pipeline_mode = #tpu.pipeline_mode<synchronous>, transform_indices = @transform_2, window_bounds = array<i64: 1, 128>}, {pipeline_mode = #tpu.pipeline_mode<synchronous>, transform_indices = @transform_3, window_bounds = array<i64: 128, 7>}, {pipeline_mode = #tpu.pipeline_mode<synchronous>, transform_indices = @transform_4, window_bounds = array<i64: 1, 7>}, {pipeline_mode = #tpu.pipeline_mode<synchronous>, transform_indices = @transform_5, window_bounds = array<i64: 2, 7>}]} {
    %c0 = arith.constant 0 : index
    %c0_0 = arith.constant 0 : index
    %0 = vector.load %arg1[%c0, %c0_0] : memref<2x9216xbf16, #tpu.memory_space<vmem>>, vector<2x9216xbf16>
    %c0_1 = arith.constant 0 : index
    %c0_2 = arith.constant 0 : index
    %1 = vector.load %arg2[%c0_1, %c0_2] : memref<9216x128xbf16, #tpu.memory_space<vmem>>, vector<9216x128xbf16>
    %cst = arith.constant dense<0.000000e+00> : vector<2x128xf32>
    %2 = tpu.matmul %0, %1, %cst {dimension_numbers = #tpu.dot_dimension_numbers<[1], [0], [0], [1], [0, 0, 1, 1], [], []>} : vector<2x9216xbf16>, vector<9216x128xbf16>, vector<2x128xf32> -> vector<2x128xf32>
    %c0_3 = arith.constant 0 : index
    %c0_4 = arith.constant 0 : index
    %3 = vector.load %arg3[%c0_3, %c0_4] : memref<1x128xf32, #tpu.memory_space<vmem>>, vector<1x128xf32>
    %4 = vector.broadcast %3 : vector<1x128xf32> to vector<2x128xf32>
    %5 = arith.addf %2, %4 : vector<2x128xf32>
    %cst_5 = arith.constant 0.000000e+00 : f32
    %6 = vector.broadcast %cst_5 : f32 to vector<2x128xf32>
    %7 = arith.maximumf %5, %6 : vector<2x128xf32>
    %c0_6 = arith.constant 0 : index
    %c0_7 = arith.constant 0 : index
    %8 = vector.load %arg4[%c0_6, %c0_7] : memref<128x7xf32, #tpu.memory_space<vmem>>, vector<128x7xf32>
    %cst_8 = arith.constant dense<0.000000e+00> : vector<2x7xf32>
    %9 = tpu.matmul %7, %8, %cst_8 {dimension_numbers = #tpu.dot_dimension_numbers<[1], [0], [0], [1], [0, 0, 1, 1], [], []>} : vector<2x128xf32>, vector<128x7xf32>, vector<2x7xf32> -> vector<2x7xf32>
    %c0_9 = arith.constant 0 : index
    %c0_10 = arith.constant 0 : index
    %10 = vector.load %arg5[%c0_9, %c0_10] : memref<1x7xf32, #tpu.memory_space<vmem>>, vector<1x7xf32>
    %11 = vector.broadcast %10 : vector<1x7xf32> to vector<2x7xf32>
    %12 = arith.addf %9, %11 : vector<2x7xf32>
    %c0_11 = arith.constant 0 : index
    %c0_12 = arith.constant 0 : index
    %13 = vector.load %arg6[%c0_11, %c0_12] : memref<2x7xf32, #tpu.memory_space<vmem>>, vector<2x7xf32>
    tpu.vector_store %arg6[%c0_11, %c0_12], %12 {strides = array<i32>} : memref<2x7xf32, #tpu.memory_space<vmem>>, vector<2x7xf32>,
    return
  }
  func.func @transform_0(%arg0: i32) -> (i32, i32) {
    %c0_i32 = arith.constant 0 : i32
    %c0_i32_0 = arith.constant 0 : i32
    %c0_i32_1 = arith.constant 0 : i32
    return %c0_i32, %c0_i32_0 : i32, i32
  }
  func.func @transform_1(%arg0: i32) -> (i32, i32) {
    %c0_i32 = arith.constant 0 : i32
    %c0_i32_0 = arith.constant 0 : i32
    %c0_i32_1 = arith.constant 0 : i32
    return %c0_i32, %c0_i32_0 : i32, i32
  }
  func.func @transform_2(%arg0: i32) -> (i32, i32) {
    %c0_i32 = arith.constant 0 : i32
    %c0_i32_0 = arith.constant 0 : i32
    %c0_i32_1 = arith.constant 0 : i32
    return %c0_i32, %c0_i32_0 : i32, i32
  }
  func.func @transform_3(%arg0: i32) -> (i32, i32) {
    %c0_i32 = arith.constant 0 : i32
    %c0_i32_0 = arith.constant 0 : i32
    %c0_i32_1 = arith.constant 0 : i32
    return %c0_i32, %c0_i32_0 : i32, i32
  }
  func.func @transform_4(%arg0: i32) -> (i32, i32) {
    %c0_i32 = arith.constant 0 : i32
    %c0_i32_0 = arith.constant 0 : i32
    %c0_i32_1 = arith.constant 0 : i32
    return %c0_i32, %c0_i32_0 : i32, i32
  }
  func.func @transform_5(%arg0: i32) -> (i32, i32) {
    %c0_i32 = arith.constant 0 : i32
    %c0_i32_0 = arith.constant 0 : i32
    %c0_i32_1 = arith.constant 0 : i32
    return %c0_i32, %c0_i32_0 : i32, i32
  }
}

</mosaic_0001>

<bundles_post_ra>
// kernel: cnn_emotion_forward.3
= control target key start
LH: loop header
LB: loop body
LE: loop exit
PB: predicated region body
PF: predicated region fallthrough
CT: control target
= control target key end

     0   :  { %s10569_s0 = inlined_call_operand.vmem [shape: bf16[2,9216], index: 0, kind: input, shape index: {}]   ;;  %s10570_s1 = inlined_call_operand.vmem [shape: bf16[9216,128], index: 1, kind: input, shape index: {}]   ;;  %s10571_s2 = inlined_call_operand.vmem [shape: f32[1,128], index: 2, kind: input, shape index: {}]   ;;  %s10572_s3 = inlined_call_operand.vmem [shape: f32[128,7], index: 3, kind: input, shape index: {}]   ;;  %s10573_s4 = inlined_call_operand.vmem [shape: f32[1,7], index: 4, kind: input, shape index: {}]   ;;  %s10574_s5 = inlined_call_operand.hbm [shape: f32[2,7], index: 5, kind: output, shape index: {}]  }
   0x1   :  { %v8110_v0 = vld [vmem:[%s10570_s1 + $0x38] sm:$0xff]  ;;  %v8109_v4 = vld [vmem:[%s10570_s1 + $0x30] sm:$0xff]  ;;  %v8108_v8 = vld [vmem:[%s10570_s1 + $0x28] sm:$0xff] }
   0x2   :  { %v8118_v1 = vld [vmem:[%s10570_s1 + $0x78] sm:$0xff]  ;;  %4804 = vmatpush.bf16.msra.mxu0 %v8110_v0  ;;  %v8117_v5 = vld [vmem:[%s10570_s1 + $0x70] sm:$0xff]  ;;  %v8116_v9 = vld [vmem:[%s10570_s1 + $0x68] sm:$0xff] }
   0x3   :  { %v8126_v2 = vld [vmem:[%s10570_s1 + $0xb8] sm:$0xff]  ;;  %4817 = vmatpush.bf16.msra.mxu1 %v8118_v1  ;;  %v8125_v6 = vld [vmem:[%s10570_s1 + $0xb0] sm:$0xff]  ;;  %v8124_v10 = vld [vmem:[%s10570_s1 + $0xa8] sm:$0xff] }
   0x4   :  { %v8134_v3 = vld [vmem:[%s10570_s1 + $0xf8] sm:$0xff]  ;;  %4830 = vmatpush.bf16.msra.mxu2 %v8126_v2  ;;  %v8133_v7 = vld [vmem:[%s10570_s1 + $0xf0] sm:$0xff]  ;;  %v8132_v11 = vld [vmem:[%s10570_s1 + $0xe8] sm:$0xff] }
   0x5   :  { %4843 = vmatpush.bf16.msra.mxu3 %v8134_v3  ;;  %v8107_v12 = vld [vmem:[%s10570_s1 + $0x20] sm:$0xff]  ;;  %v8106_v16 = vld [vmem:[%s10570_s1 + $0x18] sm:$0xff]  ;;  %v8105_v20 = vld [vmem:[%s10570_s1 + $0x10] sm:$0xff] }
   0x6   :  { %4805 = vmatpush.bf16.msra.mxu0 %v8109_v4  ;;  %v8115_v13 = vld [vmem:[%s10570_s1 + $0x60] sm:$0xff]  ;;  %v8114_v17 = vld [vmem:[%s10570_s1 + $0x58] sm:$0xff]  ;;  %v8113_v21 = vld [vmem:[%s10570_s1 + $0x50] sm:$0xff] }
   0x7   :  { %4818 = vmatpush.bf16.msra.mxu1 %v8117_v5  ;;  %v8123_v14 = vld [vmem:[%s10570_s1 + $0xa0] sm:$0xff]  ;;  %v8122_v18 = vld [vmem:[%s10570_s1 + $0x98] sm:$0xff]  ;;  %v8121_v23 = vld [vmem:[%s10570_s1 + $0x90] sm:$0xff] }
   0x8   :  { %4831 = vmatpush.bf16.msra.mxu2 %v8125_v6  ;;  %v8131_v15 = vld [vmem:[%s10570_s1 + $0xe0] sm:$0xff]  ;;  %v8130_v19 = vld [vmem:[%s10570_s1 + $0xd8] sm:$0xff]  ;;  %v8129_v24 = vld [vmem:[%s10570_s1 + $0xd0] sm:$0xff] }
   0x9   :  { %4844 = vmatpush.bf16.msra.mxu3 %v8133_v7  ;;  %v21_v22 = vld [vmem:[%s10569_s0] sm:$0xff] }
   0xa   :  { %4806 = vmatpush.bf16.msra.mxu0 %v8108_v8  ;;  %1187 = vst [vmem:[#allocation1] ss:$9 sm:$0xff] %v21_v22 }
   0xb   :  { %4819 = vmatpush.bf16.msra.mxu1 %v8116_v9 }
   0xc   :  { %4832 = vmatpush.bf16.msra.mxu2 %v8124_v10 }
   0xd   :  { %4845 = vmatpush.bf16.msra.mxu3 %v8132_v11 }
   0xe   :  { %4807 = vmatpush.bf16.msra.mxu0 %v8107_v12 }
   0xf   :  { %4820 = vmatpush.bf16.msra.mxu1 %v8115_v13 }
  0x10   :  { %4833 = vmatpush.bf16.msra.mxu2 %v8123_v14 }
  0x11   :  { %4846 = vmatpush.bf16.msra.mxu3 %v8131_v15 }
  0x12   :  { %4808 = vmatpush.bf16.msra.mxu0 %v8106_v16 }
  0x13   :  { %4821 = vmatpush.bf16.msra.mxu1 %v8114_v17 }
  0x14   :  { %4834 = vmatpush.bf16.msra.mxu2 %v8122_v18 }
  0x15   :  { %4847 = vmatpush.bf16.msra.mxu3 %v8130_v19 }
  0x16   :  { %10 = vsyncpa [#allocation3], 0  ;;  %4809 = vmatpush.bf16.msra.mxu0 %v8105_v20  ;;  %v8104_v25 = vld [vmem:[%s10570_s1 + $0x8] sm:$0xff]  ;;  %v8103_v29 = vld [vmem:[%s10570_s1] sm:$0xff]  ;;  %s8708_s7 = smov [#allocation2]   ;;  %s5790_s10 = sshll.u32 %s10574_s5, 4  ;;  %s5791_s10 = int_to_ptr.hbm [resolvable:$true] %s5790_s10 }
  0x17   :  { %4822 = vmatpush.bf16.msra.mxu1 %v8113_v21  ;;  %v8112_v26 = vld [vmem:[%s10570_s1 + $0x48] sm:$0xff]  ;;  %v8111_v30 = vld [vmem:[%s10570_s1 + $0x40] sm:$0xff]  ;;  %v8142_v33 = vld [vmem:[%s10570_s1 + $0x138] sm:$0xff]  ;;  %s5788_s8 = sshll.u32 %s8708_s7, 4  ;;  %vm5781_vm0 = vcmask 50176   ;;  %s5789_s8 = int_to_ptr.vmem [resolvable:$true] %s5788_s8 }
  0x18   :  { %4835 = vmatpush.bf16.msra.mxu2 %v8121_v23  ;;  %v8120_v27 = vld [vmem:[%s10570_s1 + $0x88] sm:$0xff]  ;;  %v8119_v31 = vld [vmem:[%s10570_s1 + $0x80] sm:$0xff]  ;;  %v8150_v34 = vld [vmem:[%s10570_s1 + $0x178] sm:$0xff] }
  0x19   :  { %4848 = vmatpush.bf16.msra.mxu3 %v8129_v24  ;;  %v8128_v28 = vld [vmem:[%s10570_s1 + $0xc8] sm:$0xff]  ;;  %v8127_v32 = vld [vmem:[%s10570_s1 + $0xc0] sm:$0xff]  ;;  %v8158_v35 = vld [vmem:[%s10570_s1 + $0x1b8] sm:$0xff] }
  0x1a   :  { %4810 = vmatpush.bf16.msra.mxu0 %v8104_v25  ;;  %v8166_v36 = vld [vmem:[%s10570_s1 + $0x1f8] sm:$0xff]  ;;  %v8141_v37 = vld [vmem:[%s10570_s1 + $0x130] sm:$0xff]  ;;  %v1188_v39 = vld [vmem:[#allocation1] sm:$0xff] }
  0x1b   :  { %4823 = vmatpush.bf16.msra.mxu1 %v8112_v26  ;;  %v1190_v38 = vld [vmem:[#allocation1 + $0x12] sm:$0xff]  ;;  %v1191_v41 = vld [vmem:[#allocation1 + $0x1b] sm:$0xff]  ;;  %v1189_v42 = vld [vmem:[#allocation1 + $0x9] sm:$0xff] }
  0x1c   :  { %4836 = vmatpush.bf16.msra.mxu2 %v8120_v27  ;;  %v8149_v40 = vld [vmem:[%s10570_s1 + $0x170] sm:$0xff]  ;;  %v8140_v45 = vld [vmem:[%s10570_s1 + $0x128] sm:$0xff]  ;;  %v8139_v49 = vld [vmem:[%s10570_s1 + $0x120] sm:$0xff] }
  0x1d   :  { %4849 = vmatpush.bf16.msra.mxu3 %v8128_v28  ;;  %v8157_v43 = vld [vmem:[%s10570_s1 + $0x1b0] sm:$0xff]  ;;  %v8148_v46 = vld [vmem:[%s10570_s1 + $0x168] sm:$0xff]  ;;  %v8147_v50 = vld [vmem:[%s10570_s1 + $0x160] sm:$0xff] }
  0x1e   :  { %4811 = vmatpush.bf16.msra.mxu0 %v8103_v29  ;;  %v8165_v44 = vld [vmem:[%s10570_s1 + $0x1f0] sm:$0xff]  ;;  %v8156_v47 = vld [vmem:[%s10570_s1 + $0x1a8] sm:$0xff]  ;;  %v1195_v54 = vld [vmem:[#allocation1 + $0x3f] sm:$0xff] }
  0x1f   :  { %4824 = vmatpush.bf16.msra.mxu1 %v8111_v30  ;;  %v8164_v48 = vld [vmem:[%s10570_s1 + $0x1e8] sm:$0xff]  ;;  %v1194_v51 = vld [vmem:[#allocation1 + $0x36] sm:$0xff]  ;;  %v8155_v56 = vld [vmem:[%s10570_s1 + $0x1a0] sm:$0xff] }
  0x20   :  { %4837 = vmatpush.bf16.msra.mxu2 %v8119_v31  ;;  %v22_v52 = vld [vmem:[%s10569_s0 + $0x8] sm:$0xff]  ;;  %v8163_v57 = vld [vmem:[%s10570_s1 + $0x1e0] sm:$0xff]  ;;  %v8138_v58 = vld [vmem:[%s10570_s1 + $0x118] sm:$0xff] }
  0x21   :  { %4850 = vmatpush.bf16.msra.mxu3 %v8127_v32  ;;  %4812 = vmatmul.bf16.vlgmr.msra.gmra.mxu0 %v1188_v39  ;;  %v1192_v53 = vld [vmem:[#allocation1 + $0x24] sm:$0xff]  ;;  %v1193_v55 = vld [vmem:[#allocation1 + $0x2d] sm:$0xff]  ;;  %v8146_v59 = vld [vmem:[%s10570_s1 + $0x158] sm:$0xff] }
  0x22   :  { %4856 = vmatpush.bf16.msrb.mxu0 %v8142_v33  ;;  %4825 = vmatmul.bf16.vlgmr.msra.gmra.mxu1 %v1189_v42  ;;  %1197 = vst [vmem:[#allocation1] ss:$9 sm:$0xff] %v22_v52  ;;  %v8154_v60 = vld [vmem:[%s10570_s1 + $0x198] sm:$0xff]  ;;  %v8137_v62 = vld [vmem:[%s10570_s1 + $0x110] sm:$0xff]  ;;  %v8136_v2 = vld [vmem:[%s10570_s1 + $0x108] sm:$0xff] }
  0x23   :  { %4869 = vmatpush.bf16.msrb.mxu1 %v8150_v34  ;;  %4838 = vmatmul.bf16.vlgmr.msra.gmra.mxu2 %v1190_v38  ;;  %v8162_v61 = vld [vmem:[%s10570_s1 + $0x1d8] sm:$0xff]  ;;  %v8145_v63 = vld [vmem:[%s10570_s1 + $0x150] sm:$0xff]  ;;  %v8144_v3 = vld [vmem:[%s10570_s1 + $0x148] sm:$0xff] }
  0x24   :  { %4882 = vmatpush.bf16.msrb.mxu2 %v8158_v35  ;;  %4851 = vmatmul.bf16.vlgmr.msra.gmra.mxu3 %v1191_v41  ;;  %v8153_v0 = vld [vmem:[%s10570_s1 + $0x190] sm:$0xff]  ;;  %v8152_v4 = vld [vmem:[%s10570_s1 + $0x188] sm:$0xff]  ;;  %v8135_v6 = vld [vmem:[%s10570_s1 + $0x100] sm:$0xff] }
  0x25   :  { %4895 = vmatpush.bf16.msrb.mxu3 %v8166_v36  ;;  %v8161_v1 = vld [vmem:[%s10570_s1 + $0x1d0] sm:$0xff]  ;;  %v8160_v5 = vld [vmem:[%s10570_s1 + $0x1c8] sm:$0xff]  ;;  %v8143_v7 = vld [vmem:[%s10570_s1 + $0x140] sm:$0xff] }
  0x26   :  { %4857 = vmatpush.bf16.msrb.mxu0 %v8141_v37  ;;  %v8151_v8 = vld [vmem:[%s10570_s1 + $0x180] sm:$0xff]  ;;  %v8174_v10 = vld [vmem:[%s10570_s1 + $0x238] sm:$0xff]  ;;  %v8173_v14 = vld [vmem:[%s10570_s1 + $0x230] sm:$0xff] }
  0x27   :  { %4870 = vmatpush.bf16.msrb.mxu1 %v8149_v40  ;;  %v8159_v9 = vld [vmem:[%s10570_s1 + $0x1c0] sm:$0xff]  ;;  %v8182_v11 = vld [vmem:[%s10570_s1 + $0x278] sm:$0xff]  ;;  %v8181_v15 = vld [vmem:[%s10570_s1 + $0x270] sm:$0xff] }
  0x28   :  { %4883 = vmatpush.bf16.msrb.mxu2 %v8157_v43  ;;  %v8190_v12 = vld [vmem:[%s10570_s1 + $0x2b8] sm:$0xff]  ;;  %v8189_v16 = vld [vmem:[%s10570_s1 + $0x2b0] sm:$0xff]  ;;  %v8172_v18 = vld [vmem:[%s10570_s1 + $0x228] sm:$0xff] }
  0x29   :  { %4896 = vmatpush.bf16.msrb.mxu3 %v8165_v44  ;;  %v8198_v13 = vld [vmem:[%s10570_s1 + $0x2f8] sm:$0xff]  ;;  %v8197_v17 = vld [vmem:[%s10570_s1 + $0x2f0] sm:$0xff]  ;;  %v8180_v19 = vld [vmem:[%s10570_s1 + $0x268] sm:$0xff] }
  0x2a   :  { %4858 = vmatpush.bf16.msrb.mxu0 %v8140_v45  ;;  %v8188_v20 = vld [vmem:[%s10570_s1 + $0x2a8] sm:$0xff]  ;;  %v8171_v22 = vld [vmem:[%s10570_s1 + $0x220] sm:$0xff]  ;;  %v8170_v26 = vld [vmem:[%s10570_s1 + $0x218] sm:$0xff] }
  0x2b   :  { %4871 = vmatpush.bf16.msrb.mxu1 %v8148_v46  ;;  %v8196_v21 = vld [vmem:[%s10570_s1 + $0x2e8] sm:$0xff]  ;;  %v8179_v23 = vld [vmem:[%s10570_s1 + $0x260] sm:$0xff]  ;;  %v8178_v27 = vld [vmem:[%s10570_s1 + $0x258] sm:$0xff] }
  0x2c   :  { %4884 = vmatpush.bf16.msrb.mxu2 %v8156_v47  ;;  %v8187_v24 = vld [vmem:[%s10570_s1 + $0x2a0] sm:$0xff]  ;;  %v8186_v28 = vld [vmem:[%s10570_s1 + $0x298] sm:$0xff]  ;;  %v8169_v30 = vld [vmem:[%s10570_s1 + $0x210] sm:$0xff] }
  0x2d   :  { %4897 = vmatpush.bf16.msrb.mxu3 %v8164_v48  ;;  %v8195_v25 = vld [vmem:[%s10570_s1 + $0x2e0] sm:$0xff]  ;;  %v8194_v29 = vld [vmem:[%s10570_s1 + $0x2d8] sm:$0xff]  ;;  %v8177_v31 = vld [vmem:[%s10570_s1 + $0x250] sm:$0xff] }
  0x2e   :  { %4859 = vmatpush.bf16.msrb.mxu0 %v8139_v49  ;;  %v8185_v32 = vld [vmem:[%s10570_s1 + $0x290] sm:$0xff]  ;;  %v8168_v34 = vld [vmem:[%s10570_s1 + $0x208] sm:$0xff]  ;;  %v8167_v38 = vld [vmem:[%s10570_s1 + $0x200] sm:$0xff] }
  0x2f   :  { %4872 = vmatpush.bf16.msrb.mxu1 %v8147_v50  ;;  %v8193_v33 = vld [vmem:[%s10570_s1 + $0x2d0] sm:$0xff]  ;;  %v8176_v35 = vld [vmem:[%s10570_s1 + $0x248] sm:$0xff]  ;;  %v8175_v39 = vld [vmem:[%s10570_s1 + $0x240] sm:$0xff] }
  0x30   :  { %4885 = vmatpush.bf16.msrb.mxu2 %v8155_v56  ;;  %v8184_v36 = vld [vmem:[%s10570_s1 + $0x288] sm:$0xff]  ;;  %v8183_v40 = vld [vmem:[%s10570_s1 + $0x280] sm:$0xff]  ;;  %v8206_v42 = vld [vmem:[%s10570_s1 + $0x338] sm:$0xff] }
  0x31   :  { %4898 = vmatpush.bf16.msrb.mxu3 %v8163_v57  ;;  %v8192_v37 = vld [vmem:[%s10570_s1 + $0x2c8] sm:$0xff]  ;;  %v8191_v41 = vld [vmem:[%s10570_s1 + $0x2c0] sm:$0xff]  ;;  %v8214_v43 = vld [vmem:[%s10570_s1 + $0x378] sm:$0xff] }
  0x32   :  { %4860 = vmatpush.bf16.msrb.mxu0 %v8138_v58  ;;  %v8222_v44 = vld [vmem:[%s10570_s1 + $0x3b8] sm:$0xff]  ;;  %v1198_v46 = vld [vmem:[#allocation1] sm:$0xff]  ;;  %v1199_v48 = vld [vmem:[#allocation1 + $0x9] sm:$0xff] }
  0x33   :  { %4873 = vmatpush.bf16.msrb.mxu1 %v8146_v59  ;;  %v8230_v45 = vld [vmem:[%s10570_s1 + $0x3f8] sm:$0xff]  ;;  %v8205_v50 = vld [vmem:[%s10570_s1 + $0x330] sm:$0xff]  ;;  %v8220_v56 = vld [vmem:[%s10570_s1 + $0x3a8] sm:$0xff] }
  0x34   :  { %4886 = vmatpush.bf16.msrb.mxu2 %v8154_v60  ;;  %v1200_v47 = vld [vmem:[#allocation1 + $0x12] sm:$0xff]  ;;  %v1201_v49 = vld [vmem:[#allocation1 + $0x1b] sm:$0xff]  ;;  %v8228_v57 = vld [vmem:[%s10570_s1 + $0x3e8] sm:$0xff] }
  0x35   :  { %4899 = vmatpush.bf16.msrb.mxu3 %v8162_v61  ;;  %v8221_v52 = vld [vmem:[%s10570_s1 + $0x3b0] sm:$0xff]  ;;  %v8203_v58 = vld [vmem:[%s10570_s1 + $0x320] sm:$0xff] }
  0x36   :  { %4861 = vmatpush.bf16.msrb.mxu0 %v8137_v62  ;;  %v8211_v59 = vld [vmem:[%s10570_s1 + $0x360] sm:$0xff]  ;;  %v8202_v62 = vld [vmem:[%s10570_s1 + $0x318] sm:$0xff] }
  0x37   :  { %4874 = vmatpush.bf16.msrb.mxu1 %v8145_v63  ;;  %v8219_v60 = vld [vmem:[%s10570_s1 + $0x3a0] sm:$0xff]  ;;  %v8210_v63 = vld [vmem:[%s10570_s1 + $0x358] sm:$0xff] }
  0x38   :  { %4887 = vmatpush.bf16.msrb.mxu2 %v8153_v0  ;;  %v8227_v61 = vld [vmem:[%s10570_s1 + $0x3e0] sm:$0xff]  ;;  %v8218_v0 = vld [vmem:[%s10570_s1 + $0x398] sm:$0xff] }
  0x39   :  { %4900 = vmatpush.bf16.msrb.mxu3 %v8161_v1  ;;  %v8226_v1 = vld [vmem:[%s10570_s1 + $0x3d8] sm:$0xff] }
  0x3a   :  { %4862 = vmatpush.bf16.msrb.mxu0 %v8136_v2  ;;  %v8201_v2 = vld [vmem:[%s10570_s1 + $0x310] sm:$0xff] }
  0x3b   :  { %4875 = vmatpush.bf16.msrb.mxu1 %v8144_v3  ;;  %v8209_v3 = vld [vmem:[%s10570_s1 + $0x350] sm:$0xff] }
  0x3c   :  { %4888 = vmatpush.bf16.msrb.mxu2 %v8152_v4  ;;  %v8217_v4 = vld [vmem:[%s10570_s1 + $0x390] sm:$0xff] }
  0x3d   :  { %4901 = vmatpush.bf16.msrb.mxu3 %v8160_v5  ;;  %v8225_v5 = vld [vmem:[%s10570_s1 + $0x3d0] sm:$0xff] }
  0x3e   :  { %4863 = vmatpush.bf16.msrb.mxu0 %v8135_v6  ;;  %v8200_v6 = vld [vmem:[%s10570_s1 + $0x308] sm:$0xff] }
  0x3f   :  { %4876 = vmatpush.bf16.msrb.mxu1 %v8143_v7  ;;  %v8208_v7 = vld [vmem:[%s10570_s1 + $0x348] sm:$0xff] }
  0x40   :  { %4889 = vmatpush.bf16.msrb.mxu2 %v8151_v8  ;;  %v8216_v8 = vld [vmem:[%s10570_s1 + $0x388] sm:$0xff] }
  0x41   :  { %4902 = vmatpush.bf16.msrb.mxu3 %v8159_v9  ;;  %4864 = vmatmul.bf16.vlgmr.msrb.gmra.mxu0 %v1192_v53  ;;  %v8229_v53 = vld [vmem:[%s10570_s1 + $0x3f0] sm:$0xff]  ;;  %v8224_v9 = vld [vmem:[%s10570_s1 + $0x3c8] sm:$0xff] }
  0x42   :  { %4908 = vmatpush.bf16.msra.mxu0 %v8174_v10  ;;  %4877 = vmatmul.bf16.vlgmr.msrb.gmra.mxu1 %v1193_v55  ;;  %v8212_v55 = vld [vmem:[%s10570_s1 + $0x368] sm:$0xff] }
  0x43   :  { %4921 = vmatpush.bf16.msra.mxu1 %v8182_v11  ;;  %4890 = vmatmul.bf16.vlgmr.msrb.gmra.mxu2 %v1194_v51  ;;  %v8213_v51 = vld [vmem:[%s10570_s1 + $0x370] sm:$0xff]  ;;  %v1202_v10 = vld [vmem:[#allocation1 + $0x24] sm:$0xff] }
  0x44   :  { %4934 = vmatpush.bf16.msra.mxu2 %v8190_v12  ;;  %4903 = vmatmul.bf16.vlgmr.msrb.gmra.mxu3 %v1195_v54  ;;  %v8204_v54 = vld [vmem:[%s10570_s1 + $0x328] sm:$0xff]  ;;  %v1204_v11 = vld [vmem:[#allocation1 + $0x36] sm:$0xff] }
  0x45   :  { %4947 = vmatpush.bf16.msra.mxu3 %v8198_v13  ;;  %v1203_v12 = vld [vmem:[#allocation1 + $0x2d] sm:$0xff]  ;;  %v1205_v13 = vld [vmem:[#allocation1 + $0x3f] sm:$0xff] }
  0x46   :  { %4909 = vmatpush.bf16.msra.mxu0 %v8173_v14  ;;  %v23_v14 = vld [vmem:[%s10569_s0 + $0x10] sm:$0xff] }
  0x47   :  { %4922 = vmatpush.bf16.msra.mxu1 %v8181_v15  ;;  %1207 = vst [vmem:[#allocation1] ss:$9 sm:$0xff] %v23_v14  ;;  %v8199_v15 = vld [vmem:[%s10570_s1 + $0x300] sm:$0xff]  ;;  %v8282_v14 = vld [vmem:[%s10570_s1 + $0x598] sm:$0xff] }
  0x48   :  { %4935 = vmatpush.bf16.msra.mxu2 %v8189_v16  ;;  %v8207_v16 = vld [vmem:[%s10570_s1 + $0x340] sm:$0xff] }
  0x49   :  { %4948 = vmatpush.bf16.msra.mxu3 %v8197_v17  ;;  %v8215_v17 = vld [vmem:[%s10570_s1 + $0x380] sm:$0xff] }
  0x4a   :  { %4910 = vmatpush.bf16.msra.mxu0 %v8172_v18  ;;  %v8223_v18 = vld [vmem:[%s10570_s1 + $0x3c0] sm:$0xff] }
  0x4b   :  { %4923 = vmatpush.bf16.msra.mxu1 %v8180_v19  ;;  %v8238_v19 = vld [vmem:[%s10570_s1 + $0x438] sm:$0xff] }
  0x4c   :  { %4936 = vmatpush.bf16.msra.mxu2 %v8188_v20  ;;  %v8246_v20 = vld [vmem:[%s10570_s1 + $0x478] sm:$0xff] }
  0x4d   :  { %4949 = vmatpush.bf16.msra.mxu3 %v8196_v21  ;;  %v8254_v21 = vld [vmem:[%s10570_s1 + $0x4b8] sm:$0xff] }
  0x4e   :  { %4911 = vmatpush.bf16.msra.mxu0 %v8171_v22  ;;  %v8262_v22 = vld [vmem:[%s10570_s1 + $0x4f8] sm:$0xff] }
  0x4f   :  { %4924 = vmatpush.bf16.msra.mxu1 %v8179_v23  ;;  %v8237_v23 = vld [vmem:[%s10570_s1 + $0x430] sm:$0xff] }
  0x50   :  { %4937 = vmatpush.bf16.msra.mxu2 %v8187_v24  ;;  %v8245_v24 = vld [vmem:[%s10570_s1 + $0x470] sm:$0xff] }
  0x51   :  { %4950 = vmatpush.bf16.msra.mxu3 %v8195_v25  ;;  %v8253_v25 = vld [vmem:[%s10570_s1 + $0x4b0] sm:$0xff] }
  0x52   :  { %4912 = vmatpush.bf16.msra.mxu0 %v8170_v26  ;;  %v8261_v26 = vld [vmem:[%s10570_s1 + $0x4f0] sm:$0xff] }
  0x53   :  { %4925 = vmatpush.bf16.msra.mxu1 %v8178_v27  ;;  %v8236_v27 = vld [vmem:[%s10570_s1 + $0x428] sm:$0xff] }
  0x54   :  { %4938 = vmatpush.bf16.msra.mxu2 %v8186_v28  ;;  %v8244_v28 = vld [vmem:[%s10570_s1 + $0x468] sm:$0xff] }
  0x55   :  { %4951 = vmatpush.bf16.msra.mxu3 %v8194_v29  ;;  %v8252_v29 = vld [vmem:[%s10570_s1 + $0x4a8] sm:$0xff] }
  0x56   :  { %4913 = vmatpush.bf16.msra.mxu0 %v8169_v30  ;;  %v8260_v30 = vld [vmem:[%s10570_s1 + $0x4e8] sm:$0xff] }
  0x57   :  { %4926 = vmatpush.bf16.msra.mxu1 %v8177_v31  ;;  %v8235_v31 = vld [vmem:[%s10570_s1 + $0x420] sm:$0xff] }
  0x58   :  { %4939 = vmatpush.bf16.msra.mxu2 %v8185_v32  ;;  %v8243_v32 = vld [vmem:[%s10570_s1 + $0x460] sm:$0xff] }
  0x59   :  { %4952 = vmatpush.bf16.msra.mxu3 %v8193_v33  ;;  %v8251_v33 = vld [vmem:[%s10570_s1 + $0x4a0] sm:$0xff] }
  0x5a   :  { %4914 = vmatpush.bf16.msra.mxu0 %v8168_v34  ;;  %v8259_v34 = vld [vmem:[%s10570_s1 + $0x4e0] sm:$0xff] }
  0x5b   :  { %4927 = vmatpush.bf16.msra.mxu1 %v8176_v35  ;;  %v8234_v35 = vld [vmem:[%s10570_s1 + $0x418] sm:$0xff] }
  0x5c   :  { %4940 = vmatpush.bf16.msra.mxu2 %v8184_v36  ;;  %v8242_v36 = vld [vmem:[%s10570_s1 + $0x458] sm:$0xff] }
  0x5d   :  { %4953 = vmatpush.bf16.msra.mxu3 %v8192_v37  ;;  %v8250_v37 = vld [vmem:[%s10570_s1 + $0x498] sm:$0xff] }
  0x5e   :  { %4915 = vmatpush.bf16.msra.mxu0 %v8167_v38  ;;  %v8258_v38 = vld [vmem:[%s10570_s1 + $0x4d8] sm:$0xff] }
  0x5f   :  { %4928 = vmatpush.bf16.msra.mxu1 %v8175_v39  ;;  %v8233_v39 = vld [vmem:[%s10570_s1 + $0x410] sm:$0xff] }
  0x60   :  { %4941 = vmatpush.bf16.msra.mxu2 %v8183_v40  ;;  %v8241_v40 = vld [vmem:[%s10570_s1 + $0x450] sm:$0xff] }
  0x61   :  { %4954 = vmatpush.bf16.msra.mxu3 %v8191_v41  ;;  %4916 = vmatmul.bf16.vlgmr.msra.gmra.mxu0 %v1198_v46  ;;  %v8249_v41 = vld [vmem:[%s10570_s1 + $0x490] sm:$0xff]  ;;  %v8256_v46 = vld [vmem:[%s10570_s1 + $0x4c8] sm:$0xff] }
  0x62   :  { %4960 = vmatpush.bf16.msrb.mxu0 %v8206_v42  ;;  %4929 = vmatmul.bf16.vlgmr.msra.gmra.mxu1 %v1199_v48  ;;  %v8257_v42 = vld [vmem:[%s10570_s1 + $0x4d0] sm:$0xff]  ;;  %v8239_v48 = vld [vmem:[%s10570_s1 + $0x440] sm:$0xff] }
  0x63   :  { %4973 = vmatpush.bf16.msrb.mxu1 %v8214_v43  ;;  %4942 = vmatmul.bf16.vlgmr.msra.gmra.mxu2 %v1200_v47  ;;  %v8232_v43 = vld [vmem:[%s10570_s1 + $0x408] sm:$0xff]  ;;  %v8231_v47 = vld [vmem:[%s10570_s1 + $0x400] sm:$0xff] }
  0x64   :  { %4986 = vmatpush.bf16.msrb.mxu2 %v8222_v44  ;;  %4955 = vmatmul.bf16.vlgmr.msra.gmra.mxu3 %v1201_v49  ;;  %v8240_v44 = vld [vmem:[%s10570_s1 + $0x448] sm:$0xff]  ;;  %v8247_v49 = vld [vmem:[%s10570_s1 + $0x480] sm:$0xff] }
  0x65   :  { %4999 = vmatpush.bf16.msrb.mxu3 %v8230_v45  ;;  %v8248_v45 = vld [vmem:[%s10570_s1 + $0x488] sm:$0xff] }
  0x66   :  { %4961 = vmatpush.bf16.msrb.mxu0 %v8205_v50  ;;  %v8255_v50 = vld [vmem:[%s10570_s1 + $0x4c0] sm:$0xff] }
  0x67   :  { %4974 = vmatpush.bf16.msrb.mxu1 %v8213_v51  ;;  %v8270_v51 = vld [vmem:[%s10570_s1 + $0x538] sm:$0xff] }
  0x68   :  { %4987 = vmatpush.bf16.msrb.mxu2 %v8221_v52  ;;  %v8278_v52 = vld [vmem:[%s10570_s1 + $0x578] sm:$0xff] }
  0x69   :  { %5000 = vmatpush.bf16.msrb.mxu3 %v8229_v53  ;;  %v8286_v53 = vld [vmem:[%s10570_s1 + $0x5b8] sm:$0xff] }
  0x6a   :  { %4962 = vmatpush.bf16.msrb.mxu0 %v8204_v54  ;;  %v8294_v54 = vld [vmem:[%s10570_s1 + $0x5f8] sm:$0xff] }
  0x6b   :  { %4975 = vmatpush.bf16.msrb.mxu1 %v8212_v55  ;;  %v1208_v55 = vld [vmem:[#allocation1] sm:$0xff] }
  0x6c   :  { %4988 = vmatpush.bf16.msrb.mxu2 %v8220_v56  ;;  %v1210_v56 = vld [vmem:[#allocation1 + $0x12] sm:$0xff] }
  0x6d   :  { %5001 = vmatpush.bf16.msrb.mxu3 %v8228_v57  ;;  %v1209_v57 = vld [vmem:[#allocation1 + $0x9] sm:$0xff] }
  0x6e   :  { %4963 = vmatpush.bf16.msrb.mxu0 %v8203_v58  ;;  %v1211_v58 = vld [vmem:[#allocation1 + $0x1b] sm:$0xff] }
  0x6f   :  { %4976 = vmatpush.bf16.msrb.mxu1 %v8211_v59  ;;  %v8269_v59 = vld [vmem:[%s10570_s1 + $0x530] sm:$0xff] }
  0x70   :  { %4989 = vmatpush.bf16.msrb.mxu2 %v8219_v60  ;;  %v8277_v60 = vld [vmem:[%s10570_s1 + $0x570] sm:$0xff] }
  0x71   :  { %5002 = vmatpush.bf16.msrb.mxu3 %v8227_v61  ;;  %v8285_v61 = vld [vmem:[%s10570_s1 + $0x5b0] sm:$0xff] }
  0x72   :  { %4964 = vmatpush.bf16.msrb.mxu0 %v8202_v62  ;;  %v8293_v62 = vld [vmem:[%s10570_s1 + $0x5f0] sm:$0xff] }
  0x73   :  { %4977 = vmatpush.bf16.msrb.mxu1 %v8210_v63  ;;  %v8268_v63 = vld [vmem:[%s10570_s1 + $0x528] sm:$0xff] }
  0x74   :  { %4990 = vmatpush.bf16.msrb.mxu2 %v8218_v0  ;;  %v8276_v0 = vld [vmem:[%s10570_s1 + $0x568] sm:$0xff] }
  0x75   :  { %5003 = vmatpush.bf16.msrb.mxu3 %v8226_v1  ;;  %v8680_v1 = vld [vmem:[%s10571_s2] ss:$0 sm:$0xff] }
  0x76   :  { %4965 = vmatpush.bf16.msrb.mxu0 %v8201_v2  ;;  %v8284_v2 = vld [vmem:[%s10570_s1 + $0x5a8] sm:$0xff] }
  0x77   :  { %4978 = vmatpush.bf16.msrb.mxu1 %v8209_v3  ;;  %v8292_v3 = vld [vmem:[%s10570_s1 + $0x5e8] sm:$0xff] }
  0x78   :  { %4991 = vmatpush.bf16.msrb.mxu2 %v8217_v4 }
  0x79   :  { %5004 = vmatpush.bf16.msrb.mxu3 %v8225_v5  ;;  %v8267_v5 = vld [vmem:[%s10570_s1 + $0x520] sm:$0xff] }
  0x7a   :  { %4966 = vmatpush.bf16.msrb.mxu0 %v8200_v6  ;;  %v8275_v6 = vld [vmem:[%s10570_s1 + $0x560] sm:$0xff] }
  0x7b   :  { %4979 = vmatpush.bf16.msrb.mxu1 %v8208_v7 }
  0x7c   :  { %4992 = vmatpush.bf16.msrb.mxu2 %v8216_v8 }
  0x7d   :  { %5005 = vmatpush.bf16.msrb.mxu3 %v8224_v9  ;;  %v8283_v9 = vld [vmem:[%s10570_s1 + $0x5a0] sm:$0xff] }
  0x7e   :  { %4967 = vmatpush.bf16.msrb.mxu0 %v8199_v15  ;;  %v8290_v15 = vld [vmem:[%s10570_s1 + $0x5d8] sm:$0xff] }
  0x7f   :  { %4980 = vmatpush.bf16.msrb.mxu1 %v8207_v16 }
  0x80   :  { %4993 = vmatpush.bf16.msrb.mxu2 %v8215_v17 }
  0x81   :  { %5006 = vmatpush.bf16.msrb.mxu3 %v8223_v18  ;;  %4968 = vmatmul.bf16.vlgmr.msrb.gmra.mxu0 %v1202_v10  ;;  %v8291_v10 = vld [vmem:[%s10570_s1 + $0x5e0] sm:$0xff] }
  0x82   :  { %5012 = vmatpush.bf16.msra.mxu0 %v8238_v19  ;;  %4981 = vmatmul.bf16.vlgmr.msrb.gmra.mxu1 %v1203_v12  ;;  %v8266_v12 = vld [vmem:[%s10570_s1 + $0x518] sm:$0xff] }
  0x83   :  { %5025 = vmatpush.bf16.msra.mxu1 %v8246_v20  ;;  %4994 = vmatmul.bf16.vlgmr.msrb.gmra.mxu2 %v1204_v11  ;;  %v8265_v20 = vld [vmem:[%s10570_s1 + $0x510] sm:$0xff] }
  0x84   :  { %5038 = vmatpush.bf16.msra.mxu2 %v8254_v21  ;;  %5007 = vmatmul.bf16.vlgmr.msrb.gmra.mxu3 %v1205_v13  ;;  %v8274_v13 = vld [vmem:[%s10570_s1 + $0x558] sm:$0xff]  ;;  %v8273_v21 = vld [vmem:[%s10570_s1 + $0x550] sm:$0xff] }
  0x85   :  { %5051 = vmatpush.bf16.msra.mxu3 %v8262_v22 }
  0x86   :  { %5013 = vmatpush.bf16.msra.mxu0 %v8237_v23 }
  0x87   :  { %5026 = vmatpush.bf16.msra.mxu1 %v8245_v24  ;;  %v8281_v24 = vld [vmem:[%s10570_s1 + $0x590] sm:$0xff] }
  0x88   :  { %5039 = vmatpush.bf16.msra.mxu2 %v8253_v25  ;;  %v8289_v25 = vld [vmem:[%s10570_s1 + $0x5d0] sm:$0xff] }
  0x89   :  { %5052 = vmatpush.bf16.msra.mxu3 %v8261_v26  ;;  %v8264_v26 = vld [vmem:[%s10570_s1 + $0x508] sm:$0xff] }
  0x8a   :  { %5014 = vmatpush.bf16.msra.mxu0 %v8236_v27  ;;  %v8272_v27 = vld [vmem:[%s10570_s1 + $0x548] sm:$0xff] }
  0x8b   :  { %5027 = vmatpush.bf16.msra.mxu1 %v8244_v28  ;;  %v8280_v28 = vld [vmem:[%s10570_s1 + $0x588] sm:$0xff] }
  0x8c   :  { %5040 = vmatpush.bf16.msra.mxu2 %v8252_v29  ;;  %v8288_v29 = vld [vmem:[%s10570_s1 + $0x5c8] sm:$0xff] }
  0x8d   :  { %5053 = vmatpush.bf16.msra.mxu3 %v8260_v30  ;;  %v1212_v30 = vld [vmem:[#allocation1 + $0x24] sm:$0xff] }
  0x8e   :  { %5015 = vmatpush.bf16.msra.mxu0 %v8235_v31  ;;  %v1214_v31 = vld [vmem:[#allocation1 + $0x36] sm:$0xff] }
  0x8f   :  { %5028 = vmatpush.bf16.msra.mxu1 %v8243_v32 }
  0x90   :  { %5041 = vmatpush.bf16.msra.mxu2 %v8251_v33  ;;  %v1213_v33 = vld [vmem:[#allocation1 + $0x2d] sm:$0xff] }
  0x91   :  { %5054 = vmatpush.bf16.msra.mxu3 %v8259_v34  ;;  %v1215_v34 = vld [vmem:[#allocation1 + $0x3f] sm:$0xff] }
  0x92   :  { %5016 = vmatpush.bf16.msra.mxu0 %v8234_v35 }
  0x93   :  { %5029 = vmatpush.bf16.msra.mxu1 %v8242_v36  ;;  %v24_v36 = vld [vmem:[%s10569_s0 + $0x18] sm:$0xff] }
  0x94   :  { %5042 = vmatpush.bf16.msra.mxu2 %v8250_v37  ;;  %1217 = vst [vmem:[#allocation1] ss:$9 sm:$0xff] %v24_v36  ;;  %v8263_v37 = vld [vmem:[%s10570_s1 + $0x500] sm:$0xff]  ;;  %v8356_v36 = vld [vmem:[%s10570_s1 + $0x7e8] sm:$0xff] }
  0x95   :  { %5055 = vmatpush.bf16.msra.mxu3 %v8258_v38  ;;  %v8271_v38 = vld [vmem:[%s10570_s1 + $0x540] sm:$0xff] }
  0x96   :  { %5017 = vmatpush.bf16.msra.mxu0 %v8233_v39  ;;  %v8279_v39 = vld [vmem:[%s10570_s1 + $0x580] sm:$0xff] }
  0x97   :  { %5030 = vmatpush.bf16.msra.mxu1 %v8241_v40  ;;  %v8287_v40 = vld [vmem:[%s10570_s1 + $0x5c0] sm:$0xff] }
  0x98   :  { %5043 = vmatpush.bf16.msra.mxu2 %v8249_v41  ;;  %v8302_v41 = vld [vmem:[%s10570_s1 + $0x638] sm:$0xff] }
  0x99   :  { %5056 = vmatpush.bf16.msra.mxu3 %v8257_v42  ;;  %v8310_v42 = vld [vmem:[%s10570_s1 + $0x678] sm:$0xff] }
  0x9a   :  { %5018 = vmatpush.bf16.msra.mxu0 %v8232_v43  ;;  %v8318_v43 = vld [vmem:[%s10570_s1 + $0x6b8] sm:$0xff] }
  0x9b   :  { %5031 = vmatpush.bf16.msra.mxu1 %v8240_v44  ;;  %v8326_v44 = vld [vmem:[%s10570_s1 + $0x6f8] sm:$0xff] }
  0x9c   :  { %5044 = vmatpush.bf16.msra.mxu2 %v8248_v45  ;;  %v8301_v45 = vld [vmem:[%s10570_s1 + $0x630] sm:$0xff] }
  0x9d   :  { %5057 = vmatpush.bf16.msra.mxu3 %v8256_v46  ;;  %v8309_v46 = vld [vmem:[%s10570_s1 + $0x670] sm:$0xff] }
  0x9e   :  { %5019 = vmatpush.bf16.msra.mxu0 %v8231_v47  ;;  %v4813_v4 = vpop.f32.mrf.mxu0  ;;  %v8317_v47 = vld [vmem:[%s10570_s1 + $0x6b0] sm:$0xff] }
  0x9f   :  { %5032 = vmatpush.bf16.msra.mxu1 %v8239_v48  ;;  %v4814_v7 = vadd.f32 %v8680_v1, %v4813_v4  ;;  %v4826_v8 = vpop.f32.mrf.mxu1  ;;  %v8325_v48 = vld [vmem:[%s10570_s1 + $0x6f0] sm:$0xff] }
  0xa0   :  { %5045 = vmatpush.bf16.msra.mxu2 %v8247_v49  ;;  %v8300_v49 = vld [vmem:[%s10570_s1 + $0x628] sm:$0xff] }
  0xa1   :  { %5058 = vmatpush.bf16.msra.mxu3 %v8255_v50  ;;  %5020 = vmatmul.bf16.vlgmr.msra.gmra.mxu0 %v1208_v55  ;;  %v4827_v11 = vadd.f32 %v4826_v8, %v4814_v7  ;;  %v8308_v50 = vld [vmem:[%s10570_s1 + $0x668] sm:$0xff]  ;;  %v8307_v55 = vld [vmem:[%s10570_s1 + $0x660] sm:$0xff] }
  0xa2   :  { %5064 = vmatpush.bf16.msrb.mxu0 %v8270_v51  ;;  %5033 = vmatmul.bf16.vlgmr.msra.gmra.mxu1 %v1209_v57  ;;  %v8316_v51 = vld [vmem:[%s10570_s1 + $0x6a8] sm:$0xff] }
  0xa3   :  { %5077 = vmatpush.bf16.msrb.mxu1 %v8278_v52  ;;  %5046 = vmatmul.bf16.vlgmr.msra.gmra.mxu2 %v1210_v56  ;;  %v8324_v52 = vld [vmem:[%s10570_s1 + $0x6e8] sm:$0xff] }
  0xa4   :  { %5090 = vmatpush.bf16.msrb.mxu2 %v8286_v53  ;;  %5059 = vmatmul.bf16.vlgmr.msra.gmra.mxu3 %v1211_v58  ;;  %v8315_v58 = vld [vmem:[%s10570_s1 + $0x6a0] sm:$0xff] }
  0xa5   :  { %5103 = vmatpush.bf16.msrb.mxu3 %v8294_v54  ;;  %v8299_v54 = vld [vmem:[%s10570_s1 + $0x620] sm:$0xff] }
  0xa6   :  { %5065 = vmatpush.bf16.msrb.mxu0 %v8269_v59  ;;  %v4839_v16 = vpop.f32.mrf.mxu2  ;;  %v4815_v19 = vpop.f32.mrf.mxu0  ;;  %v8323_v59 = vld [vmem:[%s10570_s1 + $0x6e0] sm:$0xff] }
  0xa7   :  { %5078 = vmatpush.bf16.msrb.mxu1 %v8277_v60  ;;  %v4840_v17 = vadd.f32 %v4839_v16, %v4827_v11  ;;  %v4852_v18 = vpop.f32.mrf.mxu3  ;;  %v4828_v23 = vpop.f32.mrf.mxu1  ;;  %v8296_v11 = vld [vmem:[%s10570_s1 + $0x608] sm:$0xff]  ;;  %v8311_v19 = vld [vmem:[%s10570_s1 + $0x680] sm:$0xff] }
  0xa8   :  { %5091 = vmatpush.bf16.msrb.mxu2 %v8285_v61  ;;  %v8298_v61 = vld [vmem:[%s10570_s1 + $0x618] sm:$0xff] }
  0xa9   :  { %5104 = vmatpush.bf16.msrb.mxu3 %v8293_v62  ;;  %v9297_v22 = vadd.f32 %v4852_v18, %v4840_v17  ;;  %v8306_v62 = vld [vmem:[%s10570_s1 + $0x658] sm:$0xff]  ;;  %v8295_v17 = vld [vmem:[%s10570_s1 + $0x600] sm:$0xff] }
  0xaa   :  { %5066 = vmatpush.bf16.msrb.mxu0 %v8268_v63  ;;  %v8314_v63 = vld [vmem:[%s10570_s1 + $0x698] sm:$0xff]  ;;  %v8303_v18 = vld [vmem:[%s10570_s1 + $0x640] sm:$0xff] }
  0xab   :  { %5079 = vmatpush.bf16.msrb.mxu1 %v8276_v0  ;;  %v8322_v0 = vld [vmem:[%s10570_s1 + $0x6d8] sm:$0xff] }
  0xac   :  { %5092 = vmatpush.bf16.msrb.mxu2 %v8284_v2  ;;  %v8350_v23 = vld [vmem:[%s10570_s1 + $0x7b8] sm:$0xff] }
  0xad   :  { %5105 = vmatpush.bf16.msrb.mxu3 %v8292_v3 }
  0xae   :  { %5067 = vmatpush.bf16.msrb.mxu0 %v8267_v5  ;;  %v4841_v32 = vpop.f32.mrf.mxu2  ;;  %v8297_v5 = vld [vmem:[%s10570_s1 + $0x610] sm:$0xff] }
  0xaf   :  { %5080 = vmatpush.bf16.msrb.mxu1 %v8275_v6  ;;  %v4854_v35 = vpop.f32.mrf.mxu3  ;;  %v8305_v6 = vld [vmem:[%s10570_s1 + $0x650] sm:$0xff] }
  0xb0   :  { %5093 = vmatpush.bf16.msrb.mxu2 %v8283_v9  ;;  %v8313_v9 = vld [vmem:[%s10570_s1 + $0x690] sm:$0xff]  ;;  %v8348_v35 = vld [vmem:[%s10570_s1 + $0x7a8] sm:$0xff] }
  0xb1   :  { %5106 = vmatpush.bf16.msrb.mxu3 %v8291_v10  ;;  %v8321_v10 = vld [vmem:[%s10570_s1 + $0x6d0] sm:$0xff] }
  0xb2   :  { %5068 = vmatpush.bf16.msrb.mxu0 %v8266_v12  ;;  %v8304_v12 = vld [vmem:[%s10570_s1 + $0x648] sm:$0xff]  ;;  %v8357_v32 = vld [vmem:[%s10570_s1 + $0x7f0] sm:$0xff] }
  0xb3   :  { %5081 = vmatpush.bf16.msrb.mxu1 %v8274_v13  ;;  %v8312_v13 = vld [vmem:[%s10570_s1 + $0x688] sm:$0xff] }
  0xb4   :  { %5094 = vmatpush.bf16.msrb.mxu2 %v8282_v14  ;;  %v8320_v14 = vld [vmem:[%s10570_s1 + $0x6c8] sm:$0xff] }
  0xb5   :  { %5107 = vmatpush.bf16.msrb.mxu3 %v8290_v15 }
  0xb6   :  { %5069 = vmatpush.bf16.msrb.mxu0 %v8265_v20  ;;  %v8319_v20 = vld [vmem:[%s10570_s1 + $0x6c0] sm:$0xff] }
  0xb7   :  { %5082 = vmatpush.bf16.msrb.mxu1 %v8273_v21  ;;  %v8334_v21 = vld [vmem:[%s10570_s1 + $0x738] sm:$0xff] }
  0xb8   :  { %5095 = vmatpush.bf16.msrb.mxu2 %v8281_v24  ;;  %v8358_v24 = vld [vmem:[%s10570_s1 + $0x7f8] sm:$0xff] }
  0xb9   :  { %5108 = vmatpush.bf16.msrb.mxu3 %v8289_v25  ;;  %v1218_v25 = vld [vmem:[#allocation1] sm:$0xff] }
  0xba   :  { %5070 = vmatpush.bf16.msrb.mxu0 %v8264_v26  ;;  %v1220_v26 = vld [vmem:[#allocation1 + $0x12] sm:$0xff] }
  0xbb   :  { %5083 = vmatpush.bf16.msrb.mxu1 %v8272_v27  ;;  %v1219_v27 = vld [vmem:[#allocation1 + $0x9] sm:$0xff] }
  0xbc   :  { %5096 = vmatpush.bf16.msrb.mxu2 %v8280_v28  ;;  %v1221_v28 = vld [vmem:[#allocation1 + $0x1b] sm:$0xff] }
  0xbd   :  { %5109 = vmatpush.bf16.msrb.mxu3 %v8288_v29  ;;  %v8333_v29 = vld [vmem:[%s10570_s1 + $0x730] sm:$0xff] }
  0xbe   :  { %5071 = vmatpush.bf16.msrb.mxu0 %v8263_v37  ;;  %v4865_v53 = vpop.f32.mrf.mxu0 }
  0xbf   :  { %5084 = vmatpush.bf16.msrb.mxu1 %v8271_v38  ;;  %v4866_v56 = vadd.f32 %v4865_v53, %v9297_v22  ;;  %v4878_v57 = vpop.f32.mrf.mxu1  ;;  %v8342_v22 = vld [vmem:[%s10570_s1 + $0x778] sm:$0xff] }
  0xc0   :  { %5097 = vmatpush.bf16.msrb.mxu2 %v8279_v39  ;;  %v8331_v39 = vld [vmem:[%s10570_s1 + $0x720] sm:$0xff] }
  0xc1   :  { %5110 = vmatpush.bf16.msrb.mxu3 %v8287_v40  ;;  %5072 = vmatmul.bf16.vlgmr.msrb.gmra.mxu0 %v1212_v30  ;;  %v4879_v60 = vadd.f32 %v4878_v57, %v4866_v56  ;;  %v8341_v30 = vld [vmem:[%s10570_s1 + $0x770] sm:$0xff]  ;;  %v8339_v40 = vld [vmem:[%s10570_s1 + $0x760] sm:$0xff] }
  0xc2   :  { %5116 = vmatpush.bf16.msra.mxu0 %v8302_v41  ;;  %5085 = vmatmul.bf16.vlgmr.msrb.gmra.mxu1 %v1213_v33  ;;  %v8332_v33 = vld [vmem:[%s10570_s1 + $0x728] sm:$0xff]  ;;  %v8345_v57 = vld [vmem:[%s10570_s1 + $0x790] sm:$0xff] }
  0xc3   :  { %5129 = vmatpush.bf16.msra.mxu1 %v8310_v42  ;;  %5098 = vmatmul.bf16.vlgmr.msrb.gmra.mxu2 %v1214_v31  ;;  %v8349_v31 = vld [vmem:[%s10570_s1 + $0x7b0] sm:$0xff]  ;;  %v8347_v42 = vld [vmem:[%s10570_s1 + $0x7a0] sm:$0xff] }
  0xc4   :  { %5142 = vmatpush.bf16.msra.mxu2 %v8318_v43  ;;  %5111 = vmatmul.bf16.vlgmr.msrb.gmra.mxu3 %v1215_v34  ;;  %v8340_v34 = vld [vmem:[%s10570_s1 + $0x768] sm:$0xff]  ;;  %v8355_v43 = vld [vmem:[%s10570_s1 + $0x7e0] sm:$0xff] }
  0xc5   :  { %5155 = vmatpush.bf16.msra.mxu3 %v8326_v44 }
  0xc6   :  { %5117 = vmatpush.bf16.msra.mxu0 %v8301_v45  ;;  %v4891_v1 = vpop.f32.mrf.mxu2  ;;  %v4867_v4 = vpop.f32.mrf.mxu0  ;;  %v8330_v45 = vld [vmem:[%s10570_s1 + $0x718] sm:$0xff] }
  0xc7   :  { %5130 = vmatpush.bf16.msra.mxu1 %v8309_v46  ;;  %v4892_v2 = vadd.f32 %v4891_v1, %v4879_v60  ;;  %v4904_v3 = vpop.f32.mrf.mxu3  ;;  %v4880_v8 = vpop.f32.mrf.mxu1  ;;  %v8338_v46 = vld [vmem:[%s10570_s1 + $0x758] sm:$0xff]  ;;  %v8336_v60 = vld [vmem:[%s10570_s1 + $0x748] sm:$0xff] }
  0xc8   :  { %5143 = vmatpush.bf16.msra.mxu2 %v8317_v47  ;;  %v8346_v47 = vld [vmem:[%s10570_s1 + $0x798] sm:$0xff]  ;;  %v8343_v8 = vld [vmem:[%s10570_s1 + $0x780] sm:$0xff] }
  0xc9   :  { %5156 = vmatpush.bf16.msra.mxu3 %v8325_v48  ;;  %v4905_v7 = vadd.f32 %v4904_v3, %v4892_v2  ;;  %v8354_v48 = vld [vmem:[%s10570_s1 + $0x7d8] sm:$0xff]  ;;  %v1223_v2 = vld [vmem:[#allocation1 + $0x2d] sm:$0xff] }
  0xca   :  { %5118 = vmatpush.bf16.msra.mxu0 %v8300_v49  ;;  %v1225_v3 = vld [vmem:[#allocation1 + $0x3f] sm:$0xff] }
  0xcb   :  { %5131 = vmatpush.bf16.msra.mxu1 %v8308_v50 }
  0xcc   :  { %5144 = vmatpush.bf16.msra.mxu2 %v8316_v51 }
  0xcd   :  { %5157 = vmatpush.bf16.msra.mxu3 %v8324_v52 }
  0xce   :  { %5119 = vmatpush.bf16.msra.mxu0 %v8299_v54  ;;  %v4893_v15 = vpop.f32.mrf.mxu2  ;;  %v8329_v54 = vld [vmem:[%s10570_s1 + $0x710] sm:$0xff] }
  0xcf   :  { %5132 = vmatpush.bf16.msra.mxu1 %v8307_v55  ;;  %v4906_v16 = vpop.f32.mrf.mxu3  ;;  %v8337_v55 = vld [vmem:[%s10570_s1 + $0x750] sm:$0xff] }
  0xd0   :  { %5145 = vmatpush.bf16.msra.mxu2 %v8315_v58  ;;  %v8353_v58 = vld [vmem:[%s10570_s1 + $0x7d0] sm:$0xff] }
  0xd1   :  { %5158 = vmatpush.bf16.msra.mxu3 %v8323_v59  ;;  %v8328_v59 = vld [vmem:[%s10570_s1 + $0x708] sm:$0xff]  ;;  %v8373_v15 = vld [vmem:[%s10570_s1 + $0x870] sm:$0xff] }
  0xd2   :  { %5120 = vmatpush.bf16.msra.mxu0 %v8298_v61  ;;  %v8344_v61 = vld [vmem:[%s10570_s1 + $0x788] sm:$0xff]  ;;  %v8381_v16 = vld [vmem:[%s10570_s1 + $0x8b0] sm:$0xff] }
  0xd3   :  { %5133 = vmatpush.bf16.msra.mxu1 %v8306_v62  ;;  %v8352_v62 = vld [vmem:[%s10570_s1 + $0x7c8] sm:$0xff] }
  0xd4   :  { %5146 = vmatpush.bf16.msra.mxu2 %v8314_v63  ;;  %v1222_v63 = vld [vmem:[#allocation1 + $0x24] sm:$0xff] }
  0xd5   :  { %5159 = vmatpush.bf16.msra.mxu3 %v8322_v0  ;;  %v1224_v0 = vld [vmem:[#allocation1 + $0x36] sm:$0xff] }
  0xd6   :  { %5121 = vmatpush.bf16.msra.mxu0 %v8297_v5  ;;  %v25_v5 = vld [vmem:[%s10569_s0 + $0x20] sm:$0xff] }
  0xd7   :  { %5134 = vmatpush.bf16.msra.mxu1 %v8305_v6  ;;  %1227 = vst [vmem:[#allocation1] ss:$9 sm:$0xff] %v25_v5  ;;  %v8327_v6 = vld [vmem:[%s10570_s1 + $0x700] sm:$0xff]  ;;  %v8420_v5 = vld [vmem:[%s10570_s1 + $0x9e8] sm:$0xff] }
  0xd8   :  { %5147 = vmatpush.bf16.msra.mxu2 %v8313_v9  ;;  %v8351_v9 = vld [vmem:[%s10570_s1 + $0x7c0] sm:$0xff] }
  0xd9   :  { %5160 = vmatpush.bf16.msra.mxu3 %v8321_v10  ;;  %v8366_v10 = vld [vmem:[%s10570_s1 + $0x838] sm:$0xff] }
  0xda   :  { %5122 = vmatpush.bf16.msra.mxu0 %v8296_v11  ;;  %v8374_v11 = vld [vmem:[%s10570_s1 + $0x878] sm:$0xff] }
  0xdb   :  { %5135 = vmatpush.bf16.msra.mxu1 %v8304_v12  ;;  %v8382_v12 = vld [vmem:[%s10570_s1 + $0x8b8] sm:$0xff] }
  0xdc   :  { %5148 = vmatpush.bf16.msra.mxu2 %v8312_v13  ;;  %v8390_v13 = vld [vmem:[%s10570_s1 + $0x8f8] sm:$0xff] }
  0xdd   :  { %5161 = vmatpush.bf16.msra.mxu3 %v8320_v14  ;;  %v8365_v14 = vld [vmem:[%s10570_s1 + $0x830] sm:$0xff] }
  0xde   :  { %5123 = vmatpush.bf16.msra.mxu0 %v8295_v17  ;;  %v4917_v37 = vpop.f32.mrf.mxu0  ;;  %v8389_v17 = vld [vmem:[%s10570_s1 + $0x8f0] sm:$0xff] }
  0xdf   :  { %5136 = vmatpush.bf16.msra.mxu1 %v8303_v18  ;;  %v4918_v38 = vadd.f32 %v4917_v37, %v4905_v7  ;;  %v4930_v41 = vpop.f32.mrf.mxu1  ;;  %v8335_v7 = vld [vmem:[%s10570_s1 + $0x740] sm:$0xff]  ;;  %v8364_v18 = vld [vmem:[%s10570_s1 + $0x828] sm:$0xff] }
  0xe0   :  { %5149 = vmatpush.bf16.msra.mxu2 %v8311_v19  ;;  %v8372_v19 = vld [vmem:[%s10570_s1 + $0x868] sm:$0xff] }
  0xe1   :  { %5162 = vmatpush.bf16.msra.mxu3 %v8319_v20  ;;  %5124 = vmatmul.bf16.vlgmr.msra.gmra.mxu0 %v1218_v25  ;;  %v4931_v44 = vadd.f32 %v4930_v41, %v4918_v38  ;;  %v8380_v20 = vld [vmem:[%s10570_s1 + $0x8a8] sm:$0xff]  ;;  %v8371_v25 = vld [vmem:[%s10570_s1 + $0x860] sm:$0xff] }
  0xe2   :  { %5168 = vmatpush.bf16.msrb.mxu0 %v8334_v21  ;;  %5137 = vmatmul.bf16.vlgmr.msra.gmra.mxu1 %v1219_v27  ;;  %v8388_v21 = vld [vmem:[%s10570_s1 + $0x8e8] sm:$0xff]  ;;  %v8379_v27 = vld [vmem:[%s10570_s1 + $0x8a0] sm:$0xff] }
  0xe3   :  { %5181 = vmatpush.bf16.msrb.mxu1 %v8342_v22  ;;  %5150 = vmatmul.bf16.vlgmr.msra.gmra.mxu2 %v1220_v26 }
  0xe4   :  { %5194 = vmatpush.bf16.msrb.mxu2 %v8350_v23  ;;  %5163 = vmatmul.bf16.vlgmr.msra.gmra.mxu3 %v1221_v28  ;;  %v8387_v28 = vld [vmem:[%s10570_s1 + $0x8e0] sm:$0xff] }
  0xe5   :  { %5207 = vmatpush.bf16.msrb.mxu3 %v8358_v24  ;;  %v8363_v24 = vld [vmem:[%s10570_s1 + $0x820] sm:$0xff] }
  0xe6   :  { %5169 = vmatpush.bf16.msrb.mxu0 %v8333_v29  ;;  %v4943_v49 = vpop.f32.mrf.mxu2  ;;  %v4919_v52 = vpop.f32.mrf.mxu0 }
  0xe7   :  { %5182 = vmatpush.bf16.msrb.mxu1 %v8341_v30  ;;  %v4944_v50 = vadd.f32 %v4943_v49, %v4931_v44  ;;  %v4956_v51 = vpop.f32.mrf.mxu3  ;;  %v4932_v56 = vpop.f32.mrf.mxu1  ;;  %v8362_v30 = vld [vmem:[%s10570_s1 + $0x818] sm:$0xff]  ;;  %v8360_v44 = vld [vmem:[%s10570_s1 + $0x808] sm:$0xff]  ;;  %v8375_v52 = vld [vmem:[%s10570_s1 + $0x880] sm:$0xff] }
  0xe8   :  { %5195 = vmatpush.bf16.msrb.mxu2 %v8349_v31  ;;  %v8370_v31 = vld [vmem:[%s10570_s1 + $0x858] sm:$0xff] }
  0xe9   :  { %5208 = vmatpush.bf16.msrb.mxu3 %v8357_v32  ;;  %v9489_v53 = vadd.f32 %v4956_v51, %v4944_v50  ;;  %v8378_v32 = vld [vmem:[%s10570_s1 + $0x898] sm:$0xff]  ;;  %v8359_v50 = vld [vmem:[%s10570_s1 + $0x800] sm:$0xff] }
  0xea   :  { %5170 = vmatpush.bf16.msrb.mxu0 %v8332_v33  ;;  %v8386_v33 = vld [vmem:[%s10570_s1 + $0x8d8] sm:$0xff]  ;;  %v8367_v51 = vld [vmem:[%s10570_s1 + $0x840] sm:$0xff] }
  0xeb   :  { %5183 = vmatpush.bf16.msrb.mxu1 %v8340_v34  ;;  %v8414_v56 = vld [vmem:[%s10570_s1 + $0x9b8] sm:$0xff] }
  0xec   :  { %5196 = vmatpush.bf16.msrb.mxu2 %v8348_v35 }
  0xed   :  { %5209 = vmatpush.bf16.msrb.mxu3 %v8356_v36 }
  0xee   :  { %5171 = vmatpush.bf16.msrb.mxu0 %v8331_v39  ;;  %v4945_v1 = vpop.f32.mrf.mxu2  ;;  %v8361_v39 = vld [vmem:[%s10570_s1 + $0x810] sm:$0xff] }
  0xef   :  { %5184 = vmatpush.bf16.msrb.mxu1 %v8339_v40  ;;  %v4958_v4 = vpop.f32.mrf.mxu3  ;;  %v8369_v40 = vld [vmem:[%s10570_s1 + $0x850] sm:$0xff] }
  0xf0   :  { %5197 = vmatpush.bf16.msrb.mxu2 %v8347_v42  ;;  %v8377_v42 = vld [vmem:[%s10570_s1 + $0x890] sm:$0xff]  ;;  %v8412_v4 = vld [vmem:[%s10570_s1 + $0x9a8] sm:$0xff] }
  0xf1   :  { %5210 = vmatpush.bf16.msrb.mxu3 %v8355_v43  ;;  %v8385_v43 = vld [vmem:[%s10570_s1 + $0x8d0] sm:$0xff] }
  0xf2   :  { %5172 = vmatpush.bf16.msrb.mxu0 %v8330_v45  ;;  %v8368_v45 = vld [vmem:[%s10570_s1 + $0x848] sm:$0xff]  ;;  %v8421_v1 = vld [vmem:[%s10570_s1 + $0x9f0] sm:$0xff] }
  0xf3   :  { %5185 = vmatpush.bf16.msrb.mxu1 %v8338_v46  ;;  %v8376_v46 = vld [vmem:[%s10570_s1 + $0x888] sm:$0xff] }
  0xf4   :  { %5198 = vmatpush.bf16.msrb.mxu2 %v8346_v47  ;;  %v8384_v47 = vld [vmem:[%s10570_s1 + $0x8c8] sm:$0xff] }
  0xf5   :  { %5211 = vmatpush.bf16.msrb.mxu3 %v8354_v48 }
  0xf6   :  { %5173 = vmatpush.bf16.msrb.mxu0 %v8329_v54  ;;  %v8398_v54 = vld [vmem:[%s10570_s1 + $0x938] sm:$0xff] }
  0xf7   :  { %5186 = vmatpush.bf16.msrb.mxu1 %v8337_v55  ;;  %v8406_v55 = vld [vmem:[%s10570_s1 + $0x978] sm:$0xff] }
  0xf8   :  { %5199 = vmatpush.bf16.msrb.mxu2 %v8345_v57  ;;  %v8422_v57 = vld [vmem:[%s10570_s1 + $0x9f8] sm:$0xff] }
  0xf9   :  { %5212 = vmatpush.bf16.msrb.mxu3 %v8353_v58  ;;  %v1228_v58 = vld [vmem:[#allocation1] sm:$0xff] }
  0xfa   :  { %5174 = vmatpush.bf16.msrb.mxu0 %v8328_v59  ;;  %v1230_v59 = vld [vmem:[#allocation1 + $0x12] sm:$0xff] }
  0xfb   :  { %5187 = vmatpush.bf16.msrb.mxu1 %v8336_v60  ;;  %v1229_v60 = vld [vmem:[#allocation1 + $0x9] sm:$0xff] }
  0xfc   :  { %5200 = vmatpush.bf16.msrb.mxu2 %v8344_v61  ;;  %v1231_v61 = vld [vmem:[#allocation1 + $0x1b] sm:$0xff] }
  0xfd   :  { %5213 = vmatpush.bf16.msrb.mxu3 %v8352_v62  ;;  %v8397_v62 = vld [vmem:[%s10570_s1 + $0x930] sm:$0xff] }
  0xfe   :  { %5175 = vmatpush.bf16.msrb.mxu0 %v8327_v6  ;;  %v4969_v22 = vpop.f32.mrf.mxu0 }
  0xff   :  { %5188 = vmatpush.bf16.msrb.mxu1 %v8335_v7  ;;  %v4970_v23 = vadd.f32 %v4969_v22, %v9489_v53  ;;  %v4982_v26 = vpop.f32.mrf.mxu1  ;;  %v8383_v53 = vld [vmem:[%s10570_s1 + $0x8c0] sm:$0xff] }
 0x100   :  { %5201 = vmatpush.bf16.msrb.mxu2 %v8343_v8  ;;  %v8395_v8 = vld [vmem:[%s10570_s1 + $0x920] sm:$0xff] }
 0x101   :  { %5214 = vmatpush.bf16.msrb.mxu3 %v8351_v9  ;;  %5176 = vmatmul.bf16.vlgmr.msrb.gmra.mxu0 %v1222_v63  ;;  %v4983_v29 = vadd.f32 %v4982_v26, %v4970_v23  ;;  %v8405_v63 = vld [vmem:[%s10570_s1 + $0x970] sm:$0xff]  ;;  %v8403_v9 = vld [vmem:[%s10570_s1 + $0x960] sm:$0xff] }
 0x102   :  { %5220 = vmatpush.bf16.msra.mxu0 %v8366_v10  ;;  %5189 = vmatmul.bf16.vlgmr.msrb.gmra.mxu1 %v1223_v2  ;;  %v8396_v2 = vld [vmem:[%s10570_s1 + $0x928] sm:$0xff]  ;;  %v8393_v23 = vld [vmem:[%s10570_s1 + $0x910] sm:$0xff] }
 0x103   :  { %5233 = vmatpush.bf16.msra.mxu1 %v8374_v11  ;;  %5202 = vmatmul.bf16.vlgmr.msrb.gmra.mxu2 %v1224_v0  ;;  %v8413_v0 = vld [vmem:[%s10570_s1 + $0x9b0] sm:$0xff]  ;;  %v8411_v11 = vld [vmem:[%s10570_s1 + $0x9a0] sm:$0xff] }
 0x104   :  { %5246 = vmatpush.bf16.msra.mxu2 %v8382_v12  ;;  %5215 = vmatmul.bf16.vlgmr.msrb.gmra.mxu3 %v1225_v3  ;;  %v8404_v3 = vld [vmem:[%s10570_s1 + $0x968] sm:$0xff]  ;;  %v8419_v12 = vld [vmem:[%s10570_s1 + $0x9e0] sm:$0xff]  ;;  %v8409_v26 = vld [vmem:[%s10570_s1 + $0x990] sm:$0xff] }
 0x105   :  { %5259 = vmatpush.bf16.msra.mxu3 %v8390_v13 }
 0x106   :  { %5221 = vmatpush.bf16.msra.mxu0 %v8365_v14  ;;  %v4995_v34 = vpop.f32.mrf.mxu2  ;;  %v4971_v37 = vpop.f32.mrf.mxu0  ;;  %v8394_v14 = vld [vmem:[%s10570_s1 + $0x918] sm:$0xff] }
 0x107   :  { %5234 = vmatpush.bf16.msra.mxu1 %v8373_v15  ;;  %v4996_v35 = vadd.f32 %v4995_v34, %v4983_v29  ;;  %v5008_v36 = vpop.f32.mrf.mxu3  ;;  %v4984_v41 = vpop.f32.mrf.mxu1  ;;  %v8402_v15 = vld [vmem:[%s10570_s1 + $0x958] sm:$0xff]  ;;  %v8400_v29 = vld [vmem:[%s10570_s1 + $0x948] sm:$0xff] }
 0x108   :  { %5247 = vmatpush.bf16.msra.mxu2 %v8381_v16  ;;  %v8410_v16 = vld [vmem:[%s10570_s1 + $0x998] sm:$0xff]  ;;  %v8407_v41 = vld [vmem:[%s10570_s1 + $0x980] sm:$0xff] }
 0x109   :  { %5260 = vmatpush.bf16.msra.mxu3 %v8389_v17  ;;  %v5009_v38 = vadd.f32 %v5008_v36, %v4996_v35  ;;  %v8418_v17 = vld [vmem:[%s10570_s1 + $0x9d8] sm:$0xff]  ;;  %v1233_v35 = vld [vmem:[#allocation1 + $0x2d] sm:$0xff] }
 0x10a   :  { %5222 = vmatpush.bf16.msra.mxu0 %v8364_v18  ;;  %v1235_v36 = vld [vmem:[#allocation1 + $0x3f] sm:$0xff] }
 0x10b   :  { %5235 = vmatpush.bf16.msra.mxu1 %v8372_v19 }
 0x10c   :  { %5248 = vmatpush.bf16.msra.mxu2 %v8380_v20 }
 0x10d   :  { %5261 = vmatpush.bf16.msra.mxu3 %v8388_v21 }
 0x10e   :  { %5223 = vmatpush.bf16.msra.mxu0 %v8363_v24  ;;  %v4997_v48 = vpop.f32.mrf.mxu2  ;;  %v8401_v24 = vld [vmem:[%s10570_s1 + $0x950] sm:$0xff] }
 0x10f   :  { %5236 = vmatpush.bf16.msra.mxu1 %v8371_v25  ;;  %v5010_v49 = vpop.f32.mrf.mxu3  ;;  %v8437_v48 = vld [vmem:[%s10570_s1 + $0xa70] sm:$0xff] }
 0x110   :  { %5249 = vmatpush.bf16.msra.mxu2 %v8379_v27  ;;  %v8417_v27 = vld [vmem:[%s10570_s1 + $0x9d0] sm:$0xff] }
 0x111   :  { %5262 = vmatpush.bf16.msra.mxu3 %v8387_v28  ;;  %v8392_v28 = vld [vmem:[%s10570_s1 + $0x908] sm:$0xff]  ;;  %v8445_v49 = vld [vmem:[%s10570_s1 + $0xab0] sm:$0xff] }
 0x112   :  { %5224 = vmatpush.bf16.msra.mxu0 %v8362_v30  ;;  %v8408_v30 = vld [vmem:[%s10570_s1 + $0x988] sm:$0xff] }
 0x113   :  { %5237 = vmatpush.bf16.msra.mxu1 %v8370_v31  ;;  %v8416_v31 = vld [vmem:[%s10570_s1 + $0x9c8] sm:$0xff] }
 0x114   :  { %5250 = vmatpush.bf16.msra.mxu2 %v8378_v32  ;;  %v1232_v32 = vld [vmem:[#allocation1 + $0x24] sm:$0xff] }
 0x115   :  { %5263 = vmatpush.bf16.msra.mxu3 %v8386_v33  ;;  %v1234_v33 = vld [vmem:[#allocation1 + $0x36] sm:$0xff] }
 0x116   :  { %5225 = vmatpush.bf16.msra.mxu0 %v8361_v39  ;;  %v8391_v39 = vld [vmem:[%s10570_s1 + $0x900] sm:$0xff] }
 0x117   :  { %5238 = vmatpush.bf16.msra.mxu1 %v8369_v40  ;;  %v8399_v40 = vld [vmem:[%s10570_s1 + $0x940] sm:$0xff] }
 0x118   :  { %5251 = vmatpush.bf16.msra.mxu2 %v8377_v42  ;;  %v8415_v42 = vld [vmem:[%s10570_s1 + $0x9c0] sm:$0xff] }
 0x119   :  { %5264 = vmatpush.bf16.msra.mxu3 %v8385_v43  ;;  %v8430_v43 = vld [vmem:[%s10570_s1 + $0xa38] sm:$0xff] }
 0x11a   :  { %5226 = vmatpush.bf16.msra.mxu0 %v8360_v44  ;;  %v8438_v44 = vld [vmem:[%s10570_s1 + $0xa78] sm:$0xff] }
 0x11b   :  { %5239 = vmatpush.bf16.msra.mxu1 %v8368_v45  ;;  %v8446_v45 = vld [vmem:[%s10570_s1 + $0xab8] sm:$0xff] }
 0x11c   :  { %5252 = vmatpush.bf16.msra.mxu2 %v8376_v46  ;;  %v8454_v46 = vld [vmem:[%s10570_s1 + $0xaf8] sm:$0xff] }
 0x11d   :  { %5265 = vmatpush.bf16.msra.mxu3 %v8384_v47  ;;  %v8429_v47 = vld [vmem:[%s10570_s1 + $0xa30] sm:$0xff] }
 0x11e   :  { %5227 = vmatpush.bf16.msra.mxu0 %v8359_v50  ;;  %v5021_v6 = vpop.f32.mrf.mxu0  ;;  %v8453_v50 = vld [vmem:[%s10570_s1 + $0xaf0] sm:$0xff] }
 0x11f   :  { %5240 = vmatpush.bf16.msra.mxu1 %v8367_v51  ;;  %v5022_v7 = vadd.f32 %v5021_v6, %v5009_v38  ;;  %v5034_v10 = vpop.f32.mrf.mxu1  ;;  %v26_v38 = vld [vmem:[%s10569_s0 + $0x28] sm:$0xff] }
 0x120   :  { %5253 = vmatpush.bf16.msra.mxu2 %v8375_v52  ;;  %1237 = vst [vmem:[#allocation1] ss:$9 sm:$0xff] %v26_v38  ;;  %v8428_v51 = vld [vmem:[%s10570_s1 + $0xa28] sm:$0xff] }
 0x121   :  { %5266 = vmatpush.bf16.msra.mxu3 %v8383_v53  ;;  %5228 = vmatmul.bf16.vlgmr.msra.gmra.mxu0 %v1228_v58  ;;  %v5035_v13 = vadd.f32 %v5034_v10, %v5022_v7  ;;  %v8436_v52 = vld [vmem:[%s10570_s1 + $0xa68] sm:$0xff]  ;;  %v8435_v58 = vld [vmem:[%s10570_s1 + $0xa60] sm:$0xff] }
 0x122   :  { %5272 = vmatpush.bf16.msrb.mxu0 %v8398_v54  ;;  %5241 = vmatmul.bf16.vlgmr.msra.gmra.mxu1 %v1229_v60  ;;  %v8444_v53 = vld [vmem:[%s10570_s1 + $0xaa8] sm:$0xff]  ;;  %v8443_v60 = vld [vmem:[%s10570_s1 + $0xaa0] sm:$0xff] }
 0x123   :  { %5285 = vmatpush.bf16.msrb.mxu1 %v8406_v55  ;;  %5254 = vmatmul.bf16.vlgmr.msra.gmra.mxu2 %v1230_v59  ;;  %v8452_v54 = vld [vmem:[%s10570_s1 + $0xae8] sm:$0xff] }
 0x124   :  { %5298 = vmatpush.bf16.msrb.mxu2 %v8414_v56  ;;  %5267 = vmatmul.bf16.vlgmr.msra.gmra.mxu3 %v1231_v61  ;;  %v8451_v61 = vld [vmem:[%s10570_s1 + $0xae0] sm:$0xff]  ;;  %v8484_v38 = vld [vmem:[%s10570_s1 + $0xbe8] sm:$0xff] }
 0x125   :  { %5311 = vmatpush.bf16.msrb.mxu3 %v8422_v57  ;;  %v8427_v57 = vld [vmem:[%s10570_s1 + $0xa20] sm:$0xff] }
 0x126   :  { %5273 = vmatpush.bf16.msrb.mxu0 %v8397_v62  ;;  %v5047_v18 = vpop.f32.mrf.mxu2  ;;  %v5023_v21 = vpop.f32.mrf.mxu0 }
 0x127   :  { %5286 = vmatpush.bf16.msrb.mxu1 %v8405_v63  ;;  %v5048_v19 = vadd.f32 %v5047_v18, %v5035_v13  ;;  %v5060_v20 = vpop.f32.mrf.mxu3  ;;  %v5036_v25 = vpop.f32.mrf.mxu1  ;;  %v8426_v63 = vld [vmem:[%s10570_s1 + $0xa18] sm:$0xff]  ;;  %v8424_v13 = vld [vmem:[%s10570_s1 + $0xa08] sm:$0xff]  ;;  %v8439_v21 = vld [vmem:[%s10570_s1 + $0xa80] sm:$0xff] }
 0x128   :  { %5299 = vmatpush.bf16.msrb.mxu2 %v8413_v0  ;;  %v8434_v0 = vld [vmem:[%s10570_s1 + $0xa58] sm:$0xff] }
 0x129   :  { %5312 = vmatpush.bf16.msrb.mxu3 %v8421_v1  ;;  %v9687_v22 = vadd.f32 %v5060_v20, %v5048_v19  ;;  %v8442_v1 = vld [vmem:[%s10570_s1 + $0xa98] sm:$0xff]  ;;  %v8423_v19 = vld [vmem:[%s10570_s1 + $0xa00] sm:$0xff] }
 0x12a   :  { %5274 = vmatpush.bf16.msrb.mxu0 %v8396_v2  ;;  %v8450_v2 = vld [vmem:[%s10570_s1 + $0xad8] sm:$0xff]  ;;  %v8431_v20 = vld [vmem:[%s10570_s1 + $0xa40] sm:$0xff] }
 0x12b   :  { %5287 = vmatpush.bf16.msrb.mxu1 %v8404_v3  ;;  %v8478_v25 = vld [vmem:[%s10570_s1 + $0xbb8] sm:$0xff] }
 0x12c   :  { %5300 = vmatpush.bf16.msrb.mxu2 %v8412_v4 }
 0x12d   :  { %5313 = vmatpush.bf16.msrb.mxu3 %v8420_v5 }
 0x12e   :  { %5275 = vmatpush.bf16.msrb.mxu0 %v8395_v8  ;;  %v5049_v34 = vpop.f32.mrf.mxu2  ;;  %v8425_v8 = vld [vmem:[%s10570_s1 + $0xa10] sm:$0xff] }
 0x12f   :  { %5288 = vmatpush.bf16.msrb.mxu1 %v8403_v9  ;;  %v5062_v37 = vpop.f32.mrf.mxu3  ;;  %v8433_v9 = vld [vmem:[%s10570_s1 + $0xa50] sm:$0xff] }
 0x130   :  { %5301 = vmatpush.bf16.msrb.mxu2 %v8411_v11  ;;  %v8441_v11 = vld [vmem:[%s10570_s1 + $0xa90] sm:$0xff]  ;;  %v8476_v37 = vld [vmem:[%s10570_s1 + $0xba8] sm:$0xff] }
 0x131   :  { %5314 = vmatpush.bf16.msrb.mxu3 %v8419_v12  ;;  %v8449_v12 = vld [vmem:[%s10570_s1 + $0xad0] sm:$0xff] }
 0x132   :  { %5276 = vmatpush.bf16.msrb.mxu0 %v8394_v14  ;;  %v8432_v14 = vld [vmem:[%s10570_s1 + $0xa48] sm:$0xff]  ;;  %v8485_v34 = vld [vmem:[%s10570_s1 + $0xbf0] sm:$0xff] }
 0x133   :  { %5289 = vmatpush.bf16.msrb.mxu1 %v8402_v15  ;;  %v8440_v15 = vld [vmem:[%s10570_s1 + $0xa88] sm:$0xff] }
 0x134   :  { %5302 = vmatpush.bf16.msrb.mxu2 %v8410_v16  ;;  %v8448_v16 = vld [vmem:[%s10570_s1 + $0xac8] sm:$0xff] }
 0x135   :  { %5315 = vmatpush.bf16.msrb.mxu3 %v8418_v17 }
 0x136   :  { %5277 = vmatpush.bf16.msrb.mxu0 %v8393_v23  ;;  %v8462_v23 = vld [vmem:[%s10570_s1 + $0xb38] sm:$0xff] }
 0x137   :  { %5290 = vmatpush.bf16.msrb.mxu1 %v8401_v24  ;;  %v8470_v24 = vld [vmem:[%s10570_s1 + $0xb78] sm:$0xff] }
 0x138   :  { %5303 = vmatpush.bf16.msrb.mxu2 %v8409_v26  ;;  %v8486_v26 = vld [vmem:[%s10570_s1 + $0xbf8] sm:$0xff] }
 0x139   :  { %5316 = vmatpush.bf16.msrb.mxu3 %v8417_v27  ;;  %v1238_v27 = vld [vmem:[#allocation1] sm:$0xff] }
 0x13a   :  { %5278 = vmatpush.bf16.msrb.mxu0 %v8392_v28  ;;  %v1240_v28 = vld [vmem:[#allocation1 + $0x12] sm:$0xff] }
 0x13b   :  { %5291 = vmatpush.bf16.msrb.mxu1 %v8400_v29  ;;  %v1239_v29 = vld [vmem:[#allocation1 + $0x9] sm:$0xff] }
 0x13c   :  { %5304 = vmatpush.bf16.msrb.mxu2 %v8408_v30  ;;  %v1241_v30 = vld [vmem:[#allocation1 + $0x1b] sm:$0xff] }
 0x13d   :  { %5317 = vmatpush.bf16.msrb.mxu3 %v8416_v31  ;;  %v8461_v31 = vld [vmem:[%s10570_s1 + $0xb30] sm:$0xff] }
 0x13e   :  { %5279 = vmatpush.bf16.msrb.mxu0 %v8391_v39  ;;  %v5073_v55 = vpop.f32.mrf.mxu0 }
 0x13f   :  { %5292 = vmatpush.bf16.msrb.mxu1 %v8399_v40  ;;  %v5074_v56 = vadd.f32 %v5073_v55, %v9687_v22  ;;  %v5086_v59 = vpop.f32.mrf.mxu1  ;;  %v8447_v22 = vld [vmem:[%s10570_s1 + $0xac0] sm:$0xff] }
 0x140   :  { %5305 = vmatpush.bf16.msrb.mxu2 %v8407_v41  ;;  %v8459_v41 = vld [vmem:[%s10570_s1 + $0xb20] sm:$0xff] }
 0x141   :  { %5318 = vmatpush.bf16.msrb.mxu3 %v8415_v42  ;;  %5280 = vmatmul.bf16.vlgmr.msrb.gmra.mxu0 %v1232_v32  ;;  %v5087_v62 = vadd.f32 %v5086_v59, %v5074_v56  ;;  %v8469_v32 = vld [vmem:[%s10570_s1 + $0xb70] sm:$0xff]  ;;  %v8467_v42 = vld [vmem:[%s10570_s1 + $0xb60] sm:$0xff] }
 0x142   :  { %5324 = vmatpush.bf16.msra.mxu0 %v8430_v43  ;;  %5293 = vmatmul.bf16.vlgmr.msrb.gmra.mxu1 %v1233_v35  ;;  %v8460_v35 = vld [vmem:[%s10570_s1 + $0xb28] sm:$0xff]  ;;  %v8457_v56 = vld [vmem:[%s10570_s1 + $0xb10] sm:$0xff] }
 0x143   :  { %5337 = vmatpush.bf16.msra.mxu1 %v8438_v44  ;;  %5306 = vmatmul.bf16.vlgmr.msrb.gmra.mxu2 %v1234_v33  ;;  %v8477_v33 = vld [vmem:[%s10570_s1 + $0xbb0] sm:$0xff]  ;;  %v8475_v44 = vld [vmem:[%s10570_s1 + $0xba0] sm:$0xff] }
 0x144   :  { %5350 = vmatpush.bf16.msra.mxu2 %v8446_v45  ;;  %5319 = vmatmul.bf16.vlgmr.msrb.gmra.mxu3 %v1235_v36  ;;  %v8468_v36 = vld [vmem:[%s10570_s1 + $0xb68] sm:$0xff]  ;;  %v8483_v45 = vld [vmem:[%s10570_s1 + $0xbe0] sm:$0xff]  ;;  %v8473_v59 = vld [vmem:[%s10570_s1 + $0xb90] sm:$0xff] }
 0x145   :  { %5363 = vmatpush.bf16.msra.mxu3 %v8454_v46 }
 0x146   :  { %5325 = vmatpush.bf16.msra.mxu0 %v8429_v47  ;;  %v5099_v3 = vpop.f32.mrf.mxu2  ;;  %v5075_v6 = vpop.f32.mrf.mxu0  ;;  %v8458_v47 = vld [vmem:[%s10570_s1 + $0xb18] sm:$0xff] }
 0x147   :  { %5338 = vmatpush.bf16.msra.mxu1 %v8437_v48  ;;  %v5100_v4 = vadd.f32 %v5099_v3, %v5087_v62  ;;  %v5112_v5 = vpop.f32.mrf.mxu3  ;;  %v5088_v10 = vpop.f32.mrf.mxu1  ;;  %v8466_v48 = vld [vmem:[%s10570_s1 + $0xb58] sm:$0xff]  ;;  %v8464_v62 = vld [vmem:[%s10570_s1 + $0xb48] sm:$0xff] }
 0x148   :  { %5351 = vmatpush.bf16.msra.mxu2 %v8445_v49  ;;  %v8474_v49 = vld [vmem:[%s10570_s1 + $0xb98] sm:$0xff]  ;;  %v8471_v10 = vld [vmem:[%s10570_s1 + $0xb80] sm:$0xff] }
 0x149   :  { %5364 = vmatpush.bf16.msra.mxu3 %v8453_v50  ;;  %v5113_v7 = vadd.f32 %v5112_v5, %v5100_v4  ;;  %v8482_v50 = vld [vmem:[%s10570_s1 + $0xbd8] sm:$0xff]  ;;  %v1243_v4 = vld [vmem:[#allocation1 + $0x2d] sm:$0xff] }
 0x14a   :  { %5326 = vmatpush.bf16.msra.mxu0 %v8428_v51  ;;  %v1245_v5 = vld [vmem:[#allocation1 + $0x3f] sm:$0xff] }
 0x14b   :  { %5339 = vmatpush.bf16.msra.mxu1 %v8436_v52 }
 0x14c   :  { %5352 = vmatpush.bf16.msra.mxu2 %v8444_v53 }
 0x14d   :  { %5365 = vmatpush.bf16.msra.mxu3 %v8452_v54 }
 0x14e   :  { %5327 = vmatpush.bf16.msra.mxu0 %v8427_v57  ;;  %v5101_v17 = vpop.f32.mrf.mxu2  ;;  %v8465_v57 = vld [vmem:[%s10570_s1 + $0xb50] sm:$0xff] }
 0x14f   :  { %5340 = vmatpush.bf16.msra.mxu1 %v8435_v58  ;;  %v5114_v18 = vpop.f32.mrf.mxu3  ;;  %v8501_v17 = vld [vmem:[%s10570_s1 + $0xc70] sm:$0xff] }
 0x150   :  { %5353 = vmatpush.bf16.msra.mxu2 %v8443_v60  ;;  %v8481_v60 = vld [vmem:[%s10570_s1 + $0xbd0] sm:$0xff] }
 0x151   :  { %5366 = vmatpush.bf16.msra.mxu3 %v8451_v61  ;;  %v8456_v61 = vld [vmem:[%s10570_s1 + $0xb08] sm:$0xff]  ;;  %v8509_v18 = vld [vmem:[%s10570_s1 + $0xcb0] sm:$0xff] }
 0x152   :  { %5328 = vmatpush.bf16.msra.mxu0 %v8426_v63  ;;  %v8472_v63 = vld [vmem:[%s10570_s1 + $0xb88] sm:$0xff] }
 0x153   :  { %5341 = vmatpush.bf16.msra.mxu1 %v8434_v0  ;;  %v8480_v0 = vld [vmem:[%s10570_s1 + $0xbc8] sm:$0xff] }
 0x154   :  { %5354 = vmatpush.bf16.msra.mxu2 %v8442_v1  ;;  %v1242_v1 = vld [vmem:[#allocation1 + $0x24] sm:$0xff] }
 0x155   :  { %5367 = vmatpush.bf16.msra.mxu3 %v8450_v2  ;;  %v1244_v2 = vld [vmem:[#allocation1 + $0x36] sm:$0xff] }
 0x156   :  { %5329 = vmatpush.bf16.msra.mxu0 %v8425_v8  ;;  %v8455_v8 = vld [vmem:[%s10570_s1 + $0xb00] sm:$0xff] }
 0x157   :  { %5342 = vmatpush.bf16.msra.mxu1 %v8433_v9  ;;  %v8463_v9 = vld [vmem:[%s10570_s1 + $0xb40] sm:$0xff] }
 0x158   :  { %5355 = vmatpush.bf16.msra.mxu2 %v8441_v11  ;;  %v8479_v11 = vld [vmem:[%s10570_s1 + $0xbc0] sm:$0xff] }
 0x159   :  { %5368 = vmatpush.bf16.msra.mxu3 %v8449_v12  ;;  %v8494_v12 = vld [vmem:[%s10570_s1 + $0xc38] sm:$0xff] }
 0x15a   :  { %5330 = vmatpush.bf16.msra.mxu0 %v8424_v13  ;;  %v8502_v13 = vld [vmem:[%s10570_s1 + $0xc78] sm:$0xff] }
 0x15b   :  { %5343 = vmatpush.bf16.msra.mxu1 %v8432_v14  ;;  %v8510_v14 = vld [vmem:[%s10570_s1 + $0xcb8] sm:$0xff] }
 0x15c   :  { %5356 = vmatpush.bf16.msra.mxu2 %v8440_v15  ;;  %v8518_v15 = vld [vmem:[%s10570_s1 + $0xcf8] sm:$0xff] }
 0x15d   :  { %5369 = vmatpush.bf16.msra.mxu3 %v8448_v16  ;;  %v8493_v16 = vld [vmem:[%s10570_s1 + $0xc30] sm:$0xff] }
 0x15e   :  { %5331 = vmatpush.bf16.msra.mxu0 %v8423_v19  ;;  %v5125_v39 = vpop.f32.mrf.mxu0  ;;  %v8517_v19 = vld [vmem:[%s10570_s1 + $0xcf0] sm:$0xff] }
 0x15f   :  { %5344 = vmatpush.bf16.msra.mxu1 %v8431_v20  ;;  %v5126_v40 = vadd.f32 %v5125_v39, %v5113_v7  ;;  %v5138_v43 = vpop.f32.mrf.mxu1  ;;  %v27_v7 = vld [vmem:[%s10569_s0 + $0x30] sm:$0xff]  ;;  %v8492_v20 = vld [vmem:[%s10570_s1 + $0xc28] sm:$0xff] }
 0x160   :  { %5357 = vmatpush.bf16.msra.mxu2 %v8439_v21  ;;  %1247 = vst [vmem:[#allocation1] ss:$9 sm:$0xff] %v27_v7  ;;  %v8500_v21 = vld [vmem:[%s10570_s1 + $0xc68] sm:$0xff] }
 0x161   :  { %5370 = vmatpush.bf16.msra.mxu3 %v8447_v22  ;;  %5332 = vmatmul.bf16.vlgmr.msra.gmra.mxu0 %v1238_v27  ;;  %v5139_v46 = vadd.f32 %v5138_v43, %v5126_v40  ;;  %v8508_v22 = vld [vmem:[%s10570_s1 + $0xca8] sm:$0xff]  ;;  %v8499_v27 = vld [vmem:[%s10570_s1 + $0xc60] sm:$0xff] }
 0x162   :  { %5376 = vmatpush.bf16.msrb.mxu0 %v8462_v23  ;;  %5345 = vmatmul.bf16.vlgmr.msra.gmra.mxu1 %v1239_v29  ;;  %v8516_v23 = vld [vmem:[%s10570_s1 + $0xce8] sm:$0xff]  ;;  %v8507_v29 = vld [vmem:[%s10570_s1 + $0xca0] sm:$0xff] }
 0x163   :  { %5389 = vmatpush.bf16.msrb.mxu1 %v8470_v24  ;;  %5358 = vmatmul.bf16.vlgmr.msra.gmra.mxu2 %v1240_v28  ;;  %v8548_v7 = vld [vmem:[%s10570_s1 + $0xde8] sm:$0xff] }
 0x164   :  { %5402 = vmatpush.bf16.msrb.mxu2 %v8478_v25  ;;  %5371 = vmatmul.bf16.vlgmr.msra.gmra.mxu3 %v1241_v30  ;;  %v8515_v30 = vld [vmem:[%s10570_s1 + $0xce0] sm:$0xff] }
 0x165   :  { %5415 = vmatpush.bf16.msrb.mxu3 %v8486_v26  ;;  %v8491_v26 = vld [vmem:[%s10570_s1 + $0xc20] sm:$0xff] }
 0x166   :  { %5377 = vmatpush.bf16.msrb.mxu0 %v8461_v31  ;;  %v5151_v51 = vpop.f32.mrf.mxu2  ;;  %v5127_v54 = vpop.f32.mrf.mxu0 }
 0x167   :  { %5390 = vmatpush.bf16.msrb.mxu1 %v8469_v32  ;;  %v5152_v52 = vadd.f32 %v5151_v51, %v5139_v46  ;;  %v5164_v53 = vpop.f32.mrf.mxu3  ;;  %v5140_v58 = vpop.f32.mrf.mxu1  ;;  %v8490_v32 = vld [vmem:[%s10570_s1 + $0xc18] sm:$0xff]  ;;  %v8488_v46 = vld [vmem:[%s10570_s1 + $0xc08] sm:$0xff]  ;;  %v8503_v54 = vld [vmem:[%s10570_s1 + $0xc80] sm:$0xff] }
 0x168   :  { %5403 = vmatpush.bf16.msrb.mxu2 %v8477_v33  ;;  %v8498_v33 = vld [vmem:[%s10570_s1 + $0xc58] sm:$0xff] }
 0x169   :  { %5416 = vmatpush.bf16.msrb.mxu3 %v8485_v34  ;;  %v9885_v55 = vadd.f32 %v5164_v53, %v5152_v52  ;;  %v8506_v34 = vld [vmem:[%s10570_s1 + $0xc98] sm:$0xff]  ;;  %v8487_v52 = vld [vmem:[%s10570_s1 + $0xc00] sm:$0xff] }
 0x16a   :  { %5378 = vmatpush.bf16.msrb.mxu0 %v8460_v35  ;;  %v8514_v35 = vld [vmem:[%s10570_s1 + $0xcd8] sm:$0xff]  ;;  %v8495_v53 = vld [vmem:[%s10570_s1 + $0xc40] sm:$0xff] }
 0x16b   :  { %5391 = vmatpush.bf16.msrb.mxu1 %v8468_v36  ;;  %v8542_v58 = vld [vmem:[%s10570_s1 + $0xdb8] sm:$0xff] }
 0x16c   :  { %5404 = vmatpush.bf16.msrb.mxu2 %v8476_v37 }
 0x16d   :  { %5417 = vmatpush.bf16.msrb.mxu3 %v8484_v38 }
 0x16e   :  { %5379 = vmatpush.bf16.msrb.mxu0 %v8459_v41  ;;  %v5153_v3 = vpop.f32.mrf.mxu2  ;;  %v8489_v41 = vld [vmem:[%s10570_s1 + $0xc10] sm:$0xff] }
 0x16f   :  { %5392 = vmatpush.bf16.msrb.mxu1 %v8467_v42  ;;  %v5166_v6 = vpop.f32.mrf.mxu3  ;;  %v8497_v42 = vld [vmem:[%s10570_s1 + $0xc50] sm:$0xff] }
 0x170   :  { %5405 = vmatpush.bf16.msrb.mxu2 %v8475_v44  ;;  %v8505_v44 = vld [vmem:[%s10570_s1 + $0xc90] sm:$0xff]  ;;  %v8540_v6 = vld [vmem:[%s10570_s1 + $0xda8] sm:$0xff] }
 0x171   :  { %5418 = vmatpush.bf16.msrb.mxu3 %v8483_v45  ;;  %v8513_v45 = vld [vmem:[%s10570_s1 + $0xcd0] sm:$0xff] }
 0x172   :  { %5380 = vmatpush.bf16.msrb.mxu0 %v8458_v47  ;;  %v8496_v47 = vld [vmem:[%s10570_s1 + $0xc48] sm:$0xff]  ;;  %v8549_v3 = vld [vmem:[%s10570_s1 + $0xdf0] sm:$0xff] }
 0x173   :  { %5393 = vmatpush.bf16.msrb.mxu1 %v8466_v48  ;;  %v8504_v48 = vld [vmem:[%s10570_s1 + $0xc88] sm:$0xff] }
 0x174   :  { %5406 = vmatpush.bf16.msrb.mxu2 %v8474_v49  ;;  %v8512_v49 = vld [vmem:[%s10570_s1 + $0xcc8] sm:$0xff] }
 0x175   :  { %5419 = vmatpush.bf16.msrb.mxu3 %v8482_v50 }
 0x176   :  { %5381 = vmatpush.bf16.msrb.mxu0 %v8457_v56  ;;  %v8526_v56 = vld [vmem:[%s10570_s1 + $0xd38] sm:$0xff] }
 0x177   :  { %5394 = vmatpush.bf16.msrb.mxu1 %v8465_v57  ;;  %v8534_v57 = vld [vmem:[%s10570_s1 + $0xd78] sm:$0xff] }
 0x178   :  { %5407 = vmatpush.bf16.msrb.mxu2 %v8473_v59  ;;  %v8550_v59 = vld [vmem:[%s10570_s1 + $0xdf8] sm:$0xff] }
 0x179   :  { %5420 = vmatpush.bf16.msrb.mxu3 %v8481_v60  ;;  %v1248_v60 = vld [vmem:[#allocation1] sm:$0xff] }
 0x17a   :  { %5382 = vmatpush.bf16.msrb.mxu0 %v8456_v61  ;;  %v1250_v61 = vld [vmem:[#allocation1 + $0x12] sm:$0xff] }
 0x17b   :  { %5395 = vmatpush.bf16.msrb.mxu1 %v8464_v62  ;;  %v1249_v62 = vld [vmem:[#allocation1 + $0x9] sm:$0xff] }
 0x17c   :  { %5408 = vmatpush.bf16.msrb.mxu2 %v8472_v63  ;;  %v1251_v63 = vld [vmem:[#allocation1 + $0x1b] sm:$0xff] }
 0x17d   :  { %5421 = vmatpush.bf16.msrb.mxu3 %v8480_v0  ;;  %v8525_v0 = vld [vmem:[%s10570_s1 + $0xd30] sm:$0xff] }
 0x17e   :  { %5383 = vmatpush.bf16.msrb.mxu0 %v8455_v8  ;;  %v5177_v24 = vpop.f32.mrf.mxu0 }
 0x17f   :  { %5396 = vmatpush.bf16.msrb.mxu1 %v8463_v9  ;;  %v5178_v25 = vadd.f32 %v5177_v24, %v9885_v55  ;;  %v5190_v28 = vpop.f32.mrf.mxu1  ;;  %v8511_v55 = vld [vmem:[%s10570_s1 + $0xcc0] sm:$0xff] }
 0x180   :  { %5409 = vmatpush.bf16.msrb.mxu2 %v8471_v10  ;;  %v8523_v10 = vld [vmem:[%s10570_s1 + $0xd20] sm:$0xff] }
 0x181   :  { %5422 = vmatpush.bf16.msrb.mxu3 %v8479_v11  ;;  %5384 = vmatmul.bf16.vlgmr.msrb.gmra.mxu0 %v1242_v1  ;;  %v5191_v31 = vadd.f32 %v5190_v28, %v5178_v25  ;;  %v8533_v1 = vld [vmem:[%s10570_s1 + $0xd70] sm:$0xff]  ;;  %v8531_v11 = vld [vmem:[%s10570_s1 + $0xd60] sm:$0xff] }
 0x182   :  { %5428 = vmatpush.bf16.msra.mxu0 %v8494_v12  ;;  %5397 = vmatmul.bf16.vlgmr.msrb.gmra.mxu1 %v1243_v4  ;;  %v8524_v4 = vld [vmem:[%s10570_s1 + $0xd28] sm:$0xff]  ;;  %v8521_v25 = vld [vmem:[%s10570_s1 + $0xd10] sm:$0xff] }
 0x183   :  { %5441 = vmatpush.bf16.msra.mxu1 %v8502_v13  ;;  %5410 = vmatmul.bf16.vlgmr.msrb.gmra.mxu2 %v1244_v2  ;;  %v8541_v2 = vld [vmem:[%s10570_s1 + $0xdb0] sm:$0xff]  ;;  %v8539_v13 = vld [vmem:[%s10570_s1 + $0xda0] sm:$0xff] }
 0x184   :  { %5454 = vmatpush.bf16.msra.mxu2 %v8510_v14  ;;  %5423 = vmatmul.bf16.vlgmr.msrb.gmra.mxu3 %v1245_v5  ;;  %v8532_v5 = vld [vmem:[%s10570_s1 + $0xd68] sm:$0xff]  ;;  %v8547_v14 = vld [vmem:[%s10570_s1 + $0xde0] sm:$0xff]  ;;  %v8537_v28 = vld [vmem:[%s10570_s1 + $0xd90] sm:$0xff] }
 0x185   :  { %5467 = vmatpush.bf16.msra.mxu3 %v8518_v15 }
 0x186   :  { %5429 = vmatpush.bf16.msra.mxu0 %v8493_v16  ;;  %v5203_v36 = vpop.f32.mrf.mxu2  ;;  %v5179_v39 = vpop.f32.mrf.mxu0  ;;  %v8522_v16 = vld [vmem:[%s10570_s1 + $0xd18] sm:$0xff] }
 0x187   :  { %5442 = vmatpush.bf16.msra.mxu1 %v8501_v17  ;;  %v5204_v37 = vadd.f32 %v5203_v36, %v5191_v31  ;;  %v5216_v38 = vpop.f32.mrf.mxu3  ;;  %v5192_v43 = vpop.f32.mrf.mxu1  ;;  %v8530_v17 = vld [vmem:[%s10570_s1 + $0xd58] sm:$0xff]  ;;  %v8528_v31 = vld [vmem:[%s10570_s1 + $0xd48] sm:$0xff] }
 0x188   :  { %5455 = vmatpush.bf16.msra.mxu2 %v8509_v18  ;;  %v8538_v18 = vld [vmem:[%s10570_s1 + $0xd98] sm:$0xff]  ;;  %v8535_v43 = vld [vmem:[%s10570_s1 + $0xd80] sm:$0xff] }
 0x189   :  { %5468 = vmatpush.bf16.msra.mxu3 %v8517_v19  ;;  %v5217_v40 = vadd.f32 %v5216_v38, %v5204_v37  ;;  %v8546_v19 = vld [vmem:[%s10570_s1 + $0xdd8] sm:$0xff]  ;;  %v1253_v37 = vld [vmem:[#allocation1 + $0x2d] sm:$0xff] }
 0x18a   :  { %5430 = vmatpush.bf16.msra.mxu0 %v8492_v20  ;;  %v1255_v38 = vld [vmem:[#allocation1 + $0x3f] sm:$0xff] }
 0x18b   :  { %5443 = vmatpush.bf16.msra.mxu1 %v8500_v21 }
 0x18c   :  { %5456 = vmatpush.bf16.msra.mxu2 %v8508_v22 }
 0x18d   :  { %5469 = vmatpush.bf16.msra.mxu3 %v8516_v23 }
 0x18e   :  { %5431 = vmatpush.bf16.msra.mxu0 %v8491_v26  ;;  %v5205_v50 = vpop.f32.mrf.mxu2  ;;  %v8529_v26 = vld [vmem:[%s10570_s1 + $0xd50] sm:$0xff] }
 0x18f   :  { %5444 = vmatpush.bf16.msra.mxu1 %v8499_v27  ;;  %v5218_v51 = vpop.f32.mrf.mxu3  ;;  %v8565_v50 = vld [vmem:[%s10570_s1 + $0xe70] sm:$0xff] }
 0x190   :  { %5457 = vmatpush.bf16.msra.mxu2 %v8507_v29  ;;  %v8545_v29 = vld [vmem:[%s10570_s1 + $0xdd0] sm:$0xff] }
 0x191   :  { %5470 = vmatpush.bf16.msra.mxu3 %v8515_v30  ;;  %v8520_v30 = vld [vmem:[%s10570_s1 + $0xd08] sm:$0xff]  ;;  %v8573_v51 = vld [vmem:[%s10570_s1 + $0xeb0] sm:$0xff] }
 0x192   :  { %5432 = vmatpush.bf16.msra.mxu0 %v8490_v32  ;;  %v8536_v32 = vld [vmem:[%s10570_s1 + $0xd88] sm:$0xff] }
 0x193   :  { %5445 = vmatpush.bf16.msra.mxu1 %v8498_v33  ;;  %v8544_v33 = vld [vmem:[%s10570_s1 + $0xdc8] sm:$0xff] }
 0x194   :  { %5458 = vmatpush.bf16.msra.mxu2 %v8506_v34  ;;  %v1252_v34 = vld [vmem:[#allocation1 + $0x24] sm:$0xff] }
 0x195   :  { %5471 = vmatpush.bf16.msra.mxu3 %v8514_v35  ;;  %v1254_v35 = vld [vmem:[#allocation1 + $0x36] sm:$0xff] }
 0x196   :  { %5433 = vmatpush.bf16.msra.mxu0 %v8489_v41  ;;  %v8519_v41 = vld [vmem:[%s10570_s1 + $0xd00] sm:$0xff] }
 0x197   :  { %5446 = vmatpush.bf16.msra.mxu1 %v8497_v42  ;;  %v8527_v42 = vld [vmem:[%s10570_s1 + $0xd40] sm:$0xff] }
 0x198   :  { %5459 = vmatpush.bf16.msra.mxu2 %v8505_v44  ;;  %v8543_v44 = vld [vmem:[%s10570_s1 + $0xdc0] sm:$0xff] }
 0x199   :  { %5472 = vmatpush.bf16.msra.mxu3 %v8513_v45  ;;  %v8558_v45 = vld [vmem:[%s10570_s1 + $0xe38] sm:$0xff] }
 0x19a   :  { %5434 = vmatpush.bf16.msra.mxu0 %v8488_v46  ;;  %v8566_v46 = vld [vmem:[%s10570_s1 + $0xe78] sm:$0xff] }
 0x19b   :  { %5447 = vmatpush.bf16.msra.mxu1 %v8496_v47  ;;  %v8574_v47 = vld [vmem:[%s10570_s1 + $0xeb8] sm:$0xff] }
 0x19c   :  { %5460 = vmatpush.bf16.msra.mxu2 %v8504_v48  ;;  %v8582_v48 = vld [vmem:[%s10570_s1 + $0xef8] sm:$0xff] }
 0x19d   :  { %5473 = vmatpush.bf16.msra.mxu3 %v8512_v49  ;;  %v8557_v49 = vld [vmem:[%s10570_s1 + $0xe30] sm:$0xff] }
 0x19e   :  { %5435 = vmatpush.bf16.msra.mxu0 %v8487_v52  ;;  %v5229_v8 = vpop.f32.mrf.mxu0  ;;  %v8581_v52 = vld [vmem:[%s10570_s1 + $0xef0] sm:$0xff] }
 0x19f   :  { %5448 = vmatpush.bf16.msra.mxu1 %v8495_v53  ;;  %v5230_v9 = vadd.f32 %v5229_v8, %v5217_v40  ;;  %v5242_v12 = vpop.f32.mrf.mxu1  ;;  %v28_v40 = vld [vmem:[%s10569_s0 + $0x38] sm:$0xff]  ;;  %v8556_v53 = vld [vmem:[%s10570_s1 + $0xe28] sm:$0xff] }
 0x1a0   :  { %5461 = vmatpush.bf16.msra.mxu2 %v8503_v54  ;;  %1257 = vst [vmem:[#allocation1] ss:$9 sm:$0xff] %v28_v40  ;;  %v8564_v54 = vld [vmem:[%s10570_s1 + $0xe68] sm:$0xff] }
 0x1a1   :  { %5474 = vmatpush.bf16.msra.mxu3 %v8511_v55  ;;  %5436 = vmatmul.bf16.vlgmr.msra.gmra.mxu0 %v1248_v60  ;;  %v5243_v15 = vadd.f32 %v5242_v12, %v5230_v9  ;;  %v8572_v55 = vld [vmem:[%s10570_s1 + $0xea8] sm:$0xff]  ;;  %v8563_v60 = vld [vmem:[%s10570_s1 + $0xe60] sm:$0xff] }
 0x1a2   :  { %5480 = vmatpush.bf16.msrb.mxu0 %v8526_v56  ;;  %5449 = vmatmul.bf16.vlgmr.msra.gmra.mxu1 %v1249_v62  ;;  %v8580_v56 = vld [vmem:[%s10570_s1 + $0xee8] sm:$0xff]  ;;  %v8571_v62 = vld [vmem:[%s10570_s1 + $0xea0] sm:$0xff] }
 0x1a3   :  { %5493 = vmatpush.bf16.msrb.mxu1 %v8534_v57  ;;  %5462 = vmatmul.bf16.vlgmr.msra.gmra.mxu2 %v1250_v61  ;;  %v8612_v40 = vld [vmem:[%s10570_s1 + $0xfe8] sm:$0xff] }
 0x1a4   :  { %5506 = vmatpush.bf16.msrb.mxu2 %v8542_v58  ;;  %5475 = vmatmul.bf16.vlgmr.msra.gmra.mxu3 %v1251_v63  ;;  %v8579_v63 = vld [vmem:[%s10570_s1 + $0xee0] sm:$0xff] }
 0x1a5   :  { %5519 = vmatpush.bf16.msrb.mxu3 %v8550_v59  ;;  %v8555_v59 = vld [vmem:[%s10570_s1 + $0xe20] sm:$0xff] }
 0x1a6   :  { %5481 = vmatpush.bf16.msrb.mxu0 %v8525_v0  ;;  %v5255_v20 = vpop.f32.mrf.mxu2  ;;  %v5231_v23 = vpop.f32.mrf.mxu0 }
 0x1a7   :  { %5494 = vmatpush.bf16.msrb.mxu1 %v8533_v1  ;;  %v5256_v21 = vadd.f32 %v5255_v20, %v5243_v15  ;;  %v5268_v22 = vpop.f32.mrf.mxu3  ;;  %v5244_v27 = vpop.f32.mrf.mxu1  ;;  %v8554_v1 = vld [vmem:[%s10570_s1 + $0xe18] sm:$0xff]  ;;  %v8552_v15 = vld [vmem:[%s10570_s1 + $0xe08] sm:$0xff]  ;;  %v8567_v23 = vld [vmem:[%s10570_s1 + $0xe80] sm:$0xff] }
 0x1a8   :  { %5507 = vmatpush.bf16.msrb.mxu2 %v8541_v2  ;;  %v8562_v2 = vld [vmem:[%s10570_s1 + $0xe58] sm:$0xff] }
 0x1a9   :  { %5520 = vmatpush.bf16.msrb.mxu3 %v8549_v3  ;;  %v10083_v24 = vadd.f32 %v5268_v22, %v5256_v21  ;;  %v8570_v3 = vld [vmem:[%s10570_s1 + $0xe98] sm:$0xff]  ;;  %v8551_v21 = vld [vmem:[%s10570_s1 + $0xe00] sm:$0xff] }
 0x1aa   :  { %5482 = vmatpush.bf16.msrb.mxu0 %v8524_v4  ;;  %v8578_v4 = vld [vmem:[%s10570_s1 + $0xed8] sm:$0xff]  ;;  %v8559_v22 = vld [vmem:[%s10570_s1 + $0xe40] sm:$0xff] }
 0x1ab   :  { %5495 = vmatpush.bf16.msrb.mxu1 %v8532_v5  ;;  %v8606_v27 = vld [vmem:[%s10570_s1 + $0xfb8] sm:$0xff] }
 0x1ac   :  { %5508 = vmatpush.bf16.msrb.mxu2 %v8540_v6 }
 0x1ad   :  { %5521 = vmatpush.bf16.msrb.mxu3 %v8548_v7 }
 0x1ae   :  { %5483 = vmatpush.bf16.msrb.mxu0 %v8523_v10  ;;  %v5257_v36 = vpop.f32.mrf.mxu2  ;;  %v8553_v10 = vld [vmem:[%s10570_s1 + $0xe10] sm:$0xff] }
 0x1af   :  { %5496 = vmatpush.bf16.msrb.mxu1 %v8531_v11  ;;  %v5270_v39 = vpop.f32.mrf.mxu3  ;;  %v8561_v11 = vld [vmem:[%s10570_s1 + $0xe50] sm:$0xff] }
 0x1b0   :  { %5509 = vmatpush.bf16.msrb.mxu2 %v8539_v13  ;;  %v8569_v13 = vld [vmem:[%s10570_s1 + $0xe90] sm:$0xff]  ;;  %v8604_v39 = vld [vmem:[%s10570_s1 + $0xfa8] sm:$0xff] }
 0x1b1   :  { %5522 = vmatpush.bf16.msrb.mxu3 %v8547_v14  ;;  %v8577_v14 = vld [vmem:[%s10570_s1 + $0xed0] sm:$0xff] }
 0x1b2   :  { %5484 = vmatpush.bf16.msrb.mxu0 %v8522_v16  ;;  %v8560_v16 = vld [vmem:[%s10570_s1 + $0xe48] sm:$0xff]  ;;  %v8613_v36 = vld [vmem:[%s10570_s1 + $0xff0] sm:$0xff] }
 0x1b3   :  { %5497 = vmatpush.bf16.msrb.mxu1 %v8530_v17  ;;  %v8568_v17 = vld [vmem:[%s10570_s1 + $0xe88] sm:$0xff] }
 0x1b4   :  { %5510 = vmatpush.bf16.msrb.mxu2 %v8538_v18  ;;  %v8576_v18 = vld [vmem:[%s10570_s1 + $0xec8] sm:$0xff] }
 0x1b5   :  { %5523 = vmatpush.bf16.msrb.mxu3 %v8546_v19 }
 0x1b6   :  { %5485 = vmatpush.bf16.msrb.mxu0 %v8521_v25  ;;  %v8590_v25 = vld [vmem:[%s10570_s1 + $0xf38] sm:$0xff] }
 0x1b7   :  { %5498 = vmatpush.bf16.msrb.mxu1 %v8529_v26  ;;  %v8598_v26 = vld [vmem:[%s10570_s1 + $0xf78] sm:$0xff] }
 0x1b8   :  { %5511 = vmatpush.bf16.msrb.mxu2 %v8537_v28  ;;  %v8614_v28 = vld [vmem:[%s10570_s1 + $0xff8] sm:$0xff] }
 0x1b9   :  { %5524 = vmatpush.bf16.msrb.mxu3 %v8545_v29  ;;  %v1258_v29 = vld [vmem:[#allocation1] sm:$0xff] }
 0x1ba   :  { %5486 = vmatpush.bf16.msrb.mxu0 %v8520_v30  ;;  %v1260_v30 = vld [vmem:[#allocation1 + $0x12] sm:$0xff] }
 0x1bb   :  { %5499 = vmatpush.bf16.msrb.mxu1 %v8528_v31  ;;  %v1259_v31 = vld [vmem:[#allocation1 + $0x9] sm:$0xff] }
 0x1bc   :  { %5512 = vmatpush.bf16.msrb.mxu2 %v8536_v32  ;;  %v1261_v32 = vld [vmem:[#allocation1 + $0x1b] sm:$0xff] }
 0x1bd   :  { %5525 = vmatpush.bf16.msrb.mxu3 %v8544_v33  ;;  %v8589_v33 = vld [vmem:[%s10570_s1 + $0xf30] sm:$0xff] }
 0x1be   :  { %5487 = vmatpush.bf16.msrb.mxu0 %v8519_v41  ;;  %v5281_v57 = vpop.f32.mrf.mxu0 }
 0x1bf   :  { %5500 = vmatpush.bf16.msrb.mxu1 %v8527_v42  ;;  %v5282_v58 = vadd.f32 %v5281_v57, %v10083_v24  ;;  %v5294_v61 = vpop.f32.mrf.mxu1  ;;  %v8575_v24 = vld [vmem:[%s10570_s1 + $0xec0] sm:$0xff] }
 0x1c0   :  { %5513 = vmatpush.bf16.msrb.mxu2 %v8535_v43  ;;  %v8587_v43 = vld [vmem:[%s10570_s1 + $0xf20] sm:$0xff] }
 0x1c1   :  { %5526 = vmatpush.bf16.msrb.mxu3 %v8543_v44  ;;  %5488 = vmatmul.bf16.vlgmr.msrb.gmra.mxu0 %v1252_v34  ;;  %v5295_v0 = vadd.f32 %v5294_v61, %v5282_v58  ;;  %v8597_v34 = vld [vmem:[%s10570_s1 + $0xf70] sm:$0xff]  ;;  %v8595_v44 = vld [vmem:[%s10570_s1 + $0xf60] sm:$0xff] }
 0x1c2   :  { %5532 = vmatpush.bf16.msra.mxu0 %v8558_v45  ;;  %5501 = vmatmul.bf16.vlgmr.msrb.gmra.mxu1 %v1253_v37  ;;  %v8588_v37 = vld [vmem:[%s10570_s1 + $0xf28] sm:$0xff]  ;;  %v8585_v58 = vld [vmem:[%s10570_s1 + $0xf10] sm:$0xff] }
 0x1c3   :  { %5545 = vmatpush.bf16.msra.mxu1 %v8566_v46  ;;  %5514 = vmatmul.bf16.vlgmr.msrb.gmra.mxu2 %v1254_v35  ;;  %v8605_v35 = vld [vmem:[%s10570_s1 + $0xfb0] sm:$0xff]  ;;  %v8603_v46 = vld [vmem:[%s10570_s1 + $0xfa0] sm:$0xff] }
 0x1c4   :  { %5558 = vmatpush.bf16.msra.mxu2 %v8574_v47  ;;  %5527 = vmatmul.bf16.vlgmr.msrb.gmra.mxu3 %v1255_v38  ;;  %v8596_v38 = vld [vmem:[%s10570_s1 + $0xf68] sm:$0xff]  ;;  %v8611_v47 = vld [vmem:[%s10570_s1 + $0xfe0] sm:$0xff]  ;;  %v8601_v61 = vld [vmem:[%s10570_s1 + $0xf90] sm:$0xff] }
 0x1c5   :  { %5571 = vmatpush.bf16.msra.mxu3 %v8582_v48 }
 0x1c6   :  { %5533 = vmatpush.bf16.msra.mxu0 %v8557_v49  ;;  %v5307_v5 = vpop.f32.mrf.mxu2  ;;  %v5283_v8 = vpop.f32.mrf.mxu0  ;;  %v8586_v49 = vld [vmem:[%s10570_s1 + $0xf18] sm:$0xff] }
 0x1c7   :  { %5546 = vmatpush.bf16.msra.mxu1 %v8565_v50  ;;  %v5308_v6 = vadd.f32 %v5307_v5, %v5295_v0  ;;  %v5320_v7 = vpop.f32.mrf.mxu3  ;;  %v5296_v12 = vpop.f32.mrf.mxu1  ;;  %v8594_v50 = vld [vmem:[%s10570_s1 + $0xf58] sm:$0xff]  ;;  %v8592_v0 = vld [vmem:[%s10570_s1 + $0xf48] sm:$0xff] }
 0x1c8   :  { %5559 = vmatpush.bf16.msra.mxu2 %v8573_v51  ;;  %v8602_v51 = vld [vmem:[%s10570_s1 + $0xf98] sm:$0xff]  ;;  %v8599_v12 = vld [vmem:[%s10570_s1 + $0xf80] sm:$0xff] }
 0x1c9   :  { %5572 = vmatpush.bf16.msra.mxu3 %v8581_v52  ;;  %v5321_v9 = vadd.f32 %v5320_v7, %v5308_v6  ;;  %v8610_v52 = vld [vmem:[%s10570_s1 + $0xfd8] sm:$0xff]  ;;  %v1263_v6 = vld [vmem:[#allocation1 + $0x2d] sm:$0xff] }
 0x1ca   :  { %5534 = vmatpush.bf16.msra.mxu0 %v8556_v53  ;;  %v1265_v7 = vld [vmem:[#allocation1 + $0x3f] sm:$0xff] }
 0x1cb   :  { %5547 = vmatpush.bf16.msra.mxu1 %v8564_v54 }
 0x1cc   :  { %5560 = vmatpush.bf16.msra.mxu2 %v8572_v55 }
 0x1cd   :  { %5573 = vmatpush.bf16.msra.mxu3 %v8580_v56 }
 0x1ce   :  { %5535 = vmatpush.bf16.msra.mxu0 %v8555_v59  ;;  %v5309_v19 = vpop.f32.mrf.mxu2  ;;  %v8593_v59 = vld [vmem:[%s10570_s1 + $0xf50] sm:$0xff] }
 0x1cf   :  { %5548 = vmatpush.bf16.msra.mxu1 %v8563_v60  ;;  %v5322_v20 = vpop.f32.mrf.mxu3  ;;  %v8629_v19 = vld [vmem:[%s10570_s1 + $0x1070] sm:$0xff] }
 0x1d0   :  { %5561 = vmatpush.bf16.msra.mxu2 %v8571_v62  ;;  %v8609_v62 = vld [vmem:[%s10570_s1 + $0xfd0] sm:$0xff] }
 0x1d1   :  { %5574 = vmatpush.bf16.msra.mxu3 %v8579_v63  ;;  %v8584_v63 = vld [vmem:[%s10570_s1 + $0xf08] sm:$0xff]  ;;  %v8637_v20 = vld [vmem:[%s10570_s1 + $0x10b0] sm:$0xff] }
 0x1d2   :  { %5536 = vmatpush.bf16.msra.mxu0 %v8554_v1  ;;  %v8600_v1 = vld [vmem:[%s10570_s1 + $0xf88] sm:$0xff] }
 0x1d3   :  { %5549 = vmatpush.bf16.msra.mxu1 %v8562_v2  ;;  %v8608_v2 = vld [vmem:[%s10570_s1 + $0xfc8] sm:$0xff] }
 0x1d4   :  { %5562 = vmatpush.bf16.msra.mxu2 %v8570_v3  ;;  %v1262_v3 = vld [vmem:[#allocation1 + $0x24] sm:$0xff] }
 0x1d5   :  { %5575 = vmatpush.bf16.msra.mxu3 %v8578_v4  ;;  %v1264_v4 = vld [vmem:[#allocation1 + $0x36] sm:$0xff] }
 0x1d6   :  { %5537 = vmatpush.bf16.msra.mxu0 %v8553_v10  ;;  %v8583_v10 = vld [vmem:[%s10570_s1 + $0xf00] sm:$0xff] }
 0x1d7   :  { %5550 = vmatpush.bf16.msra.mxu1 %v8561_v11  ;;  %v8591_v11 = vld [vmem:[%s10570_s1 + $0xf40] sm:$0xff] }
 0x1d8   :  { %5563 = vmatpush.bf16.msra.mxu2 %v8569_v13  ;;  %v8607_v13 = vld [vmem:[%s10570_s1 + $0xfc0] sm:$0xff] }
 0x1d9   :  { %5576 = vmatpush.bf16.msra.mxu3 %v8577_v14  ;;  %v8622_v14 = vld [vmem:[%s10570_s1 + $0x1038] sm:$0xff] }
 0x1da   :  { %5538 = vmatpush.bf16.msra.mxu0 %v8552_v15  ;;  %v8630_v15 = vld [vmem:[%s10570_s1 + $0x1078] sm:$0xff] }
 0x1db   :  { %5551 = vmatpush.bf16.msra.mxu1 %v8560_v16  ;;  %v8638_v16 = vld [vmem:[%s10570_s1 + $0x10b8] sm:$0xff] }
 0x1dc   :  { %5564 = vmatpush.bf16.msra.mxu2 %v8568_v17  ;;  %v8646_v17 = vld [vmem:[%s10570_s1 + $0x10f8] sm:$0xff] }
 0x1dd   :  { %5577 = vmatpush.bf16.msra.mxu3 %v8576_v18  ;;  %v8621_v18 = vld [vmem:[%s10570_s1 + $0x1030] sm:$0xff] }
 0x1de   :  { %5539 = vmatpush.bf16.msra.mxu0 %v8551_v21  ;;  %v5333_v41 = vpop.f32.mrf.mxu0  ;;  %v8645_v21 = vld [vmem:[%s10570_s1 + $0x10f0] sm:$0xff] }
 0x1df   :  { %5552 = vmatpush.bf16.msra.mxu1 %v8559_v22  ;;  %v5334_v42 = vadd.f32 %v5333_v41, %v5321_v9  ;;  %v5346_v45 = vpop.f32.mrf.mxu1  ;;  %v29_v9 = vld [vmem:[%s10569_s0 + $0x40] sm:$0xff]  ;;  %v8620_v22 = vld [vmem:[%s10570_s1 + $0x1028] sm:$0xff] }
 0x1e0   :  { %5565 = vmatpush.bf16.msra.mxu2 %v8567_v23  ;;  %1267 = vst [vmem:[#allocation1] ss:$9 sm:$0xff] %v29_v9  ;;  %v8628_v23 = vld [vmem:[%s10570_s1 + $0x1068] sm:$0xff] }
 0x1e1   :  { %5578 = vmatpush.bf16.msra.mxu3 %v8575_v24  ;;  %5540 = vmatmul.bf16.vlgmr.msra.gmra.mxu0 %v1258_v29  ;;  %v5347_v48 = vadd.f32 %v5346_v45, %v5334_v42  ;;  %v8636_v24 = vld [vmem:[%s10570_s1 + $0x10a8] sm:$0xff]  ;;  %v8627_v29 = vld [vmem:[%s10570_s1 + $0x1060] sm:$0xff] }
 0x1e2   :  { %5584 = vmatpush.bf16.msrb.mxu0 %v8590_v25  ;;  %5553 = vmatmul.bf16.vlgmr.msra.gmra.mxu1 %v1259_v31  ;;  %v8644_v25 = vld [vmem:[%s10570_s1 + $0x10e8] sm:$0xff]  ;;  %v8635_v31 = vld [vmem:[%s10570_s1 + $0x10a0] sm:$0xff] }
 0x1e3   :  { %5597 = vmatpush.bf16.msrb.mxu1 %v8598_v26  ;;  %5566 = vmatmul.bf16.vlgmr.msra.gmra.mxu2 %v1260_v30  ;;  %v8676_v9 = vld [vmem:[%s10570_s1 + $0x11e8] sm:$0xff] }
 0x1e4   :  { %5610 = vmatpush.bf16.msrb.mxu2 %v8606_v27  ;;  %5579 = vmatmul.bf16.vlgmr.msra.gmra.mxu3 %v1261_v32  ;;  %v8643_v32 = vld [vmem:[%s10570_s1 + $0x10e0] sm:$0xff] }
 0x1e5   :  { %5623 = vmatpush.bf16.msrb.mxu3 %v8614_v28  ;;  %v8619_v28 = vld [vmem:[%s10570_s1 + $0x1020] sm:$0xff] }
 0x1e6   :  { %5585 = vmatpush.bf16.msrb.mxu0 %v8589_v33  ;;  %v5359_v53 = vpop.f32.mrf.mxu2  ;;  %v5335_v56 = vpop.f32.mrf.mxu0 }
 0x1e7   :  { %5598 = vmatpush.bf16.msrb.mxu1 %v8597_v34  ;;  %v5360_v54 = vadd.f32 %v5359_v53, %v5347_v48  ;;  %v5372_v55 = vpop.f32.mrf.mxu3  ;;  %v5348_v60 = vpop.f32.mrf.mxu1  ;;  %v8618_v34 = vld [vmem:[%s10570_s1 + $0x1018] sm:$0xff]  ;;  %v8616_v48 = vld [vmem:[%s10570_s1 + $0x1008] sm:$0xff]  ;;  %v8631_v56 = vld [vmem:[%s10570_s1 + $0x1080] sm:$0xff] }
 0x1e8   :  { %5611 = vmatpush.bf16.msrb.mxu2 %v8605_v35  ;;  %v8626_v35 = vld [vmem:[%s10570_s1 + $0x1058] sm:$0xff] }
 0x1e9   :  { %5624 = vmatpush.bf16.msrb.mxu3 %v8613_v36  ;;  %v10281_v57 = vadd.f32 %v5372_v55, %v5360_v54  ;;  %v8634_v36 = vld [vmem:[%s10570_s1 + $0x1098] sm:$0xff]  ;;  %v8615_v54 = vld [vmem:[%s10570_s1 + $0x1000] sm:$0xff] }
 0x1ea   :  { %5586 = vmatpush.bf16.msrb.mxu0 %v8588_v37  ;;  %v8642_v37 = vld [vmem:[%s10570_s1 + $0x10d8] sm:$0xff]  ;;  %v8623_v55 = vld [vmem:[%s10570_s1 + $0x1040] sm:$0xff] }
 0x1eb   :  { %5599 = vmatpush.bf16.msrb.mxu1 %v8596_v38  ;;  %v8670_v60 = vld [vmem:[%s10570_s1 + $0x11b8] sm:$0xff] }
 0x1ec   :  { %5612 = vmatpush.bf16.msrb.mxu2 %v8604_v39 }
 0x1ed   :  { %5625 = vmatpush.bf16.msrb.mxu3 %v8612_v40 }
 0x1ee   :  { %5587 = vmatpush.bf16.msrb.mxu0 %v8587_v43  ;;  %v5361_v5 = vpop.f32.mrf.mxu2  ;;  %v8617_v43 = vld [vmem:[%s10570_s1 + $0x1010] sm:$0xff] }
 0x1ef   :  { %5600 = vmatpush.bf16.msrb.mxu1 %v8595_v44  ;;  %v5374_v8 = vpop.f32.mrf.mxu3  ;;  %v8625_v44 = vld [vmem:[%s10570_s1 + $0x1050] sm:$0xff] }
 0x1f0   :  { %5613 = vmatpush.bf16.msrb.mxu2 %v8603_v46  ;;  %v8633_v46 = vld [vmem:[%s10570_s1 + $0x1090] sm:$0xff]  ;;  %v8668_v8 = vld [vmem:[%s10570_s1 + $0x11a8] sm:$0xff] }
 0x1f1   :  { %5626 = vmatpush.bf16.msrb.mxu3 %v8611_v47  ;;  %v8641_v47 = vld [vmem:[%s10570_s1 + $0x10d0] sm:$0xff] }
 0x1f2   :  { %5588 = vmatpush.bf16.msrb.mxu0 %v8586_v49  ;;  %v8624_v49 = vld [vmem:[%s10570_s1 + $0x1048] sm:$0xff]  ;;  %v8677_v5 = vld [vmem:[%s10570_s1 + $0x11f0] sm:$0xff] }
 0x1f3   :  { %5601 = vmatpush.bf16.msrb.mxu1 %v8594_v50  ;;  %v8632_v50 = vld [vmem:[%s10570_s1 + $0x1088] sm:$0xff] }
 0x1f4   :  { %5614 = vmatpush.bf16.msrb.mxu2 %v8602_v51  ;;  %v8640_v51 = vld [vmem:[%s10570_s1 + $0x10c8] sm:$0xff] }
 0x1f5   :  { %5627 = vmatpush.bf16.msrb.mxu3 %v8610_v52 }
 0x1f6   :  { %5589 = vmatpush.bf16.msrb.mxu0 %v8585_v58  ;;  %v8654_v58 = vld [vmem:[%s10570_s1 + $0x1138] sm:$0xff] }
 0x1f7   :  { %5602 = vmatpush.bf16.msrb.mxu1 %v8593_v59  ;;  %v8662_v59 = vld [vmem:[%s10570_s1 + $0x1178] sm:$0xff] }
 0x1f8   :  { %5615 = vmatpush.bf16.msrb.mxu2 %v8601_v61  ;;  %v8678_v61 = vld [vmem:[%s10570_s1 + $0x11f8] sm:$0xff] }
 0x1f9   :  { %5628 = vmatpush.bf16.msrb.mxu3 %v8609_v62  ;;  %v1268_v62 = vld [vmem:[#allocation1] sm:$0xff] }
 0x1fa   :  { %5590 = vmatpush.bf16.msrb.mxu0 %v8584_v63  ;;  %v1270_v63 = vld [vmem:[#allocation1 + $0x12] sm:$0xff] }
 0x1fb   :  { %5603 = vmatpush.bf16.msrb.mxu1 %v8592_v0  ;;  %v1269_v0 = vld [vmem:[#allocation1 + $0x9] sm:$0xff] }
 0x1fc   :  { %5616 = vmatpush.bf16.msrb.mxu2 %v8600_v1  ;;  %v1271_v1 = vld [vmem:[#allocation1 + $0x1b] sm:$0xff] }
 0x1fd   :  { %5629 = vmatpush.bf16.msrb.mxu3 %v8608_v2  ;;  %v8653_v2 = vld [vmem:[%s10570_s1 + $0x1130] sm:$0xff] }
 0x1fe   :  { %5591 = vmatpush.bf16.msrb.mxu0 %v8583_v10  ;;  %v5385_v26 = vpop.f32.mrf.mxu0 }
 0x1ff   :  { %5604 = vmatpush.bf16.msrb.mxu1 %v8591_v11  ;;  %v5386_v27 = vadd.f32 %v5385_v26, %v10281_v57  ;;  %v5398_v30 = vpop.f32.mrf.mxu1  ;;  %v8639_v57 = vld [vmem:[%s10570_s1 + $0x10c0] sm:$0xff] }
 0x200   :  { %5617 = vmatpush.bf16.msrb.mxu2 %v8599_v12  ;;  %v8651_v12 = vld [vmem:[%s10570_s1 + $0x1120] sm:$0xff] }
 0x201   :  { %5630 = vmatpush.bf16.msrb.mxu3 %v8607_v13  ;;  %5592 = vmatmul.bf16.vlgmr.msrb.gmra.mxu0 %v1262_v3  ;;  %v5399_v33 = vadd.f32 %v5398_v30, %v5386_v27  ;;  %v8661_v3 = vld [vmem:[%s10570_s1 + $0x1170] sm:$0xff]  ;;  %v8659_v13 = vld [vmem:[%s10570_s1 + $0x1160] sm:$0xff] }
 0x202   :  { %5636 = vmatpush.bf16.msra.mxu0 %v8622_v14  ;;  %5605 = vmatmul.bf16.vlgmr.msrb.gmra.mxu1 %v1263_v6  ;;  %v8652_v6 = vld [vmem:[%s10570_s1 + $0x1128] sm:$0xff]  ;;  %v8649_v27 = vld [vmem:[%s10570_s1 + $0x1110] sm:$0xff] }
 0x203   :  { %5649 = vmatpush.bf16.msra.mxu1 %v8630_v15  ;;  %5618 = vmatmul.bf16.vlgmr.msrb.gmra.mxu2 %v1264_v4  ;;  %v8669_v4 = vld [vmem:[%s10570_s1 + $0x11b0] sm:$0xff]  ;;  %v8667_v15 = vld [vmem:[%s10570_s1 + $0x11a0] sm:$0xff] }
 0x204   :  { %5662 = vmatpush.bf16.msra.mxu2 %v8638_v16  ;;  %5631 = vmatmul.bf16.vlgmr.msrb.gmra.mxu3 %v1265_v7  ;;  %v8660_v7 = vld [vmem:[%s10570_s1 + $0x1168] sm:$0xff]  ;;  %v8675_v16 = vld [vmem:[%s10570_s1 + $0x11e0] sm:$0xff]  ;;  %v8665_v30 = vld [vmem:[%s10570_s1 + $0x1190] sm:$0xff] }
 0x205   :  { %5675 = vmatpush.bf16.msra.mxu3 %v8646_v17 }
 0x206   :  { %5637 = vmatpush.bf16.msra.mxu0 %v8621_v18  ;;  %v5411_v38 = vpop.f32.mrf.mxu2  ;;  %v5387_v41 = vpop.f32.mrf.mxu0  ;;  %v8650_v18 = vld [vmem:[%s10570_s1 + $0x1118] sm:$0xff] }
 0x207   :  { %5650 = vmatpush.bf16.msra.mxu1 %v8629_v19  ;;  %v5412_v39 = vadd.f32 %v5411_v38, %v5399_v33  ;;  %v5424_v40 = vpop.f32.mrf.mxu3  ;;  %v5400_v45 = vpop.f32.mrf.mxu1  ;;  %v8658_v19 = vld [vmem:[%s10570_s1 + $0x1158] sm:$0xff]  ;;  %v8656_v33 = vld [vmem:[%s10570_s1 + $0x1148] sm:$0xff]  ;;  %v8647_v38 = vld [vmem:[%s10570_s1 + $0x1100] sm:$0xff] }
 0x208   :  { %5663 = vmatpush.bf16.msra.mxu2 %v8637_v20  ;;  %v8666_v20 = vld [vmem:[%s10570_s1 + $0x1198] sm:$0xff]  ;;  %v8671_v41 = vld [vmem:[%s10570_s1 + $0x11c0] sm:$0xff] }
 0x209   :  { %5676 = vmatpush.bf16.msra.mxu3 %v8645_v21  ;;  %v5425_v42 = vadd.f32 %v5424_v40, %v5412_v39  ;;  %v8674_v21 = vld [vmem:[%s10570_s1 + $0x11d8] sm:$0xff]  ;;  %v8655_v39 = vld [vmem:[%s10570_s1 + $0x1140] sm:$0xff] }
 0x20a   :  { %5638 = vmatpush.bf16.msra.mxu0 %v8620_v22  ;;  %v8663_v40 = vld [vmem:[%s10570_s1 + $0x1180] sm:$0xff] }
 0x20b   :  { %5651 = vmatpush.bf16.msra.mxu1 %v8628_v23  ;;  %v1275_v45 = vld [vmem:[#allocation1 + $0x3f] sm:$0xff] }
 0x20c   :  { %5664 = vmatpush.bf16.msra.mxu2 %v8636_v24 }
 0x20d   :  { %5677 = vmatpush.bf16.msra.mxu3 %v8644_v25 }
 0x20e   :  { %5639 = vmatpush.bf16.msra.mxu0 %v8619_v28  ;;  %v5413_v52 = vpop.f32.mrf.mxu2  ;;  %v8657_v28 = vld [vmem:[%s10570_s1 + $0x1150] sm:$0xff] }
 0x20f   :  { %5652 = vmatpush.bf16.msra.mxu1 %v8627_v29  ;;  %v5426_v53 = vpop.f32.mrf.mxu3 }
 0x210   :  { %5665 = vmatpush.bf16.msra.mxu2 %v8635_v31  ;;  %v8673_v31 = vld [vmem:[%s10570_s1 + $0x11d0] sm:$0xff] }
 0x211   :  { %5678 = vmatpush.bf16.msra.mxu3 %v8643_v32  ;;  %v8648_v32 = vld [vmem:[%s10570_s1 + $0x1108] sm:$0xff] }
 0x212   :  { %5640 = vmatpush.bf16.msra.mxu0 %v8618_v34  ;;  %v8664_v34 = vld [vmem:[%s10570_s1 + $0x1188] sm:$0xff] }
 0x213   :  { %5653 = vmatpush.bf16.msra.mxu1 %v8626_v35  ;;  %v8672_v35 = vld [vmem:[%s10570_s1 + $0x11c8] sm:$0xff] }
 0x214   :  { %5666 = vmatpush.bf16.msra.mxu2 %v8634_v36 }
 0x215   :  { %5679 = vmatpush.bf16.msra.mxu3 %v8642_v37 }
 0x216   :  { %5641 = vmatpush.bf16.msra.mxu0 %v8617_v43  ;;  %v1273_v43 = vld [vmem:[#allocation1 + $0x2d] sm:$0xff] }
 0x217   :  { %5654 = vmatpush.bf16.msra.mxu1 %v8625_v44  ;;  %v1274_v44 = vld [vmem:[#allocation1 + $0x36] sm:$0xff] }
 0x218   :  { %5667 = vmatpush.bf16.msra.mxu2 %v8633_v46 }
 0x219   :  { %5680 = vmatpush.bf16.msra.mxu3 %v8641_v47 }
 0x21a   :  { %5642 = vmatpush.bf16.msra.mxu0 %v8616_v48 }
 0x21b   :  { %5655 = vmatpush.bf16.msra.mxu1 %v8624_v49 }
 0x21c   :  { %5668 = vmatpush.bf16.msra.mxu2 %v8632_v50 }
 0x21d   :  { %5681 = vmatpush.bf16.msra.mxu3 %v8640_v51 }
 0x21e   :  { %5643 = vmatpush.bf16.msra.mxu0 %v8615_v54  ;;  %v5437_v10 = vpop.f32.mrf.mxu0 }
 0x21f   :  { %5656 = vmatpush.bf16.msra.mxu1 %v8623_v55  ;;  %v5438_v11 = vadd.f32 %v5437_v10, %v5425_v42  ;;  %v5450_v14 = vpop.f32.mrf.mxu1  ;;  %v1272_v42 = vld [vmem:[#allocation1 + $0x24] sm:$0xff]  ;;  %v5756_v10 = vld [vmem:[%s10572_s3 + $0x78] sm:$0xff] }
 0x220   :  { %5669 = vmatpush.bf16.msra.mxu2 %v8631_v56 }
 0x221   :  { %5682 = vmatpush.bf16.msra.mxu3 %v8639_v57  ;;  %5644 = vmatmul.bf16.vlgmr.msra.gmra.mxu0 %v1268_v62  ;;  %v5451_v17 = vadd.f32 %v5450_v14, %v5438_v11  ;;  %v5755_v11 = vld [vmem:[%s10572_s3 + $0x70] sm:$0xff]  ;;  %v5754_v14 = vld [vmem:[%s10572_s3 + $0x68] sm:$0xff] }
 0x222   :  { %5688 = vmatpush.bf16.msrb.mxu0 %v8654_v58  ;;  %5657 = vmatmul.bf16.vlgmr.msra.gmra.mxu1 %v1269_v0 }
 0x223   :  { %5701 = vmatpush.bf16.msrb.mxu1 %v8662_v59  ;;  %5670 = vmatmul.bf16.vlgmr.msra.gmra.mxu2 %v1270_v63 }
 0x224   :  { %5714 = vmatpush.bf16.msrb.mxu2 %v8670_v60  ;;  %5683 = vmatmul.bf16.vlgmr.msra.gmra.mxu3 %v1271_v1 }
 0x225   :  { %5727 = vmatpush.bf16.msrb.mxu3 %v8678_v61 }
 0x226   :  { %5689 = vmatpush.bf16.msrb.mxu0 %v8653_v2  ;;  %v5463_v22 = vpop.f32.mrf.mxu2  ;;  %v5439_v25 = vpop.f32.mrf.mxu0 }
 0x227   :  { %5702 = vmatpush.bf16.msrb.mxu1 %v8661_v3  ;;  %v5464_v23 = vadd.f32 %v5463_v22, %v5451_v17  ;;  %v5476_v24 = vpop.f32.mrf.mxu3  ;;  %v5452_v29 = vpop.f32.mrf.mxu1  ;;  %v5748_v22 = vld [vmem:[%s10572_s3 + $0x38] sm:$0xff] }
 0x228   :  { %5715 = vmatpush.bf16.msrb.mxu2 %v8669_v4  ;;  %v5743_v29 = vld [vmem:[%s10572_s3 + $0x10] sm:$0xff] }
 0x229   :  { %5728 = vmatpush.bf16.msrb.mxu3 %v8677_v5  ;;  %v5477_v26 = vadd.f32 %v5476_v24, %v5464_v23  ;;  %v5747_v23 = vld [vmem:[%s10572_s3 + $0x30] sm:$0xff]  ;;  %v5746_v24 = vld [vmem:[%s10572_s3 + $0x28] sm:$0xff] }
 0x22a   :  { %5690 = vmatpush.bf16.msrb.mxu0 %v8652_v6 }
 0x22b   :  { %5703 = vmatpush.bf16.msrb.mxu1 %v8660_v7 }
 0x22c   :  { %5716 = vmatpush.bf16.msrb.mxu2 %v8668_v8 }
 0x22d   :  { %5729 = vmatpush.bf16.msrb.mxu3 %v8676_v9 }
 0x22e   :  { %5691 = vmatpush.bf16.msrb.mxu0 %v8651_v12  ;;  %v5465_v36 = vpop.f32.mrf.mxu2 }
 0x22f   :  { %5704 = vmatpush.bf16.msrb.mxu1 %v8659_v13  ;;  %v5478_v37 = vpop.f32.mrf.mxu3  ;;  %v5741_v36 = vld [vmem:[%s10572_s3] sm:$0xff] }
 0x230   :  { %5717 = vmatpush.bf16.msrb.mxu2 %v8667_v15  ;;  %v5753_v15 = vld [vmem:[%s10572_s3 + $0x60] sm:$0xff] }
 0x231   :  { %5730 = vmatpush.bf16.msrb.mxu3 %v8675_v16  ;;  %v5752_v16 = vld [vmem:[%s10572_s3 + $0x58] sm:$0xff] }
 0x232   :  { %5692 = vmatpush.bf16.msrb.mxu0 %v8650_v18 }
 0x233   :  { %5705 = vmatpush.bf16.msrb.mxu1 %v8658_v19  ;;  %v5751_v19 = vld [vmem:[%s10572_s3 + $0x50] sm:$0xff] }
 0x234   :  { %5718 = vmatpush.bf16.msrb.mxu2 %v8666_v20  ;;  %v5750_v20 = vld [vmem:[%s10572_s3 + $0x48] sm:$0xff] }
 0x235   :  { %5731 = vmatpush.bf16.msrb.mxu3 %v8674_v21  ;;  %v5749_v21 = vld [vmem:[%s10572_s3 + $0x40] sm:$0xff] }
 0x236   :  { %5693 = vmatpush.bf16.msrb.mxu0 %v8649_v27 }
 0x237   :  { %5706 = vmatpush.bf16.msrb.mxu1 %v8657_v28  ;;  %v5744_v28 = vld [vmem:[%s10572_s3 + $0x18] sm:$0xff] }
 0x238   :  { %5719 = vmatpush.bf16.msrb.mxu2 %v8665_v30 }
 0x239   :  { %5732 = vmatpush.bf16.msrb.mxu3 %v8673_v31 }
 0x23a   :  { %5694 = vmatpush.bf16.msrb.mxu0 %v8648_v32 }
 0x23b   :  { %5707 = vmatpush.bf16.msrb.mxu1 %v8656_v33  ;;  %v5742_v33 = vld [vmem:[%s10572_s3 + $0x8] sm:$0xff] }
 0x23c   :  { %5720 = vmatpush.bf16.msrb.mxu2 %v8664_v34 }
 0x23d   :  { %5733 = vmatpush.bf16.msrb.mxu3 %v8672_v35 }
 0x23e   :  { %5695 = vmatpush.bf16.msrb.mxu0 %v8647_v38  ;;  %v5489_v46 = vpop.f32.mrf.mxu0 }
 0x23f   :  { %5708 = vmatpush.bf16.msrb.mxu1 %v8655_v39  ;;  %v5490_v47 = vadd.f32 %v5489_v46, %v5477_v26  ;;  %v5502_v48 = vpop.f32.mrf.mxu1  ;;  %v5745_v26 = vld [vmem:[%s10572_s3 + $0x20] sm:$0xff] }
 0x240   :  { %5721 = vmatpush.bf16.msrb.mxu2 %v8663_v40 }
 0x241   :  { %5734 = vmatpush.bf16.msrb.mxu3 %v8671_v41  ;;  %5696 = vmatmul.bf16.vlgmr.msrb.gmra.mxu0 %v1272_v42  ;;  %v5503_v49 = vadd.f32 %v5502_v48, %v5490_v47 }
 0x242   :  { %5709 = vmatmul.bf16.vlgmr.msrb.gmra.mxu1 %v1273_v43  ;;  %5761 = vmatpush.msra.mxu0 %v5756_v10 }
 0x243   :  { %5722 = vmatmul.bf16.vlgmr.msrb.gmra.mxu2 %v1274_v44 }
 0x244   :  { %5735 = vmatmul.bf16.vlgmr.msrb.gmra.mxu3 %v1275_v45  ;;  %5762 = vmatpush.msra.mxu0 %v5755_v11 }
 0x246   :  { %v5515_v50 = vpop.f32.mrf.mxu2  ;;  %v5491_v53 = vpop.f32.mrf.mxu0  ;;  %5763 = vmatpush.msra.mxu0 %v5754_v14 }
 0x247   :  { %v5516_v51 = vadd.f32 %v5515_v50, %v5503_v49  ;;  %v5528_v52 = vpop.f32.mrf.mxu3  ;;  %v5504_v55 = vpop.f32.mrf.mxu1 }
 0x248   :  { %5764 = vmatpush.msra.mxu0 %v5753_v15 }
 0x249   :  { %v5529_v54 = vadd.f32 %v5528_v52, %v5516_v51 }
 0x24a   :  { %5765 = vmatpush.msra.mxu0 %v5752_v16 }
 0x24c   :  { %5766 = vmatpush.msra.mxu0 %v5751_v19 }
 0x24e   :  { %v5517_v56 = vpop.f32.mrf.mxu2  ;;  %5767 = vmatpush.msra.mxu0 %v5750_v20 }
 0x24f   :  { %v5530_v57 = vpop.f32.mrf.mxu3 }
 0x250   :  { %5768 = vmatpush.msra.mxu0 %v5749_v21 }
 0x252   :  { %5769 = vmatpush.msra.mxu0 %v5748_v22 }
 0x254   :  { %5770 = vmatpush.msra.mxu0 %v5747_v23 }
 0x256   :  { %5771 = vmatpush.msra.mxu0 %v5746_v24 }
 0x258   :  { %5772 = vmatpush.msra.mxu0 %v5745_v26 }
 0x25a   :  { %5773 = vmatpush.msra.mxu0 %v5744_v28 }
 0x25c   :  { %5774 = vmatpush.msra.mxu0 %v5743_v29 }
 0x25e   :  { %v5541_v58 = vpop.f32.mrf.mxu0  ;;  %5775 = vmatpush.msra.mxu0 %v5742_v33 }
 0x25f   :  { %v5542_v59 = vadd.f32 %v5541_v58, %v5529_v54  ;;  %v5554_v60 = vpop.f32.mrf.mxu1 }
 0x260   :  { %5776 = vmatpush.msra.mxu0 %v5741_v36 }
 0x261   :  { %v5555_v61 = vadd.f32 %v5554_v60, %v5542_v59  ;;  %v8681_v59 = vld [vmem:[%s10573_s4] ss:$0 sm:$0xff] }
 0x266   :  { %v5567_v62 = vpop.f32.mrf.mxu2  ;;  %v5543_v1 = vpop.f32.mrf.mxu0 }
 0x267   :  { %v5568_v63 = vadd.f32 %v5567_v62, %v5555_v61  ;;  %v5580_v0 = vpop.f32.mrf.mxu3  ;;  %v5556_v3 = vpop.f32.mrf.mxu1 }
 0x269   :  { %v5581_v2 = vadd.f32 %v5580_v0, %v5568_v63 }
 0x26e   :  { %v5569_v4 = vpop.f32.mrf.mxu2 }
 0x26f   :  { %v5582_v5 = vpop.f32.mrf.mxu3 }
 0x27e   :  { %v5593_v6 = vpop.f32.mrf.mxu0 }
 0x27f   :  { %v5606_v7 = vpop.f32.mrf.mxu1  ;;  %v5594_v31 = vadd.f32 %v5593_v6, %v5581_v2 }
 0x281   :  { %v5607_v37 = vadd.f32 %v5606_v7, %v5594_v31 }
 0x286   :  { %v5619_v8 = vpop.f32.mrf.mxu2  ;;  %v5595_v12 = vpop.f32.mrf.mxu0 }
 0x287   :  { %v5632_v9 = vpop.f32.mrf.mxu3  ;;  %v5608_v13 = vpop.f32.mrf.mxu1  ;;  %v5620_v38 = vadd.f32 %v5619_v8, %v5607_v37 }
 0x289   :  { %v5633_v41 = vadd.f32 %v5632_v9, %v5620_v38 }
 0x28e   :  { %v5621_v17 = vpop.f32.mrf.mxu2 }
 0x28f   :  { %v5634_v18 = vpop.f32.mrf.mxu3 }
 0x29e   :  { %v5645_v25 = vpop.f32.mrf.mxu0 }
 0x29f   :  { %v5658_v27 = vpop.f32.mrf.mxu1  ;;  %v5646_v42 = vadd.f32 %v5645_v25, %v5633_v41 }
 0x2a1   :  { %v5659_v43 = vadd.f32 %v5658_v27, %v5646_v42 }
 0x2a6   :  { %v5671_v30 = vpop.f32.mrf.mxu2  ;;  %v5647_v34 = vpop.f32.mrf.mxu0 }
 0x2a7   :  { %v5684_v32 = vpop.f32.mrf.mxu3  ;;  %v5660_v35 = vpop.f32.mrf.mxu1  ;;  %v5672_v44 = vadd.f32 %v5671_v30, %v5659_v43 }
 0x2a9   :  { %v5685_v45 = vadd.f32 %v5684_v32, %v5672_v44 }
 0x2ae   :  { %v5673_v39 = vpop.f32.mrf.mxu2 }
 0x2af   :  { %v5686_v40 = vpop.f32.mrf.mxu3 }
 0x2be   :  { %v5697_v46 = vpop.f32.mrf.mxu0 }
 0x2bf   :  { %v5710_v47 = vpop.f32.mrf.mxu1  ;;  %v5698_v48 = vadd.f32 %v5697_v46, %v5685_v45 }
 0x2c1   :  { %v5711_v49 = vadd.f32 %v5710_v47, %v5698_v48 }
 0x2c6   :  { %v5723_v50 = vpop.f32.mrf.mxu2  ;;  %v5699_v53 = vpop.f32.mrf.mxu0 }
 0x2c7   :  { %v5736_v51 = vpop.f32.mrf.mxu3  ;;  %v5724_v52 = vadd.f32 %v5723_v50, %v5711_v49  ;;  %v5712_v54 = vpop.f32.mrf.mxu1 }
 0x2c9   :  { %v5737_v55 = vadd.f32 %v5736_v51, %v5724_v52 }
 0x2cb   :  { %v5740_v56 = vmax.f32 %v5737_v55, 0.0 }
 0x2cd   :  { %5777 = vmatmul.f32.vlgmr.msra.gmra.mxu0 %v5740_v56 }
 0x2ce   :  { %v5725_v57 = vpop.f32.mrf.mxu2 }
 0x2cf   :  { %v5738_v58 = vpop.f32.mrf.mxu3 }
 0x34a   :  { %v5778_v60 = vpop.f32.mrf.mxu0 }
 0x34b   :  { %v5779_v61 = vadd.f32 %v8681_v59, %v5778_v60 }
 0x34d   :  { %5782 = vst.msk [vmem:[#allocation2] sm:$0x3] %vm5781_vm0, %v5779_v61 }
 0x34e   :  { %5793 = dma.vmem_to_hbm [thread:$0]  %s5789_s8, 32, %s5791_s10, [#allocation3]  }
 0x34f   :  { %8706 = dma.done.wait [#allocation3], 32  }
 0x350   :  { %8707 = vsyncadd [#allocation3], 4294967264 }
 0x351   :  { %5798 = vsyncpa [#allocation3], 1 }

// kernel: cnn_emotion_forward.2
= control target key start
LH: loop header
LB: loop body
LE: loop exit
PB: predicated region body
PF: predicated region fallthrough
CT: control target
= control target key end

     0   :  { %s8737_s18 = smov 0   ;;  %s12148_s0 = inlined_call_operand.vmem [shape: f32[2,2304,9], index: 0, kind: input, shape index: {}]   ;;  %s12149_s1 = inlined_call_operand.vmem [shape: f32[9,32], index: 1, kind: input, shape index: {}]   ;;  %s12150_s2 = inlined_call_operand.vmem [shape: f32[1,32], index: 2, kind: input, shape index: {}]   ;;  %s12151_s3 = inlined_call_operand.vmem [shape: f32[288,64], index: 3, kind: input, shape index: {}]   ;;  %s12152_s4 = inlined_call_operand.vmem [shape: f32[1,64], index: 4, kind: input, shape index: {}]   ;;  %s12153_s5 = inlined_call_operand.vmem [shape: bf16[2,12,12,64], index: 5, kind: output, shape index: {}]  }
   0x1 LB: > { %s7230_s19 = sadd.s32 4294967295, %s8701_s18   ;;  %p7234_p0 = scmp.ge.s32.totalorder %s8701_s18, 1  ;;  %s8701_s18 = sphi %s8737_s18, %s15_s18  }
   0x2   : > { %p187_p1 = scmp.lt.s32.totalorder %s8701_s18, 3 }
   0x4   : > { %p188_p2 = pnand %p7234_p0, %p187_p1 }
   0x6   : > { %191 = sbr.rel (%p188_p2) target bundleno = 2186 (0x88a), region = 40 }
   0xb   : > { %v514_v0 = vld [vmem:[%s12149_s1 + $0x8] sm:$0x1]  ;;  %vm1384_vm0 = vcmask 1040384   ;;  %v513_v1 = vld [vmem:[%s12149_s1] sm:$0xff]  ;;  %p215_p3 = scmp.lt.s32.totalorder %s7230_s19, 1  ;;  %vm519_vm1 = vcmask 72704  }
   0xc   : > { %7237 = vmatpush.msk.msra.mxu0 %vm1384_vm0, %v514_v0  ;;  %7600 = vmatpush.msk.msra.mxu2 %vm1384_vm0, %v514_v0  ;;  %vm2773_vm2 = vcmask 261120   ;;  %s8704_s30 = smov 32   ;;  %s8705_s6 = smov 64   ;;  %vm2777_vm3 = vcmask 254976   ;;  %vm5401_vm4 = vcmask 523264   ;;  %vm5474_vm5 = vcmask 785408  }
   0xd   : > { %7601 = vmatpush.msk.msra.mxu3 %vm1384_vm0, %v514_v0  ;;  %s12219_s19 = smov (!%p215_p3, %s7230_s19), 1  ;;  %s8706_s7 = smov 96   ;;  %vm7149_vm6 = vcmask 519168   ;;  %vm7151_vm7 = vcmask 517120  }
   0xe   : > { %1403 = vmatpush.msra.mxu0 %v513_v1  ;;  %7602 = vmatpush.msra.mxu2 %v513_v1  ;;  %s7620_s24 = smul.u32 2304, %s12219_s19 }
   0xf   : > { %7603 = vmatpush.msra.mxu3 %v513_v1 }
  0x10   : > { %s8757_s27 = scalar_lea.vmem %s12148_s0, %s7620_s24 }
  0x11   : > { %v225_v2 = vld [vmem:[%s8757_s27] sm:$0xff]  ;;  %v386_v4 = vld [vmem:[%s8757_s27 + $0x508] sm:$0xff]  ;;  %v387_v7 = vld [vmem:[%s8757_s27 + $0x510] sm:$0xff] }
  0x12   : > { %v353_v3 = vld [vmem:[%s8757_s27 + $0x400] sm:$0xff]  ;;  %7238 = vmatmul.msk.f32.vlgmr.msra.gmra.mxu0 %vm519_vm1, %v225_v2  ;;  %7399 = vmatmul.msk.f32.vlgmr.msra.gmra.mxu3 %vm519_vm1, %v386_v4  ;;  %v226_v5 = vld [vmem:[%s8757_s27 + $0x8] sm:$0xff]  ;;  %v227_v8 = vld [vmem:[%s8757_s27 + $0x10] sm:$0xff] }
  0x13   : > { %7366 = vmatmul.msk.f32.vlgmr.msra.gmra.mxu2 %vm519_vm1, %v353_v3  ;;  %v354_v6 = vld [vmem:[%s8757_s27 + $0x408] sm:$0xff]  ;;  %v355_v9 = vld [vmem:[%s8757_s27 + $0x410] sm:$0xff]  ;;  %v388_v10 = vld [vmem:[%s8757_s27 + $0x518] sm:$0xff] }
  0x14   : > { %v228_v11 = vld [vmem:[%s8757_s27 + $0x18] sm:$0xff]  ;;  %v389_v13 = vld [vmem:[%s8757_s27 + $0x520] sm:$0xff]  ;;  %v390_v16 = vld [vmem:[%s8757_s27 + $0x528] sm:$0xff] }
  0x15   : > { %v356_v12 = vld [vmem:[%s8757_s27 + $0x418] sm:$0xff]  ;;  %v229_v14 = vld [vmem:[%s8757_s27 + $0x20] sm:$0xff]  ;;  %v230_v17 = vld [vmem:[%s8757_s27 + $0x28] sm:$0xff] }
  0x16   : > { %v357_v15 = vld [vmem:[%s8757_s27 + $0x420] sm:$0xff]  ;;  %v358_v18 = vld [vmem:[%s8757_s27 + $0x428] sm:$0xff]  ;;  %v391_v19 = vld [vmem:[%s8757_s27 + $0x530] sm:$0xff] }
  0x17   : > { %v231_v20 = vld [vmem:[%s8757_s27 + $0x30] sm:$0xff]  ;;  %v392_v22 = vld [vmem:[%s8757_s27 + $0x538] sm:$0xff]  ;;  %v393_v25 = vld [vmem:[%s8757_s27 + $0x540] sm:$0xff] }
  0x18   : > { %v359_v21 = vld [vmem:[%s8757_s27 + $0x430] sm:$0xff]  ;;  %v232_v23 = vld [vmem:[%s8757_s27 + $0x38] sm:$0xff]  ;;  %v233_v26 = vld [vmem:[%s8757_s27 + $0x40] sm:$0xff] }
  0x19   : > { %v360_v24 = vld [vmem:[%s8757_s27 + $0x438] sm:$0xff]  ;;  %v361_v27 = vld [vmem:[%s8757_s27 + $0x440] sm:$0xff]  ;;  %v394_v28 = vld [vmem:[%s8757_s27 + $0x548] sm:$0xff] }
  0x1a   : > { %7239 = vmatmul.msk.f32.gmra.mxu0 %vm519_vm1, %v226_v5  ;;  %7400 = vmatmul.msk.f32.gmra.mxu3 %vm519_vm1, %v387_v7  ;;  %v234_v29 = vld [vmem:[%s8757_s27 + $0x48] sm:$0xff]  ;;  %v395_v31 = vld [vmem:[%s8757_s27 + $0x550] sm:$0xff]  ;;  %v396_v34 = vld [vmem:[%s8757_s27 + $0x558] sm:$0xff] }
  0x1b   : > { %7367 = vmatmul.msk.f32.gmra.mxu2 %vm519_vm1, %v354_v6  ;;  %v362_v30 = vld [vmem:[%s8757_s27 + $0x448] sm:$0xff]  ;;  %v235_v32 = vld [vmem:[%s8757_s27 + $0x50] sm:$0xff]  ;;  %v236_v35 = vld [vmem:[%s8757_s27 + $0x58] sm:$0xff] }
  0x1c   : > { %v363_v33 = vld [vmem:[%s8757_s27 + $0x450] sm:$0xff]  ;;  %v364_v36 = vld [vmem:[%s8757_s27 + $0x458] sm:$0xff]  ;;  %v397_v37 = vld [vmem:[%s8757_s27 + $0x560] sm:$0xff] }
  0x1d   : > { %v237_v38 = vld [vmem:[%s8757_s27 + $0x60] sm:$0xff]  ;;  %v398_v40 = vld [vmem:[%s8757_s27 + $0x568] sm:$0xff]  ;;  %v399_v43 = vld [vmem:[%s8757_s27 + $0x570] sm:$0xff] }
  0x1e   : > { %v365_v39 = vld [vmem:[%s8757_s27 + $0x460] sm:$0xff]  ;;  %v238_v41 = vld [vmem:[%s8757_s27 + $0x68] sm:$0xff]  ;;  %v239_v44 = vld [vmem:[%s8757_s27 + $0x70] sm:$0xff] }
  0x1f   : > { %v366_v42 = vld [vmem:[%s8757_s27 + $0x468] sm:$0xff]  ;;  %v367_v45 = vld [vmem:[%s8757_s27 + $0x470] sm:$0xff]  ;;  %v400_v46 = vld [vmem:[%s8757_s27 + $0x578] sm:$0xff] }
  0x20   : > { %v240_v47 = vld [vmem:[%s8757_s27 + $0x78] sm:$0xff]  ;;  %v401_v49 = vld [vmem:[%s8757_s27 + $0x580] sm:$0xff]  ;;  %v402_v53 = vld [vmem:[%s8757_s27 + $0x588] sm:$0xff] }
  0x21   : > { %v368_v48 = vld [vmem:[%s8757_s27 + $0x478] sm:$0xff]  ;;  %v241_v51 = vld [vmem:[%s8757_s27 + $0x80] sm:$0xff]  ;;  %v242_v57 = vld [vmem:[%s8757_s27 + $0x88] sm:$0xff] }
  0x22   : > { %7240 = vmatmul.msk.f32.gmra.mxu0 %vm519_vm1, %v227_v8  ;;  %7401 = vmatmul.msk.f32.gmra.mxu3 %vm519_vm1, %v388_v10  ;;  %v369_v52 = vld [vmem:[%s8757_s27 + $0x480] sm:$0xff]  ;;  %v370_v58 = vld [vmem:[%s8757_s27 + $0x488] sm:$0xff]  ;;  %v403_v59 = vld [vmem:[%s8757_s27 + $0x590] sm:$0xff] }
  0x23   : > { %7368 = vmatmul.msk.f32.gmra.mxu2 %vm519_vm1, %v355_v9  ;;  %v243_v63 = vld [vmem:[%s8757_s27 + $0x90] sm:$0xff]  ;;  %v404_v1 = vld [vmem:[%s8757_s27 + $0x598] sm:$0xff]  ;;  %v8892_v7 = vld [vmem:[%s12150_s2] ss:$0 sm:$0xff] }
  0x24   : > { %v371_v0 = vld [vmem:[%s8757_s27 + $0x490] sm:$0xff]  ;;  %v244_v5 = vld [vmem:[%s8757_s27 + $0x98] sm:$0xff]  ;;  %v405_v8 = vld [vmem:[%s8757_s27 + $0x5a0] sm:$0xff] }
  0x25   : > { %v372_v6 = vld [vmem:[%s8757_s27 + $0x498] sm:$0xff] }
  0x2a   : > { %7241 = vmatmul.msk.f32.gmra.mxu0 %vm519_vm1, %v228_v11  ;;  %7402 = vmatmul.msk.f32.gmra.mxu3 %vm519_vm1, %v389_v13 }
  0x2b   : > { %7369 = vmatmul.msk.f32.gmra.mxu2 %vm519_vm1, %v356_v12 }
  0x32   : > { %7242 = vmatmul.msk.f32.gmra.mxu0 %vm519_vm1, %v229_v14  ;;  %7403 = vmatmul.msk.f32.gmra.mxu3 %vm519_vm1, %v390_v16  ;;  %v373_v16 = vld [vmem:[%s8757_s27 + $0x4a0] sm:$0xff] }
  0x33   : > { %7370 = vmatmul.msk.f32.gmra.mxu2 %vm519_vm1, %v357_v15  ;;  %v245_v15 = vld [vmem:[%s8757_s27 + $0xa0] sm:$0xff] }
  0x3a   : > { %7243 = vmatmul.msk.f32.gmra.mxu0 %vm519_vm1, %v230_v17  ;;  %7404 = vmatmul.msk.f32.gmra.mxu3 %vm519_vm1, %v391_v19  ;;  %v8703_v17 = vmov 0.0   ;;  %v406_v19 = vld [vmem:[%s8757_s27 + $0x5a8] sm:$0xff] }
  0x3b   : > { %7371 = vmatmul.msk.f32.gmra.mxu2 %vm519_vm1, %v358_v18  ;;  %2779 = vst.msk [vmem:[#allocation2 + $0x20] sm:$0xff] %vm2773_vm2, %v8703_v17 }
  0x3c   : > { %2780 = vst.msk [vmem:[#allocation2 + $0x28] sm:$0xff] %vm2773_vm2, %v8703_v17 }
  0x3d   : > { %2774 = vst.msk [vmem:[#allocation2] sm:$0xff] %vm2773_vm2, %v8703_v17 }
  0x3e   : > { %2775 = vst.msk [vmem:[#allocation2 + $0x8] sm:$0xff] %vm2773_vm2, %v8703_v17 }
  0x3f   : > { %2776 = vst.msk [vmem:[#allocation2 + $0x10] sm:$0xff] %vm2773_vm2, %v8703_v17 }
  0x40   : > { %2781 = vst.msk [vmem:[#allocation2 + $0x30] sm:$0xff] %vm2773_vm2, %v8703_v17 }
  0x41   : > { %2783 = vst.msk [vmem:[#allocation2 + $0x40] sm:$0xff] %vm2773_vm2, %v8703_v17 }
  0x42   : > { %7244 = vmatmul.msk.f32.gmra.mxu0 %vm519_vm1, %v231_v20  ;;  %7405 = vmatmul.msk.f32.gmra.mxu3 %vm519_vm1, %v392_v22  ;;  %2784 = vst.msk [vmem:[#allocation2 + $0x48] sm:$0xff] %vm2773_vm2, %v8703_v17 }
  0x43   : > { %7372 = vmatmul.msk.f32.gmra.mxu2 %vm519_vm1, %v359_v21  ;;  %2785 = vst.msk [vmem:[#allocation2 + $0x50] sm:$0xff] %vm2773_vm2, %v8703_v17 }
  0x44   : > { %2787 = vst.msk [vmem:[#allocation2 + $0x60] sm:$0xff] %vm2773_vm2, %v8703_v17 }
  0x45   : > { %2788 = vst.msk [vmem:[#allocation2 + $0x68] sm:$0xff] %vm2773_vm2, %v8703_v17 }
  0x46   : > { %2789 = vst.msk [vmem:[#allocation2 + $0x70] sm:$0xff] %vm2773_vm2, %v8703_v17 }
  0x47   : > { %2791 = vst.msk [vmem:[#allocation2 + $0x80] sm:$0xff] %vm2773_vm2, %v8703_v17 }
  0x48   : > { %2792 = vst.msk [vmem:[#allocation2 + $0x88] sm:$0xff] %vm2773_vm2, %v8703_v17 }
  0x49   : > { %2793 = vst.msk [vmem:[#allocation2 + $0x90] sm:$0xff] %vm2773_vm2, %v8703_v17 }
  0x4a   : > { %7245 = vmatmul.msk.f32.gmra.mxu0 %vm519_vm1, %v232_v23  ;;  %7406 = vmatmul.msk.f32.gmra.mxu3 %vm519_vm1, %v393_v25  ;;  %2795 = vst.msk [vmem:[#allocation2 + $0xa0] sm:$0xff] %vm2773_vm2, %v8703_v17 }
  0x4b   : > { %7373 = vmatmul.msk.f32.gmra.mxu2 %vm519_vm1, %v360_v24  ;;  %2796 = vst.msk [vmem:[#allocation2 + $0xa8] sm:$0xff] %vm2773_vm2, %v8703_v17 }
  0x4c   : > { %2797 = vst.msk [vmem:[#allocation2 + $0xb0] sm:$0xff] %vm2773_vm2, %v8703_v17 }
  0x4d   : > { %2799 = vst.msk [vmem:[#allocation2 + $0xc0] sm:$0xff] %vm2773_vm2, %v8703_v17 }
  0x4e   : > { %2800 = vst.msk [vmem:[#allocation2 + $0xc8] sm:$0xff] %vm2773_vm2, %v8703_v17 }
  0x4f   : > { %2801 = vst.msk [vmem:[#allocation2 + $0xd0] sm:$0xff] %vm2773_vm2, %v8703_v17 }
  0x50   : > { %2803 = vst.msk [vmem:[#allocation2 + $0xe0] sm:$0xff] %vm2773_vm2, %v8703_v17 }
  0x51   : > { %2804 = vst.msk [vmem:[#allocation2 + $0xe8] sm:$0xff] %vm2773_vm2, %v8703_v17 }
  0x52   : > { %7246 = vmatmul.msk.f32.gmra.mxu0 %vm519_vm1, %v233_v26  ;;  %7407 = vmatmul.msk.f32.gmra.mxu3 %vm519_vm1, %v394_v28  ;;  %v374_v28 = vld [vmem:[%s8757_s27 + $0x4a8] sm:$0xff]  ;;  %2805 = vst.msk [vmem:[#allocation2 + $0xf0] sm:$0xff] %vm2773_vm2, %v8703_v17 }
  0x53   : > { %7374 = vmatmul.msk.f32.gmra.mxu2 %vm519_vm1, %v361_v27  ;;  %v246_v27 = vld [vmem:[%s8757_s27 + $0xa8] sm:$0xff]  ;;  %2807 = vst.msk [vmem:[#allocation2 + $0x100] sm:$0xff] %vm2773_vm2, %v8703_v17 }
  0x54   : > { %2808 = vst.msk [vmem:[#allocation2 + $0x108] sm:$0xff] %vm2773_vm2, %v8703_v17 }
  0x55   : > { %2809 = vst.msk [vmem:[#allocation2 + $0x110] sm:$0xff] %vm2773_vm2, %v8703_v17 }
  0x56   : > { %2811 = vst.msk [vmem:[#allocation2 + $0x120] sm:$0xff] %vm2773_vm2, %v8703_v17 }
  0x57   : > { %2812 = vst.msk [vmem:[#allocation2 + $0x128] sm:$0xff] %vm2773_vm2, %v8703_v17 }
  0x58   : > { %2813 = vst.msk [vmem:[#allocation2 + $0x130] sm:$0xff] %vm2773_vm2, %v8703_v17 }
  0x59   : > { %2815 = vst.msk [vmem:[#allocation2 + $0x140] sm:$0xff] %vm2773_vm2, %v8703_v17 }
  0x5a   : > { %7247 = vmatmul.msk.f32.gmra.mxu0 %vm519_vm1, %v234_v29  ;;  %7408 = vmatmul.msk.f32.gmra.mxu3 %vm519_vm1, %v395_v31  ;;  %v407_v29 = vld [vmem:[%s8757_s27 + $0x5b0] sm:$0xff]  ;;  %v3024_v31 = vld [vmem:[#allocation2 + $0x1] sm:$0xff]  ;;  %2816 = vst.msk [vmem:[#allocation2 + $0x148] sm:$0xff] %vm2773_vm2, %v8703_v17 }
  0x5b   : > { %7375 = vmatmul.msk.f32.gmra.mxu2 %vm519_vm1, %v362_v30  ;;  %2817 = vst.msk [vmem:[#allocation2 + $0x150] sm:$0xff] %vm2773_vm2, %v8703_v17 }
  0x5c   : > { %2819 = vst.msk [vmem:[#allocation2 + $0x160] sm:$0xff] %vm2773_vm2, %v8703_v17 }
  0x5d   : > { %2820 = vst.msk [vmem:[#allocation2 + $0x168] sm:$0xff] %vm2773_vm2, %v8703_v17 }
  0x5e   : > { %2821 = vst.msk [vmem:[#allocation2 + $0x170] sm:$0xff] %vm2773_vm2, %v8703_v17 }
  0x5f   : > { %2823 = vst.msk [vmem:[#allocation2 + $0x180] sm:$0xff] %vm2773_vm2, %v8703_v17 }
  0x60   : > { %2824 = vst.msk [vmem:[#allocation2 + $0x188] sm:$0xff] %vm2773_vm2, %v8703_v17 }
  0x61   : > { %2825 = vst.msk [vmem:[#allocation2 + $0x190] sm:$0xff] %vm2773_vm2, %v8703_v17 }
  0x62   : > { %7248 = vmatmul.msk.f32.gmra.mxu0 %vm519_vm1, %v235_v32  ;;  %7409 = vmatmul.msk.f32.gmra.mxu3 %vm519_vm1, %v396_v34  ;;  %v3096_v32 = vld [vmem:[#allocation2 + $0x2] sm:$0xff]  ;;  %2827 = vst.msk [vmem:[#allocation2 + $0x1a0] sm:$0xff] %vm2773_vm2, %v8703_v17 }
  0x63   : > { %7376 = vmatmul.msk.f32.gmra.mxu2 %vm519_vm1, %v363_v33  ;;  %v3025_v34 = vld [vmem:[#allocation2 + $0x9] sm:$0xff]  ;;  %2828 = vst.msk [vmem:[#allocation2 + $0x1a8] sm:$0xff] %vm2773_vm2, %v8703_v17 }
  0x64   : > { %2829 = vst.msk [vmem:[#allocation2 + $0x1b0] sm:$0xff] %vm2773_vm2, %v8703_v17 }
  0x65   : > { %2831 = vst.msk [vmem:[#allocation2 + $0x1c0] sm:$0xff] %vm2773_vm2, %v8703_v17 }
  0x66   : > { %2832 = vst.msk [vmem:[#allocation2 + $0x1c8] sm:$0xff] %vm2773_vm2, %v8703_v17 }
  0x67   : > { %2833 = vst.msk [vmem:[#allocation2 + $0x1d0] sm:$0xff] %vm2773_vm2, %v8703_v17 }
  0x68   : > { %2835 = vst.msk [vmem:[#allocation2 + $0x1e0] sm:$0xff] %vm2773_vm2, %v8703_v17 }
  0x69   : > { %2836 = vst.msk [vmem:[#allocation2 + $0x1e8] sm:$0xff] %vm2773_vm2, %v8703_v17 }
  0x6a   : > { %7249 = vmatmul.msk.f32.gmra.mxu0 %vm519_vm1, %v236_v35  ;;  %7410 = vmatmul.msk.f32.gmra.mxu3 %vm519_vm1, %v397_v37  ;;  %v3097_v35 = vld [vmem:[#allocation2 + $0xa] sm:$0xff]  ;;  %v7634_v37 = vpack.i.bf16 %v3025_v34, %v3024_v31  ;;  %2837 = vst.msk [vmem:[#allocation2 + $0x1f0] sm:$0xff] %vm2773_vm2, %v8703_v17 }
  0x6b   : > { %7377 = vmatmul.msk.f32.gmra.mxu2 %vm519_vm1, %v364_v36  ;;  %2839 = vst.msk [vmem:[#allocation2 + $0x200] sm:$0xff] %vm2773_vm2, %v8703_v17 }
  0x6c   : > { %7635 = vrot.lane.b32.xlu0 %v7634_v37, %s8704_s30  ;;  %2840 = vst.msk [vmem:[#allocation2 + $0x208] sm:$0xff] %vm2773_vm2, %v8703_v17 }
  0x6d   : > { %2841 = vst.msk [vmem:[#allocation2 + $0x210] sm:$0xff] %vm2773_vm2, %v8703_v17 }
  0x6e   : > { %2843 = vst.msk [vmem:[#allocation2 + $0x220] sm:$0xff] %vm2773_vm2, %v8703_v17 }
  0x6f   : > { %2844 = vst.msk [vmem:[#allocation2 + $0x228] sm:$0xff] %vm2773_vm2, %v8703_v17 }
  0x70   : > { %2845 = vst.msk [vmem:[#allocation2 + $0x230] sm:$0xff] %vm2773_vm2, %v8703_v17 }
  0x71   : > { %2847 = vst.msk [vmem:[#allocation2 + $0x240] sm:$0xff] %vm2773_vm2, %v8703_v17 }
  0x72   : > { %7250 = vmatmul.msk.f32.gmra.mxu0 %vm519_vm1, %v237_v38  ;;  %7411 = vmatmul.msk.f32.gmra.mxu3 %vm519_vm1, %v398_v40  ;;  %v7639_v38 = vpack.i.bf16 %v3097_v35, %v3096_v32  ;;  %2848 = vst.msk [vmem:[#allocation2 + $0x248] sm:$0xff] %vm2773_vm2, %v8703_v17 }
  0x73   : > { %7378 = vmatmul.msk.f32.gmra.mxu2 %vm519_vm1, %v365_v39  ;;  %2849 = vst.msk [vmem:[#allocation2 + $0x250] sm:$0xff] %vm2773_vm2, %v8703_v17 }
  0x74   : > { %7640 = vrot.lane.b32.xlu1 %v7639_v38, %s8705_s6  ;;  %v251_v38 = vld [vmem:[%s8757_s27 + $0xd0] sm:$0xff]  ;;  %2851 = vst.msk [vmem:[#allocation2 + $0x260] sm:$0xff] %vm2773_vm2, %v8703_v17 }
  0x75   : > { %2852 = vst.msk [vmem:[#allocation2 + $0x268] sm:$0xff] %vm2773_vm2, %v8703_v17 }
  0x76   : > { %2853 = vst.msk [vmem:[#allocation2 + $0x270] sm:$0xff] %vm2773_vm2, %v8703_v17 }
  0x77   : > { %2855 = vst.msk [vmem:[#allocation2 + $0x280] sm:$0xff] %vm2773_vm2, %v8703_v17 }
  0x78   : > { %2856 = vst.msk [vmem:[#allocation2 + $0x288] sm:$0xff] %vm2773_vm2, %v8703_v17 }
  0x79   : > { %2857 = vst.msk [vmem:[#allocation2 + $0x290] sm:$0xff] %vm2773_vm2, %v8703_v17 }
  0x7a   : > { %7251 = vmatmul.msk.f32.gmra.mxu0 %vm519_vm1, %v238_v41  ;;  %7412 = vmatmul.msk.f32.gmra.mxu3 %vm519_vm1, %v399_v43  ;;  %2859 = vst.msk [vmem:[#allocation2 + $0x2a0] sm:$0xff] %vm2773_vm2, %v8703_v17 }
  0x7b   : > { %7379 = vmatmul.msk.f32.gmra.mxu2 %vm519_vm1, %v366_v42  ;;  %2860 = vst.msk [vmem:[#allocation2 + $0x2a8] sm:$0xff] %vm2773_vm2, %v8703_v17 }
  0x7c   : > { %2861 = vst.msk [vmem:[#allocation2 + $0x2b0] sm:$0xff] %vm2773_vm2, %v8703_v17 }
  0x7d   : > { %2863 = vst.msk [vmem:[#allocation2 + $0x2c0] sm:$0xff] %vm2773_vm2, %v8703_v17 }
  0x7e   : > { %2864 = vst.msk [vmem:[#allocation2 + $0x2c8] sm:$0xff] %vm2773_vm2, %v8703_v17 }
  0x7f   : > { %2865 = vst.msk [vmem:[#allocation2 + $0x2d0] sm:$0xff] %vm2773_vm2, %v8703_v17 }
  0x80   : > { %2867 = vst.msk [vmem:[#allocation2 + $0x2e0] sm:$0xff] %vm2773_vm2, %v8703_v17 }
  0x81   : > { %2868 = vst.msk [vmem:[#allocation2 + $0x2e8] sm:$0xff] %vm2773_vm2, %v8703_v17 }
  0x82   : > { %7252 = vmatmul.msk.f32.gmra.mxu0 %vm519_vm1, %v239_v44  ;;  %7413 = vmatmul.msk.f32.gmra.mxu3 %vm519_vm1, %v400_v46  ;;  %v247_v44 = vld [vmem:[%s8757_s27 + $0xb0] sm:$0xff]  ;;  %v408_v46 = vld [vmem:[%s8757_s27 + $0x5b8] sm:$0xff]  ;;  %2869 = vst.msk [vmem:[#allocation2 + $0x2f0] sm:$0xff] %vm2773_vm2, %v8703_v17 }
  0x83   : > { %7380 = vmatmul.msk.f32.gmra.mxu2 %vm519_vm1, %v367_v45  ;;  %v375_v45 = vld [vmem:[%s8757_s27 + $0x4b0] sm:$0xff]  ;;  %2871 = vst.msk [vmem:[#allocation2 + $0x300] sm:$0xff] %vm2773_vm2, %v8703_v17 }
  0x84   : > { %2872 = vst.msk [vmem:[#allocation2 + $0x308] sm:$0xff] %vm2773_vm2, %v8703_v17 }
  0x85   : > { %2873 = vst.msk [vmem:[#allocation2 + $0x310] sm:$0xff] %vm2773_vm2, %v8703_v17 }
  0x86   : > { %2875 = vst.msk [vmem:[#allocation2 + $0x320] sm:$0xff] %vm2773_vm2, %v8703_v17 }
  0x87   : > { %2876 = vst.msk [vmem:[#allocation2 + $0x328] sm:$0xff] %vm2773_vm2, %v8703_v17 }
  0x88   : > { %2877 = vst.msk [vmem:[#allocation2 + $0x330] sm:$0xff] %vm2773_vm2, %v8703_v17 }
  0x89   : > { %2782 = vst.msk [vmem:[#allocation2 + $0x38] sm:$0x3] %vm2777_vm3, %v8703_v17 }
  0x8a   : > { %7253 = vmatmul.msk.f32.gmra.mxu0 %vm519_vm1, %v240_v47  ;;  %7414 = vmatmul.msk.f32.gmra.mxu3 %vm519_vm1, %v401_v49  ;;  %2778 = vst.msk [vmem:[#allocation2 + $0x18] sm:$0x3] %vm2777_vm3, %v8703_v17 }
  0x8b   : > { %7381 = vmatmul.msk.f32.gmra.mxu2 %vm519_vm1, %v368_v48  ;;  %2786 = vst.msk [vmem:[#allocation2 + $0x58] sm:$0x3] %vm2777_vm3, %v8703_v17 }
  0x8c   : > { %2790 = vst.msk [vmem:[#allocation2 + $0x78] sm:$0x3] %vm2777_vm3, %v8703_v17 }
  0x8d   : > { %2794 = vst.msk [vmem:[#allocation2 + $0x98] sm:$0x3] %vm2777_vm3, %v8703_v17 }
  0x8e   : > { %2798 = vst.msk [vmem:[#allocation2 + $0xb8] sm:$0x3] %vm2777_vm3, %v8703_v17 }
  0x8f   : > { %v8855_v50 = vpop.f32.mrf.mxu0  ;;  %2802 = vst.msk [vmem:[#allocation2 + $0xd8] sm:$0x3] %vm2777_vm3, %v8703_v17 }
  0x90   : > { %2806 = vst.msk [vmem:[#allocation2 + $0xf8] sm:$0x3] %vm2777_vm3, %v8703_v17 }
  0x91   : > { %2810 = vst.msk [vmem:[#allocation2 + $0x118] sm:$0x3] %vm2777_vm3, %v8703_v17 }
  0x92   : > { %7254 = vmatmul.msk.f32.gmra.mxu0 %vm519_vm1, %v241_v51  ;;  %7415 = vmatmul.msk.f32.gmra.mxu3 %vm519_vm1, %v402_v53  ;;  %2814 = vst.msk [vmem:[#allocation2 + $0x138] sm:$0x3] %vm2777_vm3, %v8703_v17 }
  0x93   : > { %7382 = vmatmul.msk.f32.gmra.mxu2 %vm519_vm1, %v369_v52  ;;  %2818 = vst.msk [vmem:[#allocation2 + $0x158] sm:$0x3] %vm2777_vm3, %v8703_v17 }
  0x94   : > { %2822 = vst.msk [vmem:[#allocation2 + $0x178] sm:$0x3] %vm2777_vm3, %v8703_v17 }
  0x95   : > { %v8863_v55 = vpop.f32.mrf.mxu3  ;;  %2826 = vst.msk [vmem:[#allocation2 + $0x198] sm:$0x3] %vm2777_vm3, %v8703_v17 }
  0x96   : > { %v1789_v54 = vpop.f32.mrf.mxu2  ;;  %2830 = vst.msk [vmem:[#allocation2 + $0x1b8] sm:$0x3] %vm2777_vm3, %v8703_v17 }
  0x97   : > { %v8865_v56 = vpop.f32.mrf.mxu0  ;;  %v1790_v9 = vadd.f32 %v8892_v7, %v1789_v54  ;;  %2834 = vst.msk [vmem:[#allocation2 + $0x1d8] sm:$0x3] %vm2777_vm3, %v8703_v17 }
  0x98   : > { %2838 = vst.msk [vmem:[#allocation2 + $0x1f8] sm:$0x3] %vm2777_vm3, %v8703_v17 }
  0x99   : > { %v2397_v11 = vmax.f32 %v1790_v9, 0.0  ;;  %2842 = vst.msk [vmem:[#allocation2 + $0x218] sm:$0x3] %vm2777_vm3, %v8703_v17 }
  0x9a   : > { %7255 = vmatmul.msk.f32.gmra.mxu0 %vm519_vm1, %v242_v57  ;;  %7416 = vmatmul.msk.f32.gmra.mxu3 %vm519_vm1, %v403_v59  ;;  %v376_v59 = vld [vmem:[%s8757_s27 + $0x4b8] sm:$0xff]  ;;  %2846 = vst.msk [vmem:[#allocation2 + $0x238] sm:$0x3] %vm2777_vm3, %v8703_v17 }
  0x9b   : > { %7383 = vmatmul.msk.f32.gmra.mxu2 %vm519_vm1, %v370_v58  ;;  %v248_v58 = vld [vmem:[%s8757_s27 + $0xb8] sm:$0xff]  ;;  %2850 = vst.msk [vmem:[#allocation2 + $0x258] sm:$0x3] %vm2777_vm3, %v8703_v17 }
  0x9c   : > { %2854 = vst.msk [vmem:[#allocation2 + $0x278] sm:$0x3] %vm2777_vm3, %v8703_v17 }
  0x9d   : > { %v1891_v61 = vpop.f32.mrf.mxu3  ;;  %2858 = vst.msk [vmem:[#allocation2 + $0x298] sm:$0x3] %vm2777_vm3, %v8703_v17 }
  0x9e   : > { %v8873_v60 = vpop.f32.mrf.mxu2  ;;  %v1892_v21 = vadd.f32 %v8892_v7, %v1891_v61  ;;  %v409_v61 = vld [vmem:[%s8757_s27 + $0x5c0] sm:$0xff]  ;;  %2862 = vst.msk [vmem:[#allocation2 + $0x2b8] sm:$0x3] %vm2777_vm3, %v8703_v17 }
  0x9f   : > { %v8875_v62 = vpop.f32.mrf.mxu0  ;;  %2866 = vst.msk [vmem:[#allocation2 + $0x2d8] sm:$0x3] %vm2777_vm3, %v8703_v17 }
  0xa0   : > { %v2431_v24 = vmax.f32 %v1892_v21, 0.0  ;;  %2870 = vst.msk [vmem:[#allocation2 + $0x2f8] sm:$0x3] %vm2777_vm3, %v8703_v17 }
  0xa1   : > { %2874 = vst.msk [vmem:[#allocation2 + $0x318] sm:$0x3] %vm2777_vm3, %v8703_v17 }
  0xa2   : > { %7256 = vmatmul.msk.f32.gmra.mxu0 %vm519_vm1, %v243_v63  ;;  %7417 = vmatmul.msk.f32.gmra.mxu3 %vm519_vm1, %v404_v1  ;;  %2878 = vst.msk [vmem:[#allocation2 + $0x338] sm:$0x3] %vm2777_vm3, %v8703_v17  ;;  %v5776_v17 = vld [vmem:[%s12151_s3 + $0x68] sm:$0xff] }
  0xa3   : > { %7384 = vmatmul.msk.f32.gmra.mxu2 %vm519_vm1, %v371_v0 }
  0xa5   : > { %v1894_v3 = vpop.f32.mrf.mxu3 }
  0xa6   : > { %v8883_v2 = vpop.f32.mrf.mxu2  ;;  %v1895_v33 = vadd.f32 %v8892_v7, %v1894_v3 }
  0xa7   : > { %v8885_v4 = vpop.f32.mrf.mxu0 }
  0xa8   : > { %v2432_v41 = vmax.f32 %v1895_v33, 0.0 }
  0xaa   : > { %7257 = vmatmul.msk.f32.gmra.mxu0 %vm519_vm1, %v244_v5  ;;  %7418 = vmatmul.msk.f32.gmra.mxu3 %vm519_vm1, %v405_v8 }
  0xab   : > { %7385 = vmatmul.msk.f32.gmra.mxu2 %vm519_vm1, %v372_v6 }
  0xad   : > { %v8900_v13 = vpop.f32.mrf.mxu3 }
  0xae   : > { %v1798_v10 = vpop.f32.mrf.mxu2  ;;  %v1898_v48 = vadd.f32 %v8892_v7, %v8900_v13  ;;  %v410_v13 = vld [vmem:[%s8757_s27 + $0x5c8] sm:$0xff] }
  0xaf   : > { %v1799_v12 = vadd.f32 %v8892_v7, %v1798_v10  ;;  %v8902_v14 = vpop.f32.mrf.mxu0  ;;  %v249_v10 = vld [vmem:[%s8757_s27 + $0xc0] sm:$0xff] }
  0xb0   : > { %v2433_v53 = vmax.f32 %v1898_v48, 0.0 }
  0xb1   : > { %v2400_v18 = vmax.f32 %v1799_v12, 0.0 }
  0xb2   : > { %7258 = vmatmul.msk.f32.gmra.mxu0 %vm519_vm1, %v245_v15  ;;  %7419 = vmatmul.msk.f32.gmra.mxu3 %vm519_vm1, %v406_v19  ;;  %v1406_v19 = vadd.f32 %v8892_v7, %v8855_v50  ;;  %v411_v50 = vld [vmem:[%s8757_s27 + $0x5d0] sm:$0xff] }
  0xb3   : > { %v8913_v20 = vmax.f32 %v2397_v11, %v2400_v18  ;;  %7386 = vmatmul.msk.f32.gmra.mxu2 %vm519_vm1, %v373_v16  ;;  %v377_v11 = vld [vmem:[%s8757_s27 + $0x4c0] sm:$0xff]  ;;  %v1415_v16 = vadd.f32 %v8892_v7, %v8885_v4 }
  0xb5   : > { %v1900_v23 = vpop.f32.mrf.mxu3 }
  0xb6   : > { %v8925_v22 = vpop.f32.mrf.mxu2  ;;  %v1901_v25 = vadd.f32 %v8892_v7, %v1900_v23  ;;  %v250_v23 = vld [vmem:[%s8757_s27 + $0xc8] sm:$0xff] }
  0xb7   : > { %v8932_v26 = vpop.f32.mrf.mxu0  ;;  %v1802_v0 = vadd.f32 %v8892_v7, %v8925_v22 }
  0xb8   : > { %v2434_v30 = vmax.f32 %v1901_v25, 0.0  ;;  %v2272_v25 = vmax.f32 %v1415_v16, 0.0 }
  0xb9   : > { %v2401_v5 = vmax.f32 %v1802_v0, 0.0  ;;  %v1421_v0 = vadd.f32 %v8892_v7, %v8932_v26 }
  0xba   : > { %7259 = vmatmul.msk.f32.gmra.mxu0 %vm519_vm1, %v246_v27  ;;  %v8948_v36 = vmax.f32 %v2431_v24, %v2434_v30  ;;  %7420 = vmatmul.msk.f32.gmra.mxu3 %vm519_vm1, %v407_v29  ;;  %v378_v24 = vld [vmem:[%s8757_s27 + $0x4c8] sm:$0xff] }
  0xbb   : > { %7387 = vmatmul.msk.f32.gmra.mxu2 %vm519_vm1, %v374_v28  ;;  %v2269_v28 = vmax.f32 %v1406_v19, 0.0 }
  0xbd   : > { %v1903_v40 = vpop.f32.mrf.mxu3  ;;  %v2557_v31 = vmax.f32 %v2269_v28, %v2272_v25  ;;  %v254_v25 = vld [vmem:[%s8757_s27 + $0xe8] sm:$0xff] }
  0xbe   : > { %v8955_v39 = vpop.f32.mrf.mxu2  ;;  %v1904_v42 = vadd.f32 %v8892_v7, %v1903_v40  ;;  %v379_v40 = vld [vmem:[%s8757_s27 + $0x4d0] sm:$0xff] }
  0xbf   : > { %v8964_v43 = vpop.f32.mrf.mxu0 }
  0xc0   : > { %v2435_v47 = vmax.f32 %v1904_v42, 0.0  ;;  %v1424_v21 = vadd.f32 %v8892_v7, %v8964_v43 }
  0xc2   : > { %7260 = vmatmul.msk.f32.gmra.mxu0 %vm519_vm1, %v247_v44  ;;  %v8981_v49 = vmax.f32 %v2432_v41, %v2435_v47  ;;  %7421 = vmatmul.msk.f32.gmra.mxu3 %vm519_vm1, %v408_v46  ;;  %v2275_v29 = vmax.f32 %v1424_v21, 0.0  ;;  %v412_v41 = vld [vmem:[%s8757_s27 + $0x5d8] sm:$0xff]  ;;  %v413_v47 = vld [vmem:[%s8757_s27 + $0x5e0] sm:$0xff] }
  0xc3   : > { %7388 = vmatmul.msk.f32.gmra.mxu2 %vm519_vm1, %v375_v45  ;;  %v252_v45 = vld [vmem:[%s8757_s27 + $0xd8] sm:$0xff] }
  0xc4   : > { %v380_v46 = vld [vmem:[%s8757_s27 + $0x4d8] sm:$0xff] }
  0xc5   : > { %v1906_v52 = vpop.f32.mrf.mxu3 }
  0xc6   : > { %v8988_v51 = vpop.f32.mrf.mxu2  ;;  %v1907_v54 = vadd.f32 %v8892_v7, %v1906_v52 }
  0xc7   : > { %v8995_v57 = vpop.f32.mrf.mxu0 }
  0xc8   : > { %v2436_v63 = vmax.f32 %v1907_v54, 0.0  ;;  %v1418_v54 = vadd.f32 %v8892_v7, %v8902_v14 }
  0xca   : > { %7261 = vmatmul.msk.f32.gmra.mxu0 %vm519_vm1, %v248_v58  ;;  %v9012_v1 = vmax.f32 %v2433_v53, %v2436_v63  ;;  %7422 = vmatmul.msk.f32.gmra.mxu3 %vm519_vm1, %v409_v61  ;;  %v1427_v58 = vadd.f32 %v8892_v7, %v8995_v57  ;;  %v1409_v63 = vadd.f32 %v8892_v7, %v8865_v56  ;;  %v2273_v26 = vmax.f32 %v1418_v54, 0.0 }
  0xcb   : > { %7389 = vmatmul.msk.f32.gmra.mxu2 %vm519_vm1, %v376_v59  ;;  %v1412_v56 = vadd.f32 %v8892_v7, %v8875_v62 }
  0xcd   : > { %v9022_v8 = vpop.f32.mrf.mxu3  ;;  %v2271_v21 = vmax.f32 %v1412_v56, 0.0 }
  0xce   : > { %v1810_v3 = vpop.f32.mrf.mxu2 }
  0xcf   : > { %v1811_v6 = vadd.f32 %v8892_v7, %v1810_v3  ;;  %v9026_v9 = vpop.f32.mrf.mxu0  ;;  %v253_v3 = vld [vmem:[%s8757_s27 + $0xe0] sm:$0xff] }
  0xd0   : > { %v1430_v14 = vadd.f32 %v8892_v7, %v9026_v9 }
  0xd1   : > { %v2404_v12 = vmax.f32 %v1811_v6, 0.0  ;;  %v414_v6 = vld [vmem:[%s8757_s27 + $0x5e8] sm:$0xff] }
  0xd2   : > { %7262 = vmatmul.msk.f32.gmra.mxu0 %vm519_vm1, %v249_v10  ;;  %7423 = vmatmul.msk.f32.gmra.mxu3 %vm519_vm1, %v410_v13  ;;  %v2276_v10 = vmax.f32 %v1427_v58, 0.0  ;;  %v2277_v13 = vmax.f32 %v1430_v14, 0.0  ;;  %v256_v14 = vld [vmem:[%s8757_s27 + $0xf8] sm:$0xff] }
  0xd3   : > { %v9037_v15 = vmax.f32 %v2401_v5, %v2404_v12  ;;  %7390 = vmatmul.msk.f32.gmra.mxu2 %vm519_vm1, %v377_v11  ;;  %v381_v5 = vld [vmem:[%s8757_s27 + $0x4e0] sm:$0xff]  ;;  %v2270_v11 = vmax.f32 %v1409_v63, 0.0  ;;  %v2274_v12 = vmax.f32 %v1421_v0, 0.0 }
  0xd5   : > { %v9058_v22 = vpop.f32.mrf.mxu3  ;;  %v2559_v28 = vmax.f32 %v2271_v21, %v2274_v12 }
  0xd6   : > { %v9050_v18 = vpop.f32.mrf.mxu2 }
  0xd7   : > { %v1432_v4 = vpop.f32.mrf.mxu0  ;;  %v1814_v56 = vadd.f32 %v8892_v7, %v9050_v18 }
  0xd8   : > { %v1433_v27 = vadd.f32 %v8892_v7, %v1432_v4  ;;  %v2558_v4 = vmax.f32 %v2270_v11, %v2273_v26  ;;  %v3098_v11 = vld [vmem:[#allocation2 + $0x12] sm:$0xff] }
  0xda   : > { %v2278_v30 = vmax.f32 %v1433_v27, 0.0  ;;  %7263 = vmatmul.msk.f32.gmra.mxu0 %vm519_vm1, %v250_v23  ;;  %7424 = vmatmul.msk.f32.gmra.mxu3 %vm519_vm1, %v411_v50  ;;  %v382_v27 = vld [vmem:[%s8757_s27 + $0x4e8] sm:$0xff]  ;;  %v415_v50 = vld [vmem:[%s8757_s27 + $0x5f0] sm:$0xff] }
  0xdb   : > { %7391 = vmatmul.msk.f32.gmra.mxu2 %vm519_vm1, %v378_v24 }
  0xdc   : > { %v2629_v32 = vmax.f32 %v2275_v29, %v2278_v30 }
  0xdd   : > { %v9087_v35 = vpop.f32.mrf.mxu3 }
  0xde   : > { %v9083_v33 = vpop.f32.mrf.mxu2  ;;  %v2701_v34 = vmax.f32 %v2557_v31, %v2629_v32 }
  0xdf   : > { %v1435_v37 = vpop.f32.mrf.mxu0 }
  0xe0   : > { %2880 = vst.msk [vmem:[#allocation2 + $0x21] sm:$0xff] %vm2773_vm2, %v2701_v34  ;;  %v1436_v48 = vadd.f32 %v8892_v7, %v1435_v37  ;;  %v255_v37 = vld [vmem:[%s8757_s27 + $0xf0] sm:$0xff] }
  0xe2   : > { %7264 = vmatmul.msk.f32.gmra.mxu0 %vm519_vm1, %v251_v38  ;;  %7425 = vmatmul.msk.f32.gmra.mxu3 %vm519_vm1, %v412_v41  ;;  %v2279_v57 = vmax.f32 %v1436_v48, 0.0  ;;  %v383_v38 = vld [vmem:[%s8757_s27 + $0x4f0] sm:$0xff] }
  0xe3   : > { %7392 = vmatmul.msk.f32.gmra.mxu2 %vm519_vm1, %v379_v40  ;;  %v416_v40 = vld [vmem:[%s8757_s27 + $0x5f8] sm:$0xff] }
  0xe4   : > { %v2630_v62 = vmax.f32 %v2276_v10, %v2279_v57  ;;  %v1805_v57 = vadd.f32 %v8892_v7, %v8955_v39 }
  0xe5   : > { %v9112_v43 = vpop.f32.mrf.mxu3 }
  0xe6   : > { %v9108_v42 = vpop.f32.mrf.mxu2  ;;  %v2702_v29 = vmax.f32 %v2558_v4, %v2630_v62 }
  0xe7   : > { %v1438_v44 = vpop.f32.mrf.mxu0  ;;  %v3168_v41 = vld [vmem:[#allocation2 + $0x20] sm:$0xff]  ;;  %v1820_v26 = vadd.f32 %v8892_v7, %v9108_v42  ;;  %v1808_v42 = vadd.f32 %v8892_v7, %v8988_v51  ;;  %v2405_v51 = vmax.f32 %v1814_v56, 0.0 }
  0xe8   : > { %v1439_v59 = vadd.f32 %v8892_v7, %v1438_v44  ;;  %2881 = vst.msk [vmem:[#allocation2 + $0x29] sm:$0xff] %vm2773_vm2, %v2702_v29 }
  0xe9   : > { %v2407_v62 = vmax.f32 %v1820_v26, 0.0 }
  0xea   : > { %7265 = vmatmul.msk.f32.gmra.mxu0 %vm519_vm1, %v252_v45  ;;  %7426 = vmatmul.msk.f32.gmra.mxu3 %vm519_vm1, %v413_v47  ;;  %v2280_v9 = vmax.f32 %v1439_v59, 0.0  ;;  %v3027_v45 = vld [vmem:[#allocation2 + $0x21] sm:$0xff]  ;;  %v3026_v59 = vld [vmem:[#allocation2 + $0x11] sm:$0xff] }
  0xeb   : > { %7393 = vmatmul.msk.f32.gmra.mxu2 %vm519_vm1, %v380_v46 }
  0xec   : > { %v2631_v23 = vmax.f32 %v2277_v13, %v2280_v9  ;;  %v1817_v9 = vadd.f32 %v8892_v7, %v9083_v33 }
  0xed   : > { %v9139_v53 = vpop.f32.mrf.mxu3 }
  0xee   : > { %v9137_v52 = vpop.f32.mrf.mxu2  ;;  %v2703_v30 = vmax.f32 %v2559_v28, %v2631_v23  ;;  %v2406_v28 = vmax.f32 %v1817_v9, 0.0  ;;  %v1913_v9 = vadd.f32 %v8892_v7, %v9058_v22 }
  0xef   : > { %v9150_v61 = vpop.f32.mrf.mxu0  ;;  %v3169_v44 = vld [vmem:[#allocation2 + $0x28] sm:$0xff]  ;;  %v1823_v39 = vadd.f32 %v8892_v7, %v9137_v52  ;;  %v2402_v52 = vmax.f32 %v1805_v57, 0.0 }
  0xf0   : > { %2882 = vst.msk [vmem:[#allocation2 + $0x31] sm:$0xff] %vm2773_vm2, %v2703_v30  ;;  %v7649_v46 = vpack.i.bf16 %v3169_v44, %v3168_v41  ;;  %v3028_v54 = vld [vmem:[#allocation2 + $0x29] sm:$0xff]  ;;  %v385_v41 = vld [vmem:[%s8757_s27 + $0x500] sm:$0xff]  ;;  %v2438_v22 = vmax.f32 %v1913_v9, 0.0 }
  0xf1   : > { %v3099_v12 = vld [vmem:[#allocation2 + $0x22] sm:$0xff] }
  0xf2   : > { %7266 = vmatmul.msk.f32.gmra.mxu0 %vm519_vm1, %v253_v3  ;;  %7427 = vmatmul.msk.f32.gmra.mxu3 %vm519_vm1, %v414_v6  ;;  %v7644_v3 = vpack.i.bf16 %v3027_v45, %v3026_v59  ;;  %v417_v6 = vld [vmem:[%s8757_s27 + $0x600] sm:$0xff]  ;;  %v7654_v23 = vpack.i.bf16 %v3099_v12, %v3098_v11  ;;  %v418_v44 = vld [vmem:[%s8757_s27 + $0x608] sm:$0xff]  ;;  %v1922_v12 = vadd.f32 %v8892_v7, %v9139_v53 }
  0xf3   : > { %7394 = vmatmul.msk.f32.gmra.mxu2 %vm519_vm1, %v381_v5  ;;  %7650 = vrot.lane.b32.xlu2 %v7649_v46, %s8706_s7  ;;  %v384_v5 = vld [vmem:[%s8757_s27 + $0x4f8] sm:$0xff]  ;;  %v261_v9 = vld [vmem:[%s8757_s27 + $0x120] sm:$0xff] }
  0xf4   : > { %7645 = vrot.lane.b32.xlu0 %v7644_v3, %s8704_s30  ;;  %v2441_v53 = vmax.f32 %v1922_v12, 0.0  ;;  %v5767_v12 = vld [vmem:[%s12151_s3 + $0x20] sm:$0xff] }
  0xf5   : > { %v9180_v19 = vpop.f32.mrf.mxu3 }
  0xf6   : > { %v9178_v16 = vpop.f32.mrf.mxu2 }
  0xf7   : > { %v9186_v24 = vpop.f32.mrf.mxu0  ;;  %v3029_v58 = vld [vmem:[#allocation2 + $0x31] sm:$0xff]  ;;  %v1826_v13 = vadd.f32 %v8892_v7, %v9178_v16  ;;  %v2408_v16 = vmax.f32 %v1823_v39, 0.0 }
  0xf8   : > { %v7659_v63 = vpack.i.bf16 %v3029_v58, %v3028_v54  ;;  %v3100_v58 = vld [vmem:[#allocation2 + $0x2a] sm:$0xff]  ;;  %v3101_v59 = vld [vmem:[#allocation2 + $0x32] sm:$0xff] }
  0xf9   : > { %v2409_v29 = vmax.f32 %v1826_v13, 0.0  ;;  %v7664_v26 = vpack.i.bf16 %v3101_v59, %v3100_v58  ;;  %v260_v59 = vld [vmem:[%s8757_s27 + $0x118] sm:$0xff] }
  0xfa   : > { %7267 = vmatmul.msk.f32.gmra.mxu0 %vm519_vm1, %v254_v25  ;;  %7428 = vmatmul.msk.f32.gmra.mxu3 %vm519_vm1, %v415_v50  ;;  %v2403_v50 = vmax.f32 %v1808_v42, 0.0 }
  0xfb   : > { %7395 = vmatmul.msk.f32.gmra.mxu2 %vm519_vm1, %v382_v27  ;;  %7660 = vrot.lane.b32.xlu1 %v7659_v63, %s8704_s30  ;;  %v5777_v63 = vld [vmem:[%s12151_s3 + $0x70] sm:$0xff] }
  0xfc   : > { %7655 = vrot.lane.b32.xlu0 %v7654_v23, %s8705_s6  ;;  %v2592_v54 = vmax.f32 %v2403_v50, %v2406_v28  ;;  %v1916_v50 = vadd.f32 %v8892_v7, %v9087_v35  ;;  %v2600_v28 = vmax.f32 %v2438_v22, %v2441_v53 }
  0xfd   : > { %v9205_v32 = vpop.f32.mrf.mxu3 }
  0xfe   : > { %v1828_v31 = vpop.f32.mrf.mxu2  ;;  %v1928_v46 = vadd.f32 %v8892_v7, %v9205_v32 }
  0xff   : > { %v9210_v34 = vpop.f32.mrf.mxu0  ;;  %v1829_v10 = vadd.f32 %v8892_v7, %v1828_v31  ;;  %v257_v31 = vld [vmem:[%s8757_s27 + $0x100] sm:$0xff] }
 0x101   : > { %v2410_v33 = vmax.f32 %v1829_v10, 0.0 }
 0x102   : > { %7268 = vmatmul.msk.f32.gmra.mxu0 %vm519_vm1, %v255_v37  ;;  %7429 = vmatmul.msk.f32.gmra.mxu3 %vm519_vm1, %v416_v40  ;;  %v1910_v37 = vadd.f32 %v8892_v7, %v9022_v8 }
 0x103   : > { %7396 = vmatmul.msk.f32.gmra.mxu2 %vm519_vm1, %v383_v38  ;;  %v1919_v38 = vadd.f32 %v8892_v7, %v9112_v43  ;;  %v2662_v45 = vmax.f32 %v2407_v62, %v2410_v33  ;;  %v5778_v43 = vld [vmem:[%s12151_s3 + $0x78] sm:$0xff] }
 0x104   : > { %6019 = vmatpush.msra.mxu1 %v5778_v43  ;;  %7604 = vmatpush.msrb.mxu2 %v5778_v43 }
 0x105   : > { %v9230_v48 = vpop.f32.mrf.mxu3  ;;  %v2440_v57 = vmax.f32 %v1919_v38, 0.0  ;;  %v2734_v3 = vmax.f32 %v9037_v15, %v2662_v45  ;;  %v258_v15 = vld [vmem:[%s8757_s27 + $0x108] sm:$0xff]  ;;  %7665 = vrot.lane.b32.xlu0 %v7664_v26, %s8705_s6  ;;  %v5775_v38 = vld [vmem:[%s12151_s3 + $0x60] sm:$0xff] }
 0x106   : > { %v1831_v47 = vpop.f32.mrf.mxu2  ;;  %6020 = vmatpush.msra.mxu1 %v5777_v63  ;;  %7605 = vmatpush.msrb.mxu2 %v5777_v63 }
 0x107   : > { %v9237_v0 = vpop.f32.mrf.mxu0  ;;  %v1832_v18 = vadd.f32 %v8892_v7, %v1831_v47  ;;  %v2591_v47 = vmax.f32 %v2402_v52, %v2405_v51  ;;  %v419_v52 = vld [vmem:[%s8757_s27 + $0x610] sm:$0xff]  ;;  %2913 = vst.msk [vmem:[#allocation2 + $0x181] sm:$0xff] %vm2773_vm2, %v2734_v3  ;;  %v1931_v51 = vadd.f32 %v8892_v7, %v9230_v48  ;;  %v5770_v3 = vld [vmem:[%s12151_s3 + $0x38] sm:$0xff] }
 0x108   : > { %6021 = vmatpush.msra.mxu1 %v5776_v17  ;;  %7606 = vmatpush.msrb.mxu2 %v5776_v17 }
 0x109   : > { %v2411_v25 = vmax.f32 %v1832_v18, 0.0 }
 0x10a   : > { %7269 = vmatmul.msk.f32.gmra.mxu0 %vm519_vm1, %v256_v14  ;;  %7430 = vmatmul.msk.f32.gmra.mxu3 %vm519_vm1, %v417_v6  ;;  %v2437_v14 = vmax.f32 %v1910_v37, 0.0  ;;  %v420_v37 = vld [vmem:[%s8757_s27 + $0x618] sm:$0xff] }
 0x10b   : > { %7397 = vmatmul.msk.f32.gmra.mxu2 %vm519_vm1, %v384_v5  ;;  %v2663_v8 = vmax.f32 %v2408_v16, %v2411_v25  ;;  %v2443_v5 = vmax.f32 %v1928_v46, 0.0  ;;  %v2444_v16 = vmax.f32 %v1931_v51, 0.0  ;;  %6022 = vmatpush.msra.mxu1 %v5775_v38 }
 0x10c   : > { %v2599_v11 = vmax.f32 %v2437_v14, %v2440_v57  ;;  %7607 = vmatpush.msrb.mxu2 %v5775_v38  ;;  %v421_v14 = vld [vmem:[%s8757_s27 + $0x620] sm:$0xff] }
 0x10d   : > { %v9275_v4 = vpop.f32.mrf.mxu3  ;;  %v2735_v10 = vmax.f32 %v2591_v47, %v2663_v8  ;;  %v5772_v47 = vld [vmem:[%s12151_s3 + $0x48] sm:$0xff]  ;;  %v5771_v57 = vld [vmem:[%s12151_s3 + $0x40] sm:$0xff] }
 0x10e   : > { %v1834_v21 = vpop.f32.mrf.mxu2 }
 0x10f   : > { %v1835_v27 = vadd.f32 %v8892_v7, %v1834_v21  ;;  %v9282_v30 = vpop.f32.mrf.mxu0  ;;  %2914 = vst.msk [vmem:[#allocation2 + $0x189] sm:$0xff] %vm2773_vm2, %v2735_v10  ;;  %v5768_v10 = vld [vmem:[%s12151_s3 + $0x28] sm:$0xff] }
 0x111   : > { %v2412_v40 = vmax.f32 %v1835_v27, 0.0  ;;  %v259_v27 = vld [vmem:[%s8757_s27 + $0x110] sm:$0xff] }
 0x112   : > { %7270 = vmatmul.msk.f32.gmra.mxu0 %vm519_vm1, %v257_v31  ;;  %7431 = vmatmul.msk.f32.gmra.mxu3 %vm519_vm1, %v418_v44  ;;  %v2439_v44 = vmax.f32 %v1916_v50, 0.0 }
 0x113   : > { %v2664_v32 = vmax.f32 %v2409_v29, %v2412_v40  ;;  %7398 = vmatmul.msk.f32.gmra.mxu2 %vm519_vm1, %v385_v41  ;;  %v1925_v29 = vadd.f32 %v8892_v7, %v9180_v19  ;;  %v5774_v40 = vld [vmem:[%s12151_s3 + $0x58] sm:$0xff]  ;;  %v1934_v41 = vadd.f32 %v8892_v7, %v9275_v4  ;;  %v5773_v19 = vld [vmem:[%s12151_s3 + $0x50] sm:$0xff] }
 0x114   : > { %6023 = vmatpush.msra.mxu1 %v5774_v40  ;;  %7608 = vmatpush.msrb.mxu2 %v5774_v40 }
 0x115   : > { %v1936_v56 = vpop.f32.mrf.mxu3  ;;  %v2736_v18 = vmax.f32 %v2592_v54, %v2664_v32  ;;  %v2442_v45 = vmax.f32 %v1925_v29, 0.0  ;;  %v2445_v43 = vmax.f32 %v1934_v41, 0.0 }
 0x116   : > { %v9316_v6 = vpop.f32.mrf.mxu2  ;;  %v1937_v39 = vadd.f32 %v8892_v7, %v1936_v56  ;;  %6024 = vmatpush.msra.mxu1 %v5773_v19  ;;  %7609 = vmatpush.msrb.mxu2 %v5773_v19  ;;  %v5769_v56 = vld [vmem:[%s12151_s3 + $0x30] sm:$0xff] }
 0x117   : > { %v9323_v42 = vpop.f32.mrf.mxu0  ;;  %2915 = vst.msk [vmem:[#allocation2 + $0x191] sm:$0xff] %vm2773_vm2, %v2736_v18  ;;  %v2601_v32 = vmax.f32 %v2439_v44, %v2442_v45 }
 0x118   : > { %v2446_v13 = vmax.f32 %v1937_v39, 0.0  ;;  %6025 = vmatpush.msra.mxu1 %v5772_v47  ;;  %7610 = vmatpush.msrb.mxu2 %v5772_v47 }
 0x11a   : > { %v2671_v62 = vmax.f32 %v2443_v5, %v2446_v13  ;;  %7271 = vmatmul.msk.f32.gmra.mxu0 %vm519_vm1, %v258_v15  ;;  %7432 = vmatmul.msk.f32.gmra.mxu3 %vm519_vm1, %v419_v52  ;;  %v5766_v13 = vld [vmem:[%s12151_s3 + $0x18] sm:$0xff]  ;;  %v5765_v52 = vld [vmem:[%s12151_s3 + $0x10] sm:$0xff] }
 0x11b   : > { %6026 = vmatpush.msra.mxu1 %v5771_v57  ;;  %7611 = vmatpush.msrb.mxu2 %v5771_v57 }
 0x11c   : > { %v2743_v33 = vmax.f32 %v2599_v11, %v2671_v62  ;;  %v422_v11 = vld [vmem:[%s8757_s27 + $0x628] sm:$0xff]  ;;  %v1451_v62 = vadd.f32 %v8892_v7, %v9237_v0 }
 0x11d   : > { %v1939_v48 = vpop.f32.mrf.mxu3  ;;  %6027 = vmatpush.msra.mxu1 %v5770_v3  ;;  %7612 = vmatpush.msrb.mxu2 %v5770_v3 }
 0x11e   : > { %v9344_v21 = vpop.f32.mrf.mxu2  ;;  %2922 = vst.msk [vmem:[#allocation2 + $0x1e1] sm:$0xff] %vm2773_vm2, %v2743_v33  ;;  %v1940_v23 = vadd.f32 %v8892_v7, %v1939_v48  ;;  %v1442_v33 = vadd.f32 %v8892_v7, %v9150_v61  ;;  %v2284_v50 = vmax.f32 %v1451_v62, 0.0  ;;  %v9467_v62 = vld [vmem:[%s12150_s2] ss:$0 sm:$0xff] }
 0x11f   : > { %v9348_v25 = vpop.f32.mrf.mxu0  ;;  %6028 = vmatpush.msra.mxu1 %v5769_v56  ;;  %7613 = vmatpush.msrb.mxu2 %v5769_v56  ;;  %v1448_v56 = vadd.f32 %v8892_v7, %v9210_v34 }
 0x120   : > { %v2447_v31 = vmax.f32 %v1940_v23, 0.0  ;;  %v1460_v48 = vadd.f32 %v8892_v7, %v9348_v25  ;;  %v2281_v29 = vmax.f32 %v1442_v33, 0.0  ;;  %v1454_v25 = vadd.f32 %v8892_v7, %v9282_v30  ;;  %v424_v30 = vld [vmem:[%s8757_s27 + $0x638] sm:$0xff] }
 0x121   : > { %6029 = vmatpush.msra.mxu1 %v5768_v10  ;;  %7614 = vmatpush.msrb.mxu2 %v5768_v10 }
 0x122   : > { %v2672_v35 = vmax.f32 %v2444_v16, %v2447_v31  ;;  %7272 = vmatmul.msk.f32.gmra.mxu0 %vm519_vm1, %v259_v27  ;;  %7433 = vmatmul.msk.f32.gmra.mxu3 %vm519_vm1, %v420_v37  ;;  %v262_v27 = vld [vmem:[%s8757_s27 + $0x128] sm:$0xff]  ;;  %v2287_v31 = vmax.f32 %v1460_v48, 0.0  ;;  %v2560_v61 = vmax.f32 %v2281_v29, %v2284_v50  ;;  %v2285_v47 = vmax.f32 %v1454_v25, 0.0  ;;  %v265_v29 = vld [vmem:[%s8757_s27 + $0x140] sm:$0xff] }
 0x123   : > { %6030 = vmatpush.msra.mxu1 %v5767_v12  ;;  %7615 = vmatpush.msrb.mxu2 %v5767_v12  ;;  %v264_v12 = vld [vmem:[%s8757_s27 + $0x138] sm:$0xff] }
 0x124   : > { %v2744_v46 = vmax.f32 %v2600_v28, %v2672_v35  ;;  %v423_v28 = vld [vmem:[%s8757_s27 + $0x630] sm:$0xff]  ;;  %v1445_v35 = vadd.f32 %v8892_v7, %v9186_v24  ;;  %v5764_v24 = vld [vmem:[%s12151_s3 + $0x8] sm:$0xff] }
 0x125   : > { %v1942_v8 = vpop.f32.mrf.mxu3  ;;  %6031 = vmatpush.msra.mxu1 %v5766_v13  ;;  %7616 = vmatpush.msrb.mxu2 %v5766_v13 }
 0x126   : > { %v9372_v4 = vpop.f32.mrf.mxu2  ;;  %2923 = vst.msk [vmem:[#allocation2 + $0x1e9] sm:$0xff] %vm2773_vm2, %v2744_v46  ;;  %v1943_v54 = vadd.f32 %v8892_v7, %v1942_v8  ;;  %v263_v46 = vld [vmem:[%s8757_s27 + $0x130] sm:$0xff] }
 0x127   : > { %v9376_v58 = vpop.f32.mrf.mxu0  ;;  %6032 = vmatpush.msra.mxu1 %v5765_v52  ;;  %7617 = vmatpush.msrb.mxu2 %v5765_v52 }
 0x128   : > { %v2448_v63 = vmax.f32 %v1943_v54, 0.0  ;;  %v1463_v19 = vadd.f32 %v8892_v7, %v9376_v58  ;;  %v5763_v58 = vld [vmem:[%s12151_s3] sm:$0xff] }
 0x129   : > { %6033 = vmatpush.msra.mxu1 %v5764_v24  ;;  %7618 = vmatpush.msrb.mxu2 %v5764_v24 }
 0x12a   : > { %v2673_v5 = vmax.f32 %v2445_v43, %v2448_v63  ;;  %7273 = vmatmul.msk.f32.gmra.mxu0 %vm519_vm1, %v260_v59  ;;  %7434 = vmatmul.msk.f32.gmra.mxu3 %vm519_vm1, %v421_v14  ;;  %v2282_v43 = vmax.f32 %v1445_v35, 0.0  ;;  %v2288_v54 = vmax.f32 %v1463_v19, 0.0  ;;  %v1457_v63 = vadd.f32 %v8892_v7, %v9323_v42  ;;  %v9461_v42 = vld [vmem:[#allocation2 + $0x30] sm:$0xff]  ;;  %v266_v19 = vld [vmem:[%s8757_s27 + $0x148] sm:$0xff] }
 0x12b   : > { %6034 = vmatpush.msra.mxu1 %v5763_v58  ;;  %7619 = vmatpush.msrb.mxu2 %v5763_v58 }
 0x12c   : > { %v2745_v26 = vmax.f32 %v2601_v32, %v2673_v5  ;;  %v2561_v32 = vmax.f32 %v2282_v43, %v2285_v47  ;;  %v3060_v5 = vld [vmem:[#allocation2 + $0x181] sm:$0xff] }
 0x12d   : > { %v9396_v18 = vpop.f32.mrf.mxu3  ;;  %v3070_v51 = vld [vmem:[#allocation2 + $0x1e9] sm:$0xff] }
 0x12e   : > { %v9394_v39 = vpop.f32.mrf.mxu2  ;;  %2924 = vst.msk [vmem:[#allocation2 + $0x1f1] sm:$0xff] %vm2773_vm2, %v2745_v26 }
 0x12f   : > { %v9399_v15 = vpop.f32.mrf.mxu0  ;;  %v1847_v43 = vadd.f32 %v9467_v62, %v9394_v39 }
 0x130   : > { %v1466_v26 = vadd.f32 %v8892_v7, %v9399_v15 }
 0x131   : > { %v2416_v39 = vmax.f32 %v1847_v43, 0.0 }
 0x132   : > { %7274 = vmatmul.msk.f32.gmra.mxu0 %vm519_vm1, %v261_v9  ;;  %7435 = vmatmul.msk.f32.gmra.mxu3 %vm519_vm1, %v422_v11  ;;  %v3061_v9 = vld [vmem:[#allocation2 + $0x189] sm:$0xff]  ;;  %v2289_v33 = vmax.f32 %v1466_v26, 0.0 }
 0x133   : > { %v7669_v52 = vpack.i.bf16 %v3061_v9, %v3060_v5  ;;  %v2952_v5 = vld [vmem:[#allocation2] sm:$0xff] }
 0x135   : > { %v9418_v22 = vpop.f32.mrf.mxu3  ;;  %v3071_v53 = vld [vmem:[#allocation2 + $0x1f1] sm:$0xff]  ;;  %7670 = vrot.lane.b32.xlu0 %v7669_v52, %s8704_s30  ;;  %v1841_v52 = vadd.f32 %v9467_v62, %v9344_v21 }
 0x136   : > { %v9416_v17 = vpop.f32.mrf.mxu2  ;;  %v7674_v16 = vpack.i.bf16 %v3071_v53, %v3070_v51  ;;  %v2286_v51 = vmax.f32 %v1457_v63, 0.0  ;;  %v2283_v53 = vmax.f32 %v1448_v56, 0.0 }
 0x137   : > { %v1468_v23 = vpop.f32.mrf.mxu0  ;;  %v2414_v21 = vmax.f32 %v1841_v52, 0.0  ;;  %v430_v52 = vld [vmem:[%s8757_s27 + $0x668] sm:$0xff] }
 0x138   : > { %v1469_v0 = vadd.f32 %v8892_v7, %v1468_v23  ;;  %7675 = vrot.lane.b32.xlu2 %v7674_v16, %s8704_s30  ;;  %v2562_v16 = vmax.f32 %v2283_v53, %v2286_v51 }
 0x13a   : > { %v2290_v37 = vmax.f32 %v1469_v0, 0.0  ;;  %7275 = vmatmul.msk.f32.gmra.mxu0 %vm519_vm1, %v262_v27  ;;  %7436 = vmatmul.msk.f32.gmra.mxu3 %vm519_vm1, %v423_v28 }
 0x13c   : > { %v2632_v38 = vmax.f32 %v2287_v31, %v2290_v37 }
 0x13d   : > { %v9434_v41 = vpop.f32.mrf.mxu3 }
 0x13e   : > { %v9432_v40 = vpop.f32.mrf.mxu2  ;;  %v2704_v44 = vmax.f32 %v2560_v61, %v2632_v38  ;;  %v426_v61 = vld [vmem:[%s8757_s27 + $0x648] sm:$0xff] }
 0x13f   : > { %v1471_v45 = vpop.f32.mrf.mxu0 }
 0x140   : > { %2883 = vst.msk [vmem:[#allocation2 + $0x41] sm:$0xff] %vm2773_vm2, %v2704_v44  ;;  %v1472_v8 = vadd.f32 %v8892_v7, %v1471_v45  ;;  %v425_v7 = vld [vmem:[%s8757_s27 + $0x640] sm:$0xff]  ;;  %v7636_v44 = vpop.permute.xlu0 %7635 }
 0x141   : > { %v7637_v63 = vunpack.i.l.bf16 %v7636_v44 }
 0x142   : > { %v2291_v59 = vmax.f32 %v1472_v8, 0.0  ;;  %7276 = vmatmul.msk.f32.gmra.mxu0 %vm519_vm1, %v263_v46  ;;  %7437 = vmatmul.msk.f32.gmra.mxu3 %vm519_vm1, %v424_v30  ;;  %v1838_v30 = vadd.f32 %v9467_v62, %v9316_v6 }
 0x143   : > { %v5329_v9 = vsel %vm2773_vm2, %v2952_v5, %v7637_v63 }
 0x144   : > { %v2633_v14 = vmax.f32 %v2288_v54, %v2291_v59  ;;  %v427_v54 = vld [vmem:[%s8757_s27 + $0x650] sm:$0xff]  ;;  %v2413_v6 = vmax.f32 %v1838_v30, 0.0  ;;  %v268_v30 = vld [vmem:[%s8757_s27 + $0x158] sm:$0xff] }
 0x145   : > { %v9454_v3 = vpop.f32.mrf.mxu3 }
 0x146   : > { %v1855_v57 = vpop.f32.mrf.mxu2  ;;  %v2705_v10 = vmax.f32 %v2561_v32, %v2633_v14  ;;  %v7641_v14 = vpop.permute.xlu1 %7640  ;;  %v2593_v51 = vmax.f32 %v2413_v6, %v2416_v39 }
 0x147   : > { %v1474_v11 = vpop.f32.mrf.mxu0  ;;  %v3171_v13 = vld [vmem:[#allocation2 + $0x40] sm:$0xff]  ;;  %v1856_v32 = vadd.f32 %v9467_v62, %v1855_v57  ;;  %v7642_v56 = vunpack.i.l.bf16 %v7641_v14 }
 0x148   : > { %2884 = vst.msk [vmem:[#allocation2 + $0x49] sm:$0xff] %vm2773_vm2, %v2705_v10  ;;  %v1475_v34 = vadd.f32 %v9467_v62, %v1474_v11  ;;  %v7679_v15 = vpack.i.bf16 %v3171_v13, %v9461_v42  ;;  %v3030_v31 = vld [vmem:[#allocation2 + $0x41] sm:$0xff]  ;;  %v267_v13 = vld [vmem:[%s8757_s27 + $0x150] sm:$0xff] }
 0x149   : > { %v2419_v57 = vmax.f32 %v1856_v32, 0.0 }
 0x14a   : > { %v2292_v48 = vmax.f32 %v1475_v34, 0.0  ;;  %7277 = vmatmul.msk.f32.gmra.mxu0 %vm519_vm1, %v264_v12  ;;  %7680 = vrot.lane.b32.xlu1 %v7679_v15, %s8706_s7  ;;  %v1850_v34 = vadd.f32 %v9467_v62, %v9416_v17  ;;  %v428_v15 = vld [vmem:[%s8757_s27 + $0x658] sm:$0xff] }
 0x14b   : > { %7438 = vmatmul.msk.f32.gmra.mxu3 %vm519_vm1, %v425_v7 }
 0x14c   : > { %v2634_v23 = vmax.f32 %v2289_v33, %v2292_v48  ;;  %v5402_v33 = vsel %vm5401_vm4, %v5329_v9, %v7642_v56  ;;  %v7638_v48 = vunpack.i.h.bf16 %v7636_v44  ;;  %v269_v9 = vld [vmem:[%s8757_s27 + $0x160] sm:$0xff] }
 0x14d   : > { %v9476_v50 = vpop.f32.mrf.mxu3  ;;  %v7651_v53 = vpop.permute.xlu2 %7650 }
 0x14e   : > { %v1858_v27 = vpop.f32.mrf.mxu2  ;;  %v2706_v0 = vmax.f32 %v2562_v16, %v2634_v23  ;;  %v7652_v16 = vunpack.i.l.bf16 %v7651_v53 }
 0x14f   : > { %v9478_v28 = vpop.f32.mrf.mxu0  ;;  %v3031_v37 = vld [vmem:[#allocation2 + $0x49] sm:$0xff]  ;;  %v1859_v23 = vadd.f32 %v9467_v62, %v1858_v27 }
 0x150   : > { %2885 = vst.msk [vmem:[#allocation2 + $0x51] sm:$0xff] %vm2773_vm2, %v2706_v0  ;;  %v7684_v25 = vpack.i.bf16 %v3031_v37, %v3030_v31  ;;  %v3172_v46 = vld [vmem:[#allocation2 + $0x48] sm:$0xff]  ;;  %v2417_v31 = vmax.f32 %v1850_v34, 0.0  ;;  %v5475_v17 = vsel %vm5474_vm5, %v5402_v33, %v7652_v16  ;;  %v1955_v34 = vadd.f32 %v9467_v62, %v9454_v3 }
 0x151   : > { %v3102_v24 = vld [vmem:[#allocation2 + $0x42] sm:$0xff]  ;;  %6035 = vmatmul.f32.vlgmr.msra.gmra.mxu1 %v5475_v17  ;;  %v2420_v44 = vmax.f32 %v1859_v23, 0.0  ;;  %v1958_v17 = vadd.f32 %v9467_v62, %v9476_v50 }
 0x152   : > { %7278 = vmatmul.msk.f32.gmra.mxu0 %vm519_vm1, %v265_v29  ;;  %7685 = vrot.lane.b32.xlu1 %v7684_v25, %s8704_s30  ;;  %v2953_v29 = vld [vmem:[#allocation2 + $0x8] sm:$0xff]  ;;  %v2594_v43 = vmax.f32 %v2414_v21, %v2417_v31  ;;  %v431_v21 = vld [vmem:[%s8757_s27 + $0x670] sm:$0xff]  ;;  %v1949_v31 = vadd.f32 %v9467_v62, %v9418_v22 }
 0x153   : > { %7439 = vmatmul.msk.f32.gmra.mxu3 %vm519_vm1, %v426_v61  ;;  %v7643_v61 = vunpack.i.h.bf16 %v7641_v14  ;;  %v5330_v27 = vsel %vm2773_vm2, %v2953_v29, %v7638_v48  ;;  %v2452_v48 = vmax.f32 %v1955_v34, 0.0  ;;  %v270_v3 = vld [vmem:[%s8757_s27 + $0x168] sm:$0xff] }
 0x155   : > { %v9488_v35 = vpop.f32.mrf.mxu3  ;;  %v5403_v32 = vsel %vm5401_vm4, %v5330_v27, %v7643_v61  ;;  %v2450_v27 = vmax.f32 %v1949_v31, 0.0 }
 0x156   : > { %v9486_v38 = vpop.f32.mrf.mxu2 }
 0x157   : > { %v9491_v45 = vpop.f32.mrf.mxu0  ;;  %v3173_v47 = vld [vmem:[#allocation2 + $0x50] sm:$0xff]  ;;  %v1862_v63 = vadd.f32 %v9467_v62, %v9486_v38 }
 0x158   : > { %v3103_v8 = vld [vmem:[#allocation2 + $0x4a] sm:$0xff]  ;;  %v7689_v59 = vpack.i.bf16 %v3173_v47, %v3172_v46  ;;  %v1844_v47 = vadd.f32 %v9467_v62, %v9372_v4 }
 0x159   : > { %v7694_v58 = vpack.i.bf16 %v3103_v8, %v3102_v24  ;;  %v2421_v56 = vmax.f32 %v1862_v63, 0.0 }
 0x15a   : > { %7279 = vmatmul.msk.f32.gmra.mxu0 %vm519_vm1, %v266_v19  ;;  %7690 = vrot.lane.b32.xlu1 %v7689_v59, %s8706_s7  ;;  %v7653_v59 = vunpack.i.h.bf16 %v7651_v53  ;;  %v2415_v4 = vmax.f32 %v1844_v47, 0.0 }
 0x15b   : > { %7440 = vmatmul.msk.f32.gmra.mxu3 %vm519_vm1, %v427_v54  ;;  %7695 = vrot.lane.b32.xlu0 %v7694_v58, %s8705_s6  ;;  %v1853_v54 = vadd.f32 %v9467_v62, %v9432_v40  ;;  %v429_v58 = vld [vmem:[%s8757_s27 + $0x660] sm:$0xff] }
 0x15c   : > { %v5476_v6 = vsel %vm5474_vm5, %v5403_v32, %v7653_v59  ;;  %v1952_v32 = vadd.f32 %v9467_v62, %v9434_v41 }
 0x15d   : > { %v9503_v10 = vpop.f32.mrf.mxu3  ;;  %v2418_v5 = vmax.f32 %v1853_v54, 0.0  ;;  %6038 = vmatmul.f32.gmra.mxu1 %v5476_v6 }
 0x15e   : > { %v1864_v26 = vpop.f32.mrf.mxu2 }
 0x15f   : > { %v1865_v11 = vadd.f32 %v9467_v62, %v1864_v26  ;;  %v9507_v12 = vpop.f32.mrf.mxu0 }
 0x161   : > { %v2422_v7 = vmax.f32 %v1865_v11, 0.0  ;;  %v2595_v11 = vmax.f32 %v2415_v4, %v2418_v5 }
 0x162   : > { %7280 = vmatmul.msk.f32.gmra.mxu0 %vm519_vm1, %v267_v13 }
 0x163   : > { %v2665_v0 = vmax.f32 %v2419_v57, %v2422_v7  ;;  %7441 = vmatmul.msk.f32.gmra.mxu3 %vm519_vm1, %v428_v15  ;;  %v1964_v15 = vadd.f32 %v9467_v62, %v9503_v10 }
 0x165   : > { %v2737_v37 = vmax.f32 %v2593_v51, %v2665_v0  ;;  %v1966_v19 = vpop.f32.mrf.mxu3  ;;  %v1946_v51 = vadd.f32 %v9467_v62, %v9396_v18  ;;  %v2455_v18 = vmax.f32 %v1964_v15, 0.0 }
 0x166   : > { %v1867_v25 = vpop.f32.mrf.mxu2  ;;  %v1967_v61 = vadd.f32 %v9467_v62, %v1966_v19  ;;  %v432_v19 = vld [vmem:[%s8757_s27 + $0x678] sm:$0xff] }
 0x167   : > { %2916 = vst.msk [vmem:[#allocation2 + $0x1a1] sm:$0xff] %vm2773_vm2, %v2737_v37  ;;  %v1868_v46 = vadd.f32 %v9467_v62, %v1867_v25  ;;  %v9525_v8 = vpop.f32.mrf.mxu0  ;;  %v2449_v33 = vmax.f32 %v1946_v51, 0.0 }
 0x168   : > { %v2456_v59 = vmax.f32 %v1967_v61, 0.0 }
 0x169   : > { %v2423_v24 = vmax.f32 %v1868_v46, 0.0  ;;  %v2602_v10 = vmax.f32 %v2449_v33, %v2452_v48  ;;  %v2453_v46 = vmax.f32 %v1958_v17, 0.0  ;;  %v273_v17 = vld [vmem:[%s8757_s27 + $0x180] sm:$0xff] }
 0x16a   : > { %7281 = vmatmul.msk.f32.gmra.mxu0 %vm519_vm1, %v268_v30 }
 0x16b   : > { %v2666_v14 = vmax.f32 %v2420_v44, %v2423_v24  ;;  %7442 = vmatmul.msk.f32.gmra.mxu3 %vm519_vm1, %v429_v58  ;;  %v271_v58 = vld [vmem:[%s8757_s27 + $0x170] sm:$0xff]  ;;  %v2603_v63 = vmax.f32 %v2450_v27, %v2453_v46  ;;  %v1487_v46 = vadd.f32 %v9467_v62, %v9525_v8 }
 0x16d   : > { %v2738_v40 = vmax.f32 %v2594_v43, %v2666_v14  ;;  %v1969_v57 = vpop.f32.mrf.mxu3  ;;  %v1961_v14 = vadd.f32 %v9467_v62, %v9488_v35 }
 0x16e   : > { %v1870_v39 = vpop.f32.mrf.mxu2  ;;  %v1970_v5 = vadd.f32 %v9467_v62, %v1969_v57 }
 0x16f   : > { %2917 = vst.msk [vmem:[#allocation2 + $0x1a9] sm:$0xff] %vm2773_vm2, %v2738_v40  ;;  %v1871_v26 = vadd.f32 %v9467_v62, %v1870_v39  ;;  %v9539_v38 = vpop.f32.mrf.mxu0  ;;  %v1889_v40 = vadd.f32 %v9467_v62, %v8863_v55  ;;  %v2451_v39 = vmax.f32 %v1952_v32, 0.0 }
 0x171   : > { %v2424_v13 = vmax.f32 %v1871_v26, 0.0  ;;  %v2430_v51 = vmax.f32 %v1889_v40, 0.0 }
 0x172   : > { %7282 = vmatmul.msk.f32.gmra.mxu0 %vm519_vm1, %v269_v9 }
 0x173   : > { %v2667_v7 = vmax.f32 %v2421_v56, %v2424_v13  ;;  %7443 = vmatmul.msk.f32.gmra.mxu3 %vm519_vm1, %v430_v52  ;;  %v2454_v56 = vmax.f32 %v1961_v14, 0.0  ;;  %v272_v52 = vld [vmem:[%s8757_s27 + $0x178] sm:$0xff] }
 0x175   : > { %v2739_v53 = vmax.f32 %v2595_v11, %v2667_v7  ;;  %v1972_v23 = vpop.f32.mrf.mxu3  ;;  %v2457_v11 = vmax.f32 %v1970_v5, 0.0  ;;  %v433_v7 = vld [vmem:[%s8757_s27 + $0x680] sm:$0xff]  ;;  %v2604_v15 = vmax.f32 %v2451_v39, %v2454_v56  ;;  %v1490_v56 = vadd.f32 %v9467_v62, %v9539_v38 }
 0x176   : > { %v1873_v16 = vpop.f32.mrf.mxu2  ;;  %v1973_v0 = vadd.f32 %v9467_v62, %v1972_v23  ;;  %v3064_v44 = vld [vmem:[#allocation2 + $0x1a9] sm:$0xff] }
 0x177   : > { %2918 = vst.msk [vmem:[#allocation2 + $0x1b1] sm:$0xff] %vm2773_vm2, %v2739_v53  ;;  %v9553_v29 = vpop.f32.mrf.mxu0  ;;  %v1874_v33 = vadd.f32 %v9467_v62, %v1873_v16  ;;  %v3062_v16 = vld [vmem:[#allocation2 + $0x191] sm:$0xff] }
 0x178   : > { %v2458_v37 = vmax.f32 %v1973_v0, 0.0 }
 0x17a   : > { %7283 = vmatmul.msk.f32.gmra.mxu0 %vm519_vm1, %v270_v3  ;;  %v2674_v25 = vmax.f32 %v2455_v18, %v2458_v37  ;;  %v434_v37 = vld [vmem:[%s8757_s27 + $0x688] sm:$0xff] }
 0x17b   : > { %7444 = vmatmul.msk.f32.gmra.mxu3 %vm519_vm1, %v431_v21  ;;  %v2425_v21 = vmax.f32 %v1874_v33, 0.0  ;;  %v1484_v33 = vadd.f32 %v9467_v62, %v9507_v12 }
 0x17c   : > { %v2746_v47 = vmax.f32 %v2602_v10, %v2674_v25  ;;  %v3063_v25 = vld [vmem:[#allocation2 + $0x1a1] sm:$0xff] }
 0x17d   : > { %v1975_v43 = vpop.f32.mrf.mxu3 }
 0x17e   : > { %v1876_v30 = vpop.f32.mrf.mxu2  ;;  %v3065_v22 = vld [vmem:[#allocation2 + $0x1b1] sm:$0xff]  ;;  %2925 = vst.msk [vmem:[#allocation2 + $0x201] sm:$0xff] %vm2773_vm2, %v2746_v47  ;;  %v1976_v50 = vadd.f32 %v9467_v62, %v1975_v43  ;;  %v3069_v43 = vld [vmem:[#allocation2 + $0x1e1] sm:$0xff] }
 0x17f   : > { %v7704_v54 = vpack.i.bf16 %v3065_v22, %v3064_v44  ;;  %v1495_v24 = vpop.f32.mrf.mxu0  ;;  %v1877_v44 = vadd.f32 %v9467_v62, %v1876_v30 }
 0x180   : > { %v2459_v4 = vmax.f32 %v1976_v50, 0.0 }
 0x181   : > { %7705 = vrot.lane.b32.xlu2 %v7704_v54, %s8704_s30  ;;  %v1478_v54 = vadd.f32 %v9467_v62, %v9478_v28 }
 0x182   : > { %7284 = vmatmul.msk.f32.gmra.mxu0 %vm519_vm1, %v271_v58  ;;  %v2675_v6 = vmax.f32 %v2456_v59, %v2459_v4  ;;  %v1496_v59 = vadd.f32 %v9467_v62, %v1495_v24  ;;  %v435_v4 = vld [vmem:[%s8757_s27 + $0x690] sm:$0xff] }
 0x183   : > { %7445 = vmatmul.msk.f32.gmra.mxu3 %vm519_vm1, %v432_v19  ;;  %v2426_v19 = vmax.f32 %v1877_v44, 0.0  ;;  %v2293_v5 = vmax.f32 %v1478_v54, 0.0 }
 0x184   : > { %v2747_v41 = vmax.f32 %v2603_v63, %v2675_v6  ;;  %v274_v63 = vld [vmem:[%s8757_s27 + $0x188] sm:$0xff]  ;;  %v2299_v24 = vmax.f32 %v1496_v59, 0.0  ;;  %v277_v59 = vld [vmem:[%s8757_s27 + $0x1a0] sm:$0xff] }
 0x185   : > { %v1978_v35 = vpop.f32.mrf.mxu3 }
 0x186   : > { %v1879_v26 = vpop.f32.mrf.mxu2  ;;  %2926 = vst.msk [vmem:[#allocation2 + $0x209] sm:$0xff] %vm2773_vm2, %v2747_v41  ;;  %v1979_v13 = vadd.f32 %v9467_v62, %v1978_v35 }
 0x187   : > { %v1880_v9 = vadd.f32 %v9467_v62, %v1879_v26  ;;  %v1498_v57 = vpop.f32.mrf.mxu0 }
 0x188   : > { %v2460_v55 = vmax.f32 %v1979_v13, 0.0  ;;  %v1499_v35 = vadd.f32 %v9467_v62, %v1498_v57  ;;  %v1493_v57 = vadd.f32 %v9467_v62, %v9553_v29 }
 0x189   : > { %v2427_v34 = vmax.f32 %v1880_v9, 0.0  ;;  %v1481_v9 = vadd.f32 %v9467_v62, %v9491_v45 }
 0x18a   : > { %7285 = vmatmul.msk.f32.gmra.mxu0 %vm519_vm1, %v272_v52  ;;  %v2676_v48 = vmax.f32 %v2457_v11, %v2460_v55 }
 0x18b   : > { %v2598_v53 = vmax.f32 %v2427_v34, %v2430_v51  ;;  %7446 = vmatmul.msk.f32.gmra.mxu3 %vm519_vm1, %v433_v7  ;;  %v275_v51 = vld [vmem:[%s8757_s27 + $0x190] sm:$0xff]  ;;  %v2297_v34 = vmax.f32 %v1490_v56, 0.0  ;;  %v436_v7 = vld [vmem:[%s8757_s27 + $0x698] sm:$0xff]  ;;  %v278_v56 = vld [vmem:[%s8757_s27 + $0x1a8] sm:$0xff] }
 0x18c   : > { %v2748_v18 = vmax.f32 %v2604_v15, %v2676_v48  ;;  %v2294_v15 = vmax.f32 %v1481_v9, 0.0  ;;  %v439_v9 = vld [vmem:[%s8757_s27 + $0x6b0] sm:$0xff] }
 0x18d   : > { %v2742_v23 = vmax.f32 %v2598_v53, %v9012_v1  ;;  %v9588_v3 = vpop.f32.mrf.mxu3  ;;  %v7699_v1 = vpack.i.bf16 %v3063_v25, %v3062_v16  ;;  %v3032_v16 = vld [vmem:[#allocation2 + $0x51] sm:$0xff]  ;;  %v2298_v25 = vmax.f32 %v1493_v57, 0.0 }
 0x18e   : > { %v1882_v0 = vpop.f32.mrf.mxu2  ;;  %2927 = vst.msk [vmem:[#allocation2 + $0x211] sm:$0xff] %vm2773_vm2, %v2748_v18  ;;  %v2564_v45 = vmax.f32 %v2294_v15, %v2297_v34 }
 0x18f   : > { %2921 = vst.msk [vmem:[#allocation2 + $0x1d1] sm:$0xff] %vm2773_vm2, %v2742_v23  ;;  %v1883_v31 = vadd.f32 %v9467_v62, %v1882_v0  ;;  %v1501_v10 = vpop.f32.mrf.mxu0  ;;  %7700 = vrot.lane.b32.xlu1 %v7699_v1, %s8704_s30  ;;  %v437_v1 = vld [vmem:[%s8757_s27 + $0x6a0] sm:$0xff] }
 0x190   : > { %v1502_v48 = vadd.f32 %v9467_v62, %v1501_v10  ;;  %v2295_v10 = vmax.f32 %v1484_v33, 0.0  ;;  %v279_v33 = vld [vmem:[%s8757_s27 + $0x1b0] sm:$0xff] }
 0x191   : > { %v2428_v61 = vmax.f32 %v1883_v31, 0.0 }
 0x192   : > { %7286 = vmatmul.msk.f32.gmra.mxu0 %vm519_vm1, %v273_v17  ;;  %v2301_v44 = vmax.f32 %v1502_v48, 0.0  ;;  %v440_v48 = vld [vmem:[%s8757_s27 + $0x6b8] sm:$0xff] }
 0x193   : > { %v2596_v27 = vmax.f32 %v2425_v21, %v2428_v61  ;;  %7447 = vmatmul.msk.f32.gmra.mxu3 %vm519_vm1, %v434_v37  ;;  %v276_v37 = vld [vmem:[%s8757_s27 + $0x198] sm:$0xff] }
 0x195   : > { %v2740_v47 = vmax.f32 %v2596_v27, %v8948_v36  ;;  %v9604_v50 = vpop.f32.mrf.mxu3  ;;  %v2296_v36 = vmax.f32 %v1487_v46, 0.0  ;;  %v2565_v46 = vmax.f32 %v2295_v10, %v2298_v25 }
 0x196   : > { %v3068_v22 = vld [vmem:[#allocation2 + $0x1d1] sm:$0xff]  ;;  %v1885_v30 = vpop.f32.mrf.mxu2 }
 0x197   : > { %v7709_v58 = vpack.i.bf16 %v3069_v43, %v3068_v22  ;;  %2919 = vst.msk [vmem:[#allocation2 + $0x1c1] sm:$0xff] %vm2773_vm2, %v2740_v47  ;;  %v1886_v8 = vadd.f32 %v9467_v62, %v1885_v30  ;;  %v1504_v32 = vpop.f32.mrf.mxu0  ;;  %v2563_v39 = vmax.f32 %v2293_v5, %v2296_v36  ;;  %v7646_v22 = vpop.permute.xlu0 %7645  ;;  %v3104_v30 = vld [vmem:[#allocation2 + $0x52] sm:$0xff] }
 0x198   : > { %v1505_v14 = vadd.f32 %v9467_v62, %v1504_v32  ;;  %v9661_v5 = vpop.permute.xlu1 %7660 }
 0x199   : > { %7710 = vrot.lane.b32.xlu2 %v7709_v58, %s8704_s30  ;;  %v2429_v28 = vmax.f32 %v1886_v8, 0.0 }
 0x19a   : > { %v2302_v6 = vmax.f32 %v1505_v14, 0.0  ;;  %7287 = vmatmul.msk.f32.gmra.mxu0 %vm519_vm1, %v274_v63  ;;  %v438_v63 = vld [vmem:[%s8757_s27 + $0x6a8] sm:$0xff] }
 0x19b   : > { %v2597_v40 = vmax.f32 %v2426_v19, %v2429_v28  ;;  %7448 = vmatmul.msk.f32.gmra.mxu3 %vm519_vm1, %v435_v4  ;;  %v3072_v4 = vld [vmem:[#allocation2 + $0x201] sm:$0xff]  ;;  %v3073_v28 = vld [vmem:[#allocation2 + $0x209] sm:$0xff] }
 0x19c   : > { %v2635_v41 = vmax.f32 %v2299_v24, %v2302_v6  ;;  %v7729_v6 = vpack.i.bf16 %v3073_v28, %v3072_v4  ;;  %v281_v4 = vld [vmem:[%s8757_s27 + $0x1c0] sm:$0xff]  ;;  %v442_v28 = vld [vmem:[%s8757_s27 + $0x6c8] sm:$0xff] }
 0x19d   : > { %v2741_v26 = vmax.f32 %v2597_v40, %v8981_v49  ;;  %v9620_v13 = vpop.f32.mrf.mxu3  ;;  %v2300_v49 = vmax.f32 %v1499_v35, 0.0 }
 0x19e   : > { %v2707_v11 = vmax.f32 %v2563_v39, %v2635_v41  ;;  %v3066_v0 = vld [vmem:[#allocation2 + $0x1c1] sm:$0xff] }
 0x19f   : > { %2920 = vst.msk [vmem:[#allocation2 + $0x1c9] sm:$0xff] %vm2773_vm2, %v2741_v26  ;;  %v1507_v52 = vpop.f32.mrf.mxu0  ;;  %v7656_v40 = vpop.permute.xlu0 %7655 }
 0x1a0   : > { %2886 = vst.msk [vmem:[#allocation2 + $0x61] sm:$0xff] %vm2773_vm2, %v2707_v11  ;;  %v1508_v38 = vadd.f32 %v9467_v62, %v1507_v52  ;;  %v7647_v11 = vunpack.i.l.bf16 %v7646_v22  ;;  %v7657_v52 = vunpack.i.l.bf16 %v7656_v40 }
 0x1a2   : > { %v2303_v55 = vmax.f32 %v1508_v38, 0.0  ;;  %7288 = vmatmul.msk.f32.gmra.mxu0 %vm519_vm1, %v275_v51  ;;  %v2954_v51 = vld [vmem:[#allocation2 + $0x10] sm:$0xff] }
 0x1a3   : > { %7449 = vmatmul.msk.f32.gmra.mxu3 %vm519_vm1, %v436_v7  ;;  %v5331_v7 = vsel %vm2773_vm2, %v2954_v51, %v7647_v11 }
 0x1a4   : > { %v2636_v53 = vmax.f32 %v2300_v49, %v2303_v55  ;;  %v5404_v49 = vsel %vm5401_vm4, %v5331_v7, %v7657_v52  ;;  %v443_v7 = vld [vmem:[%s8757_s27 + $0x6d0] sm:$0xff] }
 0x1a5   : > { %v9634_v18 = vpop.f32.mrf.mxu3 }
 0x1a6   : > { %v2708_v23 = vmax.f32 %v2564_v45, %v2636_v53  ;;  %v3067_v21 = vld [vmem:[#allocation2 + $0x1c9] sm:$0xff] }
 0x1a7   : > { %v1510_v31 = vpop.f32.mrf.mxu0  ;;  %v7714_v17 = vpack.i.bf16 %v3067_v21, %v3066_v0  ;;  %v3033_v61 = vld [vmem:[#allocation2 + $0x61] sm:$0xff]  ;;  %v7658_v21 = vunpack.i.h.bf16 %v7656_v40  ;;  %v1991_v40 = vadd.f32 %v9467_v62, %v9634_v18 }
 0x1a8   : > { %2887 = vst.msk [vmem:[#allocation2 + $0x69] sm:$0xff] %vm2773_vm2, %v2708_v23  ;;  %v1511_v29 = vadd.f32 %v9467_v62, %v1510_v31  ;;  %v7719_v12 = vpack.i.bf16 %v3033_v61, %v3032_v16  ;;  %v9649_v19 = vld [vmem:[#allocation2 + $0x60] sm:$0xff]  ;;  %v7648_v23 = vunpack.i.h.bf16 %v7646_v22 }
 0x1a9   : > { %7715 = vrot.lane.b32.xlu0 %v7714_v17, %s8704_s30 }
 0x1aa   : > { %v2304_v27 = vmax.f32 %v1511_v29, 0.0  ;;  %7289 = vmatmul.msk.f32.gmra.mxu0 %vm519_vm1, %v276_v37  ;;  %7720 = vrot.lane.b32.xlu2 %v7719_v12, %s8704_s30  ;;  %v2955_v37 = vld [vmem:[#allocation2 + $0x20] sm:$0xff]  ;;  %v7662_v29 = vunpack.i.l.bf16 %v9661_v5 }
 0x1ab   : > { %7450 = vmatmul.msk.f32.gmra.mxu3 %vm519_vm1, %v437_v1  ;;  %v5332_v16 = vsel %vm2773_vm2, %v2955_v37, %v7648_v23  ;;  %v7666_v1 = vpop.permute.xlu0 %7665  ;;  %v283_v37 = vld [vmem:[%s8757_s27 + $0x1d0] sm:$0xff] }
 0x1ac   : > { %v2637_v47 = vmax.f32 %v2301_v44, %v2304_v27  ;;  %v5405_v25 = vsel %vm5401_vm4, %v5332_v16, %v7658_v21  ;;  %v280_v44 = vld [vmem:[%s8757_s27 + $0x1b8] sm:$0xff]  ;;  %v441_v27 = vld [vmem:[%s8757_s27 + $0x6c0] sm:$0xff]  ;;  %v1988_v16 = vadd.f32 %v9467_v62, %v9620_v13 }
 0x1ad   : > { %v9644_v54 = vpop.f32.mrf.mxu3 }
 0x1ae   : > { %v2709_v43 = vmax.f32 %v2565_v46, %v2637_v47  ;;  %v7667_v46 = vunpack.i.l.bf16 %v7666_v1  ;;  %v2956_v47 = vld [vmem:[#allocation2 + $0x28] sm:$0xff] }
 0x1af   : > { %v9647_v58 = vpop.f32.mrf.mxu0  ;;  %v9651_v8 = vld [vmem:[#allocation2 + $0x68] sm:$0xff]  ;;  %v5333_v22 = vsel %vm2773_vm2, %v2956_v47, %v7662_v29 }
 0x1b0   : > { %v3105_v32 = vld [vmem:[#allocation2 + $0x62] sm:$0xff]  ;;  %2888 = vst.msk [vmem:[#allocation2 + $0x71] sm:$0xff] %vm2773_vm2, %v2709_v43  ;;  %v7724_v36 = vpack.i.bf16 %v9651_v8, %v9649_v19 }
 0x1b1   : > { %v7734_v14 = vpack.i.bf16 %v3105_v32, %v3104_v30  ;;  %v3034_v41 = vld [vmem:[#allocation2 + $0x69] sm:$0xff]  ;;  %v5406_v32 = vsel %vm5401_vm4, %v5333_v22, %v7667_v46 }
 0x1b2   : > { %7290 = vmatmul.msk.f32.gmra.mxu0 %vm519_vm1, %v277_v59  ;;  %7725 = vrot.lane.b32.xlu1 %v7724_v36, %s8706_s7 }
 0x1b3   : > { %7451 = vmatmul.msk.f32.gmra.mxu3 %vm519_vm1, %v438_v63  ;;  %7735 = vrot.lane.b32.xlu2 %v7734_v14, %s8705_s6  ;;  %v7663_v63 = vunpack.i.h.bf16 %v9661_v5 }
 0x1b5   : > { %v9663_v24 = vpop.f32.mrf.mxu3 }
 0x1b7   : > { %v9665_v39 = vpop.f32.mrf.mxu0  ;;  %v3035_v26 = vld [vmem:[#allocation2 + $0x71] sm:$0xff] }
 0x1b8   : > { %v7739_v35 = vpack.i.bf16 %v3035_v26, %v3034_v41  ;;  %v3106_v55 = vld [vmem:[#allocation2 + $0x6a] sm:$0xff]  ;;  %v3107_v45 = vld [vmem:[#allocation2 + $0x72] sm:$0xff]  ;;  %v5334_v26 = vsel %vm2773_vm2, %v9461_v42, %v7663_v63 }
 0x1b9   : > { %v7744_v0 = vpack.i.bf16 %v3107_v45, %v3106_v55  ;;  %v284_v63 = vld [vmem:[%s8757_s27 + $0x1d8] sm:$0xff] }
 0x1ba   : > { %7291 = vmatmul.msk.f32.gmra.mxu0 %vm519_vm1, %v278_v56  ;;  %7730 = vrot.lane.b32.xlu1 %v7729_v6, %s8704_s30  ;;  %v1982_v6 = vadd.f32 %v9467_v62, %v9588_v3  ;;  %v7668_v56 = vunpack.i.h.bf16 %v7666_v1 }
 0x1bb   : > { %7452 = vmatmul.msk.f32.gmra.mxu3 %vm519_vm1, %v439_v9  ;;  %7740 = vrot.lane.b32.xlu2 %v7739_v35, %s8704_s30  ;;  %v2464_v35 = vmax.f32 %v1991_v40, 0.0 }
 0x1bc   : > { %v7681_v34 = vpop.permute.xlu1 %7680  ;;  %v2461_v9 = vmax.f32 %v1982_v6, 0.0  ;;  %v5407_v3 = vsel %vm5401_vm4, %v5334_v26, %v7668_v56 }
 0x1bd   : > { %v7682_v38 = vunpack.i.l.bf16 %v7681_v34  ;;  %v1999_v15 = vpop.f32.mrf.mxu3  ;;  %v7683_v31 = vunpack.i.h.bf16 %v7681_v34 }
 0x1be   : > { %v2000_v5 = vadd.f32 %v9467_v62, %v1999_v15  ;;  %v1985_v15 = vadd.f32 %v9467_v62, %v9604_v50  ;;  %v2605_v42 = vmax.f32 %v2461_v9, %v2464_v35  ;;  %v1514_v9 = vadd.f32 %v9467_v62, %v9647_v58 }
 0x1bf   : > { %v9675_v57 = vpop.f32.mrf.mxu0  ;;  %v5477_v53 = vsel %vm5474_vm5, %v5404_v49, %v7682_v38  ;;  %v5478_v10 = vsel %vm5474_vm5, %v5405_v25, %v7683_v31  ;;  %v282_v38 = vld [vmem:[%s8757_s27 + $0x1c8] sm:$0xff]  ;;  %v1994_v49 = vadd.f32 %v9467_v62, %v9644_v54  ;;  %v444_v54 = vld [vmem:[%s8757_s27 + $0x6d8] sm:$0xff] }
 0x1c0   : > { %6041 = vmatmul.f32.gmra.mxu1 %v5477_v53  ;;  %v2467_v52 = vmax.f32 %v2000_v5, 0.0  ;;  %v285_v5 = vld [vmem:[%s8757_s27 + $0x1e0] sm:$0xff] }
 0x1c2   : > { %7292 = vmatmul.msk.f32.gmra.mxu0 %vm519_vm1, %v279_v33  ;;  %v2462_v33 = vmax.f32 %v1985_v15, 0.0 }
 0x1c3   : > { %7453 = vmatmul.msk.f32.gmra.mxu3 %vm519_vm1, %v440_v48  ;;  %7745 = vrot.lane.b32.xlu2 %v7744_v0, %s8705_s6  ;;  %v2465_v48 = vmax.f32 %v1994_v49, 0.0 }
 0x1c4   : > { %v9683_v17 = vpop.permute.xlu1 %7685 }
 0x1c5   : > { %v2002_v61 = vpop.f32.mrf.mxu3  ;;  %v2606_v25 = vmax.f32 %v2462_v33, %v2465_v48 }
 0x1c6   : > { %v2003_v45 = vadd.f32 %v9467_v62, %v2002_v61  ;;  %v1997_v61 = vadd.f32 %v9467_v62, %v9663_v24 }
 0x1c7   : > { %v9688_v12 = vpop.f32.mrf.mxu0 }
 0x1c8   : > { %6044 = vmatmul.f32.gmra.mxu1 %v5478_v10  ;;  %v2468_v21 = vmax.f32 %v2003_v45, 0.0  ;;  %v2466_v46 = vmax.f32 %v1997_v61, 0.0  ;;  %v1523_v26 = vadd.f32 %v9467_v62, %v9688_v12 }
 0x1ca   : > { %7293 = vmatmul.msk.f32.gmra.mxu0 %vm519_vm1, %v280_v44  ;;  %v3074_v44 = vld [vmem:[#allocation2 + $0x211] sm:$0xff] }
 0x1cb   : > { %7454 = vmatmul.msk.f32.gmra.mxu3 %vm519_vm1, %v441_v27  ;;  %v2463_v27 = vmax.f32 %v1988_v16, 0.0 }
 0x1cc   : > { %v7691_v43 = vpop.permute.xlu1 %7690 }
 0x1cd   : > { %v7692_v59 = vunpack.i.l.bf16 %v7691_v43  ;;  %v7693_v41 = vunpack.i.h.bf16 %v7691_v43 }
 0x1ce   : > { %v2005_v30 = vpop.f32.mrf.mxu3 }
 0x1cf   : > { %v9698_v36 = vpop.f32.mrf.mxu0  ;;  %v5479_v14 = vsel %vm5474_vm5, %v5406_v32, %v7692_v59  ;;  %v5480_v34 = vsel %vm5474_vm5, %v5407_v3, %v7693_v41  ;;  %v2006_v1 = vadd.f32 %v9467_v62, %v2005_v30  ;;  %v445_v30 = vld [vmem:[%s8757_s27 + $0x6e0] sm:$0xff]  ;;  %v446_v41 = vld [vmem:[%s8757_s27 + $0x6e8] sm:$0xff] }
 0x1d0   : > { %6047 = vmatmul.f32.gmra.mxu1 %v5479_v14  ;;  %v2607_v14 = vmax.f32 %v2463_v27, %v2466_v46  ;;  %v1526_v12 = vadd.f32 %v9467_v62, %v9698_v36  ;;  %v9784_v27 = vld [vmem:[#allocation2 + $0x70] sm:$0xff] }
 0x1d1   : > { %v2469_v43 = vmax.f32 %v2006_v1, 0.0 }
 0x1d2   : > { %7294 = vmatmul.msk.f32.gmra.mxu0 %vm519_vm1, %v281_v4 }
 0x1d3   : > { %7455 = vmatmul.msk.f32.gmra.mxu3 %vm519_vm1, %v442_v28 }
 0x1d6   : > { %v2008_v11 = vpop.f32.mrf.mxu3 }
 0x1d7   : > { %v2009_v18 = vadd.f32 %v9467_v62, %v2008_v11  ;;  %v9714_v51 = vpop.f32.mrf.mxu0 }
 0x1d8   : > { %6050 = vmatmul.f32.gmra.mxu1 %v5480_v34 }
 0x1d9   : > { %v2470_v55 = vmax.f32 %v2009_v18, 0.0  ;;  %v2308_v18 = vmax.f32 %v1523_v26, 0.0  ;;  %v290_v26 = vld [vmem:[%s8757_s27 + $0x208] sm:$0xff] }
 0x1da   : > { %7295 = vmatmul.msk.f32.gmra.mxu0 %vm519_vm1, %v282_v38  ;;  %v447_v38 = vld [vmem:[%s8757_s27 + $0x6f0] sm:$0xff] }
 0x1db   : > { %v2677_v53 = vmax.f32 %v2467_v52, %v2470_v55  ;;  %7456 = vmatmul.msk.f32.gmra.mxu3 %vm519_vm1, %v443_v7  ;;  %v286_v52 = vld [vmem:[%s8757_s27 + $0x1e8] sm:$0xff]  ;;  %v2305_v7 = vmax.f32 %v1514_v9, 0.0  ;;  %v1517_v55 = vadd.f32 %v9467_v62, %v9665_v39 }
 0x1dd   : > { %v2749_v23 = vmax.f32 %v2605_v42, %v2677_v53  ;;  %v2566_v58 = vmax.f32 %v2305_v7, %v2308_v18 }
 0x1de   : > { %v2011_v0 = vpop.f32.mrf.mxu3 }
 0x1df   : > { %2928 = vst.msk [vmem:[#allocation2 + $0x221] sm:$0xff] %vm2773_vm2, %v2749_v23  ;;  %v2012_v50 = vadd.f32 %v9467_v62, %v2011_v0  ;;  %v1531_v31 = vpop.f32.mrf.mxu0  ;;  %v287_v23 = vld [vmem:[%s8757_s27 + $0x1f0] sm:$0xff]  ;;  %v2309_v0 = vmax.f32 %v1526_v12, 0.0 }
 0x1e0   : > { %v1532_v35 = vadd.f32 %v9467_v62, %v1531_v31  ;;  %v2306_v31 = vmax.f32 %v1517_v55, 0.0  ;;  %v452_v55 = vld [vmem:[%s8757_s27 + $0x718] sm:$0xff] }
 0x1e1   : > { %v2471_v29 = vmax.f32 %v2012_v50, 0.0  ;;  %v448_v50 = vld [vmem:[%s8757_s27 + $0x6f8] sm:$0xff] }
 0x1e2   : > { %7296 = vmatmul.msk.f32.gmra.mxu0 %vm519_vm1, %v283_v37  ;;  %v2311_v15 = vmax.f32 %v1532_v35, 0.0  ;;  %v2567_v39 = vmax.f32 %v2306_v31, %v2309_v0 }
 0x1e3   : > { %v2678_v10 = vmax.f32 %v2468_v21, %v2471_v29  ;;  %7457 = vmatmul.msk.f32.gmra.mxu3 %vm519_vm1, %v444_v54  ;;  %v1529_v54 = vadd.f32 %v9467_v62, %v9714_v51 }
 0x1e5   : > { %v2750_v47 = vmax.f32 %v2606_v25, %v2678_v10  ;;  %v1520_v25 = vadd.f32 %v9467_v62, %v9675_v57 }
 0x1e6   : > { %v2014_v22 = vpop.f32.mrf.mxu3  ;;  %v3075_v13 = vld [vmem:[#allocation2 + $0x221] sm:$0xff] }
 0x1e7   : > { %2929 = vst.msk [vmem:[#allocation2 + $0x229] sm:$0xff] %vm2773_vm2, %v2750_v47  ;;  %v2015_v24 = vadd.f32 %v9467_v62, %v2014_v22  ;;  %v1534_v59 = vpop.f32.mrf.mxu0  ;;  %v7764_v32 = vpack.i.bf16 %v3075_v13, %v3074_v44  ;;  %v288_v44 = vld [vmem:[%s8757_s27 + $0x1f8] sm:$0xff]  ;;  %v2310_v47 = vmax.f32 %v1529_v54, 0.0  ;;  %v449_v22 = vld [vmem:[%s8757_s27 + $0x700] sm:$0xff]  ;;  %v2307_v13 = vmax.f32 %v1520_v25, 0.0 }
 0x1e8   : > { %v1535_v45 = vadd.f32 %v9467_v62, %v1534_v59  ;;  %v453_v54 = vld [vmem:[%s8757_s27 + $0x720] sm:$0xff] }
 0x1e9   : > { %v2472_v4 = vmax.f32 %v2015_v24, 0.0  ;;  %7765 = vrot.lane.b32.xlu1 %v7764_v32, %s8704_s30  ;;  %v2568_v59 = vmax.f32 %v2307_v13, %v2310_v47  ;;  %v9850_v13 = vld [vmem:[%s12150_s2] ss:$0 sm:$0xff] }
 0x1ea   : > { %7297 = vmatmul.msk.f32.gmra.mxu0 %vm519_vm1, %v284_v63  ;;  %v2312_v36 = vmax.f32 %v1535_v45, 0.0  ;;  %v7687_v45 = vunpack.i.l.bf16 %v9683_v17 }
 0x1eb   : > { %v2679_v28 = vmax.f32 %v2469_v43, %v2472_v4  ;;  %7458 = vmatmul.msk.f32.gmra.mxu3 %vm519_vm1, %v445_v30 }
 0x1ed   : > { %v2751_v6 = vmax.f32 %v2607_v14, %v2679_v28  ;;  %v289_v14 = vld [vmem:[%s8757_s27 + $0x200] sm:$0xff] }
 0x1ee   : > { %v9744_v40 = vpop.f32.mrf.mxu3 }
 0x1ef   : > { %2930 = vst.msk [vmem:[#allocation2 + $0x231] sm:$0xff] %vm2773_vm2, %v2751_v6  ;;  %v1537_v56 = vpop.f32.mrf.mxu0  ;;  %v450_v6 = vld [vmem:[%s8757_s27 + $0x708] sm:$0xff] }
 0x1f0   : > { %v1538_v61 = vadd.f32 %v9467_v62, %v1537_v56 }
 0x1f2   : > { %7298 = vmatmul.msk.f32.gmra.mxu0 %vm519_vm1, %v285_v5  ;;  %v2313_v43 = vmax.f32 %v1538_v61, 0.0  ;;  %v9806_v5 = vpop.permute.xlu0 %7670 }
 0x1f3   : > { %7459 = vmatmul.msk.f32.gmra.mxu3 %vm519_vm1, %v446_v41 }
 0x1f6   : > { %v9756_v11 = vpop.f32.mrf.mxu3 }
 0x1f7   : > { %v1540_v3 = vpop.f32.mrf.mxu0 }
 0x1f8   : > { %v1541_v34 = vadd.f32 %v9467_v62, %v1540_v3 }
 0x1fa   : > { %v2314_v42 = vmax.f32 %v1541_v34, 0.0  ;;  %7299 = vmatmul.msk.f32.gmra.mxu0 %vm519_vm1, %v286_v52  ;;  %v451_v34 = vld [vmem:[%s8757_s27 + $0x710] sm:$0xff] }
 0x1fb   : > { %7460 = vmatmul.msk.f32.gmra.mxu3 %vm519_vm1, %v447_v38 }
 0x1fc   : > { %v2638_v49 = vmax.f32 %v2311_v15, %v2314_v42 }
 0x1fe   : > { %v2710_v53 = vmax.f32 %v2566_v58, %v2638_v49  ;;  %v9768_v33 = vpop.f32.mrf.mxu3  ;;  %v7696_v58 = vpop.permute.xlu0 %7695  ;;  %v291_v49 = vld [vmem:[%s8757_s27 + $0x210] sm:$0xff] }
 0x1ff   : > { %v1543_v48 = vpop.f32.mrf.mxu0  ;;  %v7698_v25 = vunpack.i.h.bf16 %v7696_v58 }
 0x200   : > { %2889 = vst.msk [vmem:[#allocation2 + $0x81] sm:$0xff] %vm2773_vm2, %v2710_v53  ;;  %v1544_v21 = vadd.f32 %v9467_v62, %v1543_v48  ;;  %v7697_v53 = vunpack.i.l.bf16 %v7696_v58 }
 0x201   : > { %v9819_v15 = vpop.permute.xlu1 %7700 }
 0x202   : > { %v2315_v37 = vmax.f32 %v1544_v21, 0.0  ;;  %7300 = vmatmul.msk.f32.gmra.mxu0 %vm519_vm1, %v287_v23  ;;  %v2958_v23 = vld [vmem:[#allocation2 + $0x40] sm:$0xff] }
 0x203   : > { %7461 = vmatmul.msk.f32.gmra.mxu3 %vm519_vm1, %v448_v50  ;;  %v5335_v21 = vsel %vm2773_vm2, %v2958_v23, %v7687_v45  ;;  %v295_v45 = vld [vmem:[%s8757_s27 + $0x230] sm:$0xff] }
 0x204   : > { %v2639_v16 = vmax.f32 %v2312_v36, %v2315_v37  ;;  %v5408_v31 = vsel %vm5401_vm4, %v5335_v21, %v7697_v53  ;;  %v2024_v53 = vadd.f32 %v9850_v13, %v9768_v33 }
 0x206   : > { %v2711_v29 = vmax.f32 %v2567_v39, %v2639_v16  ;;  %v9781_v1 = vpop.f32.mrf.mxu3  ;;  %v292_v39 = vld [vmem:[%s8757_s27 + $0x218] sm:$0xff]  ;;  %v7688_v16 = vunpack.i.h.bf16 %v9683_v17  ;;  %v454_v17 = vld [vmem:[%s8757_s27 + $0x728] sm:$0xff] }
 0x207   : > { %v1546_v10 = vpop.f32.mrf.mxu0  ;;  %v9786_v46 = vld [vmem:[#allocation2 + $0x80] sm:$0xff] }
 0x208   : > { %2890 = vst.msk [vmem:[#allocation2 + $0x89] sm:$0xff] %vm2773_vm2, %v2711_v29  ;;  %v1547_v51 = vadd.f32 %v9467_v62, %v1546_v10  ;;  %v7749_v57 = vpack.i.bf16 %v9786_v46, %v9784_v27  ;;  %v3036_v4 = vld [vmem:[#allocation2 + $0x81] sm:$0xff] }
 0x209   : > { %v2959_v29 = vld [vmem:[#allocation2 + $0x48] sm:$0xff] }
 0x20a   : > { %v2316_v24 = vmax.f32 %v1547_v51, 0.0  ;;  %7301 = vmatmul.msk.f32.gmra.mxu0 %vm519_vm1, %v288_v44  ;;  %7750 = vrot.lane.b32.xlu0 %v7749_v57, %s8706_s7  ;;  %v5336_v10 = vsel %vm2773_vm2, %v2959_v29, %v7688_v16  ;;  %v293_v57 = vld [vmem:[%s8757_s27 + $0x220] sm:$0xff] }
 0x20b   : > { %7462 = vmatmul.msk.f32.gmra.mxu3 %vm519_vm1, %v449_v22  ;;  %v5409_v47 = vsel %vm5401_vm4, %v5336_v10, %v7698_v25  ;;  %v296_v25 = vld [vmem:[%s8757_s27 + $0x238] sm:$0xff] }
 0x20c   : > { %v2640_v32 = vmax.f32 %v2313_v43, %v2316_v24  ;;  %v2018_v43 = vadd.f32 %v9850_v13, %v9744_v40  ;;  %v2027_v24 = vadd.f32 %v9850_v13, %v9781_v1  ;;  %v2021_v40 = vadd.f32 %v9850_v13, %v9756_v11 }
 0x20e   : > { %v2712_v63 = vmax.f32 %v2568_v59, %v2640_v32  ;;  %v9796_v30 = vpop.f32.mrf.mxu3  ;;  %v2473_v32 = vmax.f32 %v2018_v43, 0.0  ;;  %v9892_v43 = vpop.permute.xlu2 %7675 }
 0x20f   : > { %v9798_v62 = vpop.f32.mrf.mxu0  ;;  %v3037_v28 = vld [vmem:[#allocation2 + $0x89] sm:$0xff] }
 0x210   : > { %2891 = vst.msk [vmem:[#allocation2 + $0x91] sm:$0xff] %vm2773_vm2, %v2712_v63  ;;  %v7754_v56 = vpack.i.bf16 %v3037_v28, %v3036_v4  ;;  %v3108_v9 = vld [vmem:[#allocation2 + $0x82] sm:$0xff]  ;;  %v2476_v63 = vmax.f32 %v2027_v24, 0.0 }
 0x211   : > { %v9813_v52 = vld [vmem:[#allocation2 + $0x88] sm:$0xff] }
 0x212   : > { %7302 = vmatmul.msk.f32.gmra.mxu0 %vm519_vm1, %v289_v14  ;;  %7755 = vrot.lane.b32.xlu0 %v7754_v56, %s8704_s30  ;;  %v294_v56 = vld [vmem:[%s8757_s27 + $0x228] sm:$0xff]  ;;  %v2608_v1 = vmax.f32 %v2473_v32, %v2476_v63  ;;  %v1550_v32 = vadd.f32 %v9850_v13, %v9798_v62 }
 0x213   : > { %7463 = vmatmul.msk.f32.gmra.mxu3 %vm519_vm1, %v450_v6  ;;  %v458_v24 = vld [vmem:[%s8757_s27 + $0x748] sm:$0xff] }
 0x216   : > { %v9808_v41 = vpop.f32.mrf.mxu3 }
 0x217   : > { %v9811_v35 = vpop.f32.mrf.mxu0  ;;  %v3109_v3 = vld [vmem:[#allocation2 + $0x8a] sm:$0xff]  ;;  %v2033_v23 = vadd.f32 %v9850_v13, %v9808_v41 }
 0x218   : > { %v3179_v18 = vld [vmem:[#allocation2 + $0x90] sm:$0xff]  ;;  %v7769_v38 = vpack.i.bf16 %v3109_v3, %v3108_v9  ;;  %v2030_v9 = vadd.f32 %v9850_v13, %v9796_v30  ;;  %v456_v30 = vld [vmem:[%s8757_s27 + $0x738] sm:$0xff] }
 0x219   : > { %v7759_v7 = vpack.i.bf16 %v3179_v18, %v9813_v52 }
 0x21a   : > { %7303 = vmatmul.msk.f32.gmra.mxu0 %vm519_vm1, %v290_v26  ;;  %7770 = vrot.lane.b32.xlu2 %v7769_v38, %s8705_s6  ;;  %v455_v26 = vld [vmem:[%s8757_s27 + $0x730] sm:$0xff]  ;;  %v2474_v38 = vmax.f32 %v2021_v40, 0.0 }
 0x21b   : > { %7464 = vmatmul.msk.f32.gmra.mxu3 %vm519_vm1, %v451_v34  ;;  %7760 = vrot.lane.b32.xlu0 %v7759_v7, %s8706_s7  ;;  %v2477_v7 = vmax.f32 %v2030_v9, 0.0  ;;  %v2317_v9 = vmax.f32 %v1550_v32, 0.0  ;;  %v301_v32 = vld [vmem:[%s8757_s27 + $0x260] sm:$0xff] }
 0x21e   : > { %v2035_v42 = vpop.f32.mrf.mxu3 }
 0x21f   : > { %v9823_v12 = vpop.f32.mrf.mxu0  ;;  %v2036_v59 = vadd.f32 %v9850_v13, %v2035_v42 }
 0x221   : > { %v2479_v4 = vmax.f32 %v2036_v59, 0.0 }
 0x222   : > { %7304 = vmatmul.msk.f32.gmra.mxu0 %vm519_vm1, %v291_v49 }
 0x223   : > { %7465 = vmatmul.msk.f32.gmra.mxu3 %vm519_vm1, %v452_v55 }
 0x224   : > { %v7726_v48 = vpop.permute.xlu1 %7725 }
 0x225   : > { %v7727_v0 = vunpack.i.l.bf16 %v7726_v48  ;;  %v7728_v61 = vunpack.i.h.bf16 %v7726_v48  ;;  %v2609_v48 = vmax.f32 %v2474_v38, %v2477_v7  ;;  %v1553_v38 = vadd.f32 %v9850_v13, %v9811_v35 }
 0x226   : > { %v2038_v50 = vpop.f32.mrf.mxu3 }
 0x227   : > { %v9832_v36 = vpop.f32.mrf.mxu0  ;;  %v5481_v37 = vsel %vm5474_vm5, %v5408_v31, %v7727_v0  ;;  %v5482_v22 = vsel %vm5474_vm5, %v5409_v47, %v7728_v61  ;;  %v2039_v18 = vadd.f32 %v9850_v13, %v2038_v50  ;;  %v2475_v31 = vmax.f32 %v2024_v53, 0.0  ;;  %v457_v61 = vld [vmem:[%s8757_s27 + $0x740] sm:$0xff] }
 0x228   : > { %6053 = vmatmul.f32.gmra.mxu1 %v5481_v37  ;;  %v2478_v37 = vmax.f32 %v2033_v23, 0.0  ;;  %v1559_v59 = vadd.f32 %v9850_v13, %v9832_v36 }
 0x229   : > { %v2480_v49 = vmax.f32 %v2039_v18, 0.0 }
 0x22a   : > { %7305 = vmatmul.msk.f32.gmra.mxu0 %vm519_vm1, %v292_v39  ;;  %v2610_v29 = vmax.f32 %v2475_v31, %v2478_v37 }
 0x22b   : > { %7466 = vmatmul.msk.f32.gmra.mxu3 %vm519_vm1, %v453_v54 }
 0x22e   : > { %v2041_v44 = vpop.f32.mrf.mxu3 }
 0x22f   : > { %v9842_v51 = vpop.f32.mrf.mxu0  ;;  %v2042_v21 = vadd.f32 %v9850_v13, %v2041_v44 }
 0x230   : > { %6056 = vmatmul.f32.gmra.mxu1 %v5482_v22  ;;  %v1562_v18 = vadd.f32 %v9850_v13, %v9842_v51  ;;  %v2318_v51 = vmax.f32 %v1553_v38, 0.0 }
 0x231   : > { %v2481_v33 = vmax.f32 %v2042_v21, 0.0 }
 0x232   : > { %7306 = vmatmul.msk.f32.gmra.mxu0 %vm519_vm1, %v293_v57 }
 0x233   : > { %7467 = vmatmul.msk.f32.gmra.mxu3 %vm519_vm1, %v454_v17  ;;  %v297_v17 = vld [vmem:[%s8757_s27 + $0x240] sm:$0xff] }
 0x236   : > { %v2044_v14 = vpop.f32.mrf.mxu3 }
 0x237   : > { %v2045_v28 = vadd.f32 %v9850_v13, %v2044_v14  ;;  %v9860_v6 = vpop.f32.mrf.mxu0 }
 0x239   : > { %v2482_v3 = vmax.f32 %v2045_v28, 0.0  ;;  %v298_v28 = vld [vmem:[%s8757_s27 + $0x248] sm:$0xff] }
 0x23a   : > { %7307 = vmatmul.msk.f32.gmra.mxu0 %vm519_vm1, %v294_v56  ;;  %v9905_v56 = vpop.permute.xlu2 %7705 }
 0x23b   : > { %v2680_v34 = vmax.f32 %v2479_v4, %v2482_v3  ;;  %7468 = vmatmul.msk.f32.gmra.mxu3 %vm519_vm1, %v455_v26  ;;  %v2320_v26 = vmax.f32 %v1559_v59, 0.0 }
 0x23d   : > { %v2752_v42 = vmax.f32 %v2608_v1, %v2680_v34  ;;  %v459_v1 = vld [vmem:[%s8757_s27 + $0x750] sm:$0xff]  ;;  %v2569_v62 = vmax.f32 %v2317_v9, %v2320_v26 }
 0x23e   : > { %v2047_v58 = vpop.f32.mrf.mxu3 }
 0x23f   : > { %2931 = vst.msk [vmem:[#allocation2 + $0x241] sm:$0xff] %vm2773_vm2, %v2752_v42  ;;  %v2048_v11 = vadd.f32 %v9850_v13, %v2047_v58  ;;  %v1567_v55 = vpop.f32.mrf.mxu0 }
 0x240   : > { %v1568_v63 = vadd.f32 %v9850_v13, %v1567_v55  ;;  %v2321_v55 = vmax.f32 %v1562_v18, 0.0 }
 0x241   : > { %v2483_v0 = vmax.f32 %v2048_v11, 0.0  ;;  %v299_v11 = vld [vmem:[%s8757_s27 + $0x250] sm:$0xff] }
 0x242   : > { %7308 = vmatmul.msk.f32.gmra.mxu0 %vm519_vm1, %v295_v45  ;;  %v2323_v3 = vmax.f32 %v1568_v63, 0.0  ;;  %v9922_v53 = vpop.permute.xlu2 %7710  ;;  %v2570_v35 = vmax.f32 %v2318_v51, %v2321_v55  ;;  %v3110_v63 = vld [vmem:[#allocation2 + $0x92] sm:$0xff] }
 0x243   : > { %v2681_v50 = vmax.f32 %v2480_v49, %v2483_v0  ;;  %7469 = vmatmul.msk.f32.gmra.mxu3 %vm519_vm1, %v456_v30  ;;  %v460_v30 = vld [vmem:[%s8757_s27 + $0x758] sm:$0xff]  ;;  %v1565_v0 = vadd.f32 %v9850_v13, %v9860_v6  ;;  %v461_v6 = vld [vmem:[%s8757_s27 + $0x760] sm:$0xff]  ;;  %v463_v55 = vld [vmem:[%s8757_s27 + $0x770] sm:$0xff] }
 0x245   : > { %v2753_v39 = vmax.f32 %v2609_v48, %v2681_v50  ;;  %v1556_v50 = vadd.f32 %v9850_v13, %v9823_v12 }
 0x246   : > { %v2050_v54 = vpop.f32.mrf.mxu3 }
 0x247   : > { %2932 = vst.msk [vmem:[#allocation2 + $0x249] sm:$0xff] %vm2773_vm2, %v2753_v39  ;;  %v2051_v16 = vadd.f32 %v9850_v13, %v2050_v54  ;;  %v1570_v41 = vpop.f32.mrf.mxu0  ;;  %v2319_v12 = vmax.f32 %v1556_v50, 0.0 }
 0x248   : > { %v1571_v7 = vadd.f32 %v9850_v13, %v1570_v41 }
 0x249   : > { %v2484_v10 = vmax.f32 %v2051_v16, 0.0  ;;  %v3038_v16 = vld [vmem:[#allocation2 + $0x91] sm:$0xff] }
 0x24a   : > { %7309 = vmatmul.msk.f32.gmra.mxu0 %vm519_vm1, %v296_v25  ;;  %v2324_v48 = vmax.f32 %v1571_v7, 0.0  ;;  %v2322_v25 = vmax.f32 %v1565_v0, 0.0 }
 0x24b   : > { %v2682_v44 = vmax.f32 %v2481_v33, %v2484_v10  ;;  %7470 = vmatmul.msk.f32.gmra.mxu3 %vm519_vm1, %v457_v61  ;;  %v300_v33 = vld [vmem:[%s8757_s27 + $0x258] sm:$0xff]  ;;  %v9937_v10 = vpop.permute.xlu2 %7720 }
 0x24c   : > { %v7722_v51 = vunpack.i.l.bf16 %v9937_v10 }
 0x24d   : > { %v2754_v47 = vmax.f32 %v2610_v29, %v2682_v44 }
 0x24e   : > { %v9888_v22 = vpop.f32.mrf.mxu3 }
 0x24f   : > { %2933 = vst.msk [vmem:[#allocation2 + $0x251] sm:$0xff] %vm2773_vm2, %v2754_v47  ;;  %v1573_v57 = vpop.f32.mrf.mxu0 }
 0x250   : > { %v1574_v31 = vadd.f32 %v9850_v13, %v1573_v57  ;;  %v2571_v57 = vmax.f32 %v2319_v12, %v2322_v25  ;;  %v7723_v25 = vunpack.i.h.bf16 %v9937_v10  ;;  %v304_v10 = vld [vmem:[%s8757_s27 + $0x278] sm:$0xff] }
 0x252   : > { %7310 = vmatmul.msk.f32.gmra.mxu0 %vm519_vm1, %v297_v17  ;;  %v2325_v44 = vmax.f32 %v1574_v31, 0.0  ;;  %v5338_v12 = vsel %vm2773_vm2, %v9649_v19, %v7723_v25 }
 0x253   : > { %7471 = vmatmul.msk.f32.gmra.mxu3 %vm519_vm1, %v458_v24 }
 0x256   : > { %v9902_v14 = vpop.f32.mrf.mxu3 }
 0x257   : > { %v1576_v4 = vpop.f32.mrf.mxu0 }
 0x258   : > { %v1577_v40 = vadd.f32 %v9850_v13, %v1576_v4 }
 0x25a   : > { %v2326_v36 = vmax.f32 %v1577_v40, 0.0  ;;  %7311 = vmatmul.msk.f32.gmra.mxu0 %vm519_vm1, %v298_v28 }
 0x25b   : > { %7472 = vmatmul.msk.f32.gmra.mxu3 %vm519_vm1, %v459_v1  ;;  %v462_v1 = vld [vmem:[%s8757_s27 + $0x768] sm:$0xff] }
 0x25c   : > { %v2641_v34 = vmax.f32 %v2323_v3, %v2326_v36  ;;  %v7736_v36 = vpop.permute.xlu2 %7735 }
 0x25e   : > { %v2713_v42 = vmax.f32 %v2569_v62, %v2641_v34  ;;  %v9916_v58 = vpop.f32.mrf.mxu3  ;;  %v9959_v62 = vpop.permute.xlu0 %7715  ;;  %v302_v34 = vld [vmem:[%s8757_s27 + $0x268] sm:$0xff] }
 0x25f   : > { %v1579_v49 = vpop.f32.mrf.mxu0 }
 0x260   : > { %2892 = vst.msk [vmem:[#allocation2 + $0xa1] sm:$0xff] %vm2773_vm2, %v2713_v42  ;;  %v1580_v45 = vadd.f32 %v9850_v13, %v1579_v49 }
 0x262   : > { %v2327_v23 = vmax.f32 %v1580_v45, 0.0  ;;  %7312 = vmatmul.msk.f32.gmra.mxu0 %vm519_vm1, %v299_v11 }
 0x263   : > { %7473 = vmatmul.msk.f32.gmra.mxu3 %vm519_vm1, %v460_v30 }
 0x264   : > { %v2642_v21 = vmax.f32 %v2324_v48, %v2327_v23  ;;  %v7737_v48 = vunpack.i.l.bf16 %v7736_v36  ;;  %v7741_v50 = vpop.permute.xlu2 %7740 }
 0x266   : > { %v2714_v37 = vmax.f32 %v2570_v35, %v2642_v21  ;;  %v9931_v39 = vpop.f32.mrf.mxu3  ;;  %v2960_v35 = vld [vmem:[#allocation2 + $0x50] sm:$0xff] }
 0x267   : > { %v1582_v54 = vpop.f32.mrf.mxu0  ;;  %v3039_v41 = vld [vmem:[#allocation2 + $0xa1] sm:$0xff]  ;;  %v5337_v21 = vsel %vm2773_vm2, %v2960_v35, %v7722_v51 }
 0x268   : > { %2893 = vst.msk [vmem:[#allocation2 + $0xa9] sm:$0xff] %vm2773_vm2, %v2714_v37  ;;  %v1583_v61 = vadd.f32 %v9850_v13, %v1582_v54  ;;  %v7774_v29 = vpack.i.bf16 %v3039_v41, %v3038_v16  ;;  %v9947_v26 = vld [vmem:[#allocation2 + $0xa0] sm:$0xff]  ;;  %v5410_v37 = vsel %vm5401_vm4, %v5337_v21, %v7737_v48  ;;  %v303_v16 = vld [vmem:[%s8757_s27 + $0x270] sm:$0xff]  ;;  %v464_v41 = vld [vmem:[%s8757_s27 + $0x778] sm:$0xff] }
 0x26a   : > { %v2328_v47 = vmax.f32 %v1583_v61, 0.0  ;;  %7313 = vmatmul.msk.f32.gmra.mxu0 %vm519_vm1, %v300_v33  ;;  %7775 = vrot.lane.b32.xlu1 %v7774_v29, %s8704_s30  ;;  %v7738_v61 = vunpack.i.h.bf16 %v7736_v36 }
 0x26b   : > { %7474 = vmatmul.msk.f32.gmra.mxu3 %vm519_vm1, %v461_v6 }
 0x26c   : > { %v2643_v17 = vmax.f32 %v2325_v44, %v2328_v47  ;;  %v5411_v47 = vsel %vm5401_vm4, %v5338_v12, %v7738_v61 }
 0x26e   : > { %v2715_v24 = vmax.f32 %v2571_v57, %v2643_v17  ;;  %v9942_v59 = vpop.f32.mrf.mxu3 }
 0x26f   : > { %v9945_v4 = vpop.f32.mrf.mxu0  ;;  %v3111_v28 = vld [vmem:[#allocation2 + $0xa2] sm:$0xff]  ;;  %v2066_v25 = vadd.f32 %v9850_v13, %v9942_v59 }
 0x270   : > { %v9949_v40 = vld [vmem:[#allocation2 + $0xa8] sm:$0xff]  ;;  %2894 = vst.msk [vmem:[#allocation2 + $0xb1] sm:$0xff] %vm2773_vm2, %v2715_v24  ;;  %v7784_v9 = vpack.i.bf16 %v3111_v28, %v3110_v63  ;;  %v7746_v24 = vpop.permute.xlu2 %7745  ;;  %v7742_v63 = vunpack.i.l.bf16 %v7741_v50 }
 0x271   : > { %v7779_v3 = vpack.i.bf16 %v9949_v40, %v9947_v26  ;;  %v3040_v38 = vld [vmem:[#allocation2 + $0xa9] sm:$0xff]  ;;  %v7747_v28 = vunpack.i.l.bf16 %v7746_v24 }
 0x272   : > { %7314 = vmatmul.msk.f32.gmra.mxu0 %vm519_vm1, %v301_v32  ;;  %7785 = vrot.lane.b32.xlu1 %v7784_v9, %s8705_s6  ;;  %v465_v32 = vld [vmem:[%s8757_s27 + $0x780] sm:$0xff] }
 0x273   : > { %7475 = vmatmul.msk.f32.gmra.mxu3 %vm519_vm1, %v462_v1  ;;  %7780 = vrot.lane.b32.xlu0 %v7779_v3, %s8706_s7  ;;  %v5339_v3 = vsel %vm2773_vm2, %v9651_v8, %v7742_v63  ;;  %v7748_v8 = vunpack.i.h.bf16 %v7746_v24  ;;  %v468_v63 = vld [vmem:[%s8757_s27 + $0x798] sm:$0xff] }
 0x276   : > { %v9961_v18 = vpop.f32.mrf.mxu3 }
 0x277   : > { %v9964_v7 = vpop.f32.mrf.mxu0  ;;  %v3112_v42 = vld [vmem:[#allocation2 + $0xaa] sm:$0xff]  ;;  %v3113_v49 = vld [vmem:[#allocation2 + $0xb2] sm:$0xff] }
 0x278   : > { %v3041_v11 = vld [vmem:[#allocation2 + $0xb1] sm:$0xff]  ;;  %v7809_v45 = vpack.i.bf16 %v3113_v49, %v3112_v42  ;;  %v466_v49 = vld [vmem:[%s8757_s27 + $0x788] sm:$0xff] }
 0x279   : > { %v7789_v30 = vpack.i.bf16 %v3041_v11, %v3040_v38  ;;  %v305_v38 = vld [vmem:[%s8757_s27 + $0x280] sm:$0xff]  ;;  %v2054_v11 = vadd.f32 %v9850_v13, %v9888_v22 }
 0x27a   : > { %7315 = vmatmul.msk.f32.gmra.mxu0 %vm519_vm1, %v302_v34  ;;  %7810 = vrot.lane.b32.xlu1 %v7809_v45, %s8705_s6  ;;  %v5412_v34 = vsel %vm5401_vm4, %v5339_v3, %v7747_v28  ;;  %v7743_v45 = vunpack.i.h.bf16 %v7741_v50  ;;  %v2060_v28 = vadd.f32 %v9850_v13, %v9916_v58 }
 0x27b   : > { %7476 = vmatmul.msk.f32.gmra.mxu3 %vm519_vm1, %v463_v55  ;;  %7790 = vrot.lane.b32.xlu2 %v7789_v30, %s8704_s30  ;;  %v2063_v55 = vadd.f32 %v9850_v13, %v9931_v39  ;;  %v2485_v48 = vmax.f32 %v2054_v11, 0.0 }
 0x27c   : > { %v7751_v23 = vpop.permute.xlu0 %7750  ;;  %v5340_v22 = vsel %vm2773_vm2, %v9784_v27, %v7743_v45  ;;  %v308_v45 = vld [vmem:[%s8757_s27 + $0x298] sm:$0xff] }
 0x27d   : > { %v7752_v0 = vunpack.i.l.bf16 %v7751_v23  ;;  %v7753_v6 = vunpack.i.h.bf16 %v7751_v23  ;;  %v2488_v23 = vmax.f32 %v2063_v55, 0.0  ;;  %v5413_v50 = vsel %vm5401_vm4, %v5340_v22, %v7748_v8  ;;  %v469_v8 = vld [vmem:[%s8757_s27 + $0x7a0] sm:$0xff] }
 0x27e   : > { %v2071_v31 = vpop.f32.mrf.mxu3  ;;  %v309_v22 = vld [vmem:[%s8757_s27 + $0x2a0] sm:$0xff] }
 0x27f   : > { %v9974_v54 = vpop.f32.mrf.mxu0  ;;  %v5483_v33 = vsel %vm5474_vm5, %v5410_v37, %v7752_v0  ;;  %v5484_v17 = vsel %vm5474_vm5, %v5411_v47, %v7753_v6  ;;  %v2072_v30 = vadd.f32 %v9850_v13, %v2071_v31  ;;  %v306_v37 = vld [vmem:[%s8757_s27 + $0x288] sm:$0xff]  ;;  %v467_v31 = vld [vmem:[%s8757_s27 + $0x790] sm:$0xff]  ;;  %v2489_v47 = vmax.f32 %v2066_v25, 0.0 }
 0x280   : > { %6059 = vmatmul.f32.gmra.mxu1 %v5483_v33 }
 0x281   : > { %v2491_v0 = vmax.f32 %v2072_v30, 0.0 }
 0x282   : > { %7316 = vmatmul.msk.f32.gmra.mxu0 %vm519_vm1, %v303_v16  ;;  %v2057_v16 = vadd.f32 %v9850_v13, %v9902_v14 }
 0x283   : > { %7477 = vmatmul.msk.f32.gmra.mxu3 %vm519_vm1, %v464_v41  ;;  %v2611_v41 = vmax.f32 %v2485_v48, %v2488_v23 }
 0x284   : > { %v9982_v29 = vpop.permute.xlu0 %7755  ;;  %v2486_v12 = vmax.f32 %v2057_v16, 0.0  ;;  %v310_v16 = vld [vmem:[%s8757_s27 + $0x2a8] sm:$0xff] }
 0x286   : > { %v2074_v44 = vpop.f32.mrf.mxu3 }
 0x287   : > { %v9987_v57 = vpop.f32.mrf.mxu0  ;;  %v2075_v61 = vadd.f32 %v9850_v13, %v2074_v44  ;;  %v2612_v44 = vmax.f32 %v2486_v12, %v2489_v47 }
 0x288   : > { %6062 = vmatmul.f32.gmra.mxu1 %v5484_v17 }
 0x289   : > { %v2492_v14 = vmax.f32 %v2075_v61, 0.0 }
 0x28a   : > { %7317 = vmatmul.msk.f32.gmra.mxu0 %vm519_vm1, %v304_v10 }
 0x28b   : > { %7478 = vmatmul.msk.f32.gmra.mxu3 %vm519_vm1, %v465_v32  ;;  %v307_v32 = vld [vmem:[%s8757_s27 + $0x290] sm:$0xff] }
 0x28d   : > { %v7761_v19 = vpop.permute.xlu0 %7760 }
 0x28e   : > { %v7762_v1 = vunpack.i.l.bf16 %v7761_v19  ;;  %v2077_v9 = vpop.f32.mrf.mxu3  ;;  %v7763_v51 = vunpack.i.h.bf16 %v7761_v19  ;;  %v2069_v19 = vadd.f32 %v9850_v13, %v9961_v18 }
 0x28f   : > { %v9996_v36 = vpop.f32.mrf.mxu0  ;;  %v2078_v3 = vadd.f32 %v9850_v13, %v2077_v9 }
 0x290   : > { %v5485_v42 = vsel %vm5474_vm5, %v5412_v34, %v7762_v1  ;;  %v5486_v33 = vsel %vm5474_vm5, %v5413_v50, %v7763_v51  ;;  %v1586_v50 = vadd.f32 %v9850_v13, %v9945_v4 }
 0x291   : > { %6065 = vmatmul.f32.gmra.mxu1 %v5485_v42  ;;  %v2490_v42 = vmax.f32 %v2069_v19, 0.0  ;;  %v2493_v58 = vmax.f32 %v2078_v3, 0.0 }
 0x292   : > { %7318 = vmatmul.msk.f32.gmra.mxu0 %vm519_vm1, %v305_v38  ;;  %v2487_v38 = vmax.f32 %v2060_v28, 0.0  ;;  %v2329_v61 = vmax.f32 %v1586_v50, 0.0 }
 0x293   : > { %7479 = vmatmul.msk.f32.gmra.mxu3 %vm519_vm1, %v466_v49 }
 0x294   : > { %v2613_v30 = vmax.f32 %v2487_v38, %v2490_v42  ;;  %v1592_v38 = vadd.f32 %v9850_v13, %v9974_v54 }
 0x296   : > { %v2080_v35 = vpop.f32.mrf.mxu3 }
 0x297   : > { %v2081_v39 = vadd.f32 %v9850_v13, %v2080_v35  ;;  %v10012_v21 = vpop.f32.mrf.mxu0 }
 0x298   : > { %v1601_v3 = vadd.f32 %v9850_v13, %v10012_v21 }
 0x299   : > { %v2494_v27 = vmax.f32 %v2081_v39, 0.0  ;;  %6068 = vmatmul.f32.gmra.mxu1 %v5486_v33  ;;  %v1595_v39 = vadd.f32 %v9850_v13, %v9987_v57  ;;  %v1598_v57 = vadd.f32 %v9850_v13, %v9996_v36 }
 0x29a   : > { %7319 = vmatmul.msk.f32.gmra.mxu0 %vm519_vm1, %v306_v37 }
 0x29b   : > { %v2683_v6 = vmax.f32 %v2491_v0, %v2494_v27  ;;  %7480 = vmatmul.msk.f32.gmra.mxu3 %vm519_vm1, %v467_v31  ;;  %v470_v0 = vld [vmem:[%s8757_s27 + $0x7a8] sm:$0xff]  ;;  %v471_v27 = vld [vmem:[%s8757_s27 + $0x7b0] sm:$0xff] }
 0x29d   : > { %v2755_v17 = vmax.f32 %v2611_v41, %v2683_v6  ;;  %v2332_v41 = vmax.f32 %v1595_v39, 0.0 }
 0x29e   : > { %v2083_v10 = vpop.f32.mrf.mxu3 }
 0x29f   : > { %2934 = vst.msk [vmem:[#allocation2 + $0x261] sm:$0xff] %vm2773_vm2, %v2755_v17  ;;  %v2084_v24 = vadd.f32 %v9850_v13, %v2083_v10  ;;  %v1603_v59 = vpop.f32.mrf.mxu0  ;;  %v2572_v4 = vmax.f32 %v2329_v61, %v2332_v41  ;;  %v1589_v17 = vadd.f32 %v9850_v13, %v9964_v7  ;;  %v474_v41 = vld [vmem:[%s8757_s27 + $0x7c8] sm:$0xff] }
 0x2a0   : > { %v1604_v37 = vadd.f32 %v9850_v13, %v1603_v59 }
 0x2a1   : > { %v2495_v1 = vmax.f32 %v2084_v24, 0.0  ;;  %v2330_v19 = vmax.f32 %v1589_v17, 0.0 }
 0x2a2   : > { %7320 = vmatmul.msk.f32.gmra.mxu0 %vm519_vm1, %v307_v32  ;;  %v2335_v6 = vmax.f32 %v1604_v37, 0.0  ;;  %v311_v32 = vld [vmem:[%s8757_s27 + $0x2b0] sm:$0xff]  ;;  %v313_v37 = vld [vmem:[%s8757_s27 + $0x2c0] sm:$0xff] }
 0x2a3   : > { %v2684_v34 = vmax.f32 %v2492_v14, %v2495_v1  ;;  %7481 = vmatmul.msk.f32.gmra.mxu3 %vm519_vm1, %v468_v63  ;;  %v2333_v63 = vmax.f32 %v1598_v57, 0.0 }
 0x2a5   : > { %v2756_v49 = vmax.f32 %v2612_v44, %v2684_v34  ;;  %v472_v44 = vld [vmem:[%s8757_s27 + $0x7b8] sm:$0xff]  ;;  %v2573_v7 = vmax.f32 %v2330_v19, %v2333_v63  ;;  %v315_v19 = vld [vmem:[%s8757_s27 + $0x2d0] sm:$0xff] }
 0x2a6   : > { %v2086_v11 = vpop.f32.mrf.mxu3 }
 0x2a7   : > { %2935 = vst.msk [vmem:[#allocation2 + $0x269] sm:$0xff] %vm2773_vm2, %v2756_v49  ;;  %v2087_v55 = vadd.f32 %v9850_v13, %v2086_v11  ;;  %v1606_v18 = vpop.f32.mrf.mxu0 }
 0x2a8   : > { %v1607_v10 = vadd.f32 %v9850_v13, %v1606_v18  ;;  %v10082_v18 = vld [vmem:[#allocation2 + $0xb0] sm:$0xff] }
 0x2a9   : > { %v2496_v51 = vmax.f32 %v2087_v55, 0.0  ;;  %v312_v55 = vld [vmem:[%s8757_s27 + $0x2b8] sm:$0xff] }
 0x2aa   : > { %7321 = vmatmul.msk.f32.gmra.mxu0 %vm519_vm1, %v308_v45  ;;  %v2336_v36 = vmax.f32 %v1607_v10, 0.0 }
 0x2ab   : > { %v2685_v9 = vmax.f32 %v2493_v58, %v2496_v51  ;;  %7482 = vmatmul.msk.f32.gmra.mxu3 %vm519_vm1, %v469_v8  ;;  %v2334_v8 = vmax.f32 %v1601_v3, 0.0  ;;  %v2331_v51 = vmax.f32 %v1592_v38, 0.0  ;;  %v476_v3 = vld [vmem:[%s8757_s27 + $0x7d8] sm:$0xff] }
 0x2ad   : > { %v2757_v48 = vmax.f32 %v2613_v30, %v2685_v9  ;;  %v473_v30 = vld [vmem:[%s8757_s27 + $0x7c0] sm:$0xff] }
 0x2ae   : > { %v10042_v23 = vpop.f32.mrf.mxu3 }
 0x2af   : > { %2936 = vst.msk [vmem:[#allocation2 + $0x271] sm:$0xff] %vm2773_vm2, %v2757_v48  ;;  %v1609_v35 = vpop.f32.mrf.mxu0 }
 0x2b0   : > { %v1610_v42 = vadd.f32 %v9850_v13, %v1609_v35  ;;  %v2574_v35 = vmax.f32 %v2331_v51, %v2334_v8  ;;  %v7758_v51 = vunpack.i.h.bf16 %v9982_v29 }
 0x2b2   : > { %7322 = vmatmul.msk.f32.gmra.mxu0 %vm519_vm1, %v309_v22  ;;  %v2337_v9 = vmax.f32 %v1610_v42, 0.0 }
 0x2b3   : > { %7483 = vmatmul.msk.f32.gmra.mxu3 %vm519_vm1, %v470_v0 }
 0x2b6   : > { %v10054_v33 = vpop.f32.mrf.mxu3 }
 0x2b7   : > { %v1612_v31 = vpop.f32.mrf.mxu0 }
 0x2b8   : > { %v1613_v25 = vadd.f32 %v9850_v13, %v1612_v31 }
 0x2ba   : > { %v2338_v12 = vmax.f32 %v1613_v25, 0.0  ;;  %7323 = vmatmul.msk.f32.gmra.mxu0 %vm519_vm1, %v310_v16 }
 0x2bb   : > { %7484 = vmatmul.msk.f32.gmra.mxu3 %vm519_vm1, %v471_v27  ;;  %v3076_v27 = vld [vmem:[#allocation2 + $0x229] sm:$0xff] }
 0x2bc   : > { %v2644_v47 = vmax.f32 %v2335_v6, %v2338_v12  ;;  %v314_v6 = vld [vmem:[%s8757_s27 + $0x2c8] sm:$0xff] }
 0x2be   : > { %v2716_v14 = vmax.f32 %v2572_v4, %v2644_v47  ;;  %v10066_v24 = vpop.f32.mrf.mxu3  ;;  %v3077_v4 = vld [vmem:[#allocation2 + $0x231] sm:$0xff] }
 0x2bf   : > { %v1615_v59 = vpop.f32.mrf.mxu0  ;;  %v7804_v63 = vpack.i.bf16 %v3077_v4, %v3076_v27 }
 0x2c0   : > { %2895 = vst.msk [vmem:[#allocation2 + $0xc1] sm:$0xff] %vm2773_vm2, %v2716_v14  ;;  %v1616_v28 = vadd.f32 %v9850_v13, %v1615_v59  ;;  %v475_v14 = vld [vmem:[%s8757_s27 + $0x7d0] sm:$0xff] }
 0x2c2   : > { %v2339_v1 = vmax.f32 %v1616_v28, 0.0  ;;  %7324 = vmatmul.msk.f32.gmra.mxu0 %vm519_vm1, %v311_v32 }
 0x2c3   : > { %7485 = vmatmul.msk.f32.gmra.mxu3 %vm519_vm1, %v472_v44 }
 0x2c4   : > { %v2645_v34 = vmax.f32 %v2336_v36, %v2339_v1  ;;  %v3078_v36 = vld [vmem:[#allocation2 + $0x241] sm:$0xff]  ;;  %v3079_v1 = vld [vmem:[#allocation2 + $0x249] sm:$0xff] }
 0x2c5   : > { %v7814_v38 = vpack.i.bf16 %v3079_v1, %v3078_v36 }
 0x2c6   : > { %v2717_v49 = vmax.f32 %v2573_v7, %v2645_v34  ;;  %v10079_v11 = vpop.f32.mrf.mxu3  ;;  %v7757_v7 = vunpack.i.l.bf16 %v9982_v29  ;;  %v7771_v34 = vpop.permute.xlu2 %7770  ;;  %v317_v29 = vld [vmem:[%s8757_s27 + $0x2e0] sm:$0xff] }
 0x2c7   : > { %v1618_v58 = vpop.f32.mrf.mxu0  ;;  %v10084_v45 = vld [vmem:[#allocation2 + $0xc0] sm:$0xff]  ;;  %v2099_v27 = vadd.f32 %v9850_v13, %v10079_v11  ;;  %v2093_v11 = vadd.f32 %v9850_v13, %v10054_v33 }
 0x2c8   : > { %2896 = vst.msk [vmem:[#allocation2 + $0xc9] sm:$0xff] %vm2773_vm2, %v2717_v49  ;;  %v1619_v21 = vadd.f32 %v9850_v13, %v1618_v58  ;;  %v7794_v54 = vpack.i.bf16 %v10084_v45, %v10082_v18  ;;  %v3042_v31 = vld [vmem:[#allocation2 + $0xc1] sm:$0xff]  ;;  %v5341_v42 = vsel %vm2773_vm2, %v9786_v46, %v7757_v7  ;;  %v7772_v49 = vunpack.i.l.bf16 %v7771_v34 }
 0x2c9   : > { %v2498_v1 = vmax.f32 %v2093_v11, 0.0 }
 0x2ca   : > { %v2340_v48 = vmax.f32 %v1619_v21, 0.0  ;;  %7325 = vmatmul.msk.f32.gmra.mxu0 %vm519_vm1, %v312_v55  ;;  %7795 = vrot.lane.b32.xlu2 %v7794_v54, %s8706_s7  ;;  %v316_v54 = vld [vmem:[%s8757_s27 + $0x2d8] sm:$0xff] }
 0x2cb   : > { %7486 = vmatmul.msk.f32.gmra.mxu3 %vm519_vm1, %v473_v30  ;;  %v5414_v30 = vsel %vm5401_vm4, %v5341_v42, %v7772_v49  ;;  %v319_v49 = vld [vmem:[%s8757_s27 + $0x2f0] sm:$0xff] }
 0x2cc   : > { %v2646_v22 = vmax.f32 %v2337_v9, %v2340_v48  ;;  %v477_v48 = vld [vmem:[%s8757_s27 + $0x7e0] sm:$0xff] }
 0x2ce   : > { %v2718_v0 = vmax.f32 %v2574_v35, %v2646_v22  ;;  %v10094_v39 = vpop.f32.mrf.mxu3  ;;  %v5342_v35 = vsel %vm2773_vm2, %v9813_v52, %v7758_v51  ;;  %v7773_v22 = vunpack.i.h.bf16 %v7771_v34 }
 0x2cf   : > { %v10096_v50 = vpop.f32.mrf.mxu0  ;;  %v3043_v16 = vld [vmem:[#allocation2 + $0xc9] sm:$0xff] }
 0x2d0   : > { %2897 = vst.msk [vmem:[#allocation2 + $0xd1] sm:$0xff] %vm2773_vm2, %v2718_v0  ;;  %v7799_v25 = vpack.i.bf16 %v3043_v16, %v3042_v31  ;;  %v3114_v12 = vld [vmem:[#allocation2 + $0xc2] sm:$0xff]  ;;  %v5415_v31 = vsel %vm5401_vm4, %v5342_v35, %v7773_v22 }
 0x2d1   : > { %v10109_v17 = vld [vmem:[#allocation2 + $0xc8] sm:$0xff] }
 0x2d2   : > { %7326 = vmatmul.msk.f32.gmra.mxu0 %vm519_vm1, %v313_v37  ;;  %7800 = vrot.lane.b32.xlu0 %v7799_v25, %s8704_s30  ;;  %v2090_v25 = vadd.f32 %v9850_v13, %v10042_v23  ;;  %v479_v23 = vld [vmem:[%s8757_s27 + $0x7f0] sm:$0xff] }
 0x2d3   : > { %7487 = vmatmul.msk.f32.gmra.mxu3 %vm519_vm1, %v474_v41  ;;  %v478_v41 = vld [vmem:[%s8757_s27 + $0x7e8] sm:$0xff] }
 0x2d6   : > { %v10104_v61 = vpop.f32.mrf.mxu3 }
 0x2d7   : > { %v10107_v57 = vpop.f32.mrf.mxu0  ;;  %v3115_v47 = vld [vmem:[#allocation2 + $0xca] sm:$0xff] }
 0x2d8   : > { %v3185_v10 = vld [vmem:[#allocation2 + $0xd0] sm:$0xff]  ;;  %v7824_v59 = vpack.i.bf16 %v3115_v47, %v3114_v12  ;;  %v2500_v12 = vmax.f32 %v2099_v27, 0.0 }
 0x2d9   : > { %v7819_v32 = vpack.i.bf16 %v3185_v10, %v10109_v17 }
 0x2da   : > { %7327 = vmatmul.msk.f32.gmra.mxu0 %vm519_vm1, %v314_v6  ;;  %7825 = vrot.lane.b32.xlu1 %v7824_v59, %s8705_s6  ;;  %v2497_v6 = vmax.f32 %v2090_v25, 0.0  ;;  %v318_v59 = vld [vmem:[%s8757_s27 + $0x2e8] sm:$0xff] }
 0x2db   : > { %7488 = vmatmul.msk.f32.gmra.mxu3 %vm519_vm1, %v475_v14  ;;  %7820 = vrot.lane.b32.xlu2 %v7819_v32, %s8706_s7 }
 0x2dc   : > { %7805 = vrot.lane.b32.xlu0 %v7804_v63, %s8704_s30  ;;  %v2614_v32 = vmax.f32 %v2497_v6, %v2500_v12  ;;  %v2102_v63 = vadd.f32 %v9850_v13, %v10094_v39  ;;  %v480_v39 = vld [vmem:[%s8757_s27 + $0x7f8] sm:$0xff] }
 0x2de   : > { %v2107_v28 = vpop.f32.mrf.mxu3  ;;  %v2501_v7 = vmax.f32 %v2102_v63, 0.0 }
 0x2df   : > { %v10118_v44 = vpop.f32.mrf.mxu0  ;;  %v2108_v52 = vadd.f32 %v9850_v13, %v2107_v28 }
 0x2e1   : > { %v2503_v47 = vmax.f32 %v2108_v52, 0.0 }
 0x2e2   : > { %7328 = vmatmul.msk.f32.gmra.mxu0 %vm519_vm1, %v315_v19 }
 0x2e3   : > { %7489 = vmatmul.msk.f32.gmra.mxu3 %vm519_vm1, %v476_v3 }
 0x2e4   : > { %7815 = vrot.lane.b32.xlu0 %v7814_v38, %s8704_s30 }
 0x2e5   : > { %v7781_v58 = vpop.permute.xlu0 %7780 }
 0x2e6   : > { %v7782_v55 = vunpack.i.l.bf16 %v7781_v58  ;;  %v2110_v8 = vpop.f32.mrf.mxu3  ;;  %v7783_v46 = vunpack.i.h.bf16 %v7781_v58  ;;  %v2096_v58 = vadd.f32 %v9850_v13, %v10066_v24 }
 0x2e7   : > { %v10128_v21 = vpop.f32.mrf.mxu0  ;;  %v2111_v19 = vadd.f32 %v9850_v13, %v2110_v8  ;;  %v2105_v8 = vadd.f32 %v9850_v13, %v10104_v61 }
 0x2e8   : > { %v5487_v9 = vsel %vm5474_vm5, %v5414_v30, %v7782_v55  ;;  %v5488_v16 = vsel %vm5474_vm5, %v5415_v31, %v7783_v46  ;;  %v2615_v55 = vmax.f32 %v2498_v1, %v2501_v7  ;;  %v483_v1 = vld [vmem:[%s8757_s27 + $0x810] sm:$0xff] }
 0x2e9   : > { %6071 = vmatmul.f32.gmra.mxu1 %v5487_v9  ;;  %v2504_v38 = vmax.f32 %v2111_v19, 0.0  ;;  %v10175_v9 = vpop.permute.xlu1 %7730  ;;  %v2502_v46 = vmax.f32 %v2105_v8, 0.0 }
 0x2ea   : > { %7329 = vmatmul.msk.f32.gmra.mxu0 %vm519_vm1, %v316_v54 }
 0x2eb   : > { %7490 = vmatmul.msk.f32.gmra.mxu3 %vm519_vm1, %v477_v48  ;;  %v2499_v48 = vmax.f32 %v2096_v58, 0.0 }
 0x2ee   : > { %v2113_v0 = vpop.f32.mrf.mxu3 }
 0x2ef   : > { %v10139_v37 = vpop.f32.mrf.mxu0  ;;  %v2114_v54 = vadd.f32 %v9850_v13, %v2113_v0  ;;  %v2616_v0 = vmax.f32 %v2499_v48, %v2502_v46  ;;  %v484_v48 = vld [vmem:[%s8757_s27 + $0x818] sm:$0xff] }
 0x2f1   : > { %6074 = vmatmul.f32.gmra.mxu1 %v5488_v16  ;;  %v2505_v22 = vmax.f32 %v2114_v54, 0.0  ;;  %v481_v16 = vld [vmem:[%s8757_s27 + $0x800] sm:$0xff]  ;;  %v10183_v27 = vpop.permute.xlu1 %7765 }
 0x2f2   : > { %7330 = vmatmul.msk.f32.gmra.mxu0 %vm519_vm1, %v317_v29  ;;  %v320_v29 = vld [vmem:[%s8757_s27 + $0x2f8] sm:$0xff] }
 0x2f3   : > { %7491 = vmatmul.msk.f32.gmra.mxu3 %vm519_vm1, %v478_v41 }
 0x2f6   : > { %v2116_v4 = vpop.f32.mrf.mxu3 }
 0x2f7   : > { %v2117_v10 = vadd.f32 %v9850_v13, %v2116_v4  ;;  %v10153_v14 = vpop.f32.mrf.mxu0  ;;  %v321_v4 = vld [vmem:[%s8757_s27 + $0x300] sm:$0xff] }
 0x2f9   : > { %v2506_v28 = vmax.f32 %v2117_v10, 0.0  ;;  %v1631_v10 = vadd.f32 %v9850_v13, %v10128_v21 }
 0x2fa   : > { %7331 = vmatmul.msk.f32.gmra.mxu0 %vm519_vm1, %v318_v59  ;;  %v10194_v59 = vpop.permute.xlu1 %7775 }
 0x2fb   : > { %v2686_v36 = vmax.f32 %v2503_v47, %v2506_v28  ;;  %7492 = vmatmul.msk.f32.gmra.mxu3 %vm519_vm1, %v479_v23  ;;  %v482_v47 = vld [vmem:[%s8757_s27 + $0x808] sm:$0xff]  ;;  %v1622_v23 = vadd.f32 %v9850_v13, %v10096_v50  ;;  %v2344_v19 = vmax.f32 %v1631_v10, 0.0  ;;  %v10206_v50 = vpop.permute.xlu2 %7790 }
 0x2fc   : > { %v322_v28 = vld [vmem:[%s8757_s27 + $0x308] sm:$0xff] }
 0x2fd   : > { %v2758_v3 = vmax.f32 %v2614_v32, %v2686_v36  ;;  %v2341_v7 = vmax.f32 %v1622_v23, 0.0 }
 0x2fe   : > { %v2119_v34 = vpop.f32.mrf.mxu3 }
 0x2ff   : > { %2937 = vst.msk [vmem:[#allocation2 + $0x281] sm:$0xff] %vm2773_vm2, %v2758_v3  ;;  %v2120_v33 = vadd.f32 %v9850_v13, %v2119_v34  ;;  %v1639_v42 = vpop.f32.mrf.mxu0  ;;  %v2575_v21 = vmax.f32 %v2341_v7, %v2344_v19 }
 0x300   : > { %v1640_v11 = vadd.f32 %v9850_v13, %v1639_v42  ;;  %v1625_v42 = vadd.f32 %v9850_v13, %v10107_v57 }
 0x301   : > { %v2507_v30 = vmax.f32 %v2120_v33, 0.0 }
 0x302   : > { %7332 = vmatmul.msk.f32.gmra.mxu0 %vm519_vm1, %v319_v49  ;;  %v2347_v3 = vmax.f32 %v1640_v11, 0.0  ;;  %v2342_v46 = vmax.f32 %v1625_v42, 0.0  ;;  %v324_v11 = vld [vmem:[%s8757_s27 + $0x318] sm:$0xff] }
 0x303   : > { %v2687_v51 = vmax.f32 %v2504_v38, %v2507_v30  ;;  %7493 = vmatmul.msk.f32.gmra.mxu3 %vm519_vm1, %v480_v39  ;;  %v1634_v38 = vadd.f32 %v9850_v13, %v10139_v37  ;;  %v323_v30 = vld [vmem:[%s8757_s27 + $0x310] sm:$0xff]  ;;  %v7777_v37 = vunpack.i.l.bf16 %v10194_v59 }
 0x305   : > { %v2759_v35 = vmax.f32 %v2615_v55, %v2687_v51  ;;  %v7786_v55 = vpop.permute.xlu1 %7785  ;;  %v2345_v54 = vmax.f32 %v1634_v38, 0.0 }
 0x306   : > { %v2122_v24 = vpop.f32.mrf.mxu3 }
 0x307   : > { %2938 = vst.msk [vmem:[#allocation2 + $0x289] sm:$0xff] %vm2773_vm2, %v2759_v35  ;;  %v2123_v61 = vadd.f32 %v9850_v13, %v2122_v24  ;;  %v1642_v31 = vpop.f32.mrf.mxu0  ;;  %v7787_v35 = vunpack.i.l.bf16 %v7786_v55 }
 0x308   : > { %v1643_v49 = vadd.f32 %v9850_v13, %v1642_v31 }
 0x309   : > { %v2508_v41 = vmax.f32 %v2123_v61, 0.0  ;;  %v1637_v61 = vadd.f32 %v9850_v13, %v10153_v14 }
 0x30a   : > { %7333 = vmatmul.msk.f32.gmra.mxu0 %vm519_vm1, %v320_v29  ;;  %v2348_v24 = vmax.f32 %v1643_v49, 0.0 }
 0x30b   : > { %v2688_v25 = vmax.f32 %v2505_v22, %v2508_v41  ;;  %7494 = vmatmul.msk.f32.gmra.mxu3 %vm519_vm1, %v481_v16  ;;  %v2576_v22 = vmax.f32 %v2342_v46, %v2345_v54  ;;  %v2966_v16 = vld [vmem:[#allocation2 + $0x90] sm:$0xff]  ;;  %v2346_v19 = vmax.f32 %v1637_v61, 0.0 }
 0x30c   : > { %v5343_v41 = vsel %vm2773_vm2, %v2966_v16, %v7777_v37  ;;  %v3116_v54 = vld [vmem:[#allocation2 + $0xd2] sm:$0xff]  ;;  %v486_v37 = vld [vmem:[%s8757_s27 + $0x828] sm:$0xff] }
 0x30d   : > { %v2760_v52 = vmax.f32 %v2616_v0, %v2688_v25  ;;  %v1628_v25 = vadd.f32 %v9850_v13, %v10118_v44  ;;  %v5416_v10 = vsel %vm5401_vm4, %v5343_v41, %v7787_v35  ;;  %v485_v44 = vld [vmem:[%s8757_s27 + $0x820] sm:$0xff] }
 0x30e   : > { %v10185_v6 = vpop.f32.mrf.mxu3 }
 0x30f   : > { %2939 = vst.msk [vmem:[#allocation2 + $0x291] sm:$0xff] %vm2773_vm2, %v2760_v52  ;;  %v1645_v12 = vpop.f32.mrf.mxu0  ;;  %v2343_v7 = vmax.f32 %v1628_v25, 0.0 }
 0x310   : > { %v1646_v52 = vadd.f32 %v9850_v13, %v1645_v12  ;;  %v7778_v12 = vunpack.i.h.bf16 %v10194_v59 }
 0x312   : > { %7334 = vmatmul.msk.f32.gmra.mxu0 %vm519_vm1, %v321_v4  ;;  %v5344_v42 = vsel %vm2773_vm2, %v9947_v26, %v7778_v12  ;;  %v7792_v26 = vunpack.i.l.bf16 %v10206_v50 }
 0x313   : > { %7495 = vmatmul.msk.f32.gmra.mxu3 %vm519_vm1, %v482_v47 }
 0x314   : > { %v5345_v61 = vsel %vm2773_vm2, %v9949_v40, %v7792_v26 }
 0x316   : > { %v10199_v32 = vpop.f32.mrf.mxu3 }
 0x317   : > { %v1648_v63 = vpop.f32.mrf.mxu0 }
 0x318   : > { %v1649_v36 = vadd.f32 %v9850_v13, %v1648_v63  ;;  %v3044_v63 = vld [vmem:[#allocation2 + $0xd1] sm:$0xff] }
 0x31a   : > { %v2350_v34 = vmax.f32 %v1649_v36, 0.0  ;;  %7335 = vmatmul.msk.f32.gmra.mxu0 %vm519_vm1, %v322_v28 }
 0x31b   : > { %7496 = vmatmul.msk.f32.gmra.mxu3 %vm519_vm1, %v483_v1 }
 0x31c   : > { %v2647_v33 = vmax.f32 %v2347_v3, %v2350_v34  ;;  %v7788_v3 = vunpack.i.h.bf16 %v7786_v55  ;;  %v2349_v34 = vmax.f32 %v1646_v52, 0.0 }
 0x31e   : > { %v2719_v39 = vmax.f32 %v2575_v21, %v2647_v33  ;;  %v10213_v58 = vpop.f32.mrf.mxu3  ;;  %v2577_v33 = vmax.f32 %v2343_v7, %v2346_v19 }
 0x31f   : > { %v1651_v8 = vpop.f32.mrf.mxu0 }
 0x320   : > { %2898 = vst.msk [vmem:[#allocation2 + $0xe1] sm:$0xff] %vm2773_vm2, %v2719_v39  ;;  %v1652_v51 = vadd.f32 %v9850_v13, %v1651_v8  ;;  %v5417_v39 = vsel %vm5401_vm4, %v5344_v42, %v7788_v3  ;;  %v488_v3 = vld [vmem:[%s8757_s27 + $0x838] sm:$0xff]  ;;  %v489_v42 = vld [vmem:[%s8757_s27 + $0x840] sm:$0xff] }
 0x322   : > { %v2351_v57 = vmax.f32 %v1652_v51, 0.0  ;;  %7336 = vmatmul.msk.f32.gmra.mxu0 %vm519_vm1, %v323_v30  ;;  %v325_v30 = vld [vmem:[%s8757_s27 + $0x320] sm:$0xff] }
 0x323   : > { %7497 = vmatmul.msk.f32.gmra.mxu3 %vm519_vm1, %v484_v48  ;;  %v7811_v48 = vpop.permute.xlu1 %7810 }
 0x324   : > { %v2648_v31 = vmax.f32 %v2348_v24, %v2351_v57  ;;  %v7796_v29 = vpop.permute.xlu2 %7795  ;;  %v7812_v35 = vunpack.i.l.bf16 %v7811_v48  ;;  %v7813_v40 = vunpack.i.h.bf16 %v7811_v48  ;;  %v490_v48 = vld [vmem:[%s8757_s27 + $0x848] sm:$0xff] }
 0x325   : > { %v7797_v0 = vunpack.i.l.bf16 %v7796_v29  ;;  %v7798_v38 = vunpack.i.h.bf16 %v7796_v29 }
 0x326   : > { %v2720_v4 = vmax.f32 %v2576_v22, %v2648_v31  ;;  %v10228_v47 = vpop.f32.mrf.mxu3  ;;  %v326_v31 = vld [vmem:[%s8757_s27 + $0x328] sm:$0xff] }
 0x327   : > { %v1654_v23 = vpop.f32.mrf.mxu0  ;;  %v5489_v14 = vsel %vm5474_vm5, %v5416_v10, %v7797_v0  ;;  %v3045_v28 = vld [vmem:[#allocation2 + $0xe1] sm:$0xff]  ;;  %v5490_v8 = vsel %vm5474_vm5, %v5417_v39, %v7798_v38  ;;  %v5418_v0 = vsel %vm5401_vm4, %v5345_v61, %v7812_v35  ;;  %v487_v10 = vld [vmem:[%s8757_s27 + $0x830] sm:$0xff] }
 0x328   : > { %2899 = vst.msk [vmem:[#allocation2 + $0xe9] sm:$0xff] %vm2773_vm2, %v2720_v4  ;;  %v1655_v36 = vadd.f32 %v9850_v13, %v1654_v23  ;;  %6077 = vmatmul.f32.gmra.mxu1 %v5489_v14  ;;  %v7829_v1 = vpack.i.bf16 %v3045_v28, %v3044_v63  ;;  %v10278_v12 = vld [vmem:[#allocation2 + $0xe0] sm:$0xff]  ;;  %v3082_v39 = vld [vmem:[#allocation2 + $0x269] sm:$0xff] }
 0x32a   : > { %v2352_v21 = vmax.f32 %v1655_v36, 0.0  ;;  %7337 = vmatmul.msk.f32.gmra.mxu0 %vm519_vm1, %v324_v11  ;;  %7830 = vrot.lane.b32.xlu1 %v7829_v1, %s8704_s30  ;;  %v7793_v11 = vunpack.i.h.bf16 %v10206_v50  ;;  %v327_v1 = vld [vmem:[%s8757_s27 + $0x330] sm:$0xff] }
 0x32b   : > { %7498 = vmatmul.msk.f32.gmra.mxu3 %vm519_vm1, %v485_v44 }
 0x32c   : > { %v2649_v13 = vmax.f32 %v2349_v34, %v2352_v21  ;;  %v5346_v36 = vsel %vm2773_vm2, %v10082_v18, %v7793_v11  ;;  %v3080_v18 = vld [vmem:[#allocation2 + $0x251] sm:$0xff]  ;;  %v3081_v21 = vld [vmem:[#allocation2 + $0x261] sm:$0xff] }
 0x32d   : > { %v5419_v50 = vsel %vm5401_vm4, %v5346_v36, %v7813_v40 }
 0x32e   : > { %v2721_v49 = vmax.f32 %v2577_v33, %v2649_v13  ;;  %v10242_v59 = vpop.f32.mrf.mxu3  ;;  %v328_v13 = vld [vmem:[%s8757_s27 + $0x338] sm:$0xff] }
 0x32f   : > { %v10245_v55 = vpop.f32.mrf.mxu0  ;;  %v3117_v51 = vld [vmem:[#allocation2 + $0xe2] sm:$0xff] }
 0x330   : > { %2900 = vst.msk [vmem:[#allocation2 + $0xf1] sm:$0xff] %vm2773_vm2, %v2721_v49  ;;  %6080 = vmatmul.f32.gmra.mxu1 %v5490_v8  ;;  %v7844_v46 = vpack.i.bf16 %v3117_v51, %v3116_v54  ;;  %v3046_v29 = vld [vmem:[#allocation2 + $0xe9] sm:$0xff]  ;;  %v7854_v49 = vpack.i.bf16 %v3081_v21, %v3080_v18  ;;  %v3083_v8 = vld [vmem:[#allocation2 + $0x271] sm:$0xff]  ;;  %v329_v51 = vld [vmem:[%s8757_s27 + $0x340] sm:$0xff] }
 0x331   : > { %v10270_v28 = vld [vmem:[#allocation2 + $0xe8] sm:$0xff] }
 0x332   : > { %7338 = vmatmul.msk.f32.gmra.mxu0 %vm519_vm1, %v325_v30  ;;  %7845 = vrot.lane.b32.xlu0 %v7844_v46, %s8705_s6  ;;  %v7839_v34 = vpack.i.bf16 %v10270_v28, %v10278_v12  ;;  %v10301_v46 = vld [vmem:[%s12150_s2] ss:$0 sm:$0xff] }
 0x333   : > { %7499 = vmatmul.msk.f32.gmra.mxu3 %vm519_vm1, %v486_v37  ;;  %v7864_v37 = vpack.i.bf16 %v3083_v8, %v3082_v39  ;;  %v2126_v26 = vadd.f32 %v10301_v46, %v10185_v6  ;;  %v2135_v35 = vadd.f32 %v10301_v46, %v10228_v47  ;;  %v330_v6 = vld [vmem:[%s8757_s27 + $0x348] sm:$0xff]  ;;  %v2129_v47 = vadd.f32 %v10301_v46, %v10199_v32 }
 0x335   : > { %v7821_v24 = vpop.permute.xlu2 %7820  ;;  %v2512_v61 = vmax.f32 %v2135_v35, 0.0  ;;  %v2510_v11 = vmax.f32 %v2129_v47, 0.0 }
 0x336   : > { %v7822_v57 = vunpack.i.l.bf16 %v7821_v24  ;;  %v10255_v22 = vpop.f32.mrf.mxu3  ;;  %v7823_v63 = vunpack.i.h.bf16 %v7821_v24 }
 0x337   : > { %v10260_v16 = vpop.f32.mrf.mxu0  ;;  %v3047_v41 = vld [vmem:[#allocation2 + $0xf1] sm:$0xff] }
 0x338   : > { %v3118_v25 = vld [vmem:[#allocation2 + $0xea] sm:$0xff]  ;;  %v3119_v52 = vld [vmem:[#allocation2 + $0xf2] sm:$0xff]  ;;  %v5491_v4 = vsel %vm5474_vm5, %v5418_v0, %v7822_v57  ;;  %v7834_v23 = vpack.i.bf16 %v3047_v41, %v3046_v29  ;;  %v5492_v7 = vsel %vm5474_vm5, %v5419_v50, %v7823_v63  ;;  %v2509_v57 = vmax.f32 %v2126_v26, 0.0 }
 0x339   : > { %v7859_v14 = vpack.i.bf16 %v3119_v52, %v3118_v25  ;;  %6083 = vmatmul.f32.gmra.mxu1 %v5491_v4  ;;  %v491_v25 = vld [vmem:[%s8757_s27 + $0x850] sm:$0xff]  ;;  %v2138_v4 = vadd.f32 %v10301_v46, %v10242_v59  ;;  %v492_v59 = vld [vmem:[%s8757_s27 + $0x858] sm:$0xff] }
 0x33a   : > { %7339 = vmatmul.msk.f32.gmra.mxu0 %vm519_vm1, %v326_v31  ;;  %7835 = vrot.lane.b32.xlu2 %v7834_v23, %s8704_s30  ;;  %v2617_v52 = vmax.f32 %v2509_v57, %v2512_v61  ;;  %v333_v61 = vld [vmem:[%s8757_s27 + $0x360] sm:$0xff] }
 0x33b   : > { %7500 = vmatmul.msk.f32.gmra.mxu3 %vm519_vm1, %v487_v10  ;;  %7860 = vrot.lane.b32.xlu0 %v7859_v14, %s8705_s6  ;;  %v2513_v40 = vmax.f32 %v2138_v4, 0.0 }
 0x33e   : > { %v2143_v19 = vpop.f32.mrf.mxu3 }
 0x33f   : > { %v10274_v44 = vpop.f32.mrf.mxu0  ;;  %v2144_v24 = vadd.f32 %v10301_v46, %v2143_v19 }
 0x341   : > { %6086 = vmatmul.f32.gmra.mxu1 %v5492_v7  ;;  %v2515_v29 = vmax.f32 %v2144_v24, 0.0  ;;  %v2132_v7 = vadd.f32 %v10301_v46, %v10213_v58 }
 0x342   : > { %7340 = vmatmul.msk.f32.gmra.mxu0 %vm519_vm1, %v327_v1  ;;  %7840 = vrot.lane.b32.xlu2 %v7839_v34, %s8706_s7  ;;  %v331_v1 = vld [vmem:[%s8757_s27 + $0x350] sm:$0xff]  ;;  %v2141_v34 = vadd.f32 %v10301_v46, %v10255_v22 }
 0x343   : > { %7501 = vmatmul.msk.f32.gmra.mxu3 %vm519_vm1, %v488_v3  ;;  %v2618_v3 = vmax.f32 %v2510_v11, %v2513_v40 }
 0x346   : > { %v2146_v38 = vpop.f32.mrf.mxu3 }
 0x347   : > { %v10287_v33 = vpop.f32.mrf.mxu0  ;;  %v2147_v23 = vadd.f32 %v10301_v46, %v2146_v38 }
 0x349   : > { %v2516_v36 = vmax.f32 %v2147_v23, 0.0  ;;  %v495_v23 = vld [vmem:[%s8757_s27 + $0x870] sm:$0xff] }
 0x34a   : > { %7341 = vmatmul.msk.f32.gmra.mxu0 %vm519_vm1, %v328_v13  ;;  %7855 = vrot.lane.b32.xlu2 %v7854_v49, %s8704_s30  ;;  %v2511_v13 = vmax.f32 %v2132_v7, 0.0 }
 0x34b   : > { %7502 = vmatmul.msk.f32.gmra.mxu3 %vm519_vm1, %v489_v42  ;;  %v2514_v42 = vmax.f32 %v2141_v34, 0.0  ;;  %v496_v34 = vld [vmem:[%s8757_s27 + $0x878] sm:$0xff] }
 0x34e   : > { %v2149_v30 = vpop.f32.mrf.mxu3 }
 0x34f   : > { %v10294_v54 = vpop.f32.mrf.mxu0  ;;  %v2150_v21 = vadd.f32 %v10301_v46, %v2149_v30 }
 0x351   : > { %v2517_v58 = vmax.f32 %v2150_v21, 0.0 }
 0x352   : > { %7342 = vmatmul.msk.f32.gmra.mxu0 %vm519_vm1, %v329_v51  ;;  %7865 = vrot.lane.b32.xlu2 %v7864_v37, %s8704_s30  ;;  %v332_v51 = vld [vmem:[%s8757_s27 + $0x358] sm:$0xff]  ;;  %v2619_v37 = vmax.f32 %v2511_v13, %v2514_v42  ;;  %v1664_v42 = vadd.f32 %v10301_v46, %v10274_v44 }
 0x353   : > { %7503 = vmatmul.msk.f32.gmra.mxu3 %vm519_vm1, %v490_v48  ;;  %v493_v48 = vld [vmem:[%s8757_s27 + $0x860] sm:$0xff] }
 0x356   : > { %v2152_v31 = vpop.f32.mrf.mxu3 }
 0x357   : > { %v2153_v0 = vadd.f32 %v10301_v46, %v2152_v31  ;;  %v10312_v41 = vpop.f32.mrf.mxu0  ;;  %v494_v31 = vld [vmem:[%s8757_s27 + $0x868] sm:$0xff] }
 0x359   : > { %v2518_v10 = vmax.f32 %v2153_v0, 0.0  ;;  %v1658_v0 = vadd.f32 %v10301_v46, %v10245_v55 }
 0x35a   : > { %7343 = vmatmul.msk.f32.gmra.mxu0 %vm519_vm1, %v330_v6 }
 0x35b   : > { %v2689_v14 = vmax.f32 %v2515_v29, %v2518_v10  ;;  %7504 = vmatmul.msk.f32.gmra.mxu3 %vm519_vm1, %v491_v25  ;;  %v1667_v29 = vadd.f32 %v10301_v46, %v10287_v33  ;;  %v1670_v33 = vadd.f32 %v10301_v46, %v10294_v54 }
 0x35d   : > { %v2761_v63 = vmax.f32 %v2617_v52, %v2689_v14  ;;  %v334_v52 = vld [vmem:[%s8757_s27 + $0x368] sm:$0xff]  ;;  %v2356_v4 = vmax.f32 %v1667_v29, 0.0  ;;  %v2353_v14 = vmax.f32 %v1658_v0, 0.0  ;;  %v2357_v7 = vmax.f32 %v1670_v33, 0.0 }
 0x35e   : > { %v2155_v19 = vpop.f32.mrf.mxu3 }
 0x35f   : > { %2940 = vst.msk [vmem:[#allocation2 + $0x2a1] sm:$0xff] %vm2773_vm2, %v2761_v63  ;;  %v2156_v32 = vadd.f32 %v10301_v46, %v2155_v19  ;;  %v1675_v50 = vpop.f32.mrf.mxu0  ;;  %v2578_v55 = vmax.f32 %v2353_v14, %v2356_v4  ;;  %v1661_v19 = vadd.f32 %v10301_v46, %v10260_v16 }
 0x360   : > { %v1676_v6 = vadd.f32 %v10301_v46, %v1675_v50 }
 0x361   : > { %v2519_v18 = vmax.f32 %v2156_v32, 0.0 }
 0x362   : > { %7344 = vmatmul.msk.f32.gmra.mxu0 %vm519_vm1, %v331_v1  ;;  %v2359_v11 = vmax.f32 %v1676_v6, 0.0 }
 0x363   : > { %v2690_v38 = vmax.f32 %v2516_v36, %v2519_v18  ;;  %7505 = vmatmul.msk.f32.gmra.mxu3 %vm519_vm1, %v492_v59  ;;  %v335_v59 = vld [vmem:[%s8757_s27 + $0x370] sm:$0xff]  ;;  %v2354_v18 = vmax.f32 %v1661_v19, 0.0 }
 0x365   : > { %v2762_v49 = vmax.f32 %v2618_v3, %v2690_v38  ;;  %v2579_v16 = vmax.f32 %v2354_v18, %v2357_v7  ;;  %v1673_v38 = vadd.f32 %v10301_v46, %v10312_v41 }
 0x366   : > { %v2158_v39 = vpop.f32.mrf.mxu3 }
 0x367   : > { %2941 = vst.msk [vmem:[#allocation2 + $0x2a9] sm:$0xff] %vm2773_vm2, %v2762_v49  ;;  %v2159_v8 = vadd.f32 %v10301_v46, %v2158_v39  ;;  %v1678_v22 = vpop.f32.mrf.mxu0 }
 0x368   : > { %v1679_v36 = vadd.f32 %v10301_v46, %v1678_v22  ;;  %v336_v22 = vld [vmem:[%s8757_s27 + $0x378] sm:$0xff] }
 0x369   : > { %v2520_v26 = vmax.f32 %v2159_v8, 0.0 }
 0x36a   : > { %7345 = vmatmul.msk.f32.gmra.mxu0 %vm519_vm1, %v332_v51  ;;  %v2360_v54 = vmax.f32 %v1679_v36, 0.0  ;;  %v10380_v51 = vld [vmem:[#allocation2 + $0xf0] sm:$0xff] }
 0x36b   : > { %v2691_v30 = vmax.f32 %v2517_v58, %v2520_v26  ;;  %7506 = vmatmul.msk.f32.gmra.mxu3 %vm519_vm1, %v493_v48  ;;  %v497_v26 = vld [vmem:[%s8757_s27 + $0x880] sm:$0xff] }
 0x36d   : > { %v2763_v35 = vmax.f32 %v2619_v37, %v2691_v30  ;;  %v2358_v37 = vmax.f32 %v1673_v38, 0.0  ;;  %v2355_v30 = vmax.f32 %v1664_v42, 0.0 }
 0x36e   : > { %v10340_v24 = vpop.f32.mrf.mxu3 }
 0x36f   : > { %2942 = vst.msk [vmem:[#allocation2 + $0x2b1] sm:$0xff] %vm2773_vm2, %v2763_v35  ;;  %v1681_v57 = vpop.f32.mrf.mxu0 }
 0x370   : > { %v1682_v49 = vadd.f32 %v10301_v46, %v1681_v57 }
 0x372   : > { %7346 = vmatmul.msk.f32.gmra.mxu0 %vm519_vm1, %v333_v61  ;;  %v2361_v35 = vmax.f32 %v1682_v49, 0.0  ;;  %v2580_v61 = vmax.f32 %v2355_v30, %v2358_v37 }
 0x373   : > { %7507 = vmatmul.msk.f32.gmra.mxu3 %vm519_vm1, %v494_v31 }
 0x376   : > { %v10352_v25 = vpop.f32.mrf.mxu3 }
 0x377   : > { %v1684_v47 = vpop.f32.mrf.mxu0 }
 0x378   : > { %v1685_v10 = vadd.f32 %v10301_v46, %v1684_v47  ;;  %v337_v47 = vld [vmem:[%s8757_s27 + $0x380] sm:$0xff] }
 0x37a   : > { %v2362_v40 = vmax.f32 %v1685_v10, 0.0  ;;  %7347 = vmatmul.msk.f32.gmra.mxu0 %vm519_vm1, %v334_v52  ;;  %v498_v10 = vld [vmem:[%s8757_s27 + $0x888] sm:$0xff] }
 0x37b   : > { %7508 = vmatmul.msk.f32.gmra.mxu3 %vm519_vm1, %v495_v23 }
 0x37c   : > { %v2650_v63 = vmax.f32 %v2359_v11, %v2362_v40  ;;  %v7801_v11 = vpop.permute.xlu0 %7800 }
 0x37e   : > { %v2722_v32 = vmax.f32 %v2578_v55, %v2650_v63  ;;  %v10364_v50 = vpop.f32.mrf.mxu3  ;;  %v338_v55 = vld [vmem:[%s8757_s27 + $0x388] sm:$0xff]  ;;  %v7826_v63 = vpop.permute.xlu1 %7825 }
 0x37f   : > { %v1687_v1 = vpop.f32.mrf.mxu0  ;;  %v7827_v18 = vunpack.i.l.bf16 %v7826_v63  ;;  %v7828_v37 = vunpack.i.h.bf16 %v7826_v63 }
 0x380   : > { %2901 = vst.msk [vmem:[#allocation2 + $0x101] sm:$0xff] %vm2773_vm2, %v2722_v32  ;;  %v1688_v3 = vadd.f32 %v10301_v46, %v1687_v1 }
 0x382   : > { %v2363_v21 = vmax.f32 %v1688_v3, 0.0  ;;  %7348 = vmatmul.msk.f32.gmra.mxu0 %vm519_vm1, %v335_v59  ;;  %v499_v59 = vld [vmem:[%s8757_s27 + $0x890] sm:$0xff] }
 0x383   : > { %7509 = vmatmul.msk.f32.gmra.mxu3 %vm519_vm1, %v496_v34  ;;  %v7802_v34 = vunpack.i.l.bf16 %v7801_v11 }
 0x384   : > { %v2651_v13 = vmax.f32 %v2360_v54, %v2363_v21 }
 0x386   : > { %v2723_v39 = vmax.f32 %v2579_v16, %v2651_v13  ;;  %v10377_v58 = vpop.f32.mrf.mxu3  ;;  %v5347_v16 = vsel %vm2773_vm2, %v10084_v45, %v7802_v34 }
 0x387   : > { %v1690_v8 = vpop.f32.mrf.mxu0  ;;  %v10382_v48 = vld [vmem:[#allocation2 + $0x100] sm:$0xff]  ;;  %v5420_v13 = vsel %vm5401_vm4, %v5347_v16, %v7827_v18 }
 0x388   : > { %2902 = vst.msk [vmem:[#allocation2 + $0x109] sm:$0xff] %vm2773_vm2, %v2723_v39  ;;  %v1691_v41 = vadd.f32 %v10301_v46, %v1690_v8  ;;  %v7849_v44 = vpack.i.bf16 %v10382_v48, %v10380_v51  ;;  %v3048_v52 = vld [vmem:[#allocation2 + $0x101] sm:$0xff]  ;;  %v339_v39 = vld [vmem:[%s8757_s27 + $0x390] sm:$0xff]  ;;  %v500_v8 = vld [vmem:[%s8757_s27 + $0x898] sm:$0xff] }
 0x38a   : > { %v2364_v57 = vmax.f32 %v1691_v41, 0.0  ;;  %7349 = vmatmul.msk.f32.gmra.mxu0 %vm519_vm1, %v336_v22  ;;  %7850 = vrot.lane.b32.xlu1 %v7849_v44, %s8706_s7  ;;  %v7803_v22 = vunpack.i.h.bf16 %v7801_v11 }
 0x38b   : > { %7510 = vmatmul.msk.f32.gmra.mxu3 %vm519_vm1, %v497_v26 }
 0x38c   : > { %v2652_v31 = vmax.f32 %v2361_v35, %v2364_v57  ;;  %v5348_v45 = vsel %vm2773_vm2, %v10109_v17, %v7803_v22  ;;  %v340_v57 = vld [vmem:[%s8757_s27 + $0x398] sm:$0xff]  ;;  %v341_v17 = vld [vmem:[%s8757_s27 + $0x3a0] sm:$0xff] }
 0x38d   : > { %v5421_v44 = vsel %vm5401_vm4, %v5348_v45, %v7828_v37 }
 0x38e   : > { %v2724_v29 = vmax.f32 %v2580_v61, %v2652_v31  ;;  %v10392_v0 = vpop.f32.mrf.mxu3  ;;  %v501_v61 = vld [vmem:[%s8757_s27 + $0x8a0] sm:$0xff] }
 0x38f   : > { %v10394_v6 = vpop.f32.mrf.mxu0  ;;  %v3049_v4 = vld [vmem:[#allocation2 + $0x109] sm:$0xff] }
 0x390   : > { %2903 = vst.msk [vmem:[#allocation2 + $0x111] sm:$0xff] %vm2773_vm2, %v2724_v29  ;;  %v7869_v23 = vpack.i.bf16 %v3049_v4, %v3048_v52  ;;  %v10407_v33 = vld [vmem:[#allocation2 + $0x108] sm:$0xff]  ;;  %v2162_v52 = vadd.f32 %v10301_v46, %v10340_v24  ;;  %v2171_v4 = vadd.f32 %v10301_v46, %v10377_v58  ;;  %v2165_v24 = vadd.f32 %v10301_v46, %v10352_v25 }
 0x391   : > { %v3120_v32 = vld [vmem:[#allocation2 + $0x102] sm:$0xff] }
 0x392   : > { %7350 = vmatmul.msk.f32.gmra.mxu0 %vm519_vm1, %v337_v47  ;;  %7870 = vrot.lane.b32.xlu0 %v7869_v23, %s8704_s30  ;;  %v502_v47 = vld [vmem:[%s8757_s27 + $0x8a8] sm:$0xff]  ;;  %v2521_v23 = vmax.f32 %v2162_v52, 0.0  ;;  %v2524_v11 = vmax.f32 %v2171_v4, 0.0  ;;  %v505_v52 = vld [vmem:[%s8757_s27 + $0x8c0] sm:$0xff] }
 0x393   : > { %7511 = vmatmul.msk.f32.gmra.mxu3 %vm519_vm1, %v498_v10 }
 0x394   : > { %v10402_v14 = vpop.permute.xlu2 %7835  ;;  %v2620_v58 = vmax.f32 %v2521_v23, %v2524_v11 }
 0x396   : > { %v10404_v40 = vpop.f32.mrf.mxu3 }
 0x397   : > { %v10409_v19 = vpop.f32.mrf.mxu0  ;;  %v3191_v36 = vld [vmem:[#allocation2 + $0x110] sm:$0xff]  ;;  %v2177_v37 = vadd.f32 %v10301_v46, %v10404_v40 }
 0x398   : > { %v3121_v1 = vld [vmem:[#allocation2 + $0x10a] sm:$0xff]  ;;  %v7874_v7 = vpack.i.bf16 %v3191_v36, %v10407_v33 }
 0x399   : > { %v7879_v3 = vpack.i.bf16 %v3121_v1, %v3120_v32  ;;  %v342_v1 = vld [vmem:[%s8757_s27 + $0x3a8] sm:$0xff] }
 0x39a   : > { %7351 = vmatmul.msk.f32.gmra.mxu0 %vm519_vm1, %v338_v55  ;;  %7875 = vrot.lane.b32.xlu1 %v7874_v7, %s8706_s7  ;;  %v2174_v7 = vadd.f32 %v10301_v46, %v10392_v0  ;;  %v504_v0 = vld [vmem:[%s8757_s27 + $0x8b8] sm:$0xff] }
 0x39b   : > { %7512 = vmatmul.msk.f32.gmra.mxu3 %vm519_vm1, %v499_v59  ;;  %7880 = vrot.lane.b32.xlu0 %v7879_v3, %s8705_s6  ;;  %v503_v59 = vld [vmem:[%s8757_s27 + $0x8b0] sm:$0xff] }
 0x39c   : > { %v7841_v54 = vpop.permute.xlu2 %7840 }
 0x39d   : > { %v7842_v21 = vunpack.i.l.bf16 %v7841_v54  ;;  %v7843_v41 = vunpack.i.h.bf16 %v7841_v54  ;;  %v2522_v54 = vmax.f32 %v2165_v24, 0.0 }
 0x39e   : > { %v2179_v38 = vpop.f32.mrf.mxu3 }
 0x39f   : > { %v10420_v42 = vpop.f32.mrf.mxu0  ;;  %v5493_v49 = vsel %vm5474_vm5, %v5420_v13, %v7842_v21  ;;  %v5494_v35 = vsel %vm5474_vm5, %v5421_v44, %v7843_v41  ;;  %v2180_v10 = vadd.f32 %v10301_v46, %v2179_v38  ;;  %v2525_v21 = vmax.f32 %v2174_v7, 0.0 }
 0x3a0   : > { %6089 = vmatmul.f32.gmra.mxu1 %v5493_v49 }
 0x3a1   : > { %v2527_v63 = vmax.f32 %v2180_v10, 0.0  ;;  %v2621_v22 = vmax.f32 %v2522_v54, %v2525_v21  ;;  %v507_v54 = vld [vmem:[%s8757_s27 + $0x8d0] sm:$0xff] }
 0x3a2   : > { %7352 = vmatmul.msk.f32.gmra.mxu0 %vm519_vm1, %v339_v39  ;;  %v343_v39 = vld [vmem:[%s8757_s27 + $0x3b0] sm:$0xff] }
 0x3a3   : > { %7513 = vmatmul.msk.f32.gmra.mxu3 %vm519_vm1, %v500_v8  ;;  %v2168_v8 = vadd.f32 %v10301_v46, %v10364_v50 }
 0x3a5   : > { %v2523_v44 = vmax.f32 %v2168_v8, 0.0 }
 0x3a6   : > { %v2182_v26 = vpop.f32.mrf.mxu3 }
 0x3a7   : > { %v10430_v30 = vpop.f32.mrf.mxu0  ;;  %v2183_v34 = vadd.f32 %v10301_v46, %v2182_v26 }
 0x3a8   : > { %6092 = vmatmul.f32.gmra.mxu1 %v5494_v35  ;;  %v2526_v35 = vmax.f32 %v2177_v37, 0.0 }
 0x3a9   : > { %v2528_v13 = vmax.f32 %v2183_v34, 0.0 }
 0x3aa   : > { %7353 = vmatmul.msk.f32.gmra.mxu0 %vm519_vm1, %v340_v57  ;;  %v2622_v4 = vmax.f32 %v2523_v44, %v2526_v35 }
 0x3ab   : > { %7514 = vmatmul.msk.f32.gmra.mxu3 %vm519_vm1, %v501_v61 }
 0x3ae   : > { %v2185_v31 = vpop.f32.mrf.mxu3 }
 0x3af   : > { %v10437_v29 = vpop.f32.mrf.mxu0  ;;  %v2186_v45 = vadd.f32 %v10301_v46, %v2185_v31 }
 0x3b1   : > { %v2529_v50 = vmax.f32 %v2186_v45, 0.0  ;;  %v508_v45 = vld [vmem:[%s8757_s27 + $0x8d8] sm:$0xff] }
 0x3b2   : > { %7354 = vmatmul.msk.f32.gmra.mxu0 %vm519_vm1, %v341_v17 }
 0x3b3   : > { %7515 = vmatmul.msk.f32.gmra.mxu3 %vm519_vm1, %v502_v47  ;;  %v344_v47 = vld [vmem:[%s8757_s27 + $0x3b8] sm:$0xff] }
 0x3b6   : > { %v2188_v55 = vpop.f32.mrf.mxu3 }
 0x3b7   : > { %v2189_v36 = vadd.f32 %v10301_v46, %v2188_v55  ;;  %v10449_v32 = vpop.f32.mrf.mxu0 }
 0x3b8   : > { %v1709_v35 = vadd.f32 %v10301_v46, %v10449_v32 }
 0x3b9   : > { %v2530_v3 = vmax.f32 %v2189_v36, 0.0  ;;  %v506_v36 = vld [vmem:[%s8757_s27 + $0x8c8] sm:$0xff] }
 0x3ba   : > { %7355 = vmatmul.msk.f32.gmra.mxu0 %vm519_vm1, %v342_v1  ;;  %v1703_v1 = vadd.f32 %v10301_v46, %v10430_v30  ;;  %v1706_v30 = vadd.f32 %v10301_v46, %v10437_v29 }
 0x3bb   : > { %v2692_v18 = vmax.f32 %v2527_v63, %v2530_v3  ;;  %7516 = vmatmul.msk.f32.gmra.mxu3 %vm519_vm1, %v503_v59  ;;  %v345_v63 = vld [vmem:[%s8757_s27 + $0x3c0] sm:$0xff]  ;;  %v1694_v59 = vadd.f32 %v10301_v46, %v10394_v6  ;;  %v346_v3 = vld [vmem:[%s8757_s27 + $0x3c8] sm:$0xff] }
 0x3bc   : > { %v2368_v34 = vmax.f32 %v1703_v1, 0.0  ;;  %v2369_v37 = vmax.f32 %v1706_v30, 0.0  ;;  %v510_v30 = vld [vmem:[%s8757_s27 + $0x8e8] sm:$0xff] }
 0x3bd   : > { %v2764_v16 = vmax.f32 %v2620_v58, %v2692_v18  ;;  %v2365_v21 = vmax.f32 %v1694_v59, 0.0 }
 0x3be   : > { %v2191_v38 = vpop.f32.mrf.mxu3 }
 0x3bf   : > { %2943 = vst.msk [vmem:[#allocation2 + $0x2c1] sm:$0xff] %vm2773_vm2, %v2764_v16  ;;  %v2192_v25 = vadd.f32 %v10301_v46, %v2191_v38  ;;  %v1711_v49 = vpop.f32.mrf.mxu0  ;;  %v2581_v6 = vmax.f32 %v2365_v21, %v2368_v34  ;;  %v349_v34 = vld [vmem:[%s8757_s27 + $0x3e0] sm:$0xff] }
 0x3c0   : > { %v1712_v24 = vadd.f32 %v10301_v46, %v1711_v49 }
 0x3c1   : > { %v2531_v41 = vmax.f32 %v2192_v25, 0.0  ;;  %v1697_v25 = vadd.f32 %v10301_v46, %v10409_v19 }
 0x3c2   : > { %7356 = vmatmul.msk.f32.gmra.mxu0 %vm519_vm1, %v343_v39  ;;  %v2371_v16 = vmax.f32 %v1712_v24, 0.0 }
 0x3c3   : > { %v2693_v26 = vmax.f32 %v2528_v13, %v2531_v41  ;;  %7517 = vmatmul.msk.f32.gmra.mxu3 %vm519_vm1, %v504_v0 }
 0x3c5   : > { %v2765_v57 = vmax.f32 %v2621_v22, %v2693_v26  ;;  %v347_v22 = vld [vmem:[%s8757_s27 + $0x3d0] sm:$0xff]  ;;  %v2366_v26 = vmax.f32 %v1697_v25, 0.0 }
 0x3c6   : > { %v2194_v61 = vpop.f32.mrf.mxu3 }
 0x3c7   : > { %2944 = vst.msk [vmem:[#allocation2 + $0x2c9] sm:$0xff] %vm2773_vm2, %v2765_v57  ;;  %v2195_v17 = vadd.f32 %v10301_v46, %v2194_v61  ;;  %v1714_v40 = vpop.f32.mrf.mxu0  ;;  %v2582_v19 = vmax.f32 %v2366_v26, %v2369_v37  ;;  %v10511_v61 = vpop.permute.xlu0 %7805 }
 0x3c8   : > { %v1715_v49 = vadd.f32 %v10301_v46, %v1714_v40 }
 0x3c9   : > { %v2532_v10 = vmax.f32 %v2195_v17, 0.0 }
 0x3ca   : > { %7357 = vmatmul.msk.f32.gmra.mxu0 %vm519_vm1, %v344_v47  ;;  %v2372_v29 = vmax.f32 %v1715_v49, 0.0  ;;  %v7831_v49 = vpop.permute.xlu1 %7830 }
 0x3cb   : > { %v2694_v31 = vmax.f32 %v2529_v50, %v2532_v10  ;;  %7518 = vmatmul.msk.f32.gmra.mxu3 %vm519_vm1, %v505_v52  ;;  %v1700_v50 = vadd.f32 %v10301_v46, %v10420_v42  ;;  %v3050_v10 = vld [vmem:[#allocation2 + $0x111] sm:$0xff] }
 0x3cd   : > { %v2766_v23 = vmax.f32 %v2622_v4, %v2694_v31  ;;  %v348_v4 = vld [vmem:[%s8757_s27 + $0x3d8] sm:$0xff]  ;;  %v2367_v1 = vmax.f32 %v1700_v50, 0.0 }
 0x3ce   : > { %v10477_v11 = vpop.f32.mrf.mxu3 }
 0x3cf   : > { %2945 = vst.msk [vmem:[#allocation2 + $0x2d1] sm:$0xff] %vm2773_vm2, %v2766_v23  ;;  %v1717_v55 = vpop.f32.mrf.mxu0  ;;  %v2370_v23 = vmax.f32 %v1709_v35, 0.0 }
 0x3d0   : > { %v1718_v17 = vadd.f32 %v10301_v46, %v1717_v55 }
 0x3d1   : > { %v2583_v55 = vmax.f32 %v2367_v1, %v2370_v23 }
 0x3d2   : > { %7358 = vmatmul.msk.f32.gmra.mxu0 %vm519_vm1, %v345_v63  ;;  %v509_v63 = vld [vmem:[%s8757_s27 + $0x8e0] sm:$0xff]  ;;  %v2373_v59 = vmax.f32 %v1718_v17, 0.0 }
 0x3d3   : > { %7519 = vmatmul.msk.f32.gmra.mxu3 %vm519_vm1, %v506_v36 }
 0x3d6   : > { %v10489_v58 = vpop.f32.mrf.mxu3 }
 0x3d7   : > { %v1720_v7 = vpop.f32.mrf.mxu0 }
 0x3d8   : > { %v1721_v18 = vadd.f32 %v10301_v46, %v1720_v7 }
 0x3da   : > { %v2374_v38 = vmax.f32 %v1721_v18, 0.0  ;;  %7359 = vmatmul.msk.f32.gmra.mxu0 %vm519_vm1, %v346_v3  ;;  %v3122_v18 = vld [vmem:[#allocation2 + $0x112] sm:$0xff] }
 0x3db   : > { %7520 = vmatmul.msk.f32.gmra.mxu3 %vm519_vm1, %v507_v54  ;;  %v10528_v54 = vpop.permute.xlu0 %7815 }
 0x3dc   : > { %v2653_v13 = vmax.f32 %v2371_v16, %v2374_v38 }
 0x3de   : > { %v2725_v39 = vmax.f32 %v2581_v6, %v2653_v13  ;;  %v10501_v0 = vpop.f32.mrf.mxu3 }
 0x3df   : > { %v1723_v8 = vpop.f32.mrf.mxu0 }
 0x3e0   : > { %2904 = vst.msk [vmem:[#allocation2 + $0x121] sm:$0xff] %vm2773_vm2, %v2725_v39  ;;  %v1724_v41 = vadd.f32 %v10301_v46, %v1723_v8  ;;  %v3084_v39 = vld [vmem:[#allocation2 + $0x281] sm:$0xff]  ;;  %v3085_v8 = vld [vmem:[#allocation2 + $0x289] sm:$0xff] }
 0x3e2   : > { %v2375_v44 = vmax.f32 %v1724_v41, 0.0  ;;  %7360 = vmatmul.msk.f32.gmra.mxu0 %vm519_vm1, %v347_v22 }
 0x3e3   : > { %7521 = vmatmul.msk.f32.gmra.mxu3 %vm519_vm1, %v508_v45  ;;  %v7846_v37 = vpop.permute.xlu0 %7845  ;;  %v350_v45 = vld [vmem:[%s8757_s27 + $0x3e8] sm:$0xff] }
 0x3e4   : > { %v2654_v57 = vmax.f32 %v2372_v29, %v2375_v44  ;;  %v511_v44 = vld [vmem:[%s8757_s27 + $0x8f0] sm:$0xff]  ;;  %v7847_v50 = vunpack.i.l.bf16 %v7846_v37 }
 0x3e6   : > { %v2726_v40 = vmax.f32 %v2582_v19, %v2654_v57  ;;  %v10516_v47 = vpop.f32.mrf.mxu3  ;;  %v7894_v19 = vpack.i.bf16 %v3085_v8, %v3084_v39  ;;  %v7832_v57 = vunpack.i.l.bf16 %v7831_v49 }
 0x3e7   : > { %v1726_v52 = vpop.f32.mrf.mxu0  ;;  %v3051_v31 = vld [vmem:[#allocation2 + $0x121] sm:$0xff] }
 0x3e8   : > { %2905 = vst.msk [vmem:[#allocation2 + $0x129] sm:$0xff] %vm2773_vm2, %v2726_v40  ;;  %v1727_v32 = vadd.f32 %v10301_v46, %v1726_v52  ;;  %v7884_v36 = vpack.i.bf16 %v3051_v31, %v3050_v10  ;;  %v10532_v16 = vld [vmem:[#allocation2 + $0x120] sm:$0xff]  ;;  %v2972_v40 = vld [vmem:[#allocation2 + $0xd0] sm:$0xff] }
 0x3e9   : > { %v3086_v10 = vld [vmem:[#allocation2 + $0x291] sm:$0xff]  ;;  %v3087_v31 = vld [vmem:[#allocation2 + $0x2a1] sm:$0xff] }
 0x3ea   : > { %v2376_v42 = vmax.f32 %v1727_v32, 0.0  ;;  %7361 = vmatmul.msk.f32.gmra.mxu0 %vm519_vm1, %v348_v4  ;;  %7885 = vrot.lane.b32.xlu1 %v7884_v36, %s8704_s30  ;;  %v5349_v4 = vsel %vm2773_vm2, %v2972_v40, %v7832_v57  ;;  %v7838_v40 = vunpack.i.h.bf16 %v10402_v14 }
 0x3eb   : > { %7522 = vmatmul.msk.f32.gmra.mxu3 %vm519_vm1, %v509_v63  ;;  %v5422_v32 = vsel %vm5401_vm4, %v5349_v4, %v7847_v50  ;;  %v7861_v39 = vpop.permute.xlu0 %7860  ;;  %v2207_v4 = vadd.f32 %v10301_v46, %v10516_v47  ;;  %v2201_v47 = vadd.f32 %v10301_v46, %v10489_v58  ;;  %v2204_v58 = vadd.f32 %v10301_v46, %v10501_v0 }
 0x3ec   : > { %v2655_v24 = vmax.f32 %v2373_v59, %v2376_v42  ;;  %v351_v42 = vld [vmem:[%s8757_s27 + $0x3f0] sm:$0xff] }
 0x3ee   : > { %v2727_v7 = vmax.f32 %v2583_v55, %v2655_v24  ;;  %v10525_v3 = vpop.f32.mrf.mxu3  ;;  %v512_v55 = vld [vmem:[%s8757_s27 + $0x8f8] sm:$0xff]  ;;  %v7929_v24 = vpack.i.bf16 %v3087_v31, %v3086_v10  ;;  %v7863_v10 = vunpack.i.h.bf16 %v7861_v39 }
 0x3ef   : > { %v10530_v21 = vpop.f32.mrf.mxu0  ;;  %v10534_v38 = vld [vmem:[#allocation2 + $0x128] sm:$0xff] }
 0x3f0   : > { %v3123_v6 = vld [vmem:[#allocation2 + $0x122] sm:$0xff]  ;;  %2906 = vst.msk [vmem:[#allocation2 + $0x131] sm:$0xff] %vm2773_vm2, %v2727_v7  ;;  %v7889_v13 = vpack.i.bf16 %v10534_v38, %v10532_v16  ;;  %v7833_v7 = vunpack.i.h.bf16 %v7831_v49 }
 0x3f1   : > { %v7899_v25 = vpack.i.bf16 %v3123_v6, %v3122_v18  ;;  %v3052_v26 = vld [vmem:[#allocation2 + $0x129] sm:$0xff]  ;;  %v7848_v18 = vunpack.i.h.bf16 %v7846_v37  ;;  %v352_v37 = vld [vmem:[%s8757_s27 + $0x3f8] sm:$0xff] }
 0x3f2   : > { %7362 = vmatmul.msk.f32.gmra.mxu0 %vm519_vm1, %v349_v34  ;;  %7890 = vrot.lane.b32.xlu1 %v7889_v13, %s8706_s7 }
 0x3f3   : > { %7523 = vmatmul.msk.f32.gmra.mxu3 %vm519_vm1, %v510_v30  ;;  %7900 = vrot.lane.b32.xlu2 %v7899_v25, %s8705_s6  ;;  %v5350_v30 = vsel %vm2773_vm2, %v10278_v12, %v7833_v7  ;;  %v2210_v7 = vadd.f32 %v10301_v46, %v10525_v3 }
 0x3f4   : > { %v5423_v25 = vsel %vm5401_vm4, %v5350_v30, %v7848_v18 }
 0x3f5   : > { %v2537_v30 = vmax.f32 %v2210_v7, 0.0 }
 0x3f6   : > { %v10544_v22 = vpop.f32.mrf.mxu3 }
 0x3f7   : > { %v10546_v41 = vpop.f32.mrf.mxu0  ;;  %v3053_v29 = vld [vmem:[#allocation2 + $0x131] sm:$0xff]  ;;  %v2213_v3 = vadd.f32 %v10301_v46, %v10544_v22 }
 0x3f8   : > { %v7904_v35 = vpack.i.bf16 %v3053_v29, %v3052_v26  ;;  %v3124_v63 = vld [vmem:[#allocation2 + $0x12a] sm:$0xff]  ;;  %v3125_v36 = vld [vmem:[#allocation2 + $0x132] sm:$0xff]  ;;  %v7837_v26 = vunpack.i.l.bf16 %v10402_v14  ;;  %v7862_v29 = vunpack.i.l.bf16 %v7861_v39 }
 0x3f9   : > { %v7909_v34 = vpack.i.bf16 %v3125_v36, %v3124_v63  ;;  %v2536_v63 = vmax.f32 %v2207_v4, 0.0  ;;  %v5352_v36 = vsel %vm2773_vm2, %v10380_v51, %v7838_v40 }
 0x3fa   : > { %7363 = vmatmul.msk.f32.gmra.mxu0 %vm519_vm1, %v350_v45  ;;  %7895 = vrot.lane.b32.xlu1 %v7894_v19, %s8704_s30  ;;  %v5798_v45 = vld [vmem:[%s12151_s3 + $0x118] sm:$0xff]  ;;  %v5351_v19 = vsel %vm2773_vm2, %v10270_v28, %v7837_v26 }
 0x3fb   : > { %7524 = vmatmul.msk.f32.gmra.mxu3 %vm519_vm1, %v511_v44  ;;  %7905 = vrot.lane.b32.xlu2 %v7904_v35, %s8704_s30  ;;  %v5424_v57 = vsel %vm5401_vm4, %v5351_v19, %v7862_v29  ;;  %v2538_v19 = vmax.f32 %v2213_v3, 0.0 }
 0x3fc   : > { %v7851_v17 = vpop.permute.xlu1 %7850  ;;  %6497 = vmatpush.msrb.mxu1 %v5798_v45 }
 0x3fd   : > { %v7852_v52 = vunpack.i.l.bf16 %v7851_v17  ;;  %v7853_v6 = vunpack.i.h.bf16 %v7851_v17 }
 0x3fe   : > { %v2215_v23 = vpop.f32.mrf.mxu3 }
 0x3ff   : > { %v10556_v1 = vpop.f32.mrf.mxu0  ;;  %v5495_v59 = vsel %vm5474_vm5, %v5422_v32, %v7852_v52  ;;  %v5496_v49 = vsel %vm5474_vm5, %v5423_v25, %v7853_v6  ;;  %v2198_v52 = vadd.f32 %v10301_v46, %v10477_v11  ;;  %v2216_v31 = vadd.f32 %v10301_v46, %v2215_v23 }
 0x400   : > { %6095 = vmatmul.f32.gmra.mxu1 %v5495_v59  ;;  %v2534_v6 = vmax.f32 %v2201_v47, 0.0 }
 0x401   : > { %v2533_v32 = vmax.f32 %v2198_v52, 0.0 }
 0x402   : > { %7364 = vmatmul.msk.f32.gmra.mxu0 %vm519_vm1, %v351_v42  ;;  %7930 = vrot.lane.b32.xlu1 %v7929_v24, %s8704_s30  ;;  %v5425_v42 = vsel %vm5401_vm4, %v5352_v36, %v7863_v10  ;;  %v2624_v26 = vmax.f32 %v2534_v6, %v2537_v30 }
 0x403   : > { %7525 = vmatmul.msk.f32.gmra.mxu3 %vm519_vm1, %v512_v55  ;;  %7910 = vrot.lane.b32.xlu2 %v7909_v34, %s8705_s6  ;;  %v2539_v55 = vmax.f32 %v2216_v31, 0.0  ;;  %v2623_v23 = vmax.f32 %v2533_v32, %v2536_v63  ;;  %v1730_v63 = vadd.f32 %v10301_v46, %v10530_v21 }
 0x406   : > { %v2218_v13 = vpop.f32.mrf.mxu3 }
 0x407   : > { %v10568_v8 = vpop.f32.mrf.mxu0  ;;  %v2219_v51 = vadd.f32 %v10301_v46, %v2218_v13 }
 0x408   : > { %6098 = vmatmul.f32.gmra.mxu1 %v5496_v49 }
 0x409   : > { %v2540_v49 = vmax.f32 %v2219_v51, 0.0 }
 0x40a   : > { %7365 = vmatmul.msk.f32.gmra.mxu0 %vm519_vm1, %v352_v37 }
 0x40c   : > { %v7876_v12 = vpop.permute.xlu1 %7875 }
 0x40d   : > { %v7877_v44 = vunpack.i.l.bf16 %v7876_v12  ;;  %v7878_v28 = vunpack.i.h.bf16 %v7876_v12 }
 0x40e   : > { %v2221_v35 = vpop.f32.mrf.mxu3 }
 0x40f   : > { %v10580_v50 = vpop.f32.mrf.mxu0  ;;  %v5497_v17 = vsel %vm5474_vm5, %v5424_v57, %v7877_v44  ;;  %v5498_v11 = vsel %vm5474_vm5, %v5425_v42, %v7878_v28  ;;  %v2222_v13 = vadd.f32 %v10301_v46, %v2221_v35  ;;  %v2535_v44 = vmax.f32 %v2204_v58, 0.0 }
 0x410   : > { %6101 = vmatmul.f32.gmra.mxu1 %v5497_v17  ;;  %v1739_v35 = vadd.f32 %v10301_v46, %v10568_v8  ;;  %v1733_v8 = vadd.f32 %v10301_v46, %v10546_v41  ;;  %v1736_v41 = vadd.f32 %v10301_v46, %v10556_v1 }
 0x411   : > { %v2541_v40 = vmax.f32 %v2222_v13, 0.0  ;;  %v2625_v10 = vmax.f32 %v2535_v44, %v2538_v19  ;;  %v10635_v44 = vld [vmem:[#allocation2 + $0x130] sm:$0xff] }
 0x416   : > { %v2224_v59 = vpop.f32.mrf.mxu3 }
 0x417   : > { %v2225_v14 = vadd.f32 %v10301_v46, %v2224_v59  ;;  %v10593_v24 = vpop.f32.mrf.mxu0 }
 0x418   : > { %6104 = vmatmul.f32.gmra.mxu1 %v5498_v11  ;;  %v2377_v11 = vmax.f32 %v1730_v63, 0.0 }
 0x419   : > { %v2542_v34 = vmax.f32 %v2225_v14, 0.0 }
 0x41b   : > { %v2695_v18 = vmax.f32 %v2539_v55, %v2542_v34  ;;  %v2380_v55 = vmax.f32 %v1739_v35, 0.0  ;;  %v1742_v34 = vadd.f32 %v10301_v46, %v10580_v50  ;;  %v1745_v50 = vadd.f32 %v10301_v46, %v10593_v24 }
 0x41d   : > { %v2767_v25 = vmax.f32 %v2623_v23, %v2695_v18  ;;  %v2584_v7 = vmax.f32 %v2377_v11, %v2380_v55 }
 0x41e   : > { %v2227_v39 = vpop.f32.mrf.mxu3 }
 0x41f   : > { %2946 = vst.msk [vmem:[#allocation2 + $0x2e1] sm:$0xff] %vm2773_vm2, %v2767_v25  ;;  %v2228_v37 = vadd.f32 %v10301_v46, %v2227_v39  ;;  %v1747_v45 = vpop.f32.mrf.mxu0  ;;  %v2381_v25 = vmax.f32 %v1742_v34, 0.0 }
 0x420   : > { %v1748_v36 = vadd.f32 %v10301_v46, %v1747_v45 }
 0x421   : > { %v2543_v29 = vmax.f32 %v2228_v37, 0.0 }
 0x422   : > { %v2383_v47 = vmax.f32 %v1748_v36, 0.0 }
 0x423   : > { %v2696_v12 = vmax.f32 %v2540_v49, %v2543_v29  ;;  %v2378_v49 = vmax.f32 %v1733_v8, 0.0 }
 0x425   : > { %v2768_v57 = vmax.f32 %v2624_v26, %v2696_v12  ;;  %v2585_v58 = vmax.f32 %v2378_v49, %v2381_v25 }
 0x426   : > { %v2230_v17 = vpop.f32.mrf.mxu3 }
 0x427   : > { %2947 = vst.msk [vmem:[#allocation2 + $0x2e9] sm:$0xff] %vm2773_vm2, %v2768_v57  ;;  %v2231_v52 = vadd.f32 %v10301_v46, %v2230_v17  ;;  %v1750_v4 = vpop.f32.mrf.mxu0  ;;  %v2382_v57 = vmax.f32 %v1745_v50, 0.0 }
 0x428   : > { %v1751_v21 = vadd.f32 %v10301_v46, %v1750_v4 }
 0x429   : > { %v2544_v0 = vmax.f32 %v2231_v52, 0.0 }
 0x42a   : > { %v2384_v37 = vmax.f32 %v1751_v21, 0.0 }
 0x42b   : > { %v2697_v31 = vmax.f32 %v2541_v40, %v2544_v0  ;;  %v2379_v40 = vmax.f32 %v1736_v41, 0.0 }
 0x42d   : > { %v2769_v28 = vmax.f32 %v2625_v10, %v2697_v31  ;;  %v2586_v4 = vmax.f32 %v2379_v40, %v2382_v57 }
 0x42e   : > { %v10610_v32 = vpop.f32.mrf.mxu3 }
 0x42f   : > { %2948 = vst.msk [vmem:[#allocation2 + $0x2f1] sm:$0xff] %vm2773_vm2, %v2769_v28  ;;  %v1753_v22 = vpop.f32.mrf.mxu0 }
 0x430   : > { %v1754_v3 = vadd.f32 %v10301_v46, %v1753_v22 }
 0x432   : > { %v2385_v52 = vmax.f32 %v1754_v3, 0.0 }
 0x436   : > { %v10618_v59 = vpop.f32.mrf.mxu3 }
 0x437   : > { %v1756_v42 = vpop.f32.mrf.mxu0 }
 0x438   : > { %v1757_v14 = vadd.f32 %v10301_v46, %v1756_v42 }
 0x43a   : > { %v2386_v23 = vmax.f32 %v1757_v14, 0.0 }
 0x43c   : > { %v2656_v51 = vmax.f32 %v2383_v47, %v2386_v23 }
 0x43e   : > { %v2728_v18 = vmax.f32 %v2584_v7, %v2656_v51  ;;  %v10626_v6 = vpop.f32.mrf.mxu3 }
 0x43f   : > { %v1759_v30 = vpop.f32.mrf.mxu0 }
 0x440   : > { %2907 = vst.msk [vmem:[#allocation2 + $0x141] sm:$0xff] %vm2773_vm2, %v2728_v18  ;;  %v1760_v39 = vadd.f32 %v10301_v46, %v1759_v30 }
 0x442   : > { %v2387_v45 = vmax.f32 %v1760_v39, 0.0 }
 0x444   : > { %v2657_v26 = vmax.f32 %v2384_v37, %v2387_v45  ;;  %v10664_v37 = vpop.f32.mrf.mxu1 }
 0x446   : > { %v2729_v29 = vmax.f32 %v2585_v58, %v2657_v26  ;;  %v2242_v13 = vpop.f32.mrf.mxu3 }
 0x447   : > { %v1762_v12 = vpop.f32.mrf.mxu0  ;;  %v10637_v19 = vld [vmem:[#allocation2 + $0x140] sm:$0xff] }
 0x448   : > { %2908 = vst.msk [vmem:[#allocation2 + $0x149] sm:$0xff] %vm2773_vm2, %v2729_v29  ;;  %v1763_v17 = vadd.f32 %v10301_v46, %v1762_v12  ;;  %v7914_v24 = vpack.i.bf16 %v10637_v19, %v10635_v44  ;;  %v3054_v22 = vld [vmem:[#allocation2 + $0x141] sm:$0xff]  ;;  %v7871_v46 = vpop.permute.xlu0 %7870 }
 0x449   : > { %v7872_v18 = vunpack.i.l.bf16 %v7871_v46  ;;  %v7873_v41 = vunpack.i.h.bf16 %v7871_v46 }
 0x44a   : > { %v2388_v1 = vmax.f32 %v1763_v17, 0.0  ;;  %7915 = vrot.lane.b32.xlu0 %v7914_v24, %s8706_s7 }
 0x44b   : > { %v5353_v49 = vsel %vm2773_vm2, %v10382_v48, %v7872_v18  ;;  %v5354_v12 = vsel %vm2773_vm2, %v10407_v33, %v7873_v41 }
 0x44c   : > { %v2658_v10 = vmax.f32 %v2385_v52, %v2388_v1  ;;  %v10672_v40 = vpop.f32.mrf.mxu1  ;;  %v5797_v52 = vld [vmem:[%s12151_s3 + $0x110] sm:$0xff]  ;;  %v10680_v1 = vld [vmem:[%s12150_s2] ss:$0 sm:$0xff] }
 0x44d   : > { %v2234_v33 = vadd.f32 %v10680_v1, %v10610_v32  ;;  %6498 = vmatpush.msrb.mxu1 %v5797_v52  ;;  %v1793_v41 = vadd.f32 %v10680_v1, %v8873_v60  ;;  %v2240_v60 = vadd.f32 %v10680_v1, %v10626_v6  ;;  %v1796_v6 = vadd.f32 %v10680_v1, %v8883_v2 }
 0x44e   : > { %v2730_v0 = vmax.f32 %v2586_v4, %v2658_v10  ;;  %v2245_v31 = vpop.f32.mrf.mxu3  ;;  %v2243_v4 = vadd.f32 %v10680_v1, %v2242_v13 }
 0x44f   : > { %v10644_v28 = vpop.f32.mrf.mxu0  ;;  %v3055_v35 = vld [vmem:[#allocation2 + $0x149] sm:$0xff]  ;;  %v2246_v13 = vadd.f32 %v10680_v1, %v2245_v31  ;;  %v2398_v52 = vmax.f32 %v1793_v41, 0.0 }
 0x450   : > { %2909 = vst.msk [vmem:[#allocation2 + $0x151] sm:$0xff] %vm2773_vm2, %v2730_v0  ;;  %v7919_v63 = vpack.i.bf16 %v3055_v35, %v3054_v22  ;;  %v3126_v42 = vld [vmem:[#allocation2 + $0x142] sm:$0xff]  ;;  %v7881_v8 = vpop.permute.xlu0 %7880  ;;  %v2545_v0 = vmax.f32 %v2234_v33, 0.0  ;;  %v2548_v22 = vmax.f32 %v2243_v4, 0.0 }
 0x451   : > { %v10652_v11 = vld [vmem:[#allocation2 + $0x148] sm:$0xff]  ;;  %v7882_v30 = vunpack.i.l.bf16 %v7881_v8  ;;  %v7883_v3 = vunpack.i.h.bf16 %v7881_v8 }
 0x452   : > { %7920 = vrot.lane.b32.xlu0 %v7919_v63, %s8704_s30  ;;  %v2626_v32 = vmax.f32 %v2545_v0, %v2548_v22 }
 0x453   : > { %v5426_v58 = vsel %vm5401_vm4, %v5353_v49, %v7882_v30  ;;  %v5427_v17 = vsel %vm5401_vm4, %v5354_v12, %v7883_v3 }
 0x456   : > { %v10648_v36 = vpop.f32.mrf.mxu3 }
 0x457   : > { %v10650_v55 = vpop.f32.mrf.mxu0  ;;  %v3127_v14 = vld [vmem:[#allocation2 + $0x14a] sm:$0xff] }
 0x458   : > { %v10654_v47 = vld [vmem:[#allocation2 + $0x150] sm:$0xff]  ;;  %v7934_v23 = vpack.i.bf16 %v3127_v14, %v3126_v42 }
 0x459   : > { %v7924_v7 = vpack.i.bf16 %v10654_v47, %v10652_v11  ;;  %v3056_v41 = vld [vmem:[#allocation2 + $0x151] sm:$0xff] }
 0x45a   : > { %7935 = vrot.lane.b32.xlu2 %v7934_v23, %s8705_s6 }
 0x45b   : > { %7925 = vrot.lane.b32.xlu0 %v7924_v7, %s8706_s7  ;;  %v2237_v7 = vadd.f32 %v10680_v1, %v10618_v59  ;;  %v1766_v59 = vadd.f32 %v10680_v1, %v10644_v28  ;;  %v2249_v28 = vadd.f32 %v10680_v1, %v10648_v36  ;;  %v1769_v36 = vadd.f32 %v10680_v1, %v10650_v55 }
 0x45c   : > { %v10660_v34 = vpop.permute.xlu1 %7885 }
 0x45d   : > { %v2546_v49 = vmax.f32 %v2237_v7, 0.0  ;;  %v2389_v33 = vmax.f32 %v1766_v59, 0.0 }
 0x45e   : > { %v2251_v51 = vpop.f32.mrf.mxu3 }
 0x45f   : > { %v1771_v21 = vpop.f32.mrf.mxu0  ;;  %v2252_v10 = vadd.f32 %v10680_v1, %v2251_v51 }
 0x460   : > { %v1772_v35 = vadd.f32 %v10680_v1, %v1771_v21 }
 0x461   : > { %v2551_v46 = vmax.f32 %v2252_v10, 0.0 }
 0x462   : > { %v2391_v18 = vmax.f32 %v1772_v35, 0.0 }
 0x464   : > { %v7891_v25 = vpop.permute.xlu1 %7890 }
 0x465   : > { %v7892_v39 = vunpack.i.l.bf16 %v7891_v25  ;;  %v7893_v29 = vunpack.i.h.bf16 %v7891_v25 }
 0x466   : > { %v2254_v45 = vpop.f32.mrf.mxu3 }
 0x467   : > { %v1774_v50 = vpop.f32.mrf.mxu0  ;;  %v5499_v26 = vsel %vm5474_vm5, %v5426_v58, %v7892_v39  ;;  %v5500_v48 = vsel %vm5474_vm5, %v5427_v17, %v7893_v29  ;;  %v2255_v30 = vadd.f32 %v10680_v1, %v2254_v45  ;;  %v2549_v58 = vmax.f32 %v2246_v13, 0.0 }
 0x468   : > { %6107 = vmatmul.f32.gmra.mxu1 %v5499_v26  ;;  %v1775_v21 = vadd.f32 %v10680_v1, %v1774_v50 }
 0x469   : > { %v2552_v29 = vmax.f32 %v2255_v30, 0.0  ;;  %v2399_v30 = vmax.f32 %v1796_v6, 0.0 }
 0x46a   : > { %v2392_v50 = vmax.f32 %v1775_v21, 0.0 }
 0x46c   : > { %v2587_v22 = vmax.f32 %v2389_v33, %v2392_v50  ;;  %v10737_v33 = vld [vmem:[#allocation2 + $0x250] sm:$0xff] }
 0x46e   : > { %v2257_v57 = vpop.f32.mrf.mxu3 }
 0x46f   : > { %v1777_v24 = vpop.f32.mrf.mxu0  ;;  %v2258_v10 = vadd.f32 %v10680_v1, %v2257_v57 }
 0x470   : > { %6110 = vmatmul.f32.gmra.mxu1 %v5500_v48  ;;  %v2627_v48 = vmax.f32 %v2546_v49, %v2549_v58  ;;  %v1778_v35 = vadd.f32 %v10680_v1, %v1777_v24 }
 0x472   : > { %v2393_v24 = vmax.f32 %v1778_v35, 0.0 }
 0x476   : > { %v2260_v63 = vpop.f32.mrf.mxu3 }
 0x477   : > { %v2261_v42 = vadd.f32 %v10680_v1, %v2260_v63  ;;  %v1780_v14 = vpop.f32.mrf.mxu0 }
 0x478   : > { %v1781_v23 = vadd.f32 %v10680_v1, %v1780_v14 }
 0x479   : > { %v2554_v8 = vmax.f32 %v2261_v42, 0.0  ;;  %v2550_v42 = vmax.f32 %v2249_v28, 0.0 }
 0x47a   : > { %v2394_v51 = vmax.f32 %v1781_v23, 0.0 }
 0x47b   : > { %v2698_v25 = vmax.f32 %v2551_v46, %v2554_v8  ;;  %v2547_v46 = vmax.f32 %v2240_v60, 0.0  ;;  %v10715_v8 = vpop.f32.mrf.mxu1 }
 0x47c   : > { %v2589_v39 = vmax.f32 %v2391_v18, %v2394_v51 }
 0x47d   : > { %v2770_v26 = vmax.f32 %v2626_v32, %v2698_v25  ;;  %v2553_v32 = vmax.f32 %v2258_v10, 0.0  ;;  %v2628_v51 = vmax.f32 %v2547_v46, %v2550_v42  ;;  %v2390_v25 = vmax.f32 %v1769_v36, 0.0  ;;  %v10747_v46 = vpop.permute.xlu2 %7855 }
 0x47e   : > { %v2733_v31 = vmax.f32 %v2589_v39, %v8913_v20  ;;  %v2263_v3 = vpop.f32.mrf.mxu3 }
 0x47f   : > { %2949 = vst.msk [vmem:[#allocation2 + $0x301] sm:$0xff] %vm2773_vm2, %v2770_v26  ;;  %v2264_v45 = vadd.f32 %v10680_v1, %v2263_v3  ;;  %v1783_v12 = vpop.f32.mrf.mxu0  ;;  %v2588_v39 = vmax.f32 %v2390_v25, %v2393_v24  ;;  %v10769_v25 = vld [vmem:[#allocation2 + $0x270] sm:$0xff] }
 0x480   : > { %2912 = vst.msk [vmem:[#allocation2 + $0x171] sm:$0xff] %vm2773_vm2, %v2733_v31  ;;  %v1784_v17 = vadd.f32 %v10680_v1, %v1783_v12 }
 0x481   : > { %v2555_v20 = vmax.f32 %v2264_v45, 0.0 }
 0x482   : > { %v2395_v4 = vmax.f32 %v1784_v17, 0.0 }
 0x483   : > { %v2699_v0 = vmax.f32 %v2552_v29, %v2555_v20  ;;  %v10721_v3 = vpop.f32.mrf.mxu1  ;;  %v3148_v29 = vld [vmem:[#allocation2 + $0x22a] sm:$0xff] }
 0x484   : > { %v2659_v63 = vmax.f32 %v2395_v4, %v2398_v52  ;;  %v10735_v52 = vld [vmem:[#allocation2 + $0x180] sm:$0xff] }
 0x485   : > { %v2771_v14 = vmax.f32 %v2627_v48, %v2699_v0  ;;  %v10741_v0 = vld [vmem:[#allocation2 + $0x248] sm:$0xff] }
 0x486   : > { %v2731_v23 = vmax.f32 %v2587_v22, %v2659_v63  ;;  %v2266_v7 = vpop.f32.mrf.mxu3  ;;  %v7969_v22 = vpack.i.bf16 %v10735_v52, %v10737_v33  ;;  %v3149_v63 = vld [vmem:[#allocation2 + $0x232] sm:$0xff] }
 0x487   : > { %2950 = vst.msk [vmem:[#allocation2 + $0x309] sm:$0xff] %vm2773_vm2, %v2771_v14  ;;  %v2267_v57 = vadd.f32 %v10680_v1, %v2266_v7  ;;  %v1786_v13 = vpop.f32.mrf.mxu0  ;;  %v3059_v45 = vld [vmem:[#allocation2 + $0x171] sm:$0xff]  ;;  %v10756_v7 = vld [vmem:[#allocation2 + $0x260] sm:$0xff] }
 0x488   : > { %2910 = vst.msk [vmem:[#allocation2 + $0x161] sm:$0xff] %vm2773_vm2, %v2731_v23  ;;  %v1787_v18 = vadd.f32 %v10680_v1, %v1786_v13  ;;  %v3128_v1 = vld [vmem:[#allocation2 + $0x152] sm:$0xff]  ;;  %v10754_v23 = vld [vmem:[#allocation2 + $0x188] sm:$0xff] }
 0x489   : > { %v2556_v2 = vmax.f32 %v2267_v57, 0.0  ;;  %v7954_v60 = vpack.i.bf16 %v3128_v1, %v3148_v29  ;;  %v3131_v14 = vld [vmem:[#allocation2 + $0x172] sm:$0xff]  ;;  %v3150_v57 = vld [vmem:[#allocation2 + $0x242] sm:$0xff]  ;;  %v3154_v29 = vld [vmem:[#allocation2 + $0x26a] sm:$0xff] }
 0x48a   : > { %v2396_v55 = vmax.f32 %v1787_v18, 0.0  ;;  %v7979_v18 = vpack.i.bf16 %v10754_v23, %v10756_v7  ;;  %v3134_v1 = vld [vmem:[#allocation2 + $0x192] sm:$0xff] }
 0x48b   : > { %v2700_v21 = vmax.f32 %v2553_v32, %v2556_v2  ;;  %v10733_v20 = vpop.f32.mrf.mxu1  ;;  %v3151_v32 = vld [vmem:[#allocation2 + $0x24a] sm:$0xff] }
 0x48c   : > { %v2660_v49 = vmax.f32 %v2396_v55, %v2399_v30  ;;  %12154 = vst [vmem:[#allocation4_spill] sm:$0xff] %v10733_v20  ;;  %v7984_v13 = vpack.i.bf16 %v3131_v14, %v3151_v32  ;;  %v10765_v2 = vld [vmem:[#allocation2 + $0x190] sm:$0xff]  ;;  %v10767_v30 = vld [vmem:[#allocation2 + $0x1a0] sm:$0xff]  ;;  %v10771_v55 = vld [vmem:[#allocation2 + $0x268] sm:$0xff] }
 0x48d   : > { %v2772_v58 = vmax.f32 %v2628_v51, %v2700_v21  ;;  %v10762_v51 = vpop.permute.xlu2 %7865 }
 0x48e   : > { %v2732_v26 = vmax.f32 %v2588_v39, %v2660_v49  ;;  %v3132_v39 = vld [vmem:[#allocation2 + $0x182] sm:$0xff]  ;;  %v3152_v49 = vld [vmem:[#allocation2 + $0x252] sm:$0xff] }
 0x48f   : > { %2951 = vst.msk [vmem:[#allocation2 + $0x311] sm:$0xff] %vm2773_vm2, %v2772_v58  ;;  %v3057_v59 = vld [vmem:[#allocation2 + $0x161] sm:$0xff]  ;;  %v7999_v58 = vpack.i.bf16 %v10767_v30, %v10769_v25 }
 0x490   : > { %2911 = vst.msk [vmem:[#allocation2 + $0x169] sm:$0xff] %vm2773_vm2, %v2732_v26  ;;  %v7939_v31 = vpack.i.bf16 %v3057_v59, %v3056_v41  ;;  %v10724_v50 = vld [vmem:[#allocation2 + $0x160] sm:$0xff]  ;;  %v7989_v26 = vpack.i.bf16 %v10765_v2, %v10771_v55  ;;  %v7994_v41 = vpack.i.bf16 %v3132_v39, %v3152_v49 }
 0x491   : > { %v3135_v49 = vld [vmem:[#allocation2 + $0x1a2] sm:$0xff] }
 0x492   : > { %7940 = vrot.lane.b32.xlu1 %v7939_v31, %s8704_s30  ;;  %v3133_v31 = vld [vmem:[#allocation2 + $0x18a] sm:$0xff] }
 0x493   : > { %v10752_v36 = vpop.f32.mrf.mxu1 }
 0x494   : > { %12155 = vst [vmem:[#allocation5_spill] sm:$0xff] %v10752_v36  ;;  %v3312_v36 = vld [vmem:[#allocation2 + $0x22] sm:$0xff] }
 0x495   : > { %v7901_v59 = vpop.permute.xlu2 %7900 }
 0x496   : > { %v7902_v14 = vunpack.i.l.bf16 %v7901_v59 }
 0x497   : > { %v3058_v12 = vld [vmem:[#allocation2 + $0x169] sm:$0xff] }
 0x498   : > { %v10726_v17 = vld [vmem:[#allocation2 + $0x168] sm:$0xff]  ;;  %v7944_v48 = vpack.i.bf16 %v3059_v45, %v3058_v12  ;;  %v10739_v4 = vld [vmem:[#allocation2 + $0x170] sm:$0xff] }
 0x499   : > { %v7949_v28 = vpack.i.bf16 %v10726_v17, %v10724_v50  ;;  %v3129_v10 = vld [vmem:[#allocation2 + $0x162] sm:$0xff]  ;;  %v7959_v35 = vpack.i.bf16 %v10739_v4, %v10741_v0  ;;  %v3130_v6 = vld [vmem:[#allocation2 + $0x16a] sm:$0xff] }
 0x49a   : > { %7955 = vrot.lane.b32.xlu1 %v7954_v60, %s8705_s6  ;;  %7945 = vrot.lane.b32.xlu2 %v7944_v48, %s8704_s30  ;;  %v7964_v42 = vpack.i.bf16 %v3129_v10, %v3149_v63  ;;  %v7974_v24 = vpack.i.bf16 %v3130_v6, %v3150_v57  ;;  %v3153_v45 = vld [vmem:[#allocation2 + $0x262] sm:$0xff]  ;;  %v7887_v48 = vunpack.i.l.bf16 %v10660_v34  ;;  %v8014_v10 = vpack.i.bf16 %v3134_v1, %v3154_v29  ;;  %v2978_v63 = vld [vmem:[#allocation2 + $0x110] sm:$0xff] }
 0x49b   : > { %7950 = vrot.lane.b32.xlu0 %v7949_v28, %s8706_s7  ;;  %v10773_v21 = vpop.f32.mrf.mxu1  ;;  %v3205_v12 = vld [vmem:[#allocation2 + $0x1a8] sm:$0xff]  ;;  %v10782_v60 = vld [vmem:[#allocation2 + $0x280] sm:$0xff] }
 0x49c   : > { %12156 = vst [vmem:[#allocation6_spill] sm:$0xff] %v10773_v21 }
 0x49d   : > { %v10792_v32 = vpop.permute.xlu2 %7905 }
 0x4a2   : > { %7970 = vrot.lane.b32.xlu1 %v7969_v22, %s8706_s7  ;;  %7960 = vrot.lane.b32.xlu2 %v7959_v35, %s8706_s7  ;;  %v8004_v22 = vpack.i.bf16 %v3133_v31, %v3153_v45  ;;  %v8009_v35 = vpack.i.bf16 %v3205_v12, %v10782_v60  ;;  %v3207_v31 = vld [vmem:[#allocation2 + $0x1c0] sm:$0xff] }
 0x4a3   : > { %7965 = vrot.lane.b32.xlu0 %v7964_v42, %s8705_s6  ;;  %v10785_v28 = vpop.f32.mrf.mxu1  ;;  %v5355_v42 = vsel %vm2773_vm2, %v2978_v63, %v7887_v48  ;;  %v3137_v63 = vld [vmem:[#allocation2 + $0x1b2] sm:$0xff] }
 0x4a4   : > { %12157 = vst [vmem:[#allocation7_spill] sm:$0xff] %v10785_v28  ;;  %v5428_v39 = vsel %vm5401_vm4, %v5355_v42, %v7902_v14  ;;  %v3157_v42 = vld [vmem:[#allocation2 + $0x28a] sm:$0xff]  ;;  %v3156_v14 = vld [vmem:[#allocation2 + $0x282] sm:$0xff] }
 0x4aa   : > { %7985 = vrot.lane.b32.xlu1 %v7984_v13, %s8705_s6  ;;  %7975 = vrot.lane.b32.xlu2 %v7974_v24, %s8705_s6  ;;  %v3227_v13 = vld [vmem:[#allocation2 + $0x290] sm:$0xff] }
 0x4ab   : > { %7980 = vrot.lane.b32.xlu0 %v7979_v18, %s8706_s7  ;;  %v3206_v24 = vld [vmem:[#allocation2 + $0x1b0] sm:$0xff]  ;;  %v10794_v18 = vld [vmem:[#allocation2 + $0x288] sm:$0xff]  ;;  %v10799_v1 = vpop.f32.mrf.mxu1  ;;  %v8029_v29 = vpack.i.bf16 %v3207_v31, %v3227_v13  ;;  %v3228_v13 = vld [vmem:[#allocation2 + $0x2a0] sm:$0xff] }
 0x4ac   : > { %12158 = vst [vmem:[#allocation8_spill] sm:$0xff] %v10799_v1  ;;  %v8019_v45 = vpack.i.bf16 %v3206_v24, %v10794_v18  ;;  %v7911_v24 = vpop.permute.xlu2 %7910 }
 0x4b2   : > { %8000 = vrot.lane.b32.xlu1 %v7999_v58, %s8706_s7  ;;  %7990 = vrot.lane.b32.xlu2 %v7989_v26, %s8706_s7  ;;  %v3155_v58 = vld [vmem:[#allocation2 + $0x272] sm:$0xff]  ;;  %v7888_v26 = vunpack.i.h.bf16 %v10660_v34 }
 0x4b3   : > { %7995 = vrot.lane.b32.xlu0 %v7994_v41, %s8705_s6  ;;  %v8024_v12 = vpack.i.bf16 %v3135_v49, %v3155_v58  ;;  %v3208_v58 = vld [vmem:[#allocation2 + $0x1c8] sm:$0xff] }
 0x4b4   : > { %v5356_v34 = vsel %vm2773_vm2, %v10532_v16, %v7888_v26  ;;  %v8039_v16 = vpack.i.bf16 %v3208_v58, %v3228_v13  ;;  %v7912_v26 = vunpack.i.l.bf16 %v7911_v24 }
 0x4ba   : > { %8015 = vrot.lane.b32.xlu1 %v8014_v10, %s8705_s6  ;;  %8005 = vrot.lane.b32.xlu2 %v8004_v22, %s8705_s6  ;;  %v7903_v10 = vunpack.i.h.bf16 %v7901_v59  ;;  %v10812_v59 = vpop.f32.mrf.mxu1 }
 0x4bb   : > { %8010 = vrot.lane.b32.xlu0 %v8009_v35, %s8706_s7  ;;  %v3136_v35 = vld [vmem:[#allocation2 + $0x1aa] sm:$0xff]  ;;  %12159 = vst [vmem:[#allocation9_spill] sm:$0xff] %v10812_v59 }
 0x4bc   : > { %v7916_v6 = vpop.permute.xlu0 %7915  ;;  %v8034_v49 = vpack.i.bf16 %v3136_v35, %v3156_v14  ;;  %v5796_v35 = vld [vmem:[%s12151_s3 + $0x108] sm:$0xff]  ;;  %v3209_v14 = vld [vmem:[#allocation2 + $0x1d0] sm:$0xff] }
 0x4bd   : > { %v7917_v57 = vunpack.i.l.bf16 %v7916_v6  ;;  %v7918_v48 = vunpack.i.h.bf16 %v7916_v6  ;;  %v8044_v6 = vpack.i.bf16 %v3137_v63, %v3157_v42  ;;  %v3210_v42 = vld [vmem:[#allocation2 + $0x1e0] sm:$0xff]  ;;  %6499 = vmatpush.msrb.mxu1 %v5796_v35 }
 0x4bf   : > { %v5501_v41 = vsel %vm5474_vm5, %v5428_v39, %v7917_v57  ;;  %v5429_v57 = vsel %vm5401_vm4, %v5356_v34, %v7903_v10  ;;  %v3158_v10 = vld [vmem:[#allocation2 + $0x292] sm:$0xff] }
 0x4c0   : > { %6113 = vmatmul.f32.gmra.mxu1 %v5501_v41  ;;  %v5502_v39 = vsel %vm5474_vm5, %v5429_v57, %v7918_v48  ;;  %v7907_v41 = vunpack.i.l.bf16 %v10792_v32  ;;  %v3229_v48 = vld [vmem:[#allocation2 + $0x2a8] sm:$0xff] }
 0x4c1   : > { %v8049_v13 = vpack.i.bf16 %v3209_v14, %v3229_v48  ;;  %v3139_v48 = vld [vmem:[#allocation2 + $0x1ca] sm:$0xff] }
 0x4c2   : > { %8030 = vrot.lane.b32.xlu1 %v8029_v29, %s8706_s7  ;;  %8020 = vrot.lane.b32.xlu2 %v8019_v45, %s8706_s7  ;;  %v5357_v45 = vsel %vm2773_vm2, %v10534_v38, %v7907_v41  ;;  %v7908_v38 = vunpack.i.h.bf16 %v10792_v32  ;;  %v10828_v41 = vpop.f32.mrf.mxu1  ;;  %v3231_v32 = vld [vmem:[#allocation2 + $0x2c0] sm:$0xff]  ;;  %v3232_v14 = vld [vmem:[#allocation2 + $0x2c8] sm:$0xff] }
 0x4c3   : > { %8025 = vrot.lane.b32.xlu0 %v8024_v12, %s8705_s6  ;;  %v3230_v12 = vld [vmem:[#allocation2 + $0x2b0] sm:$0xff]  ;;  %v5430_v34 = vsel %vm5401_vm4, %v5357_v45, %v7912_v26  ;;  %12160 = vst [vmem:[#allocation10_spill] sm:$0xff] %v10828_v41  ;;  %v3159_v45 = vld [vmem:[#allocation2 + $0x2a2] sm:$0xff] }
 0x4c4   : > { %v10807_v22 = vpop.permute.xlu0 %7920  ;;  %v8059_v57 = vpack.i.bf16 %v3210_v42, %v3230_v12  ;;  %v3088_v26 = vld [vmem:[#allocation2 + $0x2a9] sm:$0xff] }
 0x4c8   : > { %6116 = vmatmul.f32.gmra.mxu1 %v5502_v39  ;;  %v3138_v39 = vld [vmem:[#allocation2 + $0x1c2] sm:$0xff] }
 0x4ca   : > { %8045 = vrot.lane.b32.xlu1 %v8044_v6, %s8705_s6  ;;  %8035 = vrot.lane.b32.xlu2 %v8034_v49, %s8705_s6  ;;  %v8054_v6 = vpack.i.bf16 %v3138_v39, %v3158_v10  ;;  %v7913_v49 = vunpack.i.h.bf16 %v7911_v24  ;;  %v8064_v10 = vpack.i.bf16 %v3139_v48, %v3159_v45  ;;  %v10837_v42 = vpop.f32.mrf.mxu1  ;;  %v3091_v45 = vld [vmem:[#allocation2 + $0x2c9] sm:$0xff] }
 0x4cb   : > { %8040 = vrot.lane.b32.xlu0 %v8039_v16, %s8706_s7  ;;  %v5358_v16 = vsel %vm2773_vm2, %v10635_v44, %v7908_v38  ;;  %v3161_v44 = vld [vmem:[#allocation2 + $0x2b2] sm:$0xff]  ;;  %12161 = vst [vmem:[#allocation11_spill] sm:$0xff] %v10837_v42  ;;  %v3385_v42 = vld [vmem:[#allocation2 + $0x40] sm:$0xff] }
 0x4cc   : > { %v5431_v12 = vsel %vm5401_vm4, %v5358_v16, %v7913_v49  ;;  %v3233_v16 = vld [vmem:[#allocation2 + $0x2d0] sm:$0xff] }
 0x4cd   : > { %v7926_v31 = vpop.permute.xlu0 %7925 }
 0x4ce   : > { %v7927_v29 = vunpack.i.l.bf16 %v7926_v31  ;;  %v7928_v58 = vunpack.i.h.bf16 %v7926_v31  ;;  %v3211_v31 = vld [vmem:[#allocation2 + $0x1e8] sm:$0xff] }
 0x4cf   : > { %v8069_v35 = vpack.i.bf16 %v3211_v31, %v3231_v32  ;;  %v3213_v32 = vld [vmem:[#allocation2 + $0x200] sm:$0xff] }
 0x4d0   : > { %v5503_v63 = vsel %vm5474_vm5, %v5430_v34, %v7927_v29  ;;  %v3089_v29 = vld [vmem:[#allocation2 + $0x2b1] sm:$0xff]  ;;  %v5504_v24 = vsel %vm5474_vm5, %v5431_v12, %v7928_v58  ;;  %v3162_v58 = vld [vmem:[#allocation2 + $0x2c2] sm:$0xff]  ;;  %v8094_v48 = vpack.i.bf16 %v3213_v32, %v3233_v16 }
 0x4d1   : > { %6119 = vmatmul.f32.gmra.mxu1 %v5503_v63  ;;  %v8074_v34 = vpack.i.bf16 %v3089_v29, %v3088_v26  ;;  %v3160_v63 = vld [vmem:[#allocation2 + $0x2aa] sm:$0xff]  ;;  %v3090_v29 = vld [vmem:[#allocation2 + $0x2c1] sm:$0xff] }
 0x4d2   : > { %8060 = vrot.lane.b32.xlu1 %v8059_v57, %s8706_s7  ;;  %8050 = vrot.lane.b32.xlu2 %v8049_v13, %s8706_s7  ;;  %v3141_v57 = vld [vmem:[#allocation2 + $0x1e2] sm:$0xff]  ;;  %v3140_v13 = vld [vmem:[#allocation2 + $0x1d2] sm:$0xff]  ;;  %v10842_v26 = vpop.f32.mrf.mxu1  ;;  %v3142_v12 = vld [vmem:[#allocation2 + $0x1ea] sm:$0xff] }
 0x4d3   : > { %8055 = vrot.lane.b32.xlu0 %v8054_v6, %s8705_s6  ;;  %v8089_v39 = vpack.i.bf16 %v3141_v57, %v3161_v44  ;;  %v8079_v38 = vpack.i.bf16 %v3140_v13, %v3160_v63  ;;  %v3212_v6 = vld [vmem:[#allocation2 + $0x1f0] sm:$0xff]  ;;  %12162 = vst [vmem:[#allocation12_spill] sm:$0xff] %v10842_v26  ;;  %v3234_v31 = vld [vmem:[#allocation2 + $0x2e0] sm:$0xff]  ;;  %v3214_v63 = vld [vmem:[#allocation2 + $0x208] sm:$0xff] }
 0x4d4   : > { %v8084_v49 = vpack.i.bf16 %v3212_v6, %v3232_v14  ;;  %v3215_v44 = vld [vmem:[#allocation2 + $0x210] sm:$0xff]  ;;  %v8109_v13 = vpack.i.bf16 %v3214_v63, %v3234_v31  ;;  %v10849_v6 = vpop.permute.xlu1 %7895  ;;  %v3093_v16 = vld [vmem:[#allocation2 + $0x2e1] sm:$0xff]  ;;  %v5794_v31 = vld [vmem:[%s12151_s3 + $0xf8] sm:$0xff] }
 0x4d5   : > { %6252 = vmatpush.msra.mxu2 %v5794_v31  ;;  %v3095_v63 = vld [vmem:[#allocation2 + $0x2f1] sm:$0xff]  ;;  %v3238_v31 = vld [vmem:[#allocation2 + $0x308] sm:$0xff] }
 0x4d9   : > { %6122 = vmatmul.f32.gmra.mxu1 %v5504_v24  ;;  %v8104_v24 = vpack.i.bf16 %v3142_v12, %v3162_v58  ;;  %v3092_v58 = vld [vmem:[#allocation2 + $0x2d1] sm:$0xff] }
 0x4da   : > { %8075 = vrot.lane.b32.xlu1 %v8074_v34, %s8704_s30  ;;  %8065 = vrot.lane.b32.xlu2 %v8064_v10, %s8705_s6  ;;  %v8099_v34 = vpack.i.bf16 %v3091_v45, %v3090_v29  ;;  %v3235_v10 = vld [vmem:[#allocation2 + $0x2e8] sm:$0xff]  ;;  %v10847_v14 = vpop.f32.mrf.mxu1  ;;  %v3164_v29 = vld [vmem:[#allocation2 + $0x2d2] sm:$0xff]  ;;  %v3216_v45 = vld [vmem:[#allocation2 + $0x220] sm:$0xff] }
 0x4db   : > { %8070 = vrot.lane.b32.xlu0 %v8069_v35, %s8706_s7  ;;  %v3163_v35 = vld [vmem:[#allocation2 + $0x2ca] sm:$0xff]  ;;  %12163 = vst [vmem:[#allocation13_spill] sm:$0xff] %v10847_v14  ;;  %v8119_v57 = vpack.i.bf16 %v3215_v44, %v3235_v10 }
 0x4dc   : > { %v3094_v44 = vld [vmem:[#allocation2 + $0x2e9] sm:$0xff] }
 0x4e2   : > { %8090 = vrot.lane.b32.xlu1 %v8089_v39, %s8705_s6  ;;  %8080 = vrot.lane.b32.xlu2 %v8079_v38, %s8705_s6  ;;  %v3143_v39 = vld [vmem:[#allocation2 + $0x1f2] sm:$0xff]  ;;  %v10854_v12 = vpop.f32.mrf.mxu1 }
 0x4e3   : > { %8085 = vrot.lane.b32.xlu0 %v8084_v49, %s8706_s7  ;;  %v8114_v38 = vpack.i.bf16 %v3143_v39, %v3163_v35  ;;  %v3236_v49 = vld [vmem:[#allocation2 + $0x2f0] sm:$0xff]  ;;  %12164 = vst [vmem:[#allocation14_spill] sm:$0xff] %v10854_v12  ;;  %v10864_v35 = vpop.permute.xlu1 %7930 }
 0x4e4   : > { %v8134_v32 = vpack.i.bf16 %v3216_v45, %v3236_v49  ;;  %v3145_v39 = vld [vmem:[#allocation2 + $0x20a] sm:$0xff] }
 0x4ea   : > { %8105 = vrot.lane.b32.xlu1 %v8104_v24, %s8705_s6  ;;  %8095 = vrot.lane.b32.xlu2 %v8094_v48, %s8706_s7  ;;  %v8124_v24 = vpack.i.bf16 %v3093_v16, %v3092_v58  ;;  %v3144_v48 = vld [vmem:[#allocation2 + $0x202] sm:$0xff]  ;;  %v10868_v45 = vpop.f32.mrf.mxu1 }
 0x4eb   : > { %8100 = vrot.lane.b32.xlu0 %v8099_v34, %s8704_s30  ;;  %v10856_v34 = vpop.permute.xlu2 %7935  ;;  %v8129_v10 = vpack.i.bf16 %v3144_v48, %v3164_v29  ;;  %v3217_v58 = vld [vmem:[#allocation2 + $0x228] sm:$0xff]  ;;  %12165 = vst [vmem:[#allocation15_spill] sm:$0xff] %v10868_v45  ;;  %v3167_v48 = vld [vmem:[#allocation2 + $0x2f2] sm:$0xff]  ;;  %v7807_v45 = vunpack.i.l.bf16 %v10511_v61 }
 0x4ed   : > { %v5381_v26 = vsel %vm2773_vm2, %v3217_v58, %v7807_v45 }
 0x4f2   : > { %8120 = vrot.lane.b32.xlu1 %v8119_v57, %s8706_s7  ;;  %8110 = vrot.lane.b32.xlu2 %v8109_v13, %s8706_s7  ;;  %v3165_v57 = vld [vmem:[#allocation2 + $0x2e2] sm:$0xff]  ;;  %v10888_v12 = vpop.f32.mrf.mxu1 }
 0x4f3   : > { %8115 = vrot.lane.b32.xlu0 %v8114_v38, %s8705_s6  ;;  %v3237_v13 = vld [vmem:[#allocation2 + $0x300] sm:$0xff]  ;;  %v8149_v38 = vpack.i.bf16 %v3095_v63, %v3094_v44  ;;  %v8139_v49 = vpack.i.bf16 %v3145_v39, %v3165_v57  ;;  %v3146_v63 = vld [vmem:[#allocation2 + $0x212] sm:$0xff]  ;;  %v7922_v57 = vunpack.i.l.bf16 %v10807_v22  ;;  %12166 = vst [vmem:[#allocation16_spill] sm:$0xff] %v10888_v12  ;;  %v3313_v12 = vld [vmem:[#allocation2 + $0x2a] sm:$0xff] }
 0x4f4   : > { %v10866_v16 = vpop.permute.xlu2 %7945  ;;  %v8144_v29 = vpack.i.bf16 %v3217_v58, %v3237_v13  ;;  %v3147_v44 = vld [vmem:[#allocation2 + $0x222] sm:$0xff]  ;;  %v8174_v20 = vpack.i.bf16 %v3313_v12, %v3312_v36  ;;  %v7808_v58 = vunpack.i.h.bf16 %v10511_v61 }
 0x4f5   : > { %v8164_v13 = vpack.i.bf16 %v3147_v44, %v3167_v48  ;;  %v7937_v44 = vunpack.i.l.bf16 %v10856_v34  ;;  %v3388_v36 = vld [vmem:[#allocation2 + $0x60] sm:$0xff]  ;;  %v3458_v61 = vld [vmem:[#allocation2 + $0x49] sm:$0xff] }
 0x4fa   : > { %8135 = vrot.lane.b32.xlu1 %v8134_v32, %s8706_s7  ;;  %8125 = vrot.lane.b32.xlu2 %v8124_v24, %s8704_s30  ;;  %v5793_v32 = vld [vmem:[%s12151_s3 + $0xf0] sm:$0xff] }
 0x4fb   : > { %8130 = vrot.lane.b32.xlu0 %v8129_v10, %s8705_s6  ;;  %6253 = vmatpush.msra.mxu2 %v5793_v32  ;;  %v3166_v10 = vld [vmem:[#allocation2 + $0x2ea] sm:$0xff] }
 0x4fc   : > { %v8154_v39 = vpack.i.bf16 %v3146_v63, %v3166_v10  ;;  %v5792_v32 = vld [vmem:[%s12151_s3 + $0xe8] sm:$0xff]  ;;  %v5359_v10 = vsel %vm2773_vm2, %v10637_v19, %v7922_v57  ;;  %v3219_v57 = vld [vmem:[#allocation2 + $0x240] sm:$0xff] }
 0x4fd   : > { %6254 = vmatpush.msra.mxu2 %v5792_v32  ;;  %v5432_v41 = vsel %vm5401_vm4, %v5359_v10, %v7937_v44  ;;  %v7923_v32 = vunpack.i.h.bf16 %v10807_v22 }
 0x4ff   : > { %v5360_v22 = vsel %vm2773_vm2, %v10652_v11, %v7923_v32 }
 0x502   : > { %8150 = vrot.lane.b32.xlu1 %v8149_v38, %s8704_s30  ;;  %8140 = vrot.lane.b32.xlu2 %v8139_v49, %s8705_s6  ;;  %v3218_v38 = vld [vmem:[#allocation2 + $0x230] sm:$0xff] }
 0x503   : > { %8145 = vrot.lane.b32.xlu0 %v8144_v29, %s8706_s7  ;;  %v8159_v49 = vpack.i.bf16 %v3218_v38, %v3238_v31  ;;  %v10882_v29 = vpop.permute.xlu2 %7960  ;;  %v3386_v31 = vld [vmem:[#allocation2 + $0x48] sm:$0xff]  ;;  %v5382_v11 = vsel %vm2773_vm2, %v3218_v38, %v7808_v58  ;;  %v7817_v58 = vunpack.i.l.bf16 %v10528_v54 }
 0x504   : > { %v10876_v24 = vpop.permute.xlu1 %7940  ;;  %v8179_v19 = vpack.i.bf16 %v3386_v31, %v3385_v42 }
 0x505   : > { %v7942_v45 = vunpack.i.l.bf16 %v10876_v24 }
 0x50a   : > { %8165 = vrot.lane.b32.xlu1 %v8164_v13, %s8705_s6  ;;  %8155 = vrot.lane.b32.xlu2 %v8154_v39, %s8705_s6  ;;  %v3239_v39 = vld [vmem:[#allocation2 + $0x310] sm:$0xff] }
 0x50b   : > { %8160 = vrot.lane.b32.xlu0 %v8159_v49, %s8706_s7  ;;  %v7962_v49 = vunpack.i.l.bf16 %v10882_v29  ;;  %v8169_v21 = vpack.i.bf16 %v3219_v57, %v3239_v39  ;;  %v10924_v10 = vpop.permute.xlu2 %7975  ;;  %v3314_v39 = vld [vmem:[#allocation2 + $0x32] sm:$0xff] }
 0x50c   : > { %v10890_v48 = vpop.permute.xlu1 %7955 }
 0x50d   : > { %v7957_v63 = vunpack.i.l.bf16 %v10890_v48  ;;  %v7951_v13 = vpop.permute.xlu0 %7950 }
 0x50e   : > { %v7952_v14 = vunpack.i.l.bf16 %v7951_v13  ;;  %v7953_v42 = vunpack.i.h.bf16 %v7951_v13  ;;  %v3457_v13 = vld [vmem:[#allocation2 + $0x41] sm:$0xff] }
 0x50f   : > { %v5454_v59 = vsel %vm5401_vm4, %v5381_v26, %v7957_v63  ;;  %v8184_v32 = vpack.i.bf16 %v3458_v61, %v3457_v13 }
 0x510   : > { %v5505_v1 = vsel %vm5474_vm5, %v5432_v41, %v7952_v14  ;;  %v5527_v28 = vsel %vm5474_vm5, %v5454_v59, %v7962_v49  ;;  %v7938_v59 = vunpack.i.h.bf16 %v10856_v34  ;;  %v10915_v41 = vpop.f32.mrf.mxu1  ;;  %v3315_v14 = vld [vmem:[#allocation2 + $0x42] sm:$0xff]  ;;  %v3387_v34 = vld [vmem:[#allocation2 + $0x50] sm:$0xff]  ;;  %v7958_v49 = vunpack.i.h.bf16 %v10890_v48 }
 0x511   : > { %6125 = vmatmul.f32.gmra.mxu1 %v5505_v1  ;;  %6191 = vmatmul.f32.vlgmr.msrb.gmra.mxu2 %v5527_v28  ;;  %v8194_v63 = vpack.i.bf16 %v3388_v36, %v3387_v34  ;;  %v8189_v38 = vpack.i.bf16 %v3315_v14, %v3314_v39  ;;  %v5383_v14 = vsel %vm2773_vm2, %v3219_v57, %v7817_v58  ;;  %v7818_v39 = vunpack.i.h.bf16 %v10528_v54 }
 0x512   : > { %8180 = vrot.lane.b32.xlu1 %v8179_v19, %s8705_s6  ;;  %8170 = vrot.lane.b32.xlu2 %v8169_v21, %s8706_s7  ;;  %v5433_v12 = vsel %vm5401_vm4, %v5360_v22, %v7938_v59  ;;  %v7977_v22 = vunpack.i.l.bf16 %v10924_v10 }
 0x513   : > { %8175 = vrot.lane.b32.xlu0 %v8174_v20, %s8704_s30  ;;  %v5791_v20 = vld [vmem:[%s12151_s3 + $0xe0] sm:$0xff]  ;;  %v5506_v31 = vsel %vm5474_vm5, %v5433_v12, %v7953_v42  ;;  %v5361_v42 = vsel %vm2773_vm2, %v10654_v47, %v7942_v45  ;;  %v3316_v12 = vld [vmem:[#allocation2 + $0x4a] sm:$0xff] }
 0x514   : > { %v10907_v26 = vpop.permute.xlu1 %7970  ;;  %6255 = vmatpush.msra.mxu2 %v5791_v20  ;;  %v5434_v59 = vsel %vm5401_vm4, %v5361_v42, %v7958_v49  ;;  %v3460_v20 = vld [vmem:[#allocation2 + $0x61] sm:$0xff]  ;;  %v5456_v47 = vsel %vm5401_vm4, %v5383_v14, %v7977_v22  ;;  %v5384_v22 = vsel %vm2773_vm2, %v10741_v0, %v7818_v39  ;;  %v5789_v39 = vld [vmem:[%s12151_s3 + $0xd0] sm:$0xff] }
 0x515   : > { %v7972_v1 = vunpack.i.l.bf16 %v10907_v26  ;;  %v10913_v28 = vpop.permute.xlu0 %7965  ;;  %v3389_v45 = vld [vmem:[#allocation2 + $0x68] sm:$0xff]  ;;  %v7973_v54 = vunpack.i.h.bf16 %v10907_v26 }
 0x516   : > { %v7967_v21 = vunpack.i.l.bf16 %v10913_v28  ;;  %v7968_v57 = vunpack.i.h.bf16 %v10913_v28  ;;  %v3392_v42 = vld [vmem:[#allocation2 + $0x88] sm:$0xff] }
 0x518   : > { %v5455_v44 = vsel %vm5401_vm4, %v5382_v11, %v7967_v21  ;;  %v10940_v36 = vpop.f32.mrf.mxu1  ;;  %v7963_v21 = vunpack.i.h.bf16 %v10882_v29  ;;  %v3317_v11 = vld [vmem:[#allocation2 + $0x52] sm:$0xff] }
 0x519   : > { %6128 = vmatmul.f32.gmra.mxu1 %v5506_v31  ;;  %v5528_v19 = vsel %vm5474_vm5, %v5455_v44, %v7972_v1  ;;  %v3390_v1 = vld [vmem:[#allocation2 + $0x70] sm:$0xff]  ;;  %v7943_v31 = vunpack.i.h.bf16 %v10876_v24  ;;  %v10960_v24 = vpop.permute.xlu2 %7990 }
 0x51a   : > { %6194 = vmatmul.f32.gmra.mxu2 %v5528_v19  ;;  %8195 = vrot.lane.b32.xlu1 %v8194_v63, %s8705_s6  ;;  %v5507_v44 = vsel %vm5474_vm5, %v5434_v59, %v7963_v21  ;;  %v8209_v13 = vpack.i.bf16 %v3390_v1, %v3389_v45  ;;  %v3459_v29 = vld [vmem:[#allocation2 + $0x51] sm:$0xff]  ;;  %v8204_v19 = vpack.i.bf16 %v3317_v11, %v3316_v12  ;;  %v3461_v11 = vld [vmem:[#allocation2 + $0x69] sm:$0xff]  ;;  %v7857_v45 = vunpack.i.l.bf16 %v10747_v46 }
 0x51b   : > { %8185 = vrot.lane.b32.xlu2 %v8184_v32, %s8706_s7  ;;  %8190 = vrot.lane.b32.xlu0 %v8189_v38, %s8704_s30  ;;  %v8199_v49 = vpack.i.bf16 %v3460_v20, %v3459_v29  ;;  %v5790_v32 = vld [vmem:[%s12151_s3 + $0xd8] sm:$0xff]  ;;  %v5362_v28 = vsel %vm2773_vm2, %v10724_v50, %v7943_v31  ;;  %v3319_v21 = vld [vmem:[#allocation2 + $0x6a] sm:$0xff]  ;;  %v3391_v20 = vld [vmem:[#allocation2 + $0x80] sm:$0xff] }
 0x51c   : > { %v10945_v34 = vpop.permute.xlu1 %7985  ;;  %6256 = vmatpush.msra.mxu2 %v5790_v32  ;;  %v5435_v58 = vsel %vm5401_vm4, %v5362_v28, %v7968_v57  ;;  %v3462_v1 = vld [vmem:[#allocation2 + $0x71] sm:$0xff]  ;;  %v8224_v12 = vpack.i.bf16 %v3392_v42, %v3391_v20  ;;  %v7978_v57 = vunpack.i.h.bf16 %v10924_v10  ;;  %v5385_v32 = vsel %vm2773_vm2, %v10737_v33, %v7857_v45  ;;  %v3321_v10 = vld [vmem:[#allocation2 + $0x82] sm:$0xff] }
 0x51d   : > { %v10937_v48 = vpop.permute.xlu0 %7980  ;;  %v7987_v38 = vunpack.i.l.bf16 %v10945_v34  ;;  %v5508_v50 = vsel %vm5474_vm5, %v5435_v58, %v7973_v54  ;;  %v8214_v31 = vpack.i.bf16 %v3462_v1, %v3461_v11  ;;  %v3464_v58 = vld [vmem:[#allocation2 + $0x89] sm:$0xff]  ;;  %v3320_v33 = vld [vmem:[#allocation2 + $0x72] sm:$0xff] }
 0x51e   : > { %v7982_v61 = vunpack.i.l.bf16 %v10937_v48  ;;  %6257 = vmatpush.msra.mxu2 %v5789_v39  ;;  %v3393_v42 = vld [vmem:[#allocation2 + $0x90] sm:$0xff]  ;;  %v8234_v11 = vpack.i.bf16 %v3321_v10, %v3320_v33  ;;  %v7993_v39 = vunpack.i.h.bf16 %v10960_v24 }
 0x51f   : > { %v5457_v59 = vsel %vm5401_vm4, %v5384_v22, %v7987_v38  ;;  %v3394_v38 = vld [vmem:[#allocation2 + $0xa0] sm:$0xff] }
 0x520   : > { %v5529_v63 = vsel %vm5474_vm5, %v5456_v47, %v7982_v61  ;;  %v7992_v61 = vunpack.i.l.bf16 %v10960_v24  ;;  %v10972_v26 = vpop.f32.mrf.mxu1  ;;  %v3318_v47 = vld [vmem:[#allocation2 + $0x62] sm:$0xff] }
 0x521   : > { %6131 = vmatmul.f32.gmra.mxu1 %v5507_v44  ;;  %v8219_v44 = vpack.i.bf16 %v3319_v21, %v3318_v47  ;;  %v8239_v21 = vpack.i.bf16 %v3394_v38, %v3393_v42  ;;  %v11000_v20 = vpop.permute.xlu2 %8005  ;;  %v3395_v38 = vld [vmem:[#allocation2 + $0xa8] sm:$0xff] }
 0x522   : > { %6197 = vmatmul.f32.gmra.mxu2 %v5529_v63  ;;  %8210 = vrot.lane.b32.xlu1 %v8209_v13, %s8705_s6  ;;  %v5530_v0 = vsel %vm5474_vm5, %v5457_v59, %v7992_v61  ;;  %v7947_v63 = vunpack.i.l.bf16 %v10866_v16  ;;  %v3463_v61 = vld [vmem:[#allocation2 + $0x81] sm:$0xff]  ;;  %v8007_v45 = vunpack.i.l.bf16 %v11000_v20 }
 0x523   : > { %8200 = vrot.lane.b32.xlu2 %v8199_v49, %s8706_s7  ;;  %8205 = vrot.lane.b32.xlu0 %v8204_v19, %s8704_s30  ;;  %v7983_v49 = vunpack.i.h.bf16 %v10937_v48  ;;  %v7948_v48 = vunpack.i.h.bf16 %v10866_v16  ;;  %v7858_v16 = vunpack.i.h.bf16 %v10747_v46  ;;  %v3322_v46 = vld [vmem:[#allocation2 + $0x8a] sm:$0xff] }
 0x524   : > { %v10978_v13 = vpop.permute.xlu1 %8000  ;;  %v5363_v54 = vsel %vm2773_vm2, %v10726_v17, %v7947_v63  ;;  %v7988_v17 = vunpack.i.h.bf16 %v10945_v34  ;;  %v5788_v34 = vld [vmem:[%s12151_s3 + $0xc8] sm:$0xff]  ;;  %v3396_v63 = vld [vmem:[#allocation2 + $0xb0] sm:$0xff] }
 0x525   : > { %v10970_v14 = vpop.permute.xlu0 %7995  ;;  %v8002_v19 = vunpack.i.l.bf16 %v10978_v13  ;;  %v5436_v22 = vsel %vm5401_vm4, %v5363_v54, %v7978_v57  ;;  %6258 = vmatpush.msra.mxu2 %v5788_v34  ;;  %v3466_v57 = vld [vmem:[#allocation2 + $0xa1] sm:$0xff]  ;;  %v3325_v34 = vld [vmem:[#allocation2 + $0xaa] sm:$0xff] }
 0x526   : > { %v7997_v29 = vunpack.i.l.bf16 %v10970_v14  ;;  %v5509_v1 = vsel %vm5474_vm5, %v5436_v22, %v7983_v49  ;;  %v7672_v49 = vunpack.i.l.bf16 %v9806_v5  ;;  %v7867_v22 = vunpack.i.l.bf16 %v10762_v51 }
 0x527   : > { %v7998_v24 = vunpack.i.h.bf16 %v10970_v14 }
 0x528   : > { %v5458_v28 = vsel %vm5401_vm4, %v5385_v32, %v7997_v29  ;;  %v10996_v59 = vpop.f32.mrf.mxu1  ;;  %v3323_v29 = vld [vmem:[#allocation2 + $0x92] sm:$0xff]  ;;  %v5386_v32 = vsel %vm2773_vm2, %v10756_v7, %v7858_v16  ;;  %v5795_v7 = vld [vmem:[%s12151_s3 + $0x100] sm:$0xff]  ;;  %v5365_v33 = vsel %vm2773_vm2, %v10735_v52, %v7672_v49  ;;  %v7673_v49 = vunpack.i.h.bf16 %v9806_v5 }
 0x529   : > { %6134 = vmatmul.f32.gmra.mxu1 %v5508_v50  ;;  %v5531_v50 = vsel %vm5474_vm5, %v5458_v28, %v8002_v19  ;;  %v5459_v54 = vsel %vm5401_vm4, %v5386_v32, %v8007_v45  ;;  %v8254_v28 = vpack.i.bf16 %v3396_v63, %v3395_v38  ;;  %v8249_v10 = vpack.i.bf16 %v3323_v29, %v3322_v46  ;;  %v11038_v14 = vpop.permute.xlu2 %8020  ;;  %v3468_v16 = vld [vmem:[#allocation2 + $0xb1] sm:$0xff]  ;;  %v5787_v45 = vld [vmem:[%s12151_s3 + $0xc0] sm:$0xff]  ;;  %v3467_v63 = vld [vmem:[#allocation2 + $0xa9] sm:$0xff] }
 0x52a   : > { %6200 = vmatmul.f32.gmra.mxu2 %v5530_v0  ;;  %8225 = vrot.lane.b32.xlu1 %v8224_v12, %s8705_s6  ;;  %v8229_v12 = vpack.i.bf16 %v3464_v58, %v3463_v61  ;;  %v5364_v0 = vsel %vm2773_vm2, %v10739_v4, %v7948_v48  ;;  %v3465_v58 = vld [vmem:[#allocation2 + $0x91] sm:$0xff]  ;;  %v8003_v61 = vunpack.i.h.bf16 %v10978_v13  ;;  %v8022_v13 = vunpack.i.l.bf16 %v11038_v14  ;;  %v3397_v52 = vld [vmem:[#allocation2 + $0xc0] sm:$0xff] }
 0x52b   : > { %8215 = vrot.lane.b32.xlu2 %v8214_v31, %s8706_s7  ;;  %8220 = vrot.lane.b32.xlu0 %v8219_v44, %s8704_s30  ;;  %v5437_v44 = vsel %vm5401_vm4, %v5364_v0, %v7988_v17  ;;  %v8244_v48 = vpack.i.bf16 %v3466_v57, %v3465_v58  ;;  %v5438_v17 = vsel %vm5401_vm4, %v5365_v33, %v7998_v24  ;;  %v7868_v46 = vunpack.i.h.bf16 %v10762_v51  ;;  %v3400_v58 = vld [vmem:[#allocation2 + $0xe0] sm:$0xff] }
 0x52c   : > { %v11020_v19 = vpop.permute.xlu1 %8015  ;;  %v5510_v4 = vsel %vm5474_vm5, %v5437_v44, %v7993_v39  ;;  %6500 = vmatpush.msrb.mxu1 %v5795_v7  ;;  %6259 = vmatpush.msra.mxu2 %v5787_v45  ;;  %v8259_v39 = vpack.i.bf16 %v3468_v16, %v3467_v63  ;;  %v3327_v24 = vld [vmem:[#allocation2 + $0xc2] sm:$0xff]  ;;  %v7702_v7 = vunpack.i.l.bf16 %v9819_v15  ;;  %v3328_v63 = vld [vmem:[#allocation2 + $0xca] sm:$0xff] }
 0x52d   : > { %v11004_v47 = vpop.permute.xlu0 %8010  ;;  %v5388_v5 = vsel %vm2773_vm2, %v10769_v25, %v7868_v46  ;;  %v3469_v33 = vld [vmem:[#allocation2 + $0xc1] sm:$0xff]  ;;  %v3326_v25 = vld [vmem:[#allocation2 + $0xb2] sm:$0xff] }
 0x52e   : > { %v8012_v31 = vunpack.i.l.bf16 %v11004_v47  ;;  %v5367_v45 = vsel %vm2773_vm2, %v10765_v2, %v7702_v7  ;;  %v3404_v7 = vld [vmem:[#allocation2 + $0x108] sm:$0xff] }
 0x530   : > { %v5532_v42 = vsel %vm5474_vm5, %v5459_v54, %v8012_v31  ;;  %v5511_v31 = vsel %vm5474_vm5, %v5438_v17, %v8003_v61  ;;  %v8013_v54 = vunpack.i.h.bf16 %v11004_v47  ;;  %v8018_v17 = vunpack.i.h.bf16 %v11020_v19 }
 0x531   : > { %6137 = vmatmul.f32.gmra.mxu1 %v5509_v1  ;;  %v11032_v1 = vpop.f32.mrf.mxu1 }
 0x532   : > { %6203 = vmatmul.f32.gmra.mxu2 %v5531_v50  ;;  %8240 = vrot.lane.b32.xlu1 %v8239_v21, %s8705_s6  ;;  %v8017_v21 = vunpack.i.l.bf16 %v11020_v19  ;;  %v5387_v50 = vsel %vm2773_vm2, %v10771_v55, %v7867_v22  ;;  %v3324_v55 = vld [vmem:[#allocation2 + $0xa2] sm:$0xff] }
 0x533   : > { %8230 = vrot.lane.b32.xlu2 %v8229_v12, %s8706_s7  ;;  %8235 = vrot.lane.b32.xlu0 %v8234_v11, %s8704_s30  ;;  %v3398_v12 = vld [vmem:[#allocation2 + $0xc8] sm:$0xff]  ;;  %v8264_v57 = vpack.i.bf16 %v3325_v34, %v3324_v55  ;;  %v7897_v34 = vunpack.i.l.bf16 %v10849_v6  ;;  %v3329_v55 = vld [vmem:[#allocation2 + $0xd2] sm:$0xff] }
 0x534   : > { %v5460_v11 = vsel %vm5401_vm4, %v5387_v50, %v8017_v21  ;;  %v8269_v44 = vpack.i.bf16 %v3398_v12, %v3397_v52  ;;  %v11057_v32 = vpop.permute.xlu1 %8030  ;;  %v11075_v21 = vpop.permute.xlu2 %8035  ;;  %v8279_v12 = vpack.i.bf16 %v3327_v24, %v3326_v25  ;;  %v3331_v25 = vld [vmem:[#allocation2 + $0xea] sm:$0xff] }
 0x535   : > { %v11051_v0 = vpop.permute.xlu0 %8025  ;;  %v5533_v29 = vsel %vm5474_vm5, %v5460_v11, %v8022_v13  ;;  %v5786_v11 = vld [vmem:[%s12151_s3 + $0xb8] sm:$0xff]  ;;  %v8037_v19 = vunpack.i.l.bf16 %v11075_v21  ;;  %v5389_v2 = vsel %vm2773_vm2, %v10782_v60, %v7897_v34  ;;  %v7932_v34 = vunpack.i.l.bf16 %v10864_v35 }
 0x536   : > { %v8027_v38 = vunpack.i.l.bf16 %v11051_v0  ;;  %6260 = vmatpush.msra.mxu2 %v5786_v11  ;;  %v3330_v11 = vld [vmem:[#allocation2 + $0xe2] sm:$0xff] }
 0x538   : > { %v5461_v22 = vsel %vm5401_vm4, %v5388_v5, %v8027_v38  ;;  %v8294_v5 = vpack.i.bf16 %v3329_v55, %v3328_v63  ;;  %v11139_v63 = vld [vmem:[#allocation2 + $0x1a8] sm:$0xff] }
 0x539   : > { %6140 = vmatmul.f32.gmra.mxu1 %v5510_v4  ;;  %v8008_v4 = vunpack.i.h.bf16 %v11000_v20  ;;  %v11064_v51 = vpop.f32.mrf.mxu1  ;;  %v3470_v20 = vld [vmem:[#allocation2 + $0xc9] sm:$0xff] }
 0x53a   : > { %6206 = vmatmul.f32.gmra.mxu2 %v5532_v42  ;;  %8255 = vrot.lane.b32.xlu1 %v8254_v28, %s8705_s6  ;;  %v8032_v28 = vunpack.i.l.bf16 %v11057_v32  ;;  %v8274_v50 = vpack.i.bf16 %v3470_v20, %v3469_v33  ;;  %v5785_v20 = vld [vmem:[%s12151_s3 + $0xb0] sm:$0xff]  ;;  %v5784_v55 = vld [vmem:[%s12151_s3 + $0xa8] sm:$0xff] }
 0x53b   : > { %8245 = vrot.lane.b32.xlu2 %v8244_v48, %s8706_s7  ;;  %8250 = vrot.lane.b32.xlu0 %v8249_v10, %s8704_s30  ;;  %v5366_v10 = vsel %vm2773_vm2, %v10754_v23, %v7673_v49  ;;  %v3399_v48 = vld [vmem:[#allocation2 + $0xd0] sm:$0xff]  ;;  %v3401_v49 = vld [vmem:[#allocation2 + $0xe8] sm:$0xff] }
 0x53c   : > { %v5439_v42 = vsel %vm5401_vm4, %v5366_v10, %v8008_v4  ;;  %v8284_v61 = vpack.i.bf16 %v3400_v58, %v3399_v48  ;;  %v5534_v23 = vsel %vm5474_vm5, %v5461_v22, %v8032_v28  ;;  %v11092_v13 = vpop.permute.xlu1 %8045  ;;  %v5462_v4 = vsel %vm5401_vm4, %v5389_v2, %v8037_v19  ;;  %v3471_v28 = vld [vmem:[#allocation2 + $0xd1] sm:$0xff]  ;;  %6261 = vmatpush.msra.mxu2 %v5785_v20  ;;  %v3475_v20 = vld [vmem:[#allocation2 + $0x101] sm:$0xff] }
 0x53d   : > { %v5512_v47 = vsel %vm5474_vm5, %v5439_v42, %v8013_v54  ;;  %v11083_v16 = vpop.permute.xlu0 %8040  ;;  %v7898_v58 = vunpack.i.h.bf16 %v10849_v6  ;;  %v8028_v10 = vunpack.i.h.bf16 %v11051_v0  ;;  %v8047_v60 = vunpack.i.l.bf16 %v11092_v13  ;;  %v3474_v33 = vld [vmem:[#allocation2 + $0xf1] sm:$0xff] }
 0x53e   : > { %v8042_v52 = vunpack.i.l.bf16 %v11083_v16  ;;  %v8033_v6 = vunpack.i.h.bf16 %v11057_v32  ;;  %6262 = vmatpush.msra.mxu2 %v5784_v55 }
 0x53f   : > { %v5390_v48 = vsel %vm2773_vm2, %v10794_v18, %v7898_v58 }
 0x541   : > { %6143 = vmatmul.f32.gmra.mxu1 %v5511_v31  ;;  %v5440_v31 = vsel %vm5401_vm4, %v5367_v45, %v8018_v17  ;;  %v11096_v46 = vpop.f32.mrf.mxu1  ;;  %v8309_v45 = vpack.i.bf16 %v3331_v25, %v3330_v11 }
 0x542   : > { %6209 = vmatmul.f32.gmra.mxu2 %v5533_v29  ;;  %8270 = vrot.lane.b32.xlu1 %v8269_v44, %s8705_s6  ;;  %v3402_v44 = vld [vmem:[#allocation2 + $0xf0] sm:$0xff]  ;;  %v8023_v29 = vunpack.i.h.bf16 %v11038_v14  ;;  %v5535_v14 = vsel %vm5474_vm5, %v5462_v4, %v8042_v52  ;;  %v7707_v52 = vunpack.i.l.bf16 %v9905_v56 }
 0x543   : > { %8260 = vrot.lane.b32.xlu2 %v8259_v39, %s8706_s7  ;;  %8265 = vrot.lane.b32.xlu0 %v8264_v57, %s8704_s30  ;;  %v3472_v39 = vld [vmem:[#allocation2 + $0xe1] sm:$0xff]  ;;  %v7703_v57 = vunpack.i.h.bf16 %v9819_v15  ;;  %v8299_v54 = vpack.i.bf16 %v3402_v44, %v3401_v49  ;;  %v11107_v15 = vpop.permute.xlu2 %8050  ;;  %v8038_v44 = vunpack.i.h.bf16 %v11075_v21 }
 0x544   : > { %v5513_v38 = vsel %vm5474_vm5, %v5440_v31, %v8023_v29  ;;  %v8289_v22 = vpack.i.bf16 %v3472_v39, %v3471_v28  ;;  %v8052_v32 = vunpack.i.l.bf16 %v11107_v15  ;;  %v11128_v17 = vpop.permute.xlu1 %8060  ;;  %v8043_v39 = vunpack.i.h.bf16 %v11083_v16  ;;  %v3406_v49 = vld [vmem:[#allocation2 + $0x120] sm:$0xff]  ;;  %v3476_v28 = vld [vmem:[#allocation2 + $0x109] sm:$0xff] }
 0x545   : > { %v11117_v0 = vpop.permute.xlu0 %8055  ;;  %v5368_v24 = vsel %vm2773_vm2, %v10767_v30, %v7703_v57  ;;  %v3014_v57 = vld [vmem:[#allocation2 + $0x290] sm:$0xff]  ;;  %v8062_v2 = vunpack.i.l.bf16 %v11128_v17  ;;  %v5369_v4 = vsel %vm2773_vm2, %v11139_v63, %v7707_v52  ;;  %v7708_v16 = vunpack.i.h.bf16 %v9905_v56  ;;  %v3407_v52 = vld [vmem:[#allocation2 + $0x128] sm:$0xff] }
 0x546   : > { %v5441_v42 = vsel %vm5401_vm4, %v5368_v24, %v8028_v10  ;;  %v8057_v31 = vunpack.i.l.bf16 %v11117_v0  ;;  %v5391_v21 = vsel %vm2773_vm2, %v3014_v57, %v7932_v34  ;;  %v5442_v58 = vsel %vm5401_vm4, %v5369_v4, %v8038_v44  ;;  %v3405_v10 = vld [vmem:[#allocation2 + $0x110] sm:$0xff]  ;;  %v3015_v34 = vld [vmem:[#allocation2 + $0x2a0] sm:$0xff] }
 0x547   : > { %v5514_v30 = vsel %vm5474_vm5, %v5441_v42, %v8033_v6  ;;  %v3332_v6 = vld [vmem:[#allocation2 + $0xf2] sm:$0xff]  ;;  %v8048_v24 = vunpack.i.h.bf16 %v11092_v13  ;;  %v7933_v56 = vunpack.i.h.bf16 %v10864_v35  ;;  %v8053_v35 = vunpack.i.h.bf16 %v11107_v15 }
 0x549   : > { %6146 = vmatmul.f32.gmra.mxu1 %v5512_v47  ;;  %v11124_v47 = vpop.f32.mrf.mxu1 }
 0x54a   : > { %6212 = vmatmul.f32.gmra.mxu2 %v5534_v23  ;;  %8285 = vrot.lane.b32.xlu1 %v8284_v61, %s8705_s6  ;;  %v5463_v61 = vsel %vm5401_vm4, %v5390_v48, %v8047_v60  ;;  %v3403_v23 = vld [vmem:[#allocation2 + $0x100] sm:$0xff]  ;;  %v8329_v60 = vpack.i.bf16 %v3406_v49, %v3405_v10  ;;  %v8058_v49 = vunpack.i.h.bf16 %v11117_v0  ;;  %v8063_v0 = vunpack.i.h.bf16 %v11128_v17 }
 0x54b   : > { %8275 = vrot.lane.b32.xlu2 %v8274_v50, %s8706_s7  ;;  %8280 = vrot.lane.b32.xlu0 %v8279_v12, %s8704_s30  ;;  %v8314_v50 = vpack.i.bf16 %v3404_v7, %v3403_v23  ;;  %v3473_v12 = vld [vmem:[#allocation2 + $0xe9] sm:$0xff]  ;;  %v5536_v18 = vsel %vm5474_vm5, %v5463_v61, %v8052_v32  ;;  %v11144_v29 = vpop.permute.xlu2 %8065  ;;  %v8319_v7 = vpack.i.bf16 %v3476_v28, %v3475_v20 }
 0x54c   : > { %v8304_v19 = vpack.i.bf16 %v3474_v33, %v3473_v12  ;;  %v11160_v42 = vpop.permute.xlu1 %8075  ;;  %v11167_v33 = vld [vmem:[#allocation2 + $0x1b0] sm:$0xff]  ;;  %v8067_v13 = vunpack.i.l.bf16 %v11144_v29 }
 0x54d   : > { %v5370_v25 = vsel %vm2773_vm2, %v11167_v33, %v7708_v16  ;;  %v3335_v12 = vld [vmem:[#allocation2 + $0x112] sm:$0xff]  ;;  %v8077_v4 = vunpack.i.l.bf16 %v11160_v42  ;;  %v3016_v16 = vld [vmem:[#allocation2 + $0x2a8] sm:$0xff] }
 0x54e   : > { %v5443_v23 = vsel %vm5401_vm4, %v5370_v25, %v8048_v24 }
 0x54f   : > { %v5516_v55 = vsel %vm5474_vm5, %v5443_v23, %v8053_v35  ;;  %v5393_v20 = vsel %vm2773_vm2, %v3016_v16, %v8077_v4  ;;  %v3336_v23 = vld [vmem:[#allocation2 + $0x122] sm:$0xff] }
 0x550   : > { %v3339_v4 = vld [vmem:[#allocation2 + $0x142] sm:$0xff] }
 0x551   : > { %6149 = vmatmul.f32.gmra.mxu1 %v5513_v38  ;;  %v11149_v38 = vpop.permute.xlu0 %8070 }
 0x552   : > { %6215 = vmatmul.f32.gmra.mxu2 %v5535_v14  ;;  %8300 = vrot.lane.b32.xlu1 %v8299_v54, %s8705_s6  ;;  %v5464_v54 = vsel %vm5401_vm4, %v5391_v21, %v8057_v31  ;;  %v11156_v14 = vpop.f32.mrf.mxu1  ;;  %v8072_v32 = vunpack.i.l.bf16 %v11149_v38  ;;  %v5783_v21 = vld [vmem:[%s12151_s3 + $0xa0] sm:$0xff] }
 0x553   : > { %8290 = vrot.lane.b32.xlu2 %v8289_v22, %s8706_s7  ;;  %8295 = vrot.lane.b32.xlu0 %v8294_v5, %s8704_s30  ;;  %v3333_v5 = vld [vmem:[#allocation2 + $0x102] sm:$0xff]  ;;  %v5515_v22 = vsel %vm5474_vm5, %v5442_v58, %v8043_v39  ;;  %v5537_v48 = vsel %vm5474_vm5, %v5464_v54, %v8062_v2  ;;  %v11175_v11 = vpop.permute.xlu2 %8080  ;;  %v3477_v2 = vld [vmem:[#allocation2 + $0x111] sm:$0xff] }
 0x554   : > { %v8324_v61 = vpack.i.bf16 %v3333_v5, %v3332_v6  ;;  %6263 = vmatpush.msra.mxu2 %v5783_v21  ;;  %v11192_v5 = vpop.permute.xlu1 %8090  ;;  %v11196_v58 = vld [vmem:[#allocation2 + $0x1c0] sm:$0xff]  ;;  %v3410_v6 = vld [vmem:[#allocation2 + $0x148] sm:$0xff]  ;;  %v8082_v24 = vunpack.i.l.bf16 %v11175_v11 }
 0x559   : > { %6152 = vmatmul.f32.gmra.mxu1 %v5514_v30  ;;  %v3408_v30 = vld [vmem:[#allocation2 + $0x130] sm:$0xff]  ;;  %v11181_v44 = vpop.permute.xlu0 %8085 }
 0x55a   : > { %6218 = vmatmul.f32.gmra.mxu2 %v5536_v18  ;;  %8315 = vrot.lane.b32.xlu1 %v8314_v50, %s8705_s6  ;;  %v3334_v50 = vld [vmem:[#allocation2 + $0x10a] sm:$0xff]  ;;  %v3478_v18 = vld [vmem:[#allocation2 + $0x121] sm:$0xff]  ;;  %v11179_v31 = vpop.f32.mrf.mxu1  ;;  %v8344_v57 = vpack.i.bf16 %v3408_v30, %v3407_v52  ;;  %v8078_v30 = vunpack.i.h.bf16 %v11160_v42  ;;  %v8068_v42 = vunpack.i.h.bf16 %v11144_v29 }
 0x55b   : > { %8305 = vrot.lane.b32.xlu2 %v8304_v19, %s8706_s7  ;;  %8310 = vrot.lane.b32.xlu0 %v8309_v45, %s8704_s30  ;;  %v7717_v19 = vunpack.i.l.bf16 %v9959_v62  ;;  %v5392_v45 = vsel %vm2773_vm2, %v3015_v34, %v7933_v56  ;;  %v8339_v15 = vpack.i.bf16 %v3335_v12, %v3334_v50  ;;  %v8334_v28 = vpack.i.bf16 %v3478_v18, %v3477_v2  ;;  %v11205_v56 = vpop.permute.xlu2 %8095  ;;  %v5782_v34 = vld [vmem:[%s12151_s3 + $0x98] sm:$0xff] }
 0x55c   : > { %v5465_v39 = vsel %vm5401_vm4, %v5392_v45, %v8067_v13  ;;  %v5466_v13 = vsel %vm5401_vm4, %v5393_v20, %v8082_v24  ;;  %v7718_v18 = vunpack.i.h.bf16 %v9959_v62  ;;  %v8092_v45 = vunpack.i.l.bf16 %v11192_v5  ;;  %6264 = vmatpush.msra.mxu2 %v5782_v34  ;;  %v11225_v62 = vpop.permute.xlu1 %8105  ;;  %v3413_v34 = vld [vmem:[#allocation2 + $0x168] sm:$0xff] }
 0x55d   : > { %v5538_v54 = vsel %vm5474_vm5, %v5465_v39, %v8072_v32  ;;  %v5371_v10 = vsel %vm2773_vm2, %v11196_v58, %v7717_v19  ;;  %v3479_v32 = vld [vmem:[#allocation2 + $0x129] sm:$0xff] }
 0x55e   : > { %v3017_v39 = vld [vmem:[#allocation2 + $0x2b0] sm:$0xff] }
 0x55f   : > { %v5394_v2 = vsel %vm2773_vm2, %v3017_v39, %v8078_v30  ;;  %v8088_v30 = vunpack.i.h.bf16 %v11181_v44 }
 0x560   : > { %v5467_v29 = vsel %vm5401_vm4, %v5394_v2, %v8092_v45  ;;  %v3341_v45 = vld [vmem:[#allocation2 + $0x152] sm:$0xff] }
 0x561   : > { %6155 = vmatmul.f32.gmra.mxu1 %v5515_v22  ;;  %v8087_v22 = vunpack.i.l.bf16 %v11181_v44  ;;  %v11218_v52 = vpop.permute.xlu0 %8100 }
 0x562   : > { %6221 = vmatmul.f32.gmra.mxu2 %v5537_v48  ;;  %8330 = vrot.lane.b32.xlu1 %v8329_v60, %s8705_s6  ;;  %v5444_v60 = vsel %vm5401_vm4, %v5371_v10, %v8058_v49  ;;  %v3480_v48 = vld [vmem:[#allocation2 + $0x131] sm:$0xff]  ;;  %v11215_v19 = vpop.f32.mrf.mxu1  ;;  %v3482_v49 = vld [vmem:[#allocation2 + $0x149] sm:$0xff] }
 0x563   : > { %8320 = vrot.lane.b32.xlu2 %v8319_v7, %s8706_s7  ;;  %8325 = vrot.lane.b32.xlu0 %v8324_v61, %s8704_s30  ;;  %v3337_v7 = vld [vmem:[#allocation2 + $0x12a] sm:$0xff]  ;;  %v3409_v61 = vld [vmem:[#allocation2 + $0x140] sm:$0xff]  ;;  %v5517_v17 = vsel %vm5474_vm5, %v5444_v60, %v8063_v0  ;;  %v5539_v50 = vsel %vm5474_vm5, %v5466_v13, %v8087_v22  ;;  %v8349_v12 = vpack.i.bf16 %v3480_v48, %v3479_v32  ;;  %v3338_v60 = vld [vmem:[#allocation2 + $0x132] sm:$0xff]  ;;  %v7712_v48 = vunpack.i.l.bf16 %v9922_v53 }
 0x564   : > { %v8359_v25 = vpack.i.bf16 %v3410_v6, %v3409_v61  ;;  %v8354_v35 = vpack.i.bf16 %v3337_v7, %v3336_v23  ;;  %v3411_v0 = vld [vmem:[#allocation2 + $0x150] sm:$0xff]  ;;  %v3481_v22 = vld [vmem:[#allocation2 + $0x141] sm:$0xff]  ;;  %v8369_v24 = vpack.i.bf16 %v3339_v4, %v3338_v60  ;;  %v11239_v7 = vpop.permute.xlu2 %8110  ;;  %v8107_v61 = vunpack.i.l.bf16 %v11225_v62  ;;  %v11261_v2 = vpop.permute.xlu1 %8120 }
 0x565   : > { %v8364_v6 = vpack.i.bf16 %v3482_v49, %v3481_v22  ;;  %v5781_v13 = vld [vmem:[%s12151_s3 + $0x90] sm:$0xff]  ;;  %v8112_v39 = vunpack.i.l.bf16 %v11239_v7  ;;  %v11282_v22 = vld [vmem:[#allocation2 + $0x2c8] sm:$0xff]  ;;  %v8122_v60 = vunpack.i.l.bf16 %v11261_v2 }
 0x566   : > { %6265 = vmatpush.msra.mxu2 %v5781_v13  ;;  %v3483_v49 = vld [vmem:[#allocation2 + $0x151] sm:$0xff] }
 0x569   : > { %6158 = vmatmul.f32.gmra.mxu1 %v5516_v55  ;;  %v8073_v55 = vunpack.i.h.bf16 %v11149_v38  ;;  %v8102_v38 = vunpack.i.l.bf16 %v11218_v52 }
 0x56a   : > { %6224 = vmatmul.f32.gmra.mxu2 %v5538_v54  ;;  %8345 = vrot.lane.b32.xlu1 %v8344_v57, %s8705_s6  ;;  %v11227_v57 = vld [vmem:[#allocation2 + $0x1c8] sm:$0xff]  ;;  %v8097_v54 = vunpack.i.l.bf16 %v11205_v56  ;;  %v11250_v23 = vpop.f32.mrf.mxu1 }
 0x56b   : > { %8335 = vrot.lane.b32.xlu2 %v8334_v28, %s8706_s7  ;;  %8340 = vrot.lane.b32.xlu0 %v8339_v15, %s8704_s30  ;;  %v3412_v15 = vld [vmem:[#allocation2 + $0x160] sm:$0xff]  ;;  %v5372_v21 = vsel %vm2773_vm2, %v11227_v57, %v7718_v18  ;;  %v3414_v18 = vld [vmem:[#allocation2 + $0x170] sm:$0xff] }
 0x56c   : > { %v5445_v28 = vsel %vm5401_vm4, %v5372_v21, %v8068_v42  ;;  %v8374_v16 = vpack.i.bf16 %v3412_v15, %v3411_v0  ;;  %v5540_v20 = vsel %vm5474_vm5, %v5467_v29, %v8097_v54  ;;  %v7713_v15 = vunpack.i.h.bf16 %v9922_v53  ;;  %v11273_v53 = vld [vmem:[#allocation2 + $0x1e0] sm:$0xff] }
 0x56d   : > { %v5518_v10 = vsel %vm5474_vm5, %v5445_v28, %v8073_v55  ;;  %v3484_v55 = vld [vmem:[#allocation2 + $0x161] sm:$0xff]  ;;  %v8389_v29 = vpack.i.bf16 %v3414_v18, %v3413_v34  ;;  %v8093_v54 = vunpack.i.h.bf16 %v11192_v5  ;;  %v3486_v34 = vld [vmem:[#allocation2 + $0x171] sm:$0xff]  ;;  %v7677_v18 = vunpack.i.l.bf16 %v9892_v43 }
 0x56e   : > { %v8379_v0 = vpack.i.bf16 %v3484_v55, %v3483_v49  ;;  %v5780_v5 = vld [vmem:[%s12151_s3 + $0x88] sm:$0xff]  ;;  %v11309_v49 = vld [vmem:[#allocation2 + $0x2d0] sm:$0xff] }
 0x56f   : > { %6266 = vmatpush.msra.mxu2 %v5780_v5 }
 0x571   : > { %6161 = vmatmul.f32.gmra.mxu1 %v5517_v17  ;;  %v3018_v17 = vld [vmem:[#allocation2 + $0x2c0] sm:$0xff] }
 0x572   : > { %6227 = vmatmul.f32.gmra.mxu2 %v5539_v50  ;;  %8360 = vrot.lane.b32.xlu1 %v8359_v25, %s8705_s6  ;;  %v8083_v25 = vunpack.i.h.bf16 %v11175_v11  ;;  %v5395_v32 = vsel %vm2773_vm2, %v3018_v17, %v8102_v38  ;;  %v11253_v50 = vpop.permute.xlu0 %8115  ;;  %v8103_v38 = vunpack.i.h.bf16 %v11218_v52  ;;  %v11278_v52 = vpop.permute.xlu2 %8125  ;;  %v8098_v17 = vunpack.i.h.bf16 %v11205_v56 }
 0x573   : > { %8350 = vrot.lane.b32.xlu2 %v8349_v12, %s8706_s7  ;;  %8355 = vrot.lane.b32.xlu0 %v8354_v35, %s8704_s30  ;;  %v11255_v12 = vld [vmem:[#allocation2 + $0x1d0] sm:$0xff]  ;;  %v5468_v42 = vsel %vm5401_vm4, %v5395_v32, %v8107_v61  ;;  %v11289_v13 = vpop.f32.mrf.mxu1  ;;  %v8127_v55 = vunpack.i.l.bf16 %v11278_v52  ;;  %v11298_v56 = vpop.permute.xlu1 %8135 }
 0x574   : > { %v3340_v35 = vld [vmem:[#allocation2 + $0x14a] sm:$0xff]  ;;  %v5373_v11 = vsel %vm2773_vm2, %v11255_v12, %v7712_v48  ;;  %v5541_v28 = vsel %vm5474_vm5, %v5468_v42, %v8112_v39  ;;  %v8108_v39 = vunpack.i.h.bf16 %v11225_v62 }
 0x575   : > { %v5446_v44 = vsel %vm5401_vm4, %v5373_v11, %v8083_v25  ;;  %v8384_v4 = vpack.i.bf16 %v3341_v45, %v3340_v35  ;;  %v3416_v48 = vld [vmem:[#allocation2 + $0x188] sm:$0xff] }
 0x576   : > { %v5519_v21 = vsel %vm5474_vm5, %v5446_v44, %v8088_v30  ;;  %v3485_v61 = vld [vmem:[#allocation2 + $0x169] sm:$0xff] }
 0x577   : > { %v3342_v30 = vld [vmem:[#allocation2 + $0x162] sm:$0xff]  ;;  %v3343_v35 = vld [vmem:[#allocation2 + $0x16a] sm:$0xff]  ;;  %v8394_v42 = vpack.i.bf16 %v3486_v34, %v3485_v61  ;;  %v7678_v61 = vunpack.i.h.bf16 %v9892_v43 }
 0x579   : > { %6164 = vmatmul.f32.gmra.mxu1 %v5518_v10  ;;  %v8117_v10 = vunpack.i.l.bf16 %v11253_v50 }
 0x57a   : > { %6230 = vmatmul.f32.gmra.mxu2 %v5540_v20  ;;  %8375 = vrot.lane.b32.xlu1 %v8374_v16, %s8705_s6  ;;  %v5374_v16 = vsel %vm2773_vm2, %v11273_v53, %v7713_v15  ;;  %v11291_v25 = vpop.permute.xlu0 %8130  ;;  %v8399_v15 = vpack.i.bf16 %v3343_v35, %v3342_v30  ;;  %v11316_v5 = vpop.permute.xlu2 %8140  ;;  %v3345_v30 = vld [vmem:[#allocation2 + $0x182] sm:$0xff]  ;;  %v8118_v35 = vunpack.i.h.bf16 %v11253_v50 }
 0x57b   : > { %8365 = vrot.lane.b32.xlu2 %v8364_v6, %s8706_s7  ;;  %8370 = vrot.lane.b32.xlu0 %v8369_v24, %s8704_s30  ;;  %v5447_v20 = vsel %vm5401_vm4, %v5374_v16, %v8093_v54  ;;  %v5396_v6 = vsel %vm2773_vm2, %v11282_v22, %v8103_v38  ;;  %v3415_v24 = vld [vmem:[#allocation2 + $0x180] sm:$0xff]  ;;  %v5397_v38 = vsel %vm2773_vm2, %v11309_v49, %v8127_v55  ;;  %v11332_v43 = vpop.permute.xlu1 %8150  ;;  %v8142_v50 = vunpack.i.l.bf16 %v11316_v5 }
 0x57c   : > { %v5469_v32 = vsel %vm5401_vm4, %v5396_v6, %v8117_v10  ;;  %v5520_v45 = vsel %vm5474_vm5, %v5447_v20, %v8098_v17  ;;  %v8404_v11 = vpack.i.bf16 %v3416_v48, %v3415_v24  ;;  %v8113_v10 = vunpack.i.h.bf16 %v11239_v7  ;;  %v3487_v20 = vld [vmem:[#allocation2 + $0x181] sm:$0xff]  ;;  %v3488_v6 = vld [vmem:[#allocation2 + $0x189] sm:$0xff]  ;;  %v3344_v24 = vld [vmem:[#allocation2 + $0x172] sm:$0xff] }
 0x57d   : > { %v5542_v44 = vsel %vm5474_vm5, %v5469_v32, %v8122_v60  ;;  %v5779_v48 = vld [vmem:[%s12151_s3 + $0x80] sm:$0xff]  ;;  %v8123_v55 = vunpack.i.h.bf16 %v11261_v2 }
 0x57e   : > { %6267 = vmatpush.msra.mxu2 %v5779_v48  ;;  %v8133_v48 = vunpack.i.h.bf16 %v11291_v25 }
 0x581   : > { %6167 = vmatmul.f32.gmra.mxu1 %v5519_v21  ;;  %v8132_v21 = vunpack.i.l.bf16 %v11291_v25  ;;  %v11372_v25 = vld [vmem:[#allocation2 + $0x2e8] sm:$0xff] }
 0x582   : > { %6233 = vmatmul.f32.gmra.mxu2 %v5541_v28  ;;  %8390 = vrot.lane.b32.xlu1 %v8389_v29, %s8705_s6  ;;  %v11305_v29 = vld [vmem:[#allocation2 + $0x1e8] sm:$0xff]  ;;  %v3417_v28 = vld [vmem:[#allocation2 + $0x190] sm:$0xff]  ;;  %v11325_v17 = vpop.permute.xlu0 %8145 }
 0x583   : > { %8380 = vrot.lane.b32.xlu2 %v8379_v0, %s8706_s7  ;;  %8385 = vrot.lane.b32.xlu0 %v8384_v4, %s8704_s30  ;;  %v5375_v62 = vsel %vm2773_vm2, %v11305_v29, %v7677_v18  ;;  %v8137_v4 = vunpack.i.l.bf16 %v11298_v56  ;;  %v3418_v0 = vld [vmem:[#allocation2 + $0x1a0] sm:$0xff]  ;;  %v5470_v60 = vsel %vm5401_vm4, %v5397_v38, %v8132_v21  ;;  %v8409_v18 = vpack.i.bf16 %v3488_v6, %v3487_v20  ;;  %v3346_v21 = vld [vmem:[#allocation2 + $0x18a] sm:$0xff] }
 0x584   : > { %v5448_v54 = vsel %vm5401_vm4, %v5375_v62, %v8108_v39  ;;  %v8419_v7 = vpack.i.bf16 %v3418_v0, %v3417_v28  ;;  %v3347_v62 = vld [vmem:[#allocation2 + $0x192] sm:$0xff]  ;;  %v3490_v28 = vld [vmem:[#allocation2 + $0x1a1] sm:$0xff]  ;;  %v7732_v0 = vunpack.i.l.bf16 %v10175_v9  ;;  %v8434_v6 = vpack.i.bf16 %v11167_v33, %v11139_v63 }
 0x585   : > { %v5521_v32 = vsel %vm5474_vm5, %v5448_v54, %v8113_v10  ;;  %v5543_v34 = vsel %vm5474_vm5, %v5470_v60, %v8137_v4  ;;  %v11348_v54 = vld [vmem:[#allocation2 + $0x2e0] sm:$0xff]  ;;  %v3489_v38 = vld [vmem:[#allocation2 + $0x191] sm:$0xff]  ;;  %v11353_v10 = vpop.permute.xlu2 %8155  ;;  %v8138_v63 = vunpack.i.h.bf16 %v11298_v56 }
 0x589   : > { %6170 = vmatmul.f32.gmra.mxu1 %v5520_v45  ;;  %v8414_v45 = vpack.i.bf16 %v3345_v30, %v3344_v24  ;;  %v8429_v24 = vpack.i.bf16 %v3347_v62, %v3346_v21  ;;  %v3349_v21 = vld [vmem:[#allocation2 + $0x1aa] sm:$0xff] }
 0x58a   : > { %6236 = vmatmul.f32.gmra.mxu2 %v5542_v44  ;;  %8405 = vrot.lane.b32.xlu1 %v8404_v11, %s8705_s6  ;;  %v8128_v11 = vunpack.i.h.bf16 %v11278_v52  ;;  %v11362_v30 = vpop.permute.xlu0 %8160 }
 0x58b   : > { %8395 = vrot.lane.b32.xlu2 %v8394_v42, %s8706_s7  ;;  %8400 = vrot.lane.b32.xlu0 %v8399_v15, %s8704_s30  ;;  %v11336_v42 = vld [vmem:[#allocation2 + $0x1f0] sm:$0xff]  ;;  %v8147_v15 = vunpack.i.l.bf16 %v11325_v17 }
 0x58c   : > { %v5376_v44 = vsel %vm2773_vm2, %v11336_v42, %v7678_v61  ;;  %v5398_v2 = vsel %vm2773_vm2, %v11348_v54, %v8128_v11  ;;  %v8152_v61 = vunpack.i.l.bf16 %v11332_v43 }
 0x58d   : > { %v5449_v52 = vsel %vm5401_vm4, %v5376_v44, %v8118_v35  ;;  %v5471_v20 = vsel %vm5401_vm4, %v5398_v2, %v8142_v50  ;;  %v11367_v35 = vld [vmem:[#allocation2 + $0x200] sm:$0xff] }
 0x58e   : > { %v11318_v16 = vpop.f32.mrf.mxu1  ;;  %v5522_v60 = vsel %vm5474_vm5, %v5449_v52, %v8123_v55  ;;  %v5377_v33 = vsel %vm2773_vm2, %v11367_v35, %v7732_v0  ;;  %v5399_v11 = vsel %vm2773_vm2, %v11372_v25, %v8152_v61  ;;  %v3348_v50 = vld [vmem:[#allocation2 + $0x1a2] sm:$0xff]  ;;  %v8157_v55 = vunpack.i.l.bf16 %v11353_v10  ;;  %v3492_v52 = vld [vmem:[#allocation2 + $0x1b1] sm:$0xff] }
 0x58f   : > { %v8153_v0 = vunpack.i.h.bf16 %v11332_v43  ;;  %v8143_v61 = vunpack.i.h.bf16 %v11316_v5  ;;  %v11400_v43 = vld [vmem:[#allocation2 + $0x2f0] sm:$0xff] }
 0x591   : > { %6173 = vmatmul.f32.gmra.mxu1 %v5521_v32  ;;  %v5544_v32 = vsel %vm5474_vm5, %v5471_v20, %v8147_v15  ;;  %v3491_v15 = vld [vmem:[#allocation2 + $0x1a9] sm:$0xff]  ;;  %v8444_v20 = vpack.i.bf16 %v3349_v21, %v3348_v50  ;;  %v8464_v21 = vpack.i.bf16 %v11273_v53, %v11255_v12  ;;  %v8163_v53 = vunpack.i.h.bf16 %v11362_v30 }
 0x592   : > { %6239 = vmatmul.f32.gmra.mxu2 %v5543_v34  ;;  %8420 = vrot.lane.b32.xlu1 %v8419_v7, %s8705_s6  ;;  %v8424_v7 = vpack.i.bf16 %v3490_v28, %v3489_v38  ;;  %v11374_v34 = vpop.permute.xlu1 %8165  ;;  %v5472_v38 = vsel %vm5401_vm4, %v5399_v11, %v8157_v55  ;;  %v8449_v28 = vpack.i.bf16 %v11227_v57, %v11196_v58  ;;  %v8148_v58 = vunpack.i.h.bf16 %v11325_v17  ;;  %v8176_v57 = vpop.permute.xlu0 %8175  ;;  %v3351_v17 = vld [vmem:[#allocation2 + $0x1c2] sm:$0xff] }
 0x593   : > { %8410 = vrot.lane.b32.xlu2 %v8409_v18, %s8706_s7  ;;  %8415 = vrot.lane.b32.xlu0 %v8414_v45, %s8704_s30  ;;  %v8162_v18 = vunpack.i.l.bf16 %v11362_v30  ;;  %v5450_v45 = vsel %vm5401_vm4, %v5377_v33, %v8133_v48  ;;  %v8167_v48 = vunpack.i.l.bf16 %v11374_v34  ;;  %v8177_v55 = vunpack.i.l.bf16 %v8176_v57 }
 0x594   : > { %v11340_v39 = vpop.f32.mrf.mxu2  ;;  %v5523_v62 = vsel %vm5474_vm5, %v5450_v45, %v8138_v63  ;;  %v3350_v45 = vld [vmem:[#allocation2 + $0x1b2] sm:$0xff] }
 0x595   : > { %v5545_v2 = vsel %vm5474_vm5, %v5472_v38, %v8162_v18  ;;  %v3494_v18 = vld [vmem:[#allocation2 + $0x1c9] sm:$0xff] }
 0x596   : > { %v11346_v4 = vpop.f32.mrf.mxu1 }
 0x599   : > { %6176 = vmatmul.f32.gmra.mxu1 %v5522_v60  ;;  %v8439_v60 = vpack.i.bf16 %v3492_v52, %v3491_v15 }
 0x59a   : > { %6242 = vmatmul.f32.gmra.mxu2 %v5544_v32  ;;  %8435 = vrot.lane.b32.xlu1 %v8434_v6, %s8705_s6  ;;  %v7733_v6 = vunpack.i.h.bf16 %v10175_v9  ;;  %v11402_v32 = vld [vmem:[#allocation2 + $0x208] sm:$0xff]  ;;  %v5400_v9 = vsel %vm2773_vm2, %v11400_v43, %v8153_v0  ;;  %v8181_v50 = vpop.permute.xlu1 %8180  ;;  %v8459_v0 = vpack.i.bf16 %v3351_v17, %v3350_v45  ;;  %v8178_v17 = vunpack.i.h.bf16 %v8176_v57 }
 0x59b   : > { %8425 = vrot.lane.b32.xlu2 %v8424_v7, %s8706_s7  ;;  %8430 = vrot.lane.b32.xlu0 %v8429_v24, %s8704_s30  ;;  %v11392_v24 = vpop.permute.xlu2 %8170  ;;  %v5473_v33 = vsel %vm5401_vm4, %v5400_v9, %v8167_v48  ;;  %v3241_v57 = vld [vmem:[#allocation2 + $0x29] sm:$0xff] }
 0x59c   : > { %v5378_v5 = vsel %vm2773_vm2, %v11402_v32, %v7733_v6  ;;  %v8172_v11 = vunpack.i.l.bf16 %v11392_v24  ;;  %v8158_v6 = vunpack.i.h.bf16 %v11353_v10 }
 0x59d   : > { %v11381_v44 = vpop.f32.mrf.mxu2  ;;  %v5451_v15 = vsel %vm5401_vm4, %v5378_v5, %v8143_v61  ;;  %v11426_v61 = vld [vmem:[#allocation2 + $0x210] sm:$0xff] }
 0x59e   : > { %12167 = vst [vmem:[#allocation17_spill] sm:$0xff] %v11381_v44  ;;  %v11383_v56 = vpop.f32.mrf.mxu1  ;;  %v5524_v52 = vsel %vm5474_vm5, %v5451_v15, %v8148_v58  ;;  %v5546_v38 = vsel %vm5474_vm5, %v5473_v33, %v8172_v11  ;;  %v3495_v33 = vld [vmem:[#allocation2 + $0x1d1] sm:$0xff]  ;;  %v8479_v15 = vpack.i.bf16 %v11336_v42, %v11305_v29  ;;  %v5548_v29 = vsel %vm2773_vm2, %v3241_v57, %v8178_v17  ;;  %v8191_v42 = vpop.permute.xlu0 %8190  ;;  %v3357_v57 = vld [vmem:[#allocation2 + $0x202] sm:$0xff] }
 0x59f   : > { %v8192_v17 = vunpack.i.l.bf16 %v8191_v42  ;;  %v3557_v44 = vld [vmem:[#allocation2 + $0x16a] sm:$0xff] }
 0x5a1   : > { %6179 = vmatmul.f32.gmra.mxu1 %v5523_v62  ;;  %v3493_v62 = vld [vmem:[#allocation2 + $0x1c1] sm:$0xff] }
 0x5a2   : > { %6245 = vmatmul.f32.gmra.mxu2 %v5545_v2  ;;  %8450 = vrot.lane.b32.xlu1 %v8449_v28, %s8705_s6  ;;  %v8454_v28 = vpack.i.bf16 %v3494_v18, %v3493_v62  ;;  %v7767_v2 = vunpack.i.l.bf16 %v10183_v27  ;;  %v3352_v18 = vld [vmem:[#allocation2 + $0x1ca] sm:$0xff]  ;;  %v8168_v62 = vunpack.i.h.bf16 %v11374_v34 }
 0x5a3   : > { %8440 = vrot.lane.b32.xlu2 %v8439_v60, %s8706_s7  ;;  %8445 = vrot.lane.b32.xlu0 %v8444_v20, %s8704_s30  ;;  %v8182_v60 = vunpack.i.l.bf16 %v8181_v50  ;;  %v3240_v20 = vld [vmem:[#allocation2 + $0x21] sm:$0xff]  ;;  %v8186_v12 = vpop.permute.xlu2 %8185 }
 0x5a4   : > { %v5547_v48 = vsel %vm2773_vm2, %v3240_v20, %v8177_v55  ;;  %v5379_v5 = vsel %vm2773_vm2, %v11426_v61, %v7767_v2  ;;  %v8187_v45 = vunpack.i.l.bf16 %v8186_v12  ;;  %v7768_v55 = vunpack.i.h.bf16 %v10183_v27  ;;  %v3003_v27 = vld [vmem:[#allocation2 + $0x220] sm:$0xff] }
 0x5a5   : > { %v11406_v7 = vpop.f32.mrf.mxu2  ;;  %v5619_v10 = vsel %vm5401_vm4, %v5547_v48, %v8182_v60  ;;  %v5452_v11 = vsel %vm5401_vm4, %v5379_v5, %v8158_v6  ;;  %v8183_v2 = vunpack.i.h.bf16 %v8181_v50  ;;  %v3354_v20 = vld [vmem:[#allocation2 + $0x1e2] sm:$0xff]  ;;  %v8173_v6 = vunpack.i.h.bf16 %v11392_v24 }
 0x5a6   : > { %12168 = vst [vmem:[#allocation18_spill] sm:$0xff] %v11406_v7  ;;  %v11408_v63 = vpop.f32.mrf.mxu1  ;;  %v5525_v30 = vsel %vm5474_vm5, %v5452_v11, %v8163_v53  ;;  %v5380_v34 = vsel %vm2773_vm2, %v3003_v27, %v7768_v55  ;;  %v3497_v5 = vld [vmem:[#allocation2 + $0x1e9] sm:$0xff]  ;;  %v8494_v55 = vpack.i.bf16 %v11402_v32, %v11367_v35 }
 0x5a7   : > { %v5453_v60 = vsel %vm5401_vm4, %v5380_v34, %v8168_v62  ;;  %v5620_v53 = vsel %vm5401_vm4, %v5548_v29, %v8183_v2  ;;  %v3500_v2 = vld [vmem:[#allocation2 + $0x209] sm:$0xff]  ;;  %v8193_v34 = vunpack.i.h.bf16 %v8191_v42 }
 0x5a8   : > { %v5526_v11 = vsel %vm5474_vm5, %v5453_v60, %v8173_v6  ;;  %v3529_v60 = vld [vmem:[#allocation2 + $0x42] sm:$0xff] }
 0x5a9   : > { %6182 = vmatmul.f32.gmra.mxu1 %v5524_v52  ;;  %v3496_v52 = vld [vmem:[#allocation2 + $0x1e1] sm:$0xff] }
 0x5aa   : > { %6248 = vmatmul.f32.gmra.mxu2 %v5546_v38  ;;  %8465 = vrot.lane.b32.xlu1 %v8464_v21, %s8705_s6  ;;  %v3353_v21 = vld [vmem:[#allocation2 + $0x1d2] sm:$0xff]  ;;  %v5691_v38 = vsel %vm5474_vm5, %v5619_v10, %v8187_v45  ;;  %v8196_v45 = vpop.permute.xlu1 %8195 }
 0x5ab   : > { %8455 = vrot.lane.b32.xlu2 %v8454_v28, %s8706_s7  ;;  %8460 = vrot.lane.b32.xlu0 %v8459_v0, %s8704_s30  ;;  %v8469_v28 = vpack.i.bf16 %v3496_v52, %v3495_v33  ;;  %v8474_v0 = vpack.i.bf16 %v3353_v21, %v3352_v18  ;;  %v3498_v10 = vld [vmem:[#allocation2 + $0x1f1] sm:$0xff]  ;;  %v8188_v18 = vunpack.i.h.bf16 %v8186_v12  ;;  %v8197_v52 = vunpack.i.l.bf16 %v8196_v45  ;;  %v8201_v62 = vpop.permute.xlu2 %8200 }
 0x5ac   : > { %v3355_v33 = vld [vmem:[#allocation2 + $0x1ea] sm:$0xff]  ;;  %v8202_v29 = vunpack.i.l.bf16 %v8201_v62 }
 0x5ad   : > { %v11428_v58 = vpop.f32.mrf.mxu2  ;;  %v5692_v24 = vsel %vm5474_vm5, %v5620_v53, %v8188_v18  ;;  %v3242_v21 = vld [vmem:[#allocation2 + $0x31] sm:$0xff]  ;;  %v8206_v18 = vpop.permute.xlu0 %8205 }
 0x5ae   : > { %12169 = vst [vmem:[#allocation19_spill] sm:$0xff] %v11428_v58  ;;  %v11430_v9 = vpop.f32.mrf.mxu1  ;;  %v5549_v12 = vsel %vm2773_vm2, %v3242_v21, %v8192_v17  ;;  %v3431_v17 = vld [vmem:[#allocation2 + $0x228] sm:$0xff] }
 0x5af   : > { %v5621_v32 = vsel %vm5401_vm4, %v5549_v12, %v8197_v52  ;;  %v8203_v52 = vunpack.i.h.bf16 %v8201_v62  ;;  %v8207_v12 = vunpack.i.l.bf16 %v8206_v18 }
 0x5b0   : > { %v5693_v6 = vsel %vm5474_vm5, %v5621_v32, %v8202_v29 }
 0x5b1   : > { %6185 = vmatmul.f32.gmra.mxu1 %v5525_v30  ;;  %v8484_v30 = vpack.i.bf16 %v3498_v10, %v3497_v5  ;;  %v8198_v10 = vunpack.i.h.bf16 %v8196_v45 }
 0x5b2   : > { %6268 = vmatmul.f32.vlgmr.msra.gmra.mxu2 %v5691_v38  ;;  %8480 = vrot.lane.b32.xlu1 %v8479_v15, %s8705_s6  ;;  %v8489_v15 = vpack.i.bf16 %v3355_v33, %v3354_v20  ;;  %v3356_v38 = vld [vmem:[#allocation2 + $0x1f2] sm:$0xff]  ;;  %v8509_v20 = vpack.i.bf16 %v3003_v27, %v11426_v61  ;;  %v3243_v33 = vld [vmem:[#allocation2 + $0x41] sm:$0xff]  ;;  %v3358_v27 = vld [vmem:[#allocation2 + $0x20a] sm:$0xff]  ;;  %v8211_v21 = vpop.permute.xlu1 %8210 }
 0x5b3   : > { %8470 = vrot.lane.b32.xlu2 %v8469_v28, %s8706_s7  ;;  %8475 = vrot.lane.b32.xlu0 %v8474_v0, %s8704_s30  ;;  %v3499_v0 = vld [vmem:[#allocation2 + $0x201] sm:$0xff]  ;;  %v8504_v5 = vpack.i.bf16 %v3357_v57, %v3356_v38  ;;  %v5550_v42 = vsel %vm2773_vm2, %v3243_v33, %v8193_v34  ;;  %v3432_v61 = vld [vmem:[#allocation2 + $0x230] sm:$0xff]  ;;  %v8212_v29 = vunpack.i.l.bf16 %v8211_v21 }
 0x5b4   : > { %v8499_v53 = vpack.i.bf16 %v3500_v2, %v3499_v0  ;;  %v5622_v45 = vsel %vm5401_vm4, %v5550_v42, %v8198_v10  ;;  %v3530_v38 = vld [vmem:[#allocation2 + $0x4a] sm:$0xff]  ;;  %v8524_v32 = vpack.i.bf16 %v3432_v61, %v3431_v17 }
 0x5b5   : > { %v11449_v50 = vpop.f32.mrf.mxu2  ;;  %v5694_v0 = vsel %vm5474_vm5, %v5622_v45, %v8203_v52  ;;  %v3244_v34 = vld [vmem:[#allocation2 + $0x49] sm:$0xff]  ;;  %v3504_v17 = vld [vmem:[#allocation2 + $0x231] sm:$0xff]  ;;  %v8208_v45 = vunpack.i.h.bf16 %v8206_v18  ;;  %v8221_v18 = vpop.permute.xlu0 %8220 }
 0x5b6   : > { %12170 = vst [vmem:[#allocation20_spill] sm:$0xff] %v11449_v50  ;;  %v11451_v48 = vpop.f32.mrf.mxu1  ;;  %v5551_v62 = vsel %vm2773_vm2, %v3244_v34, %v8207_v12  ;;  %v3503_v42 = vld [vmem:[#allocation2 + $0x229] sm:$0xff]  ;;  %v3528_v50 = vld [vmem:[#allocation2 + $0x331] sm:$0xff] }
 0x5b7   : > { %v5623_v33 = vsel %vm5401_vm4, %v5551_v62, %v8212_v29  ;;  %v3361_v61 = vld [vmem:[#allocation2 + $0x22a] sm:$0xff]  ;;  %v8529_v52 = vpack.i.bf16 %v3504_v17, %v3503_v42  ;;  %v3362_v29 = vld [vmem:[#allocation2 + $0x232] sm:$0xff]  ;;  %v8222_v17 = vunpack.i.l.bf16 %v8221_v18 }
 0x5b9   : > { %6188 = vmatmul.f32.gmra.mxu1 %v5526_v11 }
 0x5ba   : > { %6271 = vmatmul.f32.gmra.mxu2 %v5692_v24  ;;  %8495 = vrot.lane.b32.xlu1 %v8494_v55, %s8705_s6  ;;  %v3501_v24 = vld [vmem:[#allocation2 + $0x211] sm:$0xff]  ;;  %v8226_v42 = vpop.permute.xlu1 %8225 }
 0x5bb   : > { %8485 = vrot.lane.b32.xlu2 %v8484_v30, %s8706_s7  ;;  %8490 = vrot.lane.b32.xlu0 %v8489_v15, %s8704_s30  ;;  %v3502_v30 = vld [vmem:[#allocation2 + $0x221] sm:$0xff]  ;;  %v3359_v15 = vld [vmem:[#allocation2 + $0x212] sm:$0xff] }
 0x5bc   : > { %v8514_v2 = vpack.i.bf16 %v3502_v30, %v3501_v24  ;;  %v8519_v57 = vpack.i.bf16 %v3359_v15, %v3358_v27  ;;  %v3531_v24 = vld [vmem:[#allocation2 + $0x52] sm:$0xff] }
 0x5bd   : > { %v11462_v28 = vpop.f32.mrf.mxu2 }
 0x5be   : > { %12171 = vst [vmem:[#allocation21_spill] sm:$0xff] %v11462_v28  ;;  %v11464_v35 = vpop.f32.mrf.mxu1 }
 0x5c1   : > { %7526 = vmatmul.msk.f32.vlgmr.msrb.gmra.mxu1 %vm2773_vm2, %v3529_v60  ;;  %v8216_v60 = vpop.permute.xlu2 %8215 }
 0x5c2   : > { %6274 = vmatmul.f32.gmra.mxu2 %v5693_v6  ;;  %8510 = vrot.lane.b32.xlu1 %v8509_v20, %s8705_s6  ;;  %v3433_v20 = vld [vmem:[#allocation2 + $0x240] sm:$0xff]  ;;  %v3434_v6 = vld [vmem:[#allocation2 + $0x248] sm:$0xff]  ;;  %v8217_v27 = vunpack.i.l.bf16 %v8216_v60 }
 0x5c3   : > { %8500 = vrot.lane.b32.xlu2 %v8499_v53, %s8706_s7  ;;  %8505 = vrot.lane.b32.xlu0 %v8504_v5, %s8704_s30  ;;  %v3360_v53 = vld [vmem:[#allocation2 + $0x222] sm:$0xff]  ;;  %v8539_v30 = vpack.i.bf16 %v3434_v6, %v3433_v20 }
 0x5c4   : > { %v5695_v15 = vsel %vm5474_vm5, %v5623_v33, %v8217_v27  ;;  %v8534_v12 = vpack.i.bf16 %v3361_v61, %v3360_v53  ;;  %v3505_v20 = vld [vmem:[#allocation2 + $0x241] sm:$0xff]  ;;  %v3506_v6 = vld [vmem:[#allocation2 + $0x249] sm:$0xff]  ;;  %v8218_v33 = vunpack.i.h.bf16 %v8216_v60 }
 0x5c5   : > { %v11474_v11 = vpop.f32.mrf.mxu2  ;;  %v3363_v53 = vld [vmem:[#allocation2 + $0x242] sm:$0xff] }
 0x5c6   : > { %12172 = vst [vmem:[#allocation22_spill] sm:$0xff] %v11474_v11  ;;  %v11476_v55 = vpop.f32.mrf.mxu1  ;;  %v3532_v61 = vld [vmem:[#allocation2 + $0x62] sm:$0xff] }
 0x5c9   : > { %7527 = vmatmul.msk.f32.gmra.mxu1 %vm2773_vm2, %v3530_v38  ;;  %v8213_v38 = vunpack.i.h.bf16 %v8211_v21 }
 0x5ca   : > { %6277 = vmatmul.f32.gmra.mxu2 %v5694_v0  ;;  %8525 = vrot.lane.b32.xlu1 %v8524_v32, %s8705_s6  ;;  %v3245_v32 = vld [vmem:[#allocation2 + $0x51] sm:$0xff] }
 0x5cb   : > { %8515 = vrot.lane.b32.xlu2 %v8514_v2, %s8706_s7  ;;  %8520 = vrot.lane.b32.xlu0 %v8519_v57, %s8704_s30  ;;  %v5552_v0 = vsel %vm2773_vm2, %v3245_v32, %v8208_v45  ;;  %v3435_v2 = vld [vmem:[#allocation2 + $0x250] sm:$0xff]  ;;  %v3436_v57 = vld [vmem:[#allocation2 + $0x260] sm:$0xff] }
 0x5cc   : > { %v5624_v21 = vsel %vm5401_vm4, %v5552_v0, %v8213_v38  ;;  %v8554_v27 = vpack.i.bf16 %v3436_v57, %v3435_v2  ;;  %v3437_v38 = vld [vmem:[#allocation2 + $0x268] sm:$0xff]  ;;  %v3438_v32 = vld [vmem:[#allocation2 + $0x270] sm:$0xff] }
 0x5cd   : > { %v11485_v5 = vpop.f32.mrf.mxu2  ;;  %v5696_v45 = vsel %vm5474_vm5, %v5624_v21, %v8218_v33  ;;  %v3364_v0 = vld [vmem:[#allocation2 + $0x24a] sm:$0xff]  ;;  %v8223_v33 = vunpack.i.h.bf16 %v8221_v18  ;;  %v8236_v18 = vpop.permute.xlu0 %8235 }
 0x5ce   : > { %12173 = vst [vmem:[#allocation23_spill] sm:$0xff] %v11485_v5  ;;  %v11487_v10 = vpop.f32.mrf.mxu1  ;;  %v3507_v21 = vld [vmem:[#allocation2 + $0x251] sm:$0xff] }
 0x5d1   : > { %7528 = vmatmul.msk.f32.gmra.mxu1 %vm2773_vm2, %v3531_v24  ;;  %v8544_v24 = vpack.i.bf16 %v3506_v6, %v3505_v20  ;;  %v3508_v20 = vld [vmem:[#allocation2 + $0x261] sm:$0xff]  ;;  %v3365_v6 = vld [vmem:[#allocation2 + $0x252] sm:$0xff] }
 0x5d2   : > { %6280 = vmatmul.f32.gmra.mxu2 %v5695_v15  ;;  %8540 = vrot.lane.b32.xlu1 %v8539_v30, %s8705_s6  ;;  %v8549_v30 = vpack.i.bf16 %v3363_v53, %v3362_v29  ;;  %v8227_v15 = vunpack.i.l.bf16 %v8226_v42 }
 0x5d3   : > { %8530 = vrot.lane.b32.xlu2 %v8529_v52, %s8706_s7  ;;  %8535 = vrot.lane.b32.xlu0 %v8534_v12, %s8704_s30  ;;  %v3246_v52 = vld [vmem:[#allocation2 + $0x61] sm:$0xff]  ;;  %v8231_v12 = vpop.permute.xlu2 %8230 }
 0x5d4   : > { %v5553_v60 = vsel %vm2773_vm2, %v3246_v52, %v8222_v17  ;;  %v8232_v53 = vunpack.i.l.bf16 %v8231_v12  ;;  %v3247_v52 = vld [vmem:[#allocation2 + $0x69] sm:$0xff] }
 0x5d5   : > { %v11496_v34 = vpop.f32.mrf.mxu2  ;;  %v5625_v29 = vsel %vm5401_vm4, %v5553_v60, %v8227_v15  ;;  %v5554_v15 = vsel %vm2773_vm2, %v3247_v52, %v8223_v33  ;;  %v3439_v60 = vld [vmem:[#allocation2 + $0x280] sm:$0xff] }
 0x5d6   : > { %12174 = vst [vmem:[#allocation24_spill] sm:$0xff] %v11496_v34  ;;  %v11498_v62 = vpop.f32.mrf.mxu1  ;;  %v5697_v17 = vsel %vm5474_vm5, %v5625_v29, %v8232_v53  ;;  %v8241_v53 = vpop.permute.xlu1 %8240 }
 0x5d7   : > { %v8243_v34 = vunpack.i.h.bf16 %v8241_v53 }
 0x5d9   : > { %7529 = vmatmul.msk.f32.gmra.mxu1 %vm2773_vm2, %v3532_v61  ;;  %v3533_v61 = vld [vmem:[#allocation2 + $0x6a] sm:$0xff] }
 0x5da   : > { %6283 = vmatmul.f32.gmra.mxu2 %v5696_v45  ;;  %8555 = vrot.lane.b32.xlu1 %v8554_v27, %s8705_s6  ;;  %v8569_v27 = vpack.i.bf16 %v3438_v32, %v3437_v38  ;;  %v8559_v45 = vpack.i.bf16 %v3508_v20, %v3507_v21  ;;  %v3440_v38 = vld [vmem:[#allocation2 + $0x288] sm:$0xff]  ;;  %v3510_v21 = vld [vmem:[#allocation2 + $0x271] sm:$0xff] }
 0x5db   : > { %8545 = vrot.lane.b32.xlu2 %v8544_v24, %s8706_s7  ;;  %8550 = vrot.lane.b32.xlu0 %v8549_v30, %s8704_s30  ;;  %v8564_v24 = vpack.i.bf16 %v3365_v6, %v3364_v0  ;;  %v8228_v30 = vunpack.i.h.bf16 %v8226_v42  ;;  %v3366_v32 = vld [vmem:[#allocation2 + $0x262] sm:$0xff]  ;;  %v3367_v20 = vld [vmem:[#allocation2 + $0x26a] sm:$0xff]  ;;  %v8233_v6 = vunpack.i.h.bf16 %v8231_v12 }
 0x5dc   : > { %v3509_v0 = vld [vmem:[#allocation2 + $0x269] sm:$0xff]  ;;  %v8579_v52 = vpack.i.bf16 %v3367_v20, %v3366_v32 }
 0x5dd   : > { %v11507_v2 = vpop.f32.mrf.mxu2  ;;  %v5626_v42 = vsel %vm5401_vm4, %v5554_v15, %v8228_v30  ;;  %v8246_v30 = vpop.permute.xlu2 %8245  ;;  %v3441_v15 = vld [vmem:[#allocation2 + $0x290] sm:$0xff]  ;;  %v3369_v20 = vld [vmem:[#allocation2 + $0x282] sm:$0xff] }
 0x5de   : > { %12175 = vst [vmem:[#allocation25_spill] sm:$0xff] %v11507_v2  ;;  %v11509_v57 = vpop.f32.mrf.mxu1  ;;  %v5698_v33 = vsel %vm5474_vm5, %v5626_v42, %v8233_v6  ;;  %v8242_v2 = vunpack.i.l.bf16 %v8241_v53  ;;  %v8247_v6 = vunpack.i.l.bf16 %v8246_v30 }
 0x5e1   : > { %7530 = vmatmul.msk.f32.gmra.mxu1 %vm2773_vm2, %v3533_v61 }
 0x5e2   : > { %6286 = vmatmul.f32.gmra.mxu2 %v5697_v17  ;;  %8570 = vrot.lane.b32.xlu1 %v8569_v27, %s8705_s6  ;;  %v8237_v27 = vunpack.i.l.bf16 %v8236_v18  ;;  %v3534_v17 = vld [vmem:[#allocation2 + $0x72] sm:$0xff] }
 0x5e3   : > { %8560 = vrot.lane.b32.xlu2 %v8559_v45, %s8706_s7  ;;  %8565 = vrot.lane.b32.xlu0 %v8564_v24, %s8704_s30  ;;  %v8584_v45 = vpack.i.bf16 %v3440_v38, %v3439_v60  ;;  %v8574_v24 = vpack.i.bf16 %v3510_v21, %v3509_v0  ;;  %v3442_v60 = vld [vmem:[#allocation2 + $0x2a0] sm:$0xff]  ;;  %v3368_v38 = vld [vmem:[#allocation2 + $0x272] sm:$0xff]  ;;  %v3512_v21 = vld [vmem:[#allocation2 + $0x289] sm:$0xff] }
 0x5e4   : > { %v3511_v0 = vld [vmem:[#allocation2 + $0x281] sm:$0xff] }
 0x5e5   : > { %v11518_v61 = vpop.f32.mrf.mxu2 }
 0x5e6   : > { %12176 = vst [vmem:[#allocation26_spill] sm:$0xff] %v11518_v61  ;;  %v11520_v29 = vpop.f32.mrf.mxu1  ;;  %v3248_v61 = vld [vmem:[#allocation2 + $0x71] sm:$0xff] }
 0x5e7   : > { %v5555_v12 = vsel %vm2773_vm2, %v3248_v61, %v8237_v27  ;;  %v8589_v27 = vpack.i.bf16 %v3512_v21, %v3511_v0  ;;  %v3514_v0 = vld [vmem:[#allocation2 + $0x2a1] sm:$0xff]  ;;  %v3371_v21 = vld [vmem:[#allocation2 + $0x292] sm:$0xff] }
 0x5e8   : > { %v5627_v32 = vsel %vm5401_vm4, %v5555_v12, %v8242_v2  ;;  %v3443_v12 = vld [vmem:[#allocation2 + $0x2a8] sm:$0xff] }
 0x5e9   : > { %7531 = vmatmul.msk.f32.gmra.mxu1 %vm2773_vm2, %v3534_v17  ;;  %v5699_v61 = vsel %vm5474_vm5, %v5627_v32, %v8247_v6  ;;  %v8256_v6 = vpop.permute.xlu1 %8255 }
 0x5ea   : > { %6289 = vmatmul.f32.gmra.mxu2 %v5698_v33  ;;  %8585 = vrot.lane.b32.xlu1 %v8584_v45, %s8705_s6  ;;  %v8238_v45 = vunpack.i.h.bf16 %v8236_v18  ;;  %v3535_v33 = vld [vmem:[#allocation2 + $0x82] sm:$0xff]  ;;  %v8251_v18 = vpop.permute.xlu0 %8250  ;;  %v8257_v5 = vunpack.i.l.bf16 %v8256_v6 }
 0x5eb   : > { %8575 = vrot.lane.b32.xlu2 %v8574_v24, %s8706_s7  ;;  %8580 = vrot.lane.b32.xlu0 %v8579_v52, %s8704_s30  ;;  %v8599_v24 = vpack.i.bf16 %v3442_v60, %v3441_v15  ;;  %v8594_v52 = vpack.i.bf16 %v3369_v20, %v3368_v38  ;;  %v3444_v15 = vld [vmem:[#allocation2 + $0x2b0] sm:$0xff]  ;;  %v8248_v20 = vunpack.i.h.bf16 %v8246_v30  ;;  %v8261_v30 = vpop.permute.xlu2 %8260 }
 0x5ec   : > { %v3370_v60 = vld [vmem:[#allocation2 + $0x28a] sm:$0xff] }
 0x5ed   : > { %v11529_v17 = vpop.f32.mrf.mxu2  ;;  %v3513_v38 = vld [vmem:[#allocation2 + $0x291] sm:$0xff] }
 0x5ee   : > { %12177 = vst [vmem:[#allocation27_spill] sm:$0xff] %v11529_v17  ;;  %v11531_v42 = vpop.f32.mrf.mxu1  ;;  %v3249_v17 = vld [vmem:[#allocation2 + $0x81] sm:$0xff] }
 0x5ef   : > { %v5556_v2 = vsel %vm2773_vm2, %v3249_v17, %v8238_v45  ;;  %v8604_v45 = vpack.i.bf16 %v3514_v0, %v3513_v38  ;;  %v3516_v38 = vld [vmem:[#allocation2 + $0x2b1] sm:$0xff] }
 0x5f0   : > { %v5628_v53 = vsel %vm5401_vm4, %v5556_v2, %v8243_v34  ;;  %v3445_v2 = vld [vmem:[#allocation2 + $0x2c0] sm:$0xff]  ;;  %v3373_v0 = vld [vmem:[#allocation2 + $0x2aa] sm:$0xff] }
 0x5f1   : > { %7532 = vmatmul.msk.f32.gmra.mxu1 %vm2773_vm2, %v3535_v33  ;;  %v5700_v17 = vsel %vm5474_vm5, %v5628_v53, %v8248_v20  ;;  %v3515_v53 = vld [vmem:[#allocation2 + $0x2a9] sm:$0xff]  ;;  %v8253_v20 = vunpack.i.h.bf16 %v8251_v18 }
 0x5f2   : > { %6292 = vmatmul.f32.gmra.mxu2 %v5699_v61  ;;  %8600 = vrot.lane.b32.xlu1 %v8599_v24, %s8705_s6  ;;  %v8252_v24 = vunpack.i.l.bf16 %v8251_v18  ;;  %v3536_v61 = vld [vmem:[#allocation2 + $0x8a] sm:$0xff]  ;;  %v8266_v18 = vpop.permute.xlu0 %8265 }
 0x5f3   : > { %8590 = vrot.lane.b32.xlu2 %v8589_v27, %s8706_s7  ;;  %8595 = vrot.lane.b32.xlu0 %v8594_v52, %s8704_s30  ;;  %v8614_v27 = vpack.i.bf16 %v3444_v15, %v3443_v12  ;;  %v8609_v52 = vpack.i.bf16 %v3371_v21, %v3370_v60  ;;  %v3372_v12 = vld [vmem:[#allocation2 + $0x2a2] sm:$0xff]  ;;  %v8262_v21 = vunpack.i.l.bf16 %v8261_v30 }
 0x5f5   : > { %v11540_v33 = vpop.f32.mrf.mxu2 }
 0x5f6   : > { %12178 = vst [vmem:[#allocation28_spill] sm:$0xff] %v11540_v33  ;;  %v11542_v32 = vpop.f32.mrf.mxu1  ;;  %v3250_v33 = vld [vmem:[#allocation2 + $0x89] sm:$0xff] }
 0x5f7   : > { %v5557_v34 = vsel %vm2773_vm2, %v3250_v33, %v8252_v24  ;;  %v8619_v24 = vpack.i.bf16 %v3516_v38, %v3515_v53  ;;  %v3375_v53 = vld [vmem:[#allocation2 + $0x2c2] sm:$0xff]  ;;  %v8263_v38 = vunpack.i.h.bf16 %v8261_v30 }
 0x5f8   : > { %v5629_v60 = vsel %vm5401_vm4, %v5557_v34, %v8257_v5  ;;  %v3374_v34 = vld [vmem:[#allocation2 + $0x2b2] sm:$0xff] }
 0x5f9   : > { %7533 = vmatmul.msk.f32.gmra.mxu1 %vm2773_vm2, %v3536_v61  ;;  %v5701_v33 = vsel %vm5474_vm5, %v5629_v60, %v8262_v21  ;;  %v8267_v21 = vunpack.i.l.bf16 %v8266_v18 }
 0x5fa   : > { %6295 = vmatmul.f32.gmra.mxu2 %v5700_v17  ;;  %8615 = vrot.lane.b32.xlu1 %v8614_v27, %s8705_s6  ;;  %v3537_v27 = vld [vmem:[#allocation2 + $0x92] sm:$0xff]  ;;  %v8629_v17 = vpack.i.bf16 %v11282_v22, %v3445_v2 }
 0x5fb   : > { %8605 = vrot.lane.b32.xlu2 %v8604_v45, %s8706_s7  ;;  %8610 = vrot.lane.b32.xlu0 %v8609_v52, %s8704_s30  ;;  %v8624_v45 = vpack.i.bf16 %v3373_v0, %v3372_v12  ;;  %v8258_v52 = vunpack.i.h.bf16 %v8256_v6  ;;  %v3517_v12 = vld [vmem:[#allocation2 + $0x2c1] sm:$0xff]  ;;  %v3518_v6 = vld [vmem:[#allocation2 + $0x2c9] sm:$0xff]  ;;  %v8271_v0 = vpop.permute.xlu1 %8270 }
 0x5fd   : > { %v11551_v15 = vpop.f32.mrf.mxu2 }
 0x5fe   : > { %12179 = vst [vmem:[#allocation29_spill] sm:$0xff] %v11551_v15  ;;  %v11553_v61 = vpop.f32.mrf.mxu1  ;;  %v3251_v15 = vld [vmem:[#allocation2 + $0x91] sm:$0xff] }
 0x5ff   : > { %v5558_v5 = vsel %vm2773_vm2, %v3251_v15, %v8253_v20  ;;  %v8634_v20 = vpack.i.bf16 %v3518_v6, %v3517_v12  ;;  %v3520_v12 = vld [vmem:[#allocation2 + $0x2e1] sm:$0xff]  ;;  %v3377_v6 = vld [vmem:[#allocation2 + $0x2d2] sm:$0xff] }
 0x600   : > { %v5630_v60 = vsel %vm5401_vm4, %v5558_v5, %v8258_v52  ;;  %v8276_v52 = vpop.permute.xlu2 %8275  ;;  %v3376_v5 = vld [vmem:[#allocation2 + $0x2ca] sm:$0xff] }
 0x601   : > { %7534 = vmatmul.msk.f32.gmra.mxu1 %vm2773_vm2, %v3537_v27  ;;  %v3538_v27 = vld [vmem:[#allocation2 + $0xa2] sm:$0xff]  ;;  %v5702_v15 = vsel %vm5474_vm5, %v5630_v60, %v8263_v38  ;;  %v8268_v38 = vunpack.i.h.bf16 %v8266_v18 }
 0x602   : > { %6298 = vmatmul.f32.gmra.mxu2 %v5701_v33  ;;  %8630 = vrot.lane.b32.xlu1 %v8629_v17, %s8705_s6  ;;  %v8644_v17 = vpack.i.bf16 %v11348_v54, %v11309_v49  ;;  %v8639_v33 = vpack.i.bf16 %v3375_v53, %v3374_v34  ;;  %v3519_v34 = vld [vmem:[#allocation2 + $0x2d1] sm:$0xff]  ;;  %v8277_v53 = vunpack.i.l.bf16 %v8276_v52 }
 0x603   : > { %8620 = vrot.lane.b32.xlu2 %v8619_v24, %s8706_s7  ;;  %8625 = vrot.lane.b32.xlu0 %v8624_v45, %s8704_s30  ;;  %v8272_v24 = vunpack.i.l.bf16 %v8271_v0  ;;  %v3252_v45 = vld [vmem:[#allocation2 + $0xa1] sm:$0xff] }
 0x604   : > { %v5559_v30 = vsel %vm2773_vm2, %v3252_v45, %v8267_v21  ;;  %v8281_v45 = vpop.permute.xlu0 %8280 }
 0x605   : > { %v11563_v22 = vpop.f32.mrf.mxu2  ;;  %v5631_v60 = vsel %vm5401_vm4, %v5559_v30, %v8272_v24  ;;  %v3253_v24 = vld [vmem:[#allocation2 + $0xa9] sm:$0xff]  ;;  %v3451_v30 = vld [vmem:[#allocation2 + $0x300] sm:$0xff] }
 0x606   : > { %12180 = vst [vmem:[#allocation30_spill] sm:$0xff] %v11563_v22  ;;  %v11565_v2 = vpop.f32.mrf.mxu1  ;;  %v5703_v21 = vsel %vm5474_vm5, %v5631_v60, %v8277_v53  ;;  %v5560_v18 = vsel %vm2773_vm2, %v3253_v24, %v8268_v38  ;;  %v8286_v53 = vpop.permute.xlu1 %8285 }
 0x609   : > { %7535 = vmatmul.msk.f32.gmra.mxu1 %vm2773_vm2, %v3538_v27  ;;  %v3539_v27 = vld [vmem:[#allocation2 + $0xaa] sm:$0xff] }
 0x60a   : > { %6301 = vmatmul.f32.gmra.mxu2 %v5702_v15  ;;  %8645 = vrot.lane.b32.xlu1 %v8644_v17, %s8705_s6  ;;  %v8659_v17 = vpack.i.bf16 %v11400_v43, %v11372_v25  ;;  %v8649_v15 = vpack.i.bf16 %v3520_v12, %v3519_v34  ;;  %v3452_v25 = vld [vmem:[#allocation2 + $0x308] sm:$0xff]  ;;  %v3522_v34 = vld [vmem:[#allocation2 + $0x2f1] sm:$0xff] }
 0x60b   : > { %8635 = vrot.lane.b32.xlu2 %v8634_v20, %s8706_s7  ;;  %8640 = vrot.lane.b32.xlu0 %v8639_v33, %s8704_s30  ;;  %v8654_v20 = vpack.i.bf16 %v3377_v6, %v3376_v5  ;;  %v8273_v33 = vunpack.i.h.bf16 %v8271_v0  ;;  %v3378_v43 = vld [vmem:[#allocation2 + $0x2e2] sm:$0xff]  ;;  %v3379_v12 = vld [vmem:[#allocation2 + $0x2ea] sm:$0xff]  ;;  %v8278_v6 = vunpack.i.h.bf16 %v8276_v52 }
 0x60c   : > { %v3521_v5 = vld [vmem:[#allocation2 + $0x2e9] sm:$0xff]  ;;  %v8669_v24 = vpack.i.bf16 %v3379_v12, %v3378_v43 }
 0x60d   : > { %v11576_v49 = vpop.f32.mrf.mxu2  ;;  %v5632_v0 = vsel %vm5401_vm4, %v5560_v18, %v8273_v33  ;;  %v8291_v33 = vpop.permute.xlu2 %8290  ;;  %v3380_v18 = vld [vmem:[#allocation2 + $0x2f2] sm:$0xff] }
 0x60e   : > { %12181 = vst [vmem:[#allocation31_spill] sm:$0xff] %v11576_v49  ;;  %v11578_v54 = vpop.f32.mrf.mxu1  ;;  %v5704_v38 = vsel %vm5474_vm5, %v5632_v0, %v8278_v6  ;;  %v8287_v49 = vunpack.i.l.bf16 %v8286_v53  ;;  %v8292_v0 = vunpack.i.l.bf16 %v8291_v33 }
 0x611   : > { %7536 = vmatmul.msk.f32.gmra.mxu1 %vm2773_vm2, %v3539_v27 }
 0x612   : > { %6304 = vmatmul.f32.gmra.mxu2 %v5703_v21  ;;  %8660 = vrot.lane.b32.xlu1 %v8659_v17, %s8705_s6  ;;  %v8282_v17 = vunpack.i.l.bf16 %v8281_v45  ;;  %v3540_v21 = vld [vmem:[#allocation2 + $0xb2] sm:$0xff] }
 0x613   : > { %8650 = vrot.lane.b32.xlu2 %v8649_v15, %s8706_s7  ;;  %8655 = vrot.lane.b32.xlu0 %v8654_v20, %s8704_s30  ;;  %v8674_v15 = vpack.i.bf16 %v3452_v25, %v3451_v30  ;;  %v8664_v20 = vpack.i.bf16 %v3522_v34, %v3521_v5  ;;  %v3381_v30 = vld [vmem:[#allocation2 + $0x302] sm:$0xff]  ;;  %v8283_v5 = vunpack.i.h.bf16 %v8281_v45  ;;  %v8296_v45 = vpop.permute.xlu0 %8295 }
 0x614   : > { %v3541_v34 = vld [vmem:[#allocation2 + $0xc2] sm:$0xff]  ;;  %v8679_v12 = vpack.i.bf16 %v3381_v30, %v3380_v18  ;;  %v8301_v18 = vpop.permute.xlu1 %8300  ;;  %v8297_v30 = vunpack.i.l.bf16 %v8296_v45 }
 0x615   : > { %v11589_v27 = vpop.f32.mrf.mxu2 }
 0x616   : > { %12182 = vst [vmem:[#allocation32_spill] sm:$0xff] %v11589_v27  ;;  %v11591_v60 = vpop.f32.mrf.mxu1  ;;  %v3254_v27 = vld [vmem:[#allocation2 + $0xb1] sm:$0xff] }
 0x617   : > { %v5561_v52 = vsel %vm2773_vm2, %v3254_v27, %v8282_v17  ;;  %v3523_v27 = vld [vmem:[#allocation2 + $0x301] sm:$0xff]  ;;  %v3524_v17 = vld [vmem:[#allocation2 + $0x309] sm:$0xff] }
 0x618   : > { %v5633_v43 = vsel %vm5401_vm4, %v5561_v52, %v8287_v49 }
 0x619   : > { %7537 = vmatmul.msk.f32.gmra.mxu1 %vm2773_vm2, %v3540_v21  ;;  %v5705_v6 = vsel %vm5474_vm5, %v5633_v43, %v8292_v0  ;;  %v3454_v43 = vld [vmem:[#allocation2 + $0x320] sm:$0xff]  ;;  %v3542_v0 = vld [vmem:[#allocation2 + $0xca] sm:$0xff] }
 0x61a   : > { %6307 = vmatmul.f32.gmra.mxu2 %v5704_v38  ;;  %8675 = vrot.lane.b32.xlu1 %v8674_v15, %s8705_s6  ;;  %v8288_v15 = vunpack.i.h.bf16 %v8286_v53  ;;  %v3255_v38 = vld [vmem:[#allocation2 + $0xc1] sm:$0xff]  ;;  %v8293_v53 = vunpack.i.h.bf16 %v8291_v33 }
 0x61b   : > { %8665 = vrot.lane.b32.xlu2 %v8664_v20, %s8706_s7  ;;  %8670 = vrot.lane.b32.xlu0 %v8669_v24, %s8704_s30  ;;  %v5562_v49 = vsel %vm2773_vm2, %v3255_v38, %v8283_v5  ;;  %v3453_v5 = vld [vmem:[#allocation2 + $0x310] sm:$0xff] }
 0x61c   : > { %v5634_v52 = vsel %vm5401_vm4, %v5562_v49, %v8288_v15  ;;  %v8306_v15 = vpop.permute.xlu2 %8305 }
 0x61d   : > { %v11600_v25 = vpop.f32.mrf.mxu2 }
 0x61e   : > { %12183 = vst [vmem:[#allocation33_spill] sm:$0xff] %v11600_v25  ;;  %v11602_v21 = vpop.f32.mrf.mxu1 }
 0x621   : > { %7538 = vmatmul.msk.f32.gmra.mxu1 %vm2773_vm2, %v3541_v34  ;;  %v5706_v34 = vsel %vm5474_vm5, %v5634_v52, %v8293_v53  ;;  %v8307_v52 = vunpack.i.l.bf16 %v8306_v15  ;;  %v8298_v53 = vunpack.i.h.bf16 %v8296_v45  ;;  %v8311_v45 = vpop.permute.xlu0 %8310 }
 0x622   : > { %6310 = vmatmul.f32.gmra.mxu2 %v5705_v6  ;;  %8680 = vrot.lane.b32.xlu1 %v8679_v12, %s8704_s30  ;;  %v8302_v12 = vunpack.i.l.bf16 %v8301_v18  ;;  %v3525_v6 = vld [vmem:[#allocation2 + $0x311] sm:$0xff] }
 0x623   : > { %5245 = vrot.lane.b32.xlu2 %v3523_v27, %s8706_s7  ;;  %5247 = vrot.lane.b32.xlu0 %v3524_v17, %s8706_s7  ;;  %v3256_v27 = vld [vmem:[#allocation2 + $0xc9] sm:$0xff] }
 0x624   : > { %v5563_v33 = vsel %vm2773_vm2, %v3256_v27, %v8297_v30  ;;  %v3257_v30 = vld [vmem:[#allocation2 + $0xd1] sm:$0xff]  ;;  %v8321_v25 = vpop.permute.xlu2 %8320 }
 0x625   : > { %v11611_v20 = vpop.f32.mrf.mxu2  ;;  %v5635_v49 = vsel %vm5401_vm4, %v5563_v33, %v8302_v12  ;;  %v5564_v27 = vsel %vm2773_vm2, %v3257_v30, %v8298_v53  ;;  %v3383_v30 = vld [vmem:[#allocation2 + $0x312] sm:$0xff] }
 0x626   : > { %12184 = vst [vmem:[#allocation34_spill] sm:$0xff] %v11611_v20  ;;  %v11613_v24 = vpop.f32.mrf.mxu1  ;;  %v8303_v20 = vunpack.i.h.bf16 %v8301_v18  ;;  %v11639_v18 = vld [vmem:[%s12152_s4] ss:$0 sm:$0xff] }
 0x629   : > { %7539 = vmatmul.msk.f32.gmra.mxu1 %vm2773_vm2, %v3542_v0  ;;  %v3455_v0 = vld [vmem:[#allocation2 + $0x328] sm:$0xff] }
 0x62a   : > { %6313 = vmatmul.f32.gmra.mxu2 %v5706_v34  ;;  %4963 = vrot.lane.b32.xlu1 %v3454_v43, %s8705_s6  ;;  %v3543_v43 = vld [vmem:[#allocation2 + $0xd2] sm:$0xff]  ;;  %v3526_v34 = vld [vmem:[#allocation2 + $0x321] sm:$0xff] }
 0x62b   : > { %4961 = vrot.lane.b32.xlu2 %v3453_v5, %s8705_s6  ;;  %5249 = vrot.lane.b32.xlu0 %v3525_v6, %s8706_s7  ;;  %v5707_v5 = vsel %vm5474_vm5, %v5635_v49, %v8307_v52  ;;  %v3382_v6 = vld [vmem:[#allocation2 + $0x30a] sm:$0xff]  ;;  %v8308_v49 = vunpack.i.h.bf16 %v8306_v15  ;;  %v8316_v52 = vpop.permute.xlu1 %8315 }
 0x62d   : > { %v11622_v17 = vpop.f32.mrf.mxu2 }
 0x62e   : > { %12185 = vst [vmem:[#allocation35_spill] sm:$0xff] %v11622_v17  ;;  %v11624_v38 = vpop.f32.mrf.mxu1  ;;  %v3527_v17 = vld [vmem:[#allocation2 + $0x329] sm:$0xff] }
 0x631   : > { %7540 = vmatmul.msk.f32.gmra.mxu1 %vm2773_vm2, %v3543_v43  ;;  %v5636_v43 = vsel %vm5401_vm4, %v5564_v27, %v8303_v20  ;;  %v3258_v20 = vld [vmem:[#allocation2 + $0xe1] sm:$0xff]  ;;  %v6037_v27 = vadd.f32 %v11639_v18, %v10664_v37 }
 0x632   : > { %6316 = vmatmul.f32.gmra.mxu2 %v5707_v5  ;;  %4965 = vrot.lane.b32.xlu1 %v3455_v0, %s8705_s6  ;;  %v8312_v0 = vunpack.i.l.bf16 %v8311_v45  ;;  %v3456_v5 = vld [vmem:[#allocation2 + $0x330] sm:$0xff]  ;;  %v5708_v53 = vsel %vm5474_vm5, %v5636_v43, %v8308_v49  ;;  %v8322_v49 = vunpack.i.l.bf16 %v8321_v25 }
 0x633   : > { %4677 = vrot.lane.b32.xlu0 %v3382_v6, %s8704_s30  ;;  %5251 = vrot.lane.b32.xlu2 %v3526_v34, %s8706_s7  ;;  %v3544_v6 = vld [vmem:[#allocation2 + $0xe2] sm:$0xff]  ;;  %v8317_v34 = vunpack.i.l.bf16 %v8316_v52 }
 0x634   : > { %v5565_v15 = vsel %vm2773_vm2, %v3258_v20, %v8312_v0  ;;  %v3259_v0 = vld [vmem:[#allocation2 + $0xe9] sm:$0xff]  ;;  %v8323_v20 = vunpack.i.h.bf16 %v8321_v25  ;;  %v8336_v25 = vpop.permute.xlu2 %8335 }
 0x635   : > { %v6269_v12 = vpop.f32.mrf.mxu2  ;;  %v5637_v43 = vsel %vm5401_vm4, %v5565_v15, %v8317_v34 }
 0x636   : > { %v11633_v33 = vpop.f32.mrf.mxu1  ;;  %v6270_v22 = vadd.f32 %v6269_v12, %v6037_v27  ;;  %v5709_v37 = vsel %vm5474_vm5, %v5637_v43, %v8322_v49  ;;  %v8331_v27 = vpop.permute.xlu1 %8330  ;;  %v3546_v43 = vld [vmem:[#allocation2 + $0xf2] sm:$0xff] }
 0x639   : > { %7541 = vmatmul.msk.f32.gmra.mxu1 %vm2773_vm2, %v3544_v6 }
 0x63a   : > { %6319 = vmatmul.f32.gmra.mxu2 %v5708_v53  ;;  %4967 = vrot.lane.b32.xlu1 %v3456_v5, %s8705_s6  ;;  %v8313_v53 = vunpack.i.h.bf16 %v8311_v45  ;;  %v3545_v5 = vld [vmem:[#allocation2 + $0xea] sm:$0xff] }
 0x63b   : > { %4679 = vrot.lane.b32.xlu0 %v3383_v30, %s8704_s30  ;;  %5253 = vrot.lane.b32.xlu2 %v3527_v17, %s8706_s7  ;;  %v8318_v30 = vunpack.i.h.bf16 %v8316_v52  ;;  %v6040_v17 = vadd.f32 %v11639_v18, %v10672_v40  ;;  %s7621_s30 = smul.u32 96, %s12219_s19 }
 0x63c   : > { %v5566_v12 = vsel %vm2773_vm2, %v3259_v0, %v8313_v53  ;;  %v3260_v53 = vld [vmem:[#allocation2 + $0xf1] sm:$0xff] }
 0x63d   : > { %v6272_v6 = vpop.f32.mrf.mxu2  ;;  %v5638_v34 = vsel %vm5401_vm4, %v5566_v12, %v8318_v30  ;;  %s11696_s19 = scalar_lea.vmem %s12153_s5, %s7621_s30 }
 0x63e   : > { %v6502_v11 = vpop.f32.mrf.mxu1  ;;  %v5710_v40 = vsel %vm5474_vm5, %v5638_v34, %v8323_v20 }
 0x63f   : > { %v6503_v28 = vadd.f32 %v6502_v11, %v6270_v22  ;;  %v8326_v11 = vpop.permute.xlu0 %8325  ;;  %v6273_v22 = vadd.f32 %v6272_v6, %v6040_v17  ;;  %v8337_v17 = vunpack.i.l.bf16 %v8336_v25 }
 0x640   : > { %v8327_v52 = vunpack.i.l.bf16 %v8326_v11  ;;  %v8328_v12 = vunpack.i.h.bf16 %v8326_v11 }
 0x641   : > { %v6718_v58 = vmax.f32 %v6503_v28, 0.0  ;;  %7542 = vmatmul.msk.f32.gmra.mxu1 %vm2773_vm2, %v3545_v5 }
 0x642   : > { %6322 = vmatmul.f32.gmra.mxu2 %v5709_v37  ;;  %v5567_v6 = vsel %vm2773_vm2, %v3260_v53, %v8327_v52  ;;  %v6046_v52 = vadd.f32 %v11639_v18, %v10721_v3  ;;  %v8338_v53 = vunpack.i.h.bf16 %v8336_v25  ;;  %v8351_v25 = vpop.permute.xlu2 %8350 }
 0x643   : > { %6790 = vst.msk [vmem:[#allocation3] sm:$0xff] %vm5401_vm4, %v6718_v58  ;;  %5255 = vrot.lane.b32.xlu2 %v3528_v50, %s8706_s7  ;;  %v8332_v58 = vunpack.i.l.bf16 %v8331_v27  ;;  %v6043_v50 = vadd.f32 %v11639_v18, %v10715_v8  ;;  %v8333_v8 = vunpack.i.h.bf16 %v8331_v27  ;;  %v3548_v27 = vld [vmem:[#allocation2 + $0x10a] sm:$0xff] }
 0x645   : > { %v6275_v45 = vpop.f32.mrf.mxu2  ;;  %v5639_v0 = vsel %vm5401_vm4, %v5567_v6, %v8332_v58 }
 0x646   : > { %v6505_v28 = vpop.f32.mrf.mxu1  ;;  %v6276_v5 = vadd.f32 %v6275_v45, %v6043_v50  ;;  %v5711_v20 = vsel %vm5474_vm5, %v5639_v0, %v8337_v17  ;;  %v8346_v50 = vpop.permute.xlu1 %8345  ;;  %v3262_v17 = vld [vmem:[#allocation2 + $0x109] sm:$0xff] }
 0x647   : > { %v6506_v15 = vadd.f32 %v6505_v28, %v6273_v22  ;;  %v3547_v28 = vld [vmem:[#allocation2 + $0x102] sm:$0xff]  ;;  %v8347_v0 = vunpack.i.l.bf16 %v8346_v50 }
 0x649   : > { %v6719_v49 = vmax.f32 %v6506_v15, 0.0  ;;  %7543 = vmatmul.msk.f32.gmra.mxu1 %vm2773_vm2, %v3546_v43  ;;  %v3261_v15 = vld [vmem:[#allocation2 + $0x101] sm:$0xff]  ;;  %v8341_v43 = vpop.permute.xlu0 %8340 }
 0x64a   : > { %6325 = vmatmul.f32.gmra.mxu2 %v5710_v40  ;;  %v5568_v45 = vsel %vm2773_vm2, %v3261_v15, %v8328_v12  ;;  %v8342_v6 = vunpack.i.l.bf16 %v8341_v43  ;;  %v12186_v12 = vld [vmem:[#allocation4_spill] sm:$0xff]  ;;  %v8352_v15 = vunpack.i.l.bf16 %v8351_v25 }
 0x64b   : > { %6791 = vst.msk [vmem:[#allocation3 + $0x8] sm:$0xff] %vm5401_vm4, %v6719_v49  ;;  %v5640_v58 = vsel %vm5401_vm4, %v5568_v45, %v8333_v8 }
 0x64c   : > { %v5712_v3 = vsel %vm5474_vm5, %v5640_v58, %v8338_v53  ;;  %v8348_v53 = vunpack.i.h.bf16 %v8346_v50 }
 0x64d   : > { %v6278_v37 = vpop.f32.mrf.mxu2 }
 0x64e   : > { %v6508_v30 = vpop.f32.mrf.mxu1  ;;  %v6279_v49 = vadd.f32 %v6278_v37, %v6046_v52  ;;  %v6049_v37 = vadd.f32 %v11639_v18, %v12186_v12  ;;  %v8343_v52 = vunpack.i.h.bf16 %v8341_v43  ;;  %v8353_v12 = vunpack.i.h.bf16 %v8351_v25 }
 0x64f   : > { %v6509_v22 = vadd.f32 %v6508_v30, %v6276_v5 }
 0x651   : > { %v6720_v34 = vmax.f32 %v6509_v22, 0.0  ;;  %7544 = vmatmul.msk.f32.gmra.mxu1 %vm2773_vm2, %v3547_v28  ;;  %v5569_v22 = vsel %vm2773_vm2, %v3262_v17, %v8342_v6 }
 0x652   : > { %6328 = vmatmul.f32.gmra.mxu2 %v5711_v20  ;;  %v5641_v8 = vsel %vm5401_vm4, %v5569_v22, %v8347_v0 }
 0x653   : > { %6792 = vst.msk [vmem:[#allocation3 + $0x10] sm:$0xff] %vm5401_vm4, %v6720_v34  ;;  %v5713_v58 = vsel %vm5474_vm5, %v5641_v8, %v8352_v15  ;;  %v3550_v8 = vld [vmem:[#allocation2 + $0x122] sm:$0xff] }
 0x655   : > { %v6281_v11 = vpop.f32.mrf.mxu2 }
 0x656   : > { %v6511_v40 = vpop.f32.mrf.mxu1  ;;  %v6282_v28 = vadd.f32 %v6281_v11, %v6049_v37  ;;  %v8361_v37 = vpop.permute.xlu1 %8360 }
 0x657   : > { %v6512_v5 = vadd.f32 %v6511_v40, %v6279_v49  ;;  %v3549_v49 = vld [vmem:[#allocation2 + $0x112] sm:$0xff] }
 0x659   : > { %v6721_v30 = vmax.f32 %v6512_v5, 0.0  ;;  %7545 = vmatmul.msk.f32.gmra.mxu1 %vm2773_vm2, %v3548_v27  ;;  %v3263_v5 = vld [vmem:[#allocation2 + $0x111] sm:$0xff]  ;;  %v12187_v27 = vld [vmem:[#allocation5_spill] sm:$0xff] }
 0x65a   : > { %6331 = vmatmul.f32.gmra.mxu2 %v5712_v3  ;;  %v6052_v6 = vadd.f32 %v11639_v18, %v12187_v27  ;;  %v5570_v11 = vsel %vm2773_vm2, %v3263_v5, %v8343_v52  ;;  %v8362_v52 = vunpack.i.l.bf16 %v8361_v37 }
 0x65b   : > { %6793 = vst.msk [vmem:[#allocation3 + $0x18] sm:$0xff] %vm5401_vm4, %v6721_v30  ;;  %v8356_v30 = vpop.permute.xlu0 %8355  ;;  %v5642_v17 = vsel %vm5401_vm4, %v5570_v11, %v8348_v53 }
 0x65c   : > { %v8357_v22 = vunpack.i.l.bf16 %v8356_v30 }
 0x65d   : > { %v6284_v34 = vpop.f32.mrf.mxu2 }
 0x65e   : > { %v6514_v20 = vpop.f32.mrf.mxu1  ;;  %v6285_v43 = vadd.f32 %v6284_v34, %v6052_v6  ;;  %v8366_v6 = vpop.permute.xlu2 %8365 }
 0x65f   : > { %v6515_v45 = vadd.f32 %v6514_v20, %v6282_v28  ;;  %v6862_v28 = vld [vmem:[#allocation3] ss:$2 sm:$0xff]  ;;  %v6958_v20 = vld [vmem:[#allocation3 + $0x1] ss:$2 sm:$0xff] }
 0x660   : > { %v7053_v53 = vmax.f32 %v6862_v28, %v6958_v20  ;;  %v8358_v28 = vunpack.i.h.bf16 %v8356_v30 }
 0x661   : > { %v6722_v40 = vmax.f32 %v6515_v45, 0.0  ;;  %7546 = vmatmul.msk.f32.gmra.mxu1 %vm2773_vm2, %v3549_v49  ;;  %v5714_v45 = vsel %vm5474_vm5, %v5642_v17, %v8353_v12 }
 0x662   : > { %6334 = vmatmul.f32.gmra.mxu2 %v5713_v58  ;;  %v12188_v58 = vld [vmem:[#allocation6_spill] sm:$0xff] }
 0x663   : > { %6794 = vst.msk [vmem:[#allocation3 + $0x20] sm:$0xff] %vm5401_vm4, %v6722_v40  ;;  %v3264_v40 = vld [vmem:[#allocation2 + $0x121] sm:$0xff]  ;;  %v6055_v25 = vadd.f32 %v11639_v18, %v12188_v58 }
 0x664   : > { %v5571_v27 = vsel %vm2773_vm2, %v3264_v40, %v8357_v22  ;;  %v6864_v22 = vld [vmem:[#allocation3 + $0x10] ss:$2 sm:$0xf]  ;;  %v8363_v40 = vunpack.i.h.bf16 %v8361_v37 }
 0x665   : > { %v6287_v3 = vpop.f32.mrf.mxu2  ;;  %v5643_v12 = vsel %vm5401_vm4, %v5571_v27, %v8362_v52  ;;  %v12189_v52 = vld [vmem:[#allocation7_spill] sm:$0xff] }
 0x666   : > { %v6517_v0 = vpop.f32.mrf.mxu1  ;;  %v6058_v30 = vadd.f32 %v11639_v18, %v12189_v52 }
 0x667   : > { %v6518_v50 = vadd.f32 %v6517_v0, %v6285_v43  ;;  %v6288_v43 = vadd.f32 %v6287_v3, %v6055_v25 }
 0x669   : > { %v6723_v15 = vmax.f32 %v6518_v50, 0.0  ;;  %7547 = vmatmul.msk.f32.gmra.mxu1 %vm2773_vm2, %v3550_v8  ;;  %v8367_v50 = vunpack.i.l.bf16 %v8366_v6 }
 0x66a   : > { %v6866_v49 = vld [vmem:[#allocation3 + $0x18] ss:$2 sm:$0xff]  ;;  %v6962_v34 = vld [vmem:[#allocation3 + $0x19] ss:$2 sm:$0xff]  ;;  %6337 = vmatmul.f32.gmra.mxu2 %v5714_v45 }
 0x66b   : > { %v7055_v5 = vmax.f32 %v6866_v49, %v6962_v34  ;;  %6795 = vst.msk [vmem:[#allocation3 + $0x28] sm:$0xff] %vm5401_vm4, %v6723_v15  ;;  %v3551_v15 = vld [vmem:[#allocation2 + $0x12a] sm:$0xff]  ;;  %v5715_v49 = vsel %vm5474_vm5, %v5643_v12, %v8367_v50 }
 0x66c   : > { %v6960_v45 = vld [vmem:[#allocation3 + $0x11] ss:$2 sm:$0xf]  ;;  %v3265_v34 = vld [vmem:[#allocation2 + $0x129] sm:$0xff] }
 0x66d   : > { %v7101_v11 = vmax.f32 %v7053_v53, %v7055_v5  ;;  %v6290_v0 = vpop.f32.mrf.mxu2  ;;  %v7054_v53 = vmax.f32 %v6864_v22, %v6960_v45  ;;  %v5572_v27 = vsel %vm2773_vm2, %v3265_v34, %v8358_v28  ;;  %v3552_v22 = vld [vmem:[#allocation2 + $0x132] sm:$0xff]  ;;  %v12190_v34 = vld [vmem:[#allocation8_spill] sm:$0xff] }
 0x66e   : > { %v6520_v17 = vpop.f32.mrf.mxu1  ;;  %v5644_v37 = vsel %vm5401_vm4, %v5572_v27, %v8363_v40  ;;  %v8381_v40 = vpop.permute.xlu2 %8380 }
 0x66f   : > { %v7125_v20 = vpack.c.bf16 %v7101_v11, %v7101_v11  ;;  %v6521_v8 = vadd.f32 %v6520_v17, %v6288_v43  ;;  %v8371_v11 = vpop.permute.xlu0 %8370  ;;  %v6291_v17 = vadd.f32 %v6290_v0, %v6058_v30  ;;  %v3266_v0 = vld [vmem:[#allocation2 + $0x131] sm:$0xff]  ;;  %v8382_v27 = vunpack.i.l.bf16 %v8381_v40 }
 0x671   : > { %7150 = vst.msk [vmem:[%s11696_s19] sm:$0xf] %vm7149_vm6, %v7125_v20  ;;  %v6724_v3 = vmax.f32 %v6521_v8, 0.0  ;;  %7548 = vmatmul.msk.f32.gmra.mxu1 %vm2773_vm2, %v3551_v15  ;;  %v8368_v20 = vunpack.i.h.bf16 %v8366_v6  ;;  %v8376_v8 = vpop.permute.xlu1 %8375  ;;  %v8372_v15 = vunpack.i.l.bf16 %v8371_v11 }
 0x672   : > { %v6868_v58 = vld [vmem:[#allocation3 + $0x28] ss:$2 sm:$0xf]  ;;  %v6964_v25 = vld [vmem:[#allocation3 + $0x29] ss:$2 sm:$0xf]  ;;  %6340 = vmatmul.f32.gmra.mxu2 %v5715_v49 }
 0x673   : > { %v7056_v5 = vmax.f32 %v6868_v58, %v6964_v25  ;;  %6796 = vst.msk [vmem:[#allocation3 + $0x30] sm:$0xff] %vm5401_vm4, %v6724_v3  ;;  %v5716_v28 = vsel %vm5474_vm5, %v5644_v37, %v8368_v20  ;;  %v8377_v3 = vunpack.i.l.bf16 %v8376_v8  ;;  %v6061_v58 = vadd.f32 %v11639_v18, %v12190_v34 }
 0x674   : > { %v5573_v6 = vsel %vm2773_vm2, %v3266_v0, %v8372_v15  ;;  %v8383_v34 = vunpack.i.h.bf16 %v8381_v40 }
 0x675   : > { %v7102_v43 = vmax.f32 %v7054_v53, %v7056_v5  ;;  %v6293_v12 = vpop.f32.mrf.mxu2  ;;  %v5645_v5 = vsel %vm5401_vm4, %v5573_v6, %v8377_v3 }
 0x676   : > { %v6523_v50 = vpop.f32.mrf.mxu1  ;;  %v6294_v25 = vadd.f32 %v6293_v12, %v6061_v58  ;;  %v5717_v20 = vsel %vm5474_vm5, %v5645_v5, %v8382_v27  ;;  %v8396_v40 = vpop.permute.xlu2 %8395 }
 0x677   : > { %v7126_v49 = vpack.c.bf16 %v7102_v43, %v7102_v43  ;;  %v6524_v52 = vadd.f32 %v6523_v50, %v6291_v17  ;;  %v8373_v43 = vunpack.i.h.bf16 %v8371_v11  ;;  %v3553_v50 = vld [vmem:[#allocation2 + $0x142] sm:$0xff] }
 0x679   : > { %7152 = vst.msk [vmem:[%s11696_s19 + $0x4] sm:$0x3] %vm7151_vm7, %v7126_v49  ;;  %v6725_v45 = vmax.f32 %v6524_v52, 0.0  ;;  %7549 = vmatmul.msk.f32.gmra.mxu1 %vm2773_vm2, %v3552_v22  ;;  %v8378_v49 = vunpack.i.h.bf16 %v8376_v8  ;;  %v3267_v52 = vld [vmem:[#allocation2 + $0x141] sm:$0xff]  ;;  %v8391_v58 = vpop.permute.xlu1 %8390  ;;  %v3554_v8 = vld [vmem:[#allocation2 + $0x14a] sm:$0xff] }
 0x67a   : > { %6343 = vmatmul.f32.gmra.mxu2 %v5716_v28  ;;  %v12191_v22 = vld [vmem:[#allocation9_spill] sm:$0xff]  ;;  %v5574_v12 = vsel %vm2773_vm2, %v3267_v52, %v8373_v43  ;;  %v8392_v27 = vunpack.i.l.bf16 %v8391_v58  ;;  %v12192_v43 = vld [vmem:[#allocation10_spill] sm:$0xff] }
 0x67b   : > { %6797 = vst.msk [vmem:[#allocation3 + $0x38] sm:$0xff] %vm5401_vm4, %v6725_v45  ;;  %v6064_v15 = vadd.f32 %v11639_v18, %v12191_v22  ;;  %v8386_v45 = vpop.permute.xlu0 %8385  ;;  %v5646_v0 = vsel %vm5401_vm4, %v5574_v12, %v8378_v49  ;;  %v8397_v22 = vunpack.i.l.bf16 %v8396_v40 }
 0x67c   : > { %v8387_v6 = vunpack.i.l.bf16 %v8386_v45  ;;  %v5718_v5 = vsel %vm5474_vm5, %v5646_v0, %v8383_v34  ;;  %v8393_v34 = vunpack.i.h.bf16 %v8391_v58 }
 0x67d   : > { %v6296_v30 = vpop.f32.mrf.mxu2 }
 0x67e   : > { %v6526_v53 = vpop.f32.mrf.mxu1  ;;  %v6297_v28 = vadd.f32 %v6296_v30, %v6064_v15  ;;  %v6067_v30 = vadd.f32 %v11639_v18, %v12192_v43  ;;  %v8388_v15 = vunpack.i.h.bf16 %v8386_v45  ;;  %v8398_v43 = vunpack.i.h.bf16 %v8396_v40 }
 0x67f   : > { %v6527_v17 = vadd.f32 %v6526_v53, %v6294_v25 }
 0x681   : > { %v6726_v37 = vmax.f32 %v6527_v17, 0.0  ;;  %7550 = vmatmul.msk.f32.gmra.mxu1 %vm2773_vm2, %v3553_v50  ;;  %v3268_v17 = vld [vmem:[#allocation2 + $0x149] sm:$0xff] }
 0x682   : > { %6346 = vmatmul.f32.gmra.mxu2 %v5717_v20  ;;  %v5575_v50 = vsel %vm2773_vm2, %v3268_v17, %v8387_v6  ;;  %v6870_v58 = vld [vmem:[#allocation3 + $0x30] ss:$2 sm:$0xff] }
 0x683   : > { %6798 = vst.msk [vmem:[#allocation3 + $0x40] sm:$0xff] %vm5401_vm4, %v6726_v37  ;;  %v5647_v52 = vsel %vm5401_vm4, %v5575_v50, %v8392_v27 }
 0x684   : > { %v5719_v0 = vsel %vm5474_vm5, %v5647_v52, %v8397_v22  ;;  %v3556_v52 = vld [vmem:[#allocation2 + $0x162] sm:$0xff] }
 0x685   : > { %v6299_v11 = vpop.f32.mrf.mxu2 }
 0x686   : > { %v6529_v3 = vpop.f32.mrf.mxu1  ;;  %v6300_v37 = vadd.f32 %v6299_v11, %v6067_v30  ;;  %v8406_v30 = vpop.permute.xlu1 %8405 }
 0x687   : > { %v6530_v25 = vadd.f32 %v6529_v3, %v6297_v28  ;;  %v3555_v28 = vld [vmem:[#allocation2 + $0x152] sm:$0xff] }
 0x689   : > { %v6727_v53 = vmax.f32 %v6530_v25, 0.0  ;;  %7551 = vmatmul.msk.f32.gmra.mxu1 %vm2773_vm2, %v3554_v8  ;;  %v3269_v25 = vld [vmem:[#allocation2 + $0x151] sm:$0xff] }
 0x68a   : > { %6349 = vmatmul.f32.gmra.mxu2 %v5718_v5  ;;  %v12193_v8 = vld [vmem:[#allocation11_spill] sm:$0xff]  ;;  %v5576_v11 = vsel %vm2773_vm2, %v3269_v25, %v8388_v15 }
 0x68b   : > { %6799 = vst.msk [vmem:[#allocation3 + $0x48] sm:$0xff] %vm5401_vm4, %v6727_v53  ;;  %v6070_v6 = vadd.f32 %v11639_v18, %v12193_v8  ;;  %v8401_v53 = vpop.permute.xlu0 %8400  ;;  %v5648_v17 = vsel %vm5401_vm4, %v5576_v11, %v8393_v34 }
 0x68c   : > { %v8402_v50 = vunpack.i.l.bf16 %v8401_v53 }
 0x68d   : > { %v6302_v20 = vpop.f32.mrf.mxu2 }
 0x68e   : > { %v6532_v49 = vpop.f32.mrf.mxu1  ;;  %v6303_v5 = vadd.f32 %v6302_v20, %v6070_v6  ;;  %v3270_v20 = vld [vmem:[#allocation2 + $0x161] sm:$0xff]  ;;  %v8411_v6 = vpop.permute.xlu2 %8410 }
 0x68f   : > { %v6533_v12 = vadd.f32 %v6532_v49, %v6300_v37  ;;  %v6966_v49 = vld [vmem:[#allocation3 + $0x31] ss:$2 sm:$0xff]  ;;  %v5577_v8 = vsel %vm2773_vm2, %v3270_v20, %v8402_v50 }
 0x690   : > { %v7057_v40 = vmax.f32 %v6870_v58, %v6966_v49  ;;  %v6968_v58 = vld [vmem:[#allocation3 + $0x41] ss:$2 sm:$0xf] }
 0x691   : > { %v6728_v3 = vmax.f32 %v6533_v12, 0.0  ;;  %7552 = vmatmul.msk.f32.gmra.mxu1 %vm2773_vm2, %v3555_v28  ;;  %v5720_v12 = vsel %vm5474_vm5, %v5648_v17, %v8398_v43  ;;  %v8407_v28 = vunpack.i.l.bf16 %v8406_v30 }
 0x692   : > { %6352 = vmatmul.f32.gmra.mxu2 %v5719_v0  ;;  %v12194_v0 = vld [vmem:[#allocation12_spill] sm:$0xff] }
 0x693   : > { %6800 = vst.msk [vmem:[#allocation3 + $0x50] sm:$0xff] %vm5401_vm4, %v6728_v3  ;;  %v6073_v34 = vadd.f32 %v11639_v18, %v12194_v0  ;;  %v5649_v43 = vsel %vm5401_vm4, %v5577_v8, %v8407_v28  ;;  %v6872_v0 = vld [vmem:[#allocation3 + $0x40] ss:$2 sm:$0xf]  ;;  %v12195_v28 = vld [vmem:[#allocation13_spill] sm:$0xff] }
 0x694   : > { %v7058_v20 = vmax.f32 %v6872_v0, %v6968_v58 }
 0x695   : > { %v6305_v45 = vpop.f32.mrf.mxu2 }
 0x696   : > { %v6535_v27 = vpop.f32.mrf.mxu1 }
 0x697   : > { %v6536_v37 = vadd.f32 %v6535_v27, %v6303_v5  ;;  %v6306_v5 = vadd.f32 %v6305_v45, %v6073_v34  ;;  %v8408_v45 = vunpack.i.h.bf16 %v8406_v30 }
 0x699   : > { %v6729_v22 = vmax.f32 %v6536_v37, 0.0  ;;  %7553 = vmatmul.msk.f32.gmra.mxu1 %vm2773_vm2, %v3556_v52  ;;  %v8412_v37 = vunpack.i.l.bf16 %v8411_v6  ;;  %v8403_v52 = vunpack.i.h.bf16 %v8401_v53  ;;  %v6076_v53 = vadd.f32 %v11639_v18, %v12195_v28 }
 0x69a   : > { %v6874_v15 = vld [vmem:[#allocation3 + $0x48] ss:$2 sm:$0xff]  ;;  %v6970_v3 = vld [vmem:[#allocation3 + $0x49] ss:$2 sm:$0xff]  ;;  %6355 = vmatmul.f32.gmra.mxu2 %v5720_v12 }
 0x69b   : > { %v7059_v25 = vmax.f32 %v6874_v15, %v6970_v3  ;;  %6801 = vst.msk [vmem:[#allocation3 + $0x58] sm:$0xff] %vm5401_vm4, %v6729_v22  ;;  %v5721_v50 = vsel %vm5474_vm5, %v5649_v43, %v8412_v37  ;;  %v3271_v22 = vld [vmem:[#allocation2 + $0x169] sm:$0xff] }
 0x69d   : > { %v7103_v11 = vmax.f32 %v7057_v40, %v7059_v25  ;;  %v6308_v27 = vpop.f32.mrf.mxu2  ;;  %v5578_v40 = vsel %vm2773_vm2, %v3271_v22, %v8403_v52 }
 0x69e   : > { %v6538_v17 = vpop.f32.mrf.mxu1  ;;  %v5650_v30 = vsel %vm5401_vm4, %v5578_v40, %v8408_v45  ;;  %v8426_v45 = vpop.permute.xlu2 %8425 }
 0x69f   : > { %v7127_v12 = vpack.c.bf16 %v7103_v11, %v7103_v11  ;;  %v6539_v7 = vadd.f32 %v6538_v17, %v6306_v5  ;;  %v8413_v5 = vunpack.i.h.bf16 %v8411_v6  ;;  %v8421_v17 = vpop.permute.xlu1 %8420 }
 0x6a0   : > { %v8422_v58 = vunpack.i.l.bf16 %v8421_v17 }
 0x6a1   : > { %7153 = vst.msk [vmem:[%s11696_s19 + $0x8] sm:$0xf] %vm7149_vm6, %v7127_v12  ;;  %v6730_v49 = vmax.f32 %v6539_v7, 0.0  ;;  %7554 = vmatmul.msk.f32.gmra.mxu1 %vm2773_vm2, %v3557_v44  ;;  %v8416_v7 = vpop.permute.xlu0 %8415  ;;  %v6309_v44 = vadd.f32 %v6308_v27, %v6076_v53  ;;  %v5722_v52 = vsel %vm5474_vm5, %v5650_v30, %v8413_v5  ;;  %v3272_v27 = vld [vmem:[#allocation2 + $0x171] sm:$0xff]  ;;  %v8423_v30 = vunpack.i.h.bf16 %v8421_v17  ;;  %v3273_v5 = vld [vmem:[#allocation2 + $0x181] sm:$0xff] }
 0x6a2   : > { %v6876_v15 = vld [vmem:[#allocation3 + $0x58] ss:$2 sm:$0xf]  ;;  %v6972_v3 = vld [vmem:[#allocation3 + $0x59] ss:$2 sm:$0xf]  ;;  %6358 = vmatmul.f32.gmra.mxu2 %v5721_v50  ;;  %v8417_v43 = vunpack.i.l.bf16 %v8416_v7 }
 0x6a3   : > { %v7060_v34 = vmax.f32 %v6876_v15, %v6972_v3  ;;  %6802 = vst.msk [vmem:[#allocation3 + $0x60] sm:$0xff] %vm5401_vm4, %v6730_v49  ;;  %v3558_v50 = vld [vmem:[#allocation2 + $0x172] sm:$0xff]  ;;  %v3560_v17 = vld [vmem:[#allocation2 + $0x18a] sm:$0xff] }
 0x6a4   : > { %v12196_v49 = vld [vmem:[#allocation14_spill] sm:$0xff]  ;;  %v5579_v6 = vsel %vm2773_vm2, %v3272_v27, %v8417_v43 }
 0x6a5   : > { %v7104_v25 = vmax.f32 %v7058_v20, %v7060_v34  ;;  %v6311_v8 = vpop.f32.mrf.mxu2  ;;  %v6079_v22 = vadd.f32 %v11639_v18, %v12196_v49  ;;  %v5651_v53 = vsel %vm5401_vm4, %v5579_v6, %v8422_v58  ;;  %v8427_v20 = vunpack.i.l.bf16 %v8426_v45 }
 0x6a6   : > { %v6541_v11 = vpop.f32.mrf.mxu1  ;;  %v8418_v34 = vunpack.i.h.bf16 %v8416_v7  ;;  %v8428_v58 = vunpack.i.h.bf16 %v8426_v45  ;;  %v8441_v45 = vpop.permute.xlu2 %8440 }
 0x6a7   : > { %v7128_v37 = vpack.c.bf16 %v7104_v25, %v7104_v25  ;;  %v6542_v12 = vadd.f32 %v6541_v11, %v6309_v44  ;;  %v6312_v15 = vadd.f32 %v6311_v8, %v6079_v22  ;;  %v3559_v25 = vld [vmem:[#allocation2 + $0x182] sm:$0xff]  ;;  %v5723_v11 = vsel %vm5474_vm5, %v5651_v53, %v8427_v20  ;;  %v8436_v27 = vpop.permute.xlu1 %8435 }
 0x6a8   : > { %v5580_v8 = vsel %vm2773_vm2, %v3273_v5, %v8418_v34  ;;  %v3274_v53 = vld [vmem:[#allocation2 + $0x189] sm:$0xff]  ;;  %v12198_v20 = vld [vmem:[#allocation16_spill] sm:$0xff] }
 0x6a9   : > { %7154 = vst.msk [vmem:[%s11696_s19 + $0xc] sm:$0x3] %vm7151_vm7, %v7128_v37  ;;  %v6731_v0 = vmax.f32 %v6542_v12, 0.0  ;;  %7555 = vmatmul.msk.f32.gmra.mxu1 %vm2773_vm2, %v3558_v50  ;;  %v12197_v37 = vld [vmem:[#allocation15_spill] sm:$0xff]  ;;  %v8431_v12 = vpop.permute.xlu0 %8430 }
 0x6aa   : > { %6361 = vmatmul.f32.gmra.mxu2 %v5722_v52  ;;  %v6082_v43 = vadd.f32 %v11639_v18, %v12197_v37  ;;  %v5652_v52 = vsel %vm5401_vm4, %v5580_v8, %v8423_v30  ;;  %v8432_v49 = vunpack.i.l.bf16 %v8431_v12  ;;  %v8442_v30 = vunpack.i.l.bf16 %v8441_v45 }
 0x6ab   : > { %6803 = vst.msk [vmem:[#allocation3 + $0x68] sm:$0xff] %vm5401_vm4, %v6731_v0  ;;  %v8433_v5 = vunpack.i.h.bf16 %v8431_v12 }
 0x6ac   : > { %v5581_v34 = vsel %vm2773_vm2, %v3274_v53, %v8432_v49 }
 0x6ad   : > { %v6314_v3 = vpop.f32.mrf.mxu2 }
 0x6ae   : > { %v6544_v28 = vpop.f32.mrf.mxu1  ;;  %v6315_v50 = vadd.f32 %v6314_v3, %v6082_v43  ;;  %v6085_v3 = vadd.f32 %v11639_v18, %v12198_v20  ;;  %v3561_v43 = vld [vmem:[#allocation2 + $0x192] sm:$0xff] }
 0x6af   : > { %v6545_v40 = vadd.f32 %v6544_v28, %v6312_v15  ;;  %v5724_v15 = vsel %vm5474_vm5, %v5652_v52, %v8428_v58  ;;  %v8437_v28 = vunpack.i.l.bf16 %v8436_v27  ;;  %v3275_v52 = vld [vmem:[#allocation2 + $0x191] sm:$0xff]  ;;  %v6088_v58 = vadd.f32 %v11639_v18, %v10915_v41 }
 0x6b1   : > { %v6732_v44 = vmax.f32 %v6545_v40, 0.0  ;;  %7556 = vmatmul.msk.f32.gmra.mxu1 %vm2773_vm2, %v3559_v25  ;;  %v8446_v49 = vpop.permute.xlu0 %8445 }
 0x6b2   : > { %6364 = vmatmul.f32.gmra.mxu2 %v5723_v11  ;;  %v5653_v11 = vsel %vm5401_vm4, %v5581_v34, %v8437_v28  ;;  %v8451_v28 = vpop.permute.xlu1 %8450  ;;  %v8447_v53 = vunpack.i.l.bf16 %v8446_v49  ;;  %v3562_v34 = vld [vmem:[#allocation2 + $0x1a2] sm:$0xff] }
 0x6b3   : > { %6804 = vst.msk [vmem:[#allocation3 + $0x70] sm:$0xff] %vm5401_vm4, %v6732_v44 }
 0x6b5   : > { %v6317_v7 = vpop.f32.mrf.mxu2 }
 0x6b6   : > { %v6547_v0 = vpop.f32.mrf.mxu1  ;;  %v6318_v40 = vadd.f32 %v6317_v7, %v6085_v3  ;;  %v5582_v7 = vsel %vm2773_vm2, %v3275_v52, %v8433_v5  ;;  %v6974_v3 = vld [vmem:[#allocation3 + $0x61] ss:$2 sm:$0xff]  ;;  %v6091_v5 = vadd.f32 %v11639_v18, %v10940_v36 }
 0x6b7   : > { %v6548_v22 = vadd.f32 %v6547_v0, %v6315_v50  ;;  %v5725_v50 = vsel %vm5474_vm5, %v5653_v11, %v8442_v30  ;;  %v8438_v0 = vunpack.i.h.bf16 %v8436_v27  ;;  %v6878_v27 = vld [vmem:[#allocation3 + $0x60] ss:$2 sm:$0xff] }
 0x6b9   : > { %v6733_v6 = vmax.f32 %v6548_v22, 0.0  ;;  %7557 = vmatmul.msk.f32.gmra.mxu1 %vm2773_vm2, %v3560_v17 }
 0x6ba   : > { %6367 = vmatmul.f32.gmra.mxu2 %v5724_v15  ;;  %v8443_v15 = vunpack.i.h.bf16 %v8441_v45  ;;  %v7061_v45 = vmax.f32 %v6878_v27, %v6974_v3  ;;  %v6880_v36 = vld [vmem:[#allocation3 + $0x70] ss:$2 sm:$0xf]  ;;  %v6976_v27 = vld [vmem:[#allocation3 + $0x71] ss:$2 sm:$0xf] }
 0x6bb   : > { %6805 = vst.msk [vmem:[#allocation3 + $0x78] sm:$0xff] %vm5401_vm4, %v6733_v6  ;;  %v5654_v6 = vsel %vm5401_vm4, %v5582_v7, %v8438_v0 }
 0x6bc   : > { %v5726_v41 = vsel %vm5474_vm5, %v5654_v6, %v8443_v15 }
 0x6bd   : > { %v6320_v25 = vpop.f32.mrf.mxu2 }
 0x6be   : > { %v6550_v44 = vpop.f32.mrf.mxu1  ;;  %v6321_v22 = vadd.f32 %v6320_v25, %v6088_v58  ;;  %v3276_v25 = vld [vmem:[#allocation2 + $0x1a1] sm:$0xff] }
 0x6bf   : > { %v6551_v37 = vadd.f32 %v6550_v44, %v6318_v40  ;;  %v8452_v44 = vunpack.i.l.bf16 %v8451_v28 }
 0x6c1   : > { %v6734_v8 = vmax.f32 %v6551_v37, 0.0  ;;  %7558 = vmatmul.msk.f32.gmra.mxu1 %vm2773_vm2, %v3561_v43  ;;  %v5583_v43 = vsel %vm2773_vm2, %v3276_v25, %v8447_v53  ;;  %v8461_v25 = vpop.permute.xlu0 %8460 }
 0x6c2   : > { %6370 = vmatmul.f32.gmra.mxu2 %v5725_v50  ;;  %v5655_v7 = vsel %vm5401_vm4, %v5583_v43, %v8452_v44  ;;  %v7062_v44 = vmax.f32 %v6880_v36, %v6976_v27 }
 0x6c3   : > { %6806 = vst.msk [vmem:[#allocation3 + $0x80] sm:$0xff] %vm5401_vm4, %v6734_v8  ;;  %v8456_v8 = vpop.permute.xlu2 %8455 }
 0x6c5   : > { %v6323_v12 = vpop.f32.mrf.mxu2 }
 0x6c6   : > { %v6553_v17 = vpop.f32.mrf.mxu1  ;;  %v6324_v0 = vadd.f32 %v6323_v12, %v6091_v5  ;;  %v8453_v12 = vunpack.i.h.bf16 %v8451_v28 }
 0x6c7   : > { %v6554_v20 = vadd.f32 %v6553_v17, %v6321_v22  ;;  %v8457_v22 = vunpack.i.l.bf16 %v8456_v8  ;;  %v8448_v17 = vunpack.i.h.bf16 %v8446_v49  ;;  %v6094_v49 = vadd.f32 %v11639_v18, %v10972_v26  ;;  %v3564_v26 = vld [vmem:[#allocation2 + $0x1b2] sm:$0xff] }
 0x6c9   : > { %v6735_v40 = vmax.f32 %v6554_v20, 0.0  ;;  %7559 = vmatmul.msk.f32.gmra.mxu1 %vm2773_vm2, %v3562_v34  ;;  %v3563_v20 = vld [vmem:[#allocation2 + $0x1aa] sm:$0xff]  ;;  %v5727_v53 = vsel %vm5474_vm5, %v5655_v7, %v8457_v22 }
 0x6ca   : > { %v6882_v11 = vld [vmem:[#allocation3 + $0x78] ss:$2 sm:$0xff]  ;;  %v6978_v30 = vld [vmem:[#allocation3 + $0x79] ss:$2 sm:$0xff]  ;;  %6373 = vmatmul.f32.gmra.mxu2 %v5726_v41  ;;  %v3277_v34 = vld [vmem:[#allocation2 + $0x1a9] sm:$0xff] }
 0x6cb   : > { %v7063_v37 = vmax.f32 %v6882_v11, %v6978_v30  ;;  %6807 = vst.msk [vmem:[#allocation3 + $0x88] sm:$0xff] %vm5401_vm4, %v6735_v40  ;;  %v5584_v30 = vsel %vm2773_vm2, %v3277_v34, %v8448_v17  ;;  %v8471_v36 = vpop.permute.xlu2 %8470 }
 0x6cc   : > { %v5656_v28 = vsel %vm5401_vm4, %v5584_v30, %v8453_v12  ;;  %v8472_v12 = vunpack.i.l.bf16 %v8471_v36  ;;  %v3279_v30 = vld [vmem:[#allocation2 + $0x1c1] sm:$0xff] }
 0x6cd   : > { %v7105_v50 = vmax.f32 %v7061_v45, %v7063_v37  ;;  %v6326_v52 = vpop.f32.mrf.mxu2 }
 0x6ce   : > { %v6556_v58 = vpop.f32.mrf.mxu1  ;;  %v6327_v45 = vadd.f32 %v6326_v52, %v6094_v49  ;;  %v3278_v52 = vld [vmem:[#allocation2 + $0x1b1] sm:$0xff]  ;;  %v3565_v49 = vld [vmem:[#allocation2 + $0x1c2] sm:$0xff] }
 0x6cf   : > { %v7129_v6 = vpack.c.bf16 %v7105_v50, %v7105_v50  ;;  %v6557_v15 = vadd.f32 %v6556_v58, %v6324_v0  ;;  %v8458_v50 = vunpack.i.h.bf16 %v8456_v8  ;;  %v8466_v0 = vpop.permute.xlu1 %8465  ;;  %v8462_v58 = vunpack.i.l.bf16 %v8461_v25 }
 0x6d1   : > { %7155 = vst.msk [vmem:[%s11696_s19 + $0x10] sm:$0xf] %vm7149_vm6, %v7129_v6  ;;  %v6736_v3 = vmax.f32 %v6557_v15, 0.0  ;;  %7560 = vmatmul.msk.f32.gmra.mxu1 %vm2773_vm2, %v3563_v20  ;;  %v5728_v17 = vsel %vm5474_vm5, %v5656_v28, %v8458_v50  ;;  %v8467_v15 = vunpack.i.l.bf16 %v8466_v0  ;;  %v6097_v20 = vadd.f32 %v11639_v18, %v10996_v59 }
 0x6d2   : > { %v6884_v40 = vld [vmem:[#allocation3 + $0x88] ss:$2 sm:$0xf]  ;;  %v6980_v41 = vld [vmem:[#allocation3 + $0x89] ss:$2 sm:$0xf]  ;;  %6376 = vmatmul.f32.gmra.mxu2 %v5727_v53  ;;  %v5585_v8 = vsel %vm2773_vm2, %v3278_v52, %v8462_v58  ;;  %v8468_v59 = vunpack.i.h.bf16 %v8466_v0  ;;  %v8473_v58 = vunpack.i.h.bf16 %v8471_v36  ;;  %v6103_v52 = vadd.f32 %v11639_v18, %v11064_v51 }
 0x6d3   : > { %v7064_v11 = vmax.f32 %v6884_v40, %v6980_v41  ;;  %6808 = vst.msk [vmem:[#allocation3 + $0x90] sm:$0xff] %vm5401_vm4, %v6736_v3  ;;  %v5657_v34 = vsel %vm5401_vm4, %v5585_v8, %v8467_v15  ;;  %v8463_v40 = vunpack.i.h.bf16 %v8461_v25  ;;  %v3566_v0 = vld [vmem:[#allocation2 + $0x1ca] sm:$0xff]  ;;  %v8486_v8 = vpop.permute.xlu2 %8485 }
 0x6d4   : > { %v3280_v15 = vld [vmem:[#allocation2 + $0x1c9] sm:$0xff] }
 0x6d5   : > { %v7106_v5 = vmax.f32 %v7062_v44, %v7064_v11  ;;  %v6329_v37 = vpop.f32.mrf.mxu2  ;;  %v5729_v11 = vsel %vm5474_vm5, %v5657_v34, %v8472_v12  ;;  %v8487_v34 = vunpack.i.l.bf16 %v8486_v8 }
 0x6d6   : > { %v6559_v43 = vpop.f32.mrf.mxu1  ;;  %v6330_v27 = vadd.f32 %v6329_v37, %v6097_v20  ;;  %v8476_v37 = vpop.permute.xlu0 %8475 }
 0x6d7   : > { %v7130_v7 = vpack.c.bf16 %v7106_v5, %v7106_v5  ;;  %v6560_v22 = vadd.f32 %v6559_v43, %v6327_v45  ;;  %v6100_v5 = vadd.f32 %v11639_v18, %v11032_v1  ;;  %v5586_v45 = vsel %vm2773_vm2, %v3279_v30, %v8463_v40 }
 0x6d8   : > { %v5658_v50 = vsel %vm5401_vm4, %v5586_v45, %v8468_v59  ;;  %v8478_v12 = vunpack.i.h.bf16 %v8476_v37  ;;  %v6106_v59 = vadd.f32 %v11639_v18, %v11096_v46 }
 0x6d9   : > { %7156 = vst.msk [vmem:[%s11696_s19 + $0x14] sm:$0x3] %vm7151_vm7, %v7130_v7  ;;  %v6737_v6 = vmax.f32 %v6560_v22, 0.0  ;;  %7561 = vmatmul.msk.f32.gmra.mxu1 %vm2773_vm2, %v3564_v26  ;;  %v8481_v7 = vpop.permute.xlu1 %8480  ;;  %v8477_v22 = vunpack.i.l.bf16 %v8476_v37  ;;  %v5730_v1 = vsel %vm5474_vm5, %v5658_v50, %v8473_v58 }
 0x6da   : > { %6379 = vmatmul.f32.gmra.mxu2 %v5728_v17  ;;  %v8482_v17 = vunpack.i.l.bf16 %v8481_v7  ;;  %v8483_v51 = vunpack.i.h.bf16 %v8481_v7 }
 0x6db   : > { %6809 = vst.msk [vmem:[#allocation3 + $0x98] sm:$0xff] %vm5401_vm4, %v6737_v6  ;;  %v5587_v20 = vsel %vm2773_vm2, %v3280_v15, %v8477_v22  ;;  %v3282_v15 = vld [vmem:[#allocation2 + $0x1e1] sm:$0xff] }
 0x6dd   : > { %v6332_v3 = vpop.f32.mrf.mxu2 }
 0x6de   : > { %v6562_v53 = vpop.f32.mrf.mxu1  ;;  %v6333_v43 = vadd.f32 %v6332_v3, %v6100_v5  ;;  %v8491_v5 = vpop.permute.xlu0 %8490 }
 0x6df   : > { %v6563_v41 = vadd.f32 %v6562_v53, %v6330_v27  ;;  %v5659_v53 = vsel %vm5401_vm4, %v5587_v20, %v8482_v17  ;;  %v8492_v58 = vunpack.i.l.bf16 %v8491_v5 }
 0x6e1   : > { %v6738_v44 = vmax.f32 %v6563_v41, 0.0  ;;  %7562 = vmatmul.msk.f32.gmra.mxu1 %vm2773_vm2, %v3565_v49  ;;  %v3567_v41 = vld [vmem:[#allocation2 + $0x1d2] sm:$0xff]  ;;  %v8496_v50 = vpop.permute.xlu1 %8495 }
 0x6e2   : > { %6382 = vmatmul.f32.gmra.mxu2 %v5729_v11  ;;  %v3281_v11 = vld [vmem:[#allocation2 + $0x1d1] sm:$0xff]  ;;  %v8497_v18 = vunpack.i.l.bf16 %v8496_v50 }
 0x6e3   : > { %6810 = vst.msk [vmem:[#allocation3 + $0xa0] sm:$0xff] %vm5401_vm4, %v6738_v44  ;;  %v5731_v44 = vsel %vm5474_vm5, %v5659_v53, %v8487_v34  ;;  %v5588_v30 = vsel %vm2773_vm2, %v3281_v11, %v8478_v12  ;;  %v6886_v7 = vld [vmem:[#allocation3 + $0x90] ss:$2 sm:$0xff] }
 0x6e5   : > { %v6335_v25 = vpop.f32.mrf.mxu2 }
 0x6e6   : > { %v6565_v28 = vpop.f32.mrf.mxu1  ;;  %v6336_v36 = vadd.f32 %v6335_v25, %v6103_v52  ;;  %v5660_v25 = vsel %vm5401_vm4, %v5588_v30, %v8483_v51  ;;  %v11835_v52 = vld [vmem:[%s12152_s4] ss:$0 sm:$0xff] }
 0x6e7   : > { %v6566_v26 = vadd.f32 %v6565_v28, %v6333_v43  ;;  %v8488_v28 = vunpack.i.h.bf16 %v8486_v8  ;;  %v6109_v20 = vadd.f32 %v11835_v52, %v11124_v47 }
 0x6e9   : > { %v6739_v6 = vmax.f32 %v6566_v26, 0.0  ;;  %7563 = vmatmul.msk.f32.gmra.mxu1 %vm2773_vm2, %v3566_v0  ;;  %v6982_v26 = vld [vmem:[#allocation3 + $0x91] ss:$2 sm:$0xff]  ;;  %v3568_v0 = vld [vmem:[#allocation2 + $0x1e2] sm:$0xff]  ;;  %v5732_v46 = vsel %vm5474_vm5, %v5660_v25, %v8488_v28 }
 0x6ea   : > { %6385 = vmatmul.f32.gmra.mxu2 %v5730_v1  ;;  %v7065_v8 = vmax.f32 %v6886_v7, %v6982_v26  ;;  %v6888_v47 = vld [vmem:[#allocation3 + $0xa0] ss:$2 sm:$0xf]  ;;  %v6984_v30 = vld [vmem:[#allocation3 + $0xa1] ss:$2 sm:$0xf] }
 0x6eb   : > { %6811 = vst.msk [vmem:[#allocation3 + $0xa8] sm:$0xff] %vm5401_vm4, %v6739_v6  ;;  %v3283_v25 = vld [vmem:[#allocation2 + $0x1e9] sm:$0xff] }
 0x6ed   : > { %v6338_v27 = vpop.f32.mrf.mxu2 }
 0x6ee   : > { %v6568_v3 = vpop.f32.mrf.mxu1  ;;  %v6339_v45 = vadd.f32 %v6338_v27, %v6106_v59  ;;  %v5589_v27 = vsel %vm2773_vm2, %v3282_v15, %v8492_v58  ;;  %v3569_v59 = vld [vmem:[#allocation2 + $0x1ea] sm:$0xff]  ;;  %v8511_v15 = vpop.permute.xlu1 %8510 }
 0x6ef   : > { %v6569_v40 = vadd.f32 %v6568_v3, %v6336_v36  ;;  %v8501_v3 = vpop.permute.xlu2 %8500 }
 0x6f1   : > { %v6740_v49 = vmax.f32 %v6569_v40, 0.0  ;;  %7564 = vmatmul.msk.f32.gmra.mxu1 %vm2773_vm2, %v3567_v41  ;;  %v5661_v41 = vsel %vm5401_vm4, %v5589_v27, %v8497_v18 }
 0x6f2   : > { %6388 = vmatmul.f32.gmra.mxu2 %v5731_v44  ;;  %v8493_v44 = vunpack.i.h.bf16 %v8491_v5  ;;  %v6112_v5 = vadd.f32 %v11835_v52, %v11156_v14  ;;  %v3570_v14 = vld [vmem:[#allocation2 + $0x1f2] sm:$0xff] }
 0x6f3   : > { %6812 = vst.msk [vmem:[#allocation3 + $0xb0] sm:$0xff] %vm5401_vm4, %v6740_v49  ;;  %v8502_v49 = vunpack.i.l.bf16 %v8501_v3 }
 0x6f4   : > { %v5590_v26 = vsel %vm2773_vm2, %v3283_v25, %v8493_v44 }
 0x6f5   : > { %v6341_v37 = vpop.f32.mrf.mxu2 }
 0x6f6   : > { %v6571_v43 = vpop.f32.mrf.mxu1  ;;  %v6342_v34 = vadd.f32 %v6341_v37, %v6109_v20  ;;  %v8498_v37 = vunpack.i.h.bf16 %v8496_v50 }
 0x6f7   : > { %v6572_v22 = vadd.f32 %v6571_v43, %v6339_v45  ;;  %v5733_v43 = vsel %vm5474_vm5, %v5661_v41, %v8502_v49  ;;  %v8516_v41 = vpop.permute.xlu2 %8515 }
 0x6f8   : > { %v5662_v50 = vsel %vm5401_vm4, %v5590_v26, %v8498_v37  ;;  %v3285_v37 = vld [vmem:[#allocation2 + $0x201] sm:$0xff] }
 0x6f9   : > { %v6741_v6 = vmax.f32 %v6572_v22, 0.0  ;;  %7565 = vmatmul.msk.f32.gmra.mxu1 %vm2773_vm2, %v3568_v0  ;;  %v7066_v22 = vmax.f32 %v6888_v47, %v6984_v30  ;;  %v8506_v0 = vpop.permute.xlu0 %8505 }
 0x6fa   : > { %v6890_v1 = vld [vmem:[#allocation3 + $0xa8] ss:$2 sm:$0xff]  ;;  %v6986_v17 = vld [vmem:[#allocation3 + $0xa9] ss:$2 sm:$0xff]  ;;  %6391 = vmatmul.f32.gmra.mxu2 %v5732_v46  ;;  %v8507_v20 = vunpack.i.l.bf16 %v8506_v0  ;;  %v8508_v47 = vunpack.i.h.bf16 %v8506_v0 }
 0x6fb   : > { %v7067_v36 = vmax.f32 %v6890_v1, %v6986_v17  ;;  %6813 = vst.msk [vmem:[#allocation3 + $0xb8] sm:$0xff] %vm5401_vm4, %v6741_v6  ;;  %v8503_v17 = vunpack.i.h.bf16 %v8501_v3 }
 0x6fd   : > { %v7107_v53 = vmax.f32 %v7065_v8, %v7067_v36  ;;  %v6344_v12 = vpop.f32.mrf.mxu2 }
 0x6fe   : > { %v6574_v40 = vpop.f32.mrf.mxu1  ;;  %v6345_v46 = vadd.f32 %v6344_v12, %v6112_v5  ;;  %v3284_v12 = vld [vmem:[#allocation2 + $0x1f1] sm:$0xff] }
 0x6ff   : > { %v7131_v51 = vpack.c.bf16 %v7107_v53, %v7107_v53  ;;  %v6575_v11 = vadd.f32 %v6574_v40, %v6342_v34  ;;  %v5734_v53 = vsel %vm5474_vm5, %v5662_v50, %v8503_v17  ;;  %v8512_v34 = vunpack.i.l.bf16 %v8511_v15  ;;  %v3572_v50 = vld [vmem:[#allocation2 + $0x20a] sm:$0xff] }
 0x700   : > { %v6115_v40 = vadd.f32 %v11835_v52, %v11179_v31  ;;  %v5591_v3 = vsel %vm2773_vm2, %v3284_v12, %v8507_v20  ;;  %v8513_v31 = vunpack.i.h.bf16 %v8511_v15  ;;  %v3286_v20 = vld [vmem:[#allocation2 + $0x209] sm:$0xff] }
 0x701   : > { %7157 = vst.msk [vmem:[%s11696_s19 + $0x18] sm:$0xf] %vm7149_vm6, %v7131_v51  ;;  %v6742_v45 = vmax.f32 %v6575_v11, 0.0  ;;  %7566 = vmatmul.msk.f32.gmra.mxu1 %vm2773_vm2, %v3569_v59  ;;  %v5663_v11 = vsel %vm5401_vm4, %v5591_v3, %v8512_v34  ;;  %v8517_v59 = vunpack.i.l.bf16 %v8516_v41  ;;  %v8521_v5 = vpop.permute.xlu0 %8520 }
 0x702   : > { %v6892_v28 = vld [vmem:[#allocation3 + $0xb8] ss:$2 sm:$0xf]  ;;  %v6988_v58 = vld [vmem:[#allocation3 + $0xb9] ss:$2 sm:$0xf]  ;;  %6394 = vmatmul.f32.gmra.mxu2 %v5733_v43  ;;  %v8523_v3 = vunpack.i.h.bf16 %v8521_v5 }
 0x703   : > { %v7068_v7 = vmax.f32 %v6892_v28, %v6988_v58  ;;  %6814 = vst.msk [vmem:[#allocation3 + $0xc0] sm:$0xff] %vm5401_vm4, %v6742_v45  ;;  %v3571_v45 = vld [vmem:[#allocation2 + $0x202] sm:$0xff]  ;;  %v5735_v25 = vsel %vm5474_vm5, %v5663_v11, %v8517_v59  ;;  %v6118_v28 = vadd.f32 %v11835_v52, %v11215_v19  ;;  %v5592_v58 = vsel %vm2773_vm2, %v3285_v37, %v8508_v47  ;;  %v3287_v11 = vld [vmem:[#allocation2 + $0x211] sm:$0xff] }
 0x704   : > { %v5664_v0 = vsel %vm5401_vm4, %v5592_v58, %v8513_v31  ;;  %v6124_v59 = vadd.f32 %v11835_v52, %v11289_v13  ;;  %v5594_v47 = vsel %vm2773_vm2, %v3287_v11, %v8523_v3 }
 0x705   : > { %v7108_v6 = vmax.f32 %v7066_v22, %v7068_v7  ;;  %v6347_v18 = vpop.f32.mrf.mxu2 }
 0x706   : > { %v6577_v1 = vpop.f32.mrf.mxu1  ;;  %v6348_v49 = vadd.f32 %v6347_v18, %v6115_v40  ;;  %v8522_v18 = vunpack.i.l.bf16 %v8521_v5 }
 0x707   : > { %v7132_v8 = vpack.c.bf16 %v7108_v6, %v7108_v6  ;;  %v6578_v36 = vadd.f32 %v6577_v1, %v6345_v46  ;;  %v8518_v6 = vunpack.i.h.bf16 %v8516_v41  ;;  %v8526_v46 = vpop.permute.xlu1 %8525 }
 0x708   : > { %v8527_v15 = vunpack.i.l.bf16 %v8526_v46 }
 0x709   : > { %7158 = vst.msk [vmem:[%s11696_s19 + $0x1c] sm:$0x3] %vm7151_vm7, %v7132_v8  ;;  %v6743_v27 = vmax.f32 %v6578_v36, 0.0  ;;  %7567 = vmatmul.msk.f32.gmra.mxu1 %vm2773_vm2, %v3570_v14  ;;  %v5736_v19 = vsel %vm5474_vm5, %v5664_v0, %v8518_v6  ;;  %v6121_v8 = vadd.f32 %v11835_v52, %v11250_v23  ;;  %v5593_v36 = vsel %vm2773_vm2, %v3286_v20, %v8522_v18  ;;  %v8531_v14 = vpop.permute.xlu2 %8530 }
 0x70a   : > { %6397 = vmatmul.f32.gmra.mxu2 %v5734_v53  ;;  %v5665_v12 = vsel %vm5401_vm4, %v5593_v36, %v8527_v15  ;;  %v8532_v40 = vunpack.i.l.bf16 %v8531_v14  ;;  %v8528_v23 = vunpack.i.h.bf16 %v8526_v46  ;;  %v8533_v37 = vunpack.i.h.bf16 %v8531_v14 }
 0x70b   : > { %6815 = vst.msk [vmem:[#allocation3 + $0xc8] sm:$0xff] %vm5401_vm4, %v6743_v27 }
 0x70c   : > { %v5666_v31 = vsel %vm5401_vm4, %v5594_v47, %v8528_v23  ;;  %v3289_v23 = vld [vmem:[#allocation2 + $0x229] sm:$0xff] }
 0x70d   : > { %v6350_v44 = vpop.f32.mrf.mxu2  ;;  %v5738_v13 = vsel %vm5474_vm5, %v5666_v31, %v8533_v37 }
 0x70e   : > { %v6580_v51 = vpop.f32.mrf.mxu1  ;;  %v6351_v22 = vadd.f32 %v6350_v44, %v6118_v28 }
 0x70f   : > { %v6581_v30 = vadd.f32 %v6580_v51, %v6348_v49  ;;  %v3573_v49 = vld [vmem:[#allocation2 + $0x212] sm:$0xff]  ;;  %v5737_v51 = vsel %vm5474_vm5, %v5665_v12, %v8532_v40  ;;  %v8541_v28 = vpop.permute.xlu1 %8540 }
 0x710   : > { %v8542_v6 = vunpack.i.l.bf16 %v8541_v28  ;;  %v8543_v11 = vunpack.i.h.bf16 %v8541_v28 }
 0x711   : > { %v6744_v43 = vmax.f32 %v6581_v30, 0.0  ;;  %7568 = vmatmul.msk.f32.gmra.mxu1 %vm2773_vm2, %v3571_v45  ;;  %v8536_v30 = vpop.permute.xlu0 %8535  ;;  %v8546_v20 = vpop.permute.xlu2 %8545 }
 0x712   : > { %6400 = vmatmul.f32.gmra.mxu2 %v5735_v25  ;;  %v8537_v58 = vunpack.i.l.bf16 %v8536_v30  ;;  %v8538_v12 = vunpack.i.h.bf16 %v8536_v30  ;;  %v6130_v30 = vadd.f32 %v11835_v52, %v11346_v4  ;;  %v3576_v4 = vld [vmem:[#allocation2 + $0x232] sm:$0xff] }
 0x713   : > { %6816 = vst.msk [vmem:[#allocation3 + $0xd0] sm:$0xff] %vm5401_vm4, %v6744_v43 }
 0x715   : > { %v6353_v7 = vpop.f32.mrf.mxu2 }
 0x716   : > { %v6583_v26 = vpop.f32.mrf.mxu1  ;;  %v6354_v27 = vadd.f32 %v6353_v7, %v6121_v8  ;;  %v6990_v7 = vld [vmem:[#allocation3 + $0xc1] ss:$2 sm:$0xff] }
 0x717   : > { %v6584_v1 = vadd.f32 %v6583_v26, %v6351_v22  ;;  %v6894_v22 = vld [vmem:[#allocation3 + $0xc0] ss:$2 sm:$0xff] }
 0x718   : > { %v3574_v26 = vld [vmem:[#allocation2 + $0x222] sm:$0xff] }
 0x719   : > { %v6745_v17 = vmax.f32 %v6584_v1, 0.0  ;;  %7569 = vmatmul.msk.f32.gmra.mxu1 %vm2773_vm2, %v3572_v50  ;;  %v3288_v1 = vld [vmem:[#allocation2 + $0x221] sm:$0xff]  ;;  %v6127_v50 = vadd.f32 %v11835_v52, %v11318_v16  ;;  %v8551_v31 = vpop.permute.xlu0 %8550 }
 0x71a   : > { %6403 = vmatmul.f32.gmra.mxu2 %v5736_v19  ;;  %v5595_v15 = vsel %vm2773_vm2, %v3288_v1, %v8537_v58  ;;  %v6896_v16 = vld [vmem:[#allocation3 + $0xd0] ss:$2 sm:$0xf] }
 0x71b   : > { %6817 = vst.msk [vmem:[#allocation3 + $0xd8] sm:$0xff] %vm5401_vm4, %v6745_v17  ;;  %v7069_v17 = vmax.f32 %v6894_v22, %v6990_v7  ;;  %v8548_v7 = vunpack.i.h.bf16 %v8546_v20 }
 0x71d   : > { %v6356_v53 = vpop.f32.mrf.mxu2 }
 0x71e   : > { %v6586_v34 = vpop.f32.mrf.mxu1  ;;  %v6357_v45 = vadd.f32 %v6356_v53, %v6124_v59  ;;  %v5667_v53 = vsel %vm5401_vm4, %v5595_v15, %v8542_v6  ;;  %v8561_v15 = vpop.permute.xlu2 %8560 }
 0x71f   : > { %v6587_v41 = vadd.f32 %v6586_v34, %v6354_v27  ;;  %v8547_v34 = vunpack.i.l.bf16 %v8546_v20 }
 0x721   : > { %v6746_v44 = vmax.f32 %v6587_v41, 0.0  ;;  %7570 = vmatmul.msk.f32.gmra.mxu1 %vm2773_vm2, %v3573_v49  ;;  %v3575_v41 = vld [vmem:[#allocation2 + $0x22a] sm:$0xff] }
 0x722   : > { %6406 = vmatmul.f32.gmra.mxu2 %v5737_v51  ;;  %v6992_v49 = vld [vmem:[#allocation3 + $0xd1] ss:$2 sm:$0xf]  ;;  %v5739_v51 = vsel %vm5474_vm5, %v5667_v53, %v8547_v34  ;;  %v8553_v53 = vunpack.i.h.bf16 %v8551_v31 }
 0x723   : > { %6818 = vst.msk [vmem:[#allocation3 + $0xe0] sm:$0xff] %vm5401_vm4, %v6746_v44 }
 0x725   : > { %v6359_v43 = vpop.f32.mrf.mxu2 }
 0x726   : > { %v6589_v25 = vpop.f32.mrf.mxu1  ;;  %v6360_v36 = vadd.f32 %v6359_v43, %v6127_v50  ;;  %v3290_v50 = vld [vmem:[#allocation2 + $0x231] sm:$0xff] }
 0x727   : > { %v6590_v5 = vadd.f32 %v6589_v25, %v6357_v45  ;;  %v7070_v45 = vmax.f32 %v6896_v16, %v6992_v49  ;;  %v5596_v25 = vsel %vm2773_vm2, %v3289_v23, %v8538_v12  ;;  %v3577_v12 = vld [vmem:[#allocation2 + $0x242] sm:$0xff]  ;;  %v6136_v16 = vadd.f32 %v11835_v52, %v11408_v63 }
 0x728   : > { %v5668_v28 = vsel %vm5401_vm4, %v5596_v25, %v8543_v11  ;;  %v3578_v25 = vld [vmem:[#allocation2 + $0x24a] sm:$0xff] }
 0x729   : > { %v6747_v0 = vmax.f32 %v6590_v5, 0.0  ;;  %7571 = vmatmul.msk.f32.gmra.mxu1 %vm2773_vm2, %v3574_v26  ;;  %v8556_v26 = vpop.permute.xlu1 %8555 }
 0x72a   : > { %v6898_v46 = vld [vmem:[#allocation3 + $0xd8] ss:$2 sm:$0xff]  ;;  %v6994_v18 = vld [vmem:[#allocation3 + $0xd9] ss:$2 sm:$0xff]  ;;  %6409 = vmatmul.f32.gmra.mxu2 %v5738_v13  ;;  %v8557_v1 = vunpack.i.l.bf16 %v8556_v26 }
 0x72b   : > { %v7071_v19 = vmax.f32 %v6898_v46, %v6994_v18  ;;  %6819 = vst.msk [vmem:[#allocation3 + $0xe8] sm:$0xff] %vm5401_vm4, %v6747_v0  ;;  %v8552_v0 = vunpack.i.l.bf16 %v8551_v31  ;;  %v5740_v18 = vsel %vm5474_vm5, %v5668_v28, %v8548_v7  ;;  %v8576_v28 = vpop.permute.xlu2 %8575 }
 0x72d   : > { %v7109_v8 = vmax.f32 %v7069_v17, %v7071_v19  ;;  %v6362_v14 = vpop.f32.mrf.mxu2  ;;  %v6133_v17 = vadd.f32 %v11835_v52, %v11383_v56  ;;  %v5597_v19 = vsel %vm2773_vm2, %v3290_v50, %v8552_v0  ;;  %v8558_v56 = vunpack.i.h.bf16 %v8556_v26 }
 0x72e   : > { %v6592_v27 = vpop.f32.mrf.mxu1  ;;  %v6363_v58 = vadd.f32 %v6362_v14, %v6130_v30  ;;  %v5669_v14 = vsel %vm5401_vm4, %v5597_v19, %v8557_v1  ;;  %v6142_v19 = vadd.f32 %v11835_v52, %v11451_v48 }
 0x72f   : > { %v7133_v40 = vpack.c.bf16 %v7109_v8, %v7109_v8  ;;  %v6593_v3 = vadd.f32 %v6592_v27, %v6360_v36  ;;  %v8562_v27 = vunpack.i.l.bf16 %v8561_v15 }
 0x731   : > { %7159 = vst.msk [vmem:[%s11696_s19 + $0x20] sm:$0xf] %vm7149_vm6, %v7133_v40  ;;  %v6748_v44 = vmax.f32 %v6593_v3, 0.0  ;;  %7572 = vmatmul.msk.f32.gmra.mxu1 %vm2773_vm2, %v3575_v41  ;;  %v5741_v3 = vsel %vm5474_vm5, %v5669_v14, %v8562_v27  ;;  %v3291_v41 = vld [vmem:[#allocation2 + $0x241] sm:$0xff]  ;;  %v8571_v30 = vpop.permute.xlu1 %8570 }
 0x732   : > { %v6900_v59 = vld [vmem:[#allocation3 + $0xe8] ss:$2 sm:$0xf]  ;;  %v6996_v47 = vld [vmem:[#allocation3 + $0xe9] ss:$2 sm:$0xf]  ;;  %6412 = vmatmul.f32.gmra.mxu2 %v5739_v51  ;;  %v5598_v49 = vsel %vm2773_vm2, %v3291_v41, %v8553_v53  ;;  %v8578_v53 = vunpack.i.h.bf16 %v8576_v28 }
 0x733   : > { %v7072_v43 = vmax.f32 %v6900_v59, %v6996_v47  ;;  %6820 = vst.msk [vmem:[#allocation3 + $0xf0] sm:$0xff] %vm5401_vm4, %v6748_v44  ;;  %v8566_v44 = vpop.permute.xlu0 %8565  ;;  %v5670_v59 = vsel %vm5401_vm4, %v5598_v49, %v8558_v56  ;;  %v8563_v47 = vunpack.i.h.bf16 %v8561_v15  ;;  %v3580_v41 = vld [vmem:[#allocation2 + $0x262] sm:$0xff] }
 0x735   : > { %v7110_v37 = vmax.f32 %v7070_v45, %v7072_v43  ;;  %v6365_v5 = vpop.f32.mrf.mxu2  ;;  %v8567_v45 = vunpack.i.l.bf16 %v8566_v44  ;;  %v5742_v63 = vsel %vm5474_vm5, %v5670_v59, %v8563_v47 }
 0x736   : > { %v6595_v22 = vpop.f32.mrf.mxu1  ;;  %v6366_v20 = vadd.f32 %v6365_v5, %v6133_v17  ;;  %v6139_v5 = vadd.f32 %v11835_v52, %v11430_v9  ;;  %v8573_v9 = vunpack.i.h.bf16 %v8571_v30  ;;  %v3293_v17 = vld [vmem:[#allocation2 + $0x251] sm:$0xff] }
 0x737   : > { %v7134_v13 = vpack.c.bf16 %v7110_v37, %v7110_v37  ;;  %v6596_v6 = vadd.f32 %v6595_v22, %v6363_v58  ;;  %v8572_v37 = vunpack.i.l.bf16 %v8571_v30  ;;  %v3292_v58 = vld [vmem:[#allocation2 + $0x249] sm:$0xff] }
 0x738   : > { %v5599_v22 = vsel %vm2773_vm2, %v3292_v58, %v8567_v45  ;;  %v8591_v45 = vpop.permute.xlu2 %8590 }
 0x739   : > { %7160 = vst.msk [vmem:[%s11696_s19 + $0x24] sm:$0x3] %vm7151_vm7, %v7134_v13  ;;  %v6749_v46 = vmax.f32 %v6596_v6, 0.0  ;;  %7573 = vmatmul.msk.f32.gmra.mxu1 %vm2773_vm2, %v3576_v4  ;;  %v5671_v13 = vsel %vm5401_vm4, %v5599_v22, %v8572_v37  ;;  %v8577_v6 = vunpack.i.l.bf16 %v8576_v28  ;;  %v8568_v4 = vunpack.i.h.bf16 %v8566_v44 }
 0x73a   : > { %6415 = vmatmul.f32.gmra.mxu2 %v5740_v18  ;;  %v3579_v18 = vld [vmem:[#allocation2 + $0x252] sm:$0xff]  ;;  %v8592_v58 = vunpack.i.l.bf16 %v8591_v45 }
 0x73b   : > { %6821 = vst.msk [vmem:[#allocation3 + $0xf8] sm:$0xff] %vm5401_vm4, %v6749_v46  ;;  %v5743_v50 = vsel %vm5474_vm5, %v5671_v13, %v8577_v6  ;;  %v5600_v15 = vsel %vm2773_vm2, %v3293_v17, %v8568_v4  ;;  %v3295_v6 = vld [vmem:[#allocation2 + $0x269] sm:$0xff] }
 0x73c   : > { %v5672_v27 = vsel %vm5401_vm4, %v5600_v15, %v8573_v9 }
 0x73d   : > { %v6368_v8 = vpop.f32.mrf.mxu2  ;;  %v5744_v48 = vsel %vm5474_vm5, %v5672_v27, %v8578_v53  ;;  %v8593_v27 = vunpack.i.h.bf16 %v8591_v45 }
 0x73e   : > { %v6598_v36 = vpop.f32.mrf.mxu1  ;;  %v6369_v51 = vadd.f32 %v6368_v8, %v6136_v16 }
 0x73f   : > { %v6599_v34 = vadd.f32 %v6598_v36, %v6366_v20  ;;  %v8581_v20 = vpop.permute.xlu0 %8580 }
 0x741   : > { %v6750_v40 = vmax.f32 %v6599_v34, 0.0  ;;  %7574 = vmatmul.msk.f32.gmra.mxu1 %vm2773_vm2, %v3577_v12  ;;  %v8586_v34 = vpop.permute.xlu1 %8585  ;;  %v8582_v12 = vunpack.i.l.bf16 %v8581_v20 }
 0x742   : > { %6418 = vmatmul.f32.gmra.mxu2 %v5741_v3  ;;  %v6902_v3 = vld [vmem:[#allocation3 + $0xf0] ss:$2 sm:$0xff]  ;;  %v6998_v56 = vld [vmem:[#allocation3 + $0xf1] ss:$2 sm:$0xff]  ;;  %v8587_v49 = vunpack.i.l.bf16 %v8586_v34  ;;  %v8588_v4 = vunpack.i.h.bf16 %v8586_v34 }
 0x743   : > { %6822 = vst.msk [vmem:[#allocation3 + $0x100] sm:$0xff] %vm5401_vm4, %v6750_v40  ;;  %v7073_v59 = vmax.f32 %v6902_v3, %v6998_v56 }
 0x745   : > { %v6371_v23 = vpop.f32.mrf.mxu2 }
 0x746   : > { %v6601_v11 = vpop.f32.mrf.mxu1  ;;  %v6372_v7 = vadd.f32 %v6371_v23, %v6139_v5  ;;  %v3294_v23 = vld [vmem:[#allocation2 + $0x261] sm:$0xff]  ;;  %v8583_v5 = vunpack.i.h.bf16 %v8581_v20 }
 0x747   : > { %v6602_v43 = vadd.f32 %v6601_v11, %v6369_v51  ;;  %v6145_v11 = vadd.f32 %v11835_v52, %v11464_v35  ;;  %v5601_v30 = vsel %vm2773_vm2, %v3294_v23, %v8582_v12 }
 0x748   : > { %v5673_v37 = vsel %vm5401_vm4, %v5601_v30, %v8587_v49  ;;  %v5602_v17 = vsel %vm2773_vm2, %v3295_v6, %v8583_v5 }
 0x749   : > { %v6751_v31 = vmax.f32 %v6602_v43, 0.0  ;;  %7575 = vmatmul.msk.f32.gmra.mxu1 %vm2773_vm2, %v3578_v25  ;;  %v5745_v13 = vsel %vm5474_vm5, %v5673_v37, %v8592_v58  ;;  %v8601_v53 = vpop.permute.xlu1 %8600  ;;  %v6154_v37 = vadd.f32 %v11835_v52, %v11498_v62 }
 0x74a   : > { %6421 = vmatmul.f32.gmra.mxu2 %v5742_v63  ;;  %v6904_v35 = vld [vmem:[#allocation3 + $0x100] ss:$2 sm:$0xf] }
 0x74b   : > { %6823 = vst.msk [vmem:[#allocation3 + $0x108] sm:$0xff] %vm5401_vm4, %v6751_v31 }
 0x74d   : > { %v6374_v26 = vpop.f32.mrf.mxu2 }
 0x74e   : > { %v6604_v0 = vpop.f32.mrf.mxu1  ;;  %v6375_v8 = vadd.f32 %v6374_v26, %v6142_v19  ;;  %v7000_v26 = vld [vmem:[#allocation3 + $0x101] ss:$2 sm:$0xf]  ;;  %v8596_v19 = vpop.permute.xlu0 %8595 }
 0x74f   : > { %v6605_v46 = vadd.f32 %v6604_v0, %v6372_v7  ;;  %v3581_v7 = vld [vmem:[#allocation2 + $0x26a] sm:$0xff]  ;;  %v8597_v34 = vunpack.i.l.bf16 %v8596_v19  ;;  %v8598_v30 = vunpack.i.h.bf16 %v8596_v19 }
 0x751   : > { %v6752_v1 = vmax.f32 %v6605_v46, 0.0  ;;  %7576 = vmatmul.msk.f32.gmra.mxu1 %vm2773_vm2, %v3579_v18 }
 0x752   : > { %6424 = vmatmul.f32.gmra.mxu2 %v5743_v50  ;;  %v7074_v50 = vmax.f32 %v6904_v35, %v7000_v26 }
 0x753   : > { %6824 = vst.msk [vmem:[#allocation3 + $0x110] sm:$0xff] %vm5401_vm4, %v6752_v1  ;;  %v6148_v1 = vadd.f32 %v11835_v52, %v11476_v55  ;;  %v3582_v55 = vld [vmem:[#allocation2 + $0x272] sm:$0xff] }
 0x755   : > { %v6377_v36 = vpop.f32.mrf.mxu2 }
 0x756   : > { %v6607_v14 = vpop.f32.mrf.mxu1  ;;  %v6378_v25 = vadd.f32 %v6377_v36, %v6145_v11  ;;  %v8611_v5 = vpop.permute.xlu0 %8610 }
 0x757   : > { %v6608_v40 = vadd.f32 %v6607_v14, %v6375_v8  ;;  %v5674_v14 = vsel %vm5401_vm4, %v5602_v17, %v8588_v4  ;;  %v3584_v4 = vld [vmem:[#allocation2 + $0x28a] sm:$0xff] }
 0x758   : > { %v5746_v56 = vsel %vm5474_vm5, %v5674_v14, %v8593_v27  ;;  %v8613_v14 = vunpack.i.h.bf16 %v8611_v5 }
 0x759   : > { %v6753_v16 = vmax.f32 %v6608_v40, 0.0  ;;  %7577 = vmatmul.msk.f32.gmra.mxu1 %vm2773_vm2, %v3580_v41  ;;  %v8602_v41 = vunpack.i.l.bf16 %v8601_v53 }
 0x75a   : > { %v6906_v44 = vld [vmem:[#allocation3 + $0x108] ss:$2 sm:$0xff]  ;;  %v7002_v51 = vld [vmem:[#allocation3 + $0x109] ss:$2 sm:$0xff]  ;;  %6427 = vmatmul.f32.gmra.mxu2 %v5744_v48  ;;  %v6151_v48 = vadd.f32 %v11835_v52, %v11487_v10  ;;  %v8603_v10 = vunpack.i.h.bf16 %v8601_v53 }
 0x75b   : > { %v7075_v47 = vmax.f32 %v6906_v44, %v7002_v51  ;;  %6825 = vst.msk [vmem:[#allocation3 + $0x118] sm:$0xff] %vm5401_vm4, %v6753_v16  ;;  %v3296_v16 = vld [vmem:[#allocation2 + $0x271] sm:$0xff]  ;;  %v8606_v44 = vpop.permute.xlu2 %8605 }
 0x75c   : > { %v5603_v49 = vsel %vm2773_vm2, %v3296_v16, %v8597_v34  ;;  %v8608_v26 = vunpack.i.h.bf16 %v8606_v44  ;;  %v3585_v53 = vld [vmem:[#allocation2 + $0x292] sm:$0xff] }
 0x75d   : > { %v7111_v43 = vmax.f32 %v7073_v59, %v7075_v47  ;;  %v6380_v31 = vpop.f32.mrf.mxu2  ;;  %v5675_v59 = vsel %vm5401_vm4, %v5603_v49, %v8602_v41  ;;  %v8607_v47 = vunpack.i.l.bf16 %v8606_v44 }
 0x75e   : > { %v6610_v63 = vpop.f32.mrf.mxu1  ;;  %v6381_v20 = vadd.f32 %v6380_v31, %v6148_v1  ;;  %v3298_v1 = vld [vmem:[#allocation2 + $0x289] sm:$0xff] }
 0x75f   : > { %v7135_v22 = vpack.c.bf16 %v7111_v43, %v7111_v43  ;;  %v6611_v28 = vadd.f32 %v6610_v63, %v6378_v25  ;;  %v3583_v43 = vld [vmem:[#allocation2 + $0x282] sm:$0xff]  ;;  %v5747_v31 = vsel %vm5474_vm5, %v5675_v59, %v8607_v47 }
 0x760   : > { %v3297_v63 = vld [vmem:[#allocation2 + $0x281] sm:$0xff] }
 0x761   : > { %7161 = vst.msk [vmem:[%s11696_s19 + $0x28] sm:$0xf] %vm7149_vm6, %v7135_v22  ;;  %v6754_v0 = vmax.f32 %v6611_v28, 0.0  ;;  %7578 = vmatmul.msk.f32.gmra.mxu1 %vm2773_vm2, %v3581_v7  ;;  %v5604_v58 = vsel %vm2773_vm2, %v3297_v63, %v8598_v30  ;;  %v3586_v30 = vld [vmem:[#allocation2 + $0x2a2] sm:$0xff]  ;;  %v6163_v63 = vadd.f32 %v11835_v52, %v11531_v42 }
 0x762   : > { %v6908_v46 = vld [vmem:[#allocation3 + $0x118] ss:$2 sm:$0xf]  ;;  %v7004_v18 = vld [vmem:[#allocation3 + $0x119] ss:$2 sm:$0xf]  ;;  %6430 = vmatmul.f32.gmra.mxu2 %v5745_v13  ;;  %v5676_v35 = vsel %vm5401_vm4, %v5604_v58, %v8603_v10  ;;  %v8612_v13 = vunpack.i.l.bf16 %v8611_v5 }
 0x763   : > { %v7076_v9 = vmax.f32 %v6908_v46, %v7004_v18  ;;  %6826 = vst.msk [vmem:[#allocation3 + $0x120] sm:$0xff] %vm5401_vm4, %v6754_v0  ;;  %v8616_v0 = vpop.permute.xlu1 %8615  ;;  %v5748_v62 = vsel %vm5474_vm5, %v5676_v35, %v8608_v26  ;;  %v8621_v17 = vpop.permute.xlu2 %8620  ;;  %v3300_v10 = vld [vmem:[#allocation2 + $0x2a1] sm:$0xff] }
 0x764   : > { %v8617_v18 = vunpack.i.l.bf16 %v8616_v0  ;;  %v8623_v44 = vunpack.i.h.bf16 %v8621_v17 }
 0x765   : > { %v7112_v15 = vmax.f32 %v7074_v50, %v7076_v9  ;;  %v6383_v8 = vpop.f32.mrf.mxu2  ;;  %v6157_v50 = vadd.f32 %v11835_v52, %v11509_v57  ;;  %v5605_v9 = vsel %vm2773_vm2, %v3298_v1, %v8612_v13  ;;  %v8618_v57 = vunpack.i.h.bf16 %v8616_v0 }
 0x766   : > { %v6613_v36 = vpop.f32.mrf.mxu1  ;;  %v6384_v51 = vadd.f32 %v6383_v8, %v6151_v48  ;;  %v5677_v8 = vsel %vm5401_vm4, %v5605_v9, %v8617_v18  ;;  %v3301_v9 = vld [vmem:[#allocation2 + $0x2a9] sm:$0xff] }
 0x767   : > { %v7136_v12 = vpack.c.bf16 %v7112_v15, %v7112_v15  ;;  %v6614_v40 = vadd.f32 %v6613_v36, %v6381_v20  ;;  %v8622_v36 = vunpack.i.l.bf16 %v8621_v17 }
 0x769   : > { %7162 = vst.msk [vmem:[%s11696_s19 + $0x2c] sm:$0x3] %vm7151_vm7, %v7136_v12  ;;  %v6755_v3 = vmax.f32 %v6614_v40, 0.0  ;;  %7579 = vmatmul.msk.f32.gmra.mxu1 %vm2773_vm2, %v3582_v55  ;;  %v5749_v12 = vsel %vm5474_vm5, %v5677_v8, %v8622_v36  ;;  %v3299_v40 = vld [vmem:[#allocation2 + $0x291] sm:$0xff]  ;;  %v6160_v55 = vadd.f32 %v11835_v52, %v11520_v29 }
 0x76a   : > { %6433 = vmatmul.f32.gmra.mxu2 %v5746_v56  ;;  %v8626_v56 = vpop.permute.xlu0 %8625 }
 0x76b   : > { %6827 = vst.msk [vmem:[#allocation3 + $0x128] sm:$0xff] %vm5401_vm4, %v6755_v3  ;;  %v5606_v3 = vsel %vm2773_vm2, %v3299_v40, %v8613_v14 }
 0x76c   : > { %v5678_v49 = vsel %vm5401_vm4, %v5606_v3, %v8618_v57 }
 0x76d   : > { %v6386_v23 = vpop.f32.mrf.mxu2  ;;  %v5750_v29 = vsel %vm5474_vm5, %v5678_v49, %v8623_v44 }
 0x76e   : > { %v6616_v11 = vpop.f32.mrf.mxu1  ;;  %v6387_v22 = vadd.f32 %v6386_v23, %v6154_v37  ;;  %v8627_v23 = vunpack.i.l.bf16 %v8626_v56 }
 0x76f   : > { %v6617_v45 = vadd.f32 %v6616_v11, %v6384_v51  ;;  %v8631_v51 = vpop.permute.xlu1 %8630 }
 0x770   : > { %v5607_v5 = vsel %vm2773_vm2, %v3300_v10, %v8627_v23  ;;  %v8633_v17 = vunpack.i.h.bf16 %v8631_v51  ;;  %v6169_v23 = vadd.f32 %v11835_v52, %v11553_v61  ;;  %v3589_v10 = vld [vmem:[#allocation2 + $0x2c2] sm:$0xff] }
 0x771   : > { %v6756_v25 = vmax.f32 %v6617_v45, 0.0  ;;  %7580 = vmatmul.msk.f32.gmra.mxu1 %vm2773_vm2, %v3583_v43  ;;  %v8632_v43 = vunpack.i.l.bf16 %v8631_v51  ;;  %v3302_v51 = vld [vmem:[#allocation2 + $0x2b1] sm:$0xff] }
 0x772   : > { %6436 = vmatmul.f32.gmra.mxu2 %v5747_v31  ;;  %v6910_v59 = vld [vmem:[#allocation3 + $0x120] ss:$2 sm:$0xff]  ;;  %v7006_v47 = vld [vmem:[#allocation3 + $0x121] ss:$2 sm:$0xff] }
 0x773   : > { %6828 = vst.msk [vmem:[#allocation3 + $0x130] sm:$0xff] %vm5401_vm4, %v6756_v25  ;;  %v7077_v37 = vmax.f32 %v6910_v59, %v7006_v47  ;;  %v5679_v0 = vsel %vm5401_vm4, %v5607_v5, %v8632_v43  ;;  %v6172_v5 = vadd.f32 %v11835_v52, %v11565_v2 }
 0x775   : > { %v6389_v28 = vpop.f32.mrf.mxu2 }
 0x776   : > { %v6619_v7 = vpop.f32.mrf.mxu1  ;;  %v6390_v19 = vadd.f32 %v6389_v28, %v6157_v50 }
 0x777   : > { %v6620_v6 = vadd.f32 %v6619_v7, %v6387_v22  ;;  %v8636_v22 = vpop.permute.xlu2 %8635  ;;  %v8646_v3 = vpop.permute.xlu1 %8645 }
 0x778   : > { %v8637_v13 = vunpack.i.l.bf16 %v8636_v22  ;;  %v8647_v44 = vunpack.i.l.bf16 %v8646_v3  ;;  %v8648_v61 = vunpack.i.h.bf16 %v8646_v3 }
 0x779   : > { %v6757_v46 = vmax.f32 %v6620_v6, 0.0  ;;  %7581 = vmatmul.msk.f32.gmra.mxu1 %vm2773_vm2, %v3584_v4  ;;  %v8628_v6 = vunpack.i.h.bf16 %v8626_v56 }
 0x77a   : > { %6439 = vmatmul.f32.gmra.mxu2 %v5748_v62  ;;  %v3587_v62 = vld [vmem:[#allocation2 + $0x2aa] sm:$0xff]  ;;  %v5751_v50 = vsel %vm5474_vm5, %v5679_v0, %v8637_v13 }
 0x77b   : > { %6829 = vst.msk [vmem:[#allocation3 + $0x138] sm:$0xff] %vm5401_vm4, %v6757_v46  ;;  %v6912_v42 = vld [vmem:[#allocation3 + $0x130] ss:$2 sm:$0xf]  ;;  %v5608_v14 = vsel %vm2773_vm2, %v3301_v9, %v8628_v6 }
 0x77c   : > { %v7008_v18 = vld [vmem:[#allocation3 + $0x131] ss:$2 sm:$0xf]  ;;  %v5680_v40 = vsel %vm5401_vm4, %v5608_v14, %v8633_v17 }
 0x77d   : > { %v6392_v15 = vpop.f32.mrf.mxu2  ;;  %v7078_v8 = vmax.f32 %v6912_v42, %v7008_v18 }
 0x77e   : > { %v6622_v20 = vpop.f32.mrf.mxu1  ;;  %v6393_v41 = vadd.f32 %v6392_v15, %v6160_v55  ;;  %v8638_v55 = vunpack.i.h.bf16 %v8636_v22 }
 0x77f   : > { %v6623_v27 = vadd.f32 %v6622_v20, %v6390_v19  ;;  %v6166_v20 = vadd.f32 %v11835_v52, %v11542_v32  ;;  %v3588_v32 = vld [vmem:[#allocation2 + $0x2b2] sm:$0xff]  ;;  %v8651_v59 = vpop.permute.xlu2 %8650  ;;  %v8661_v6 = vpop.permute.xlu1 %8660 }
 0x780   : > { %v5752_v49 = vsel %vm5474_vm5, %v5680_v40, %v8638_v55  ;;  %v8652_v43 = vunpack.i.l.bf16 %v8651_v59  ;;  %v8653_v13 = vunpack.i.h.bf16 %v8651_v59  ;;  %v8662_v18 = vunpack.i.l.bf16 %v8661_v6  ;;  %v3592_v59 = vld [vmem:[#allocation2 + $0x2e2] sm:$0xff] }
 0x781   : > { %v6758_v34 = vmax.f32 %v6623_v27, 0.0  ;;  %7582 = vmatmul.msk.f32.gmra.mxu1 %vm2773_vm2, %v3585_v53  ;;  %v8641_v27 = vpop.permute.xlu0 %8640  ;;  %v6178_v40 = vadd.f32 %v11835_v52, %v11591_v60 }
 0x782   : > { %6442 = vmatmul.f32.gmra.mxu2 %v5749_v12  ;;  %v8642_v56 = vunpack.i.l.bf16 %v8641_v27 }
 0x783   : > { %6830 = vst.msk [vmem:[#allocation3 + $0x140] sm:$0xff] %vm5401_vm4, %v6758_v34 }
 0x785   : > { %v6395_v16 = vpop.f32.mrf.mxu2 }
 0x786   : > { %v6625_v48 = vpop.f32.mrf.mxu1  ;;  %v6396_v7 = vadd.f32 %v6395_v16, %v6163_v63 }
 0x787   : > { %v6626_v11 = vadd.f32 %v6625_v48, %v6393_v41  ;;  %v8666_v17 = vpop.permute.xlu2 %8665 }
 0x789   : > { %v6759_v45 = vmax.f32 %v6626_v11, 0.0  ;;  %7583 = vmatmul.msk.f32.gmra.mxu1 %vm2773_vm2, %v3586_v30  ;;  %v5609_v11 = vsel %vm2773_vm2, %v3302_v51, %v8642_v56 }
 0x78a   : > { %v6914_v25 = vld [vmem:[#allocation3 + $0x138] ss:$2 sm:$0xff]  ;;  %v7010_v31 = vld [vmem:[#allocation3 + $0x139] ss:$2 sm:$0xff]  ;;  %6445 = vmatmul.f32.gmra.mxu2 %v5750_v29  ;;  %v5681_v29 = vsel %vm5401_vm4, %v5609_v11, %v8647_v44 }
 0x78b   : > { %v7079_v58 = vmax.f32 %v6914_v25, %v7010_v31  ;;  %6831 = vst.msk [vmem:[#allocation3 + $0x148] sm:$0xff] %vm5401_vm4, %v6759_v45  ;;  %v8643_v25 = vunpack.i.h.bf16 %v8641_v27 }
 0x78d   : > { %v7113_v28 = vmax.f32 %v7077_v37, %v7079_v58  ;;  %v6398_v35 = vpop.f32.mrf.mxu2  ;;  %v5753_v37 = vsel %vm5474_vm5, %v5681_v29, %v8652_v43  ;;  %v3303_v58 = vld [vmem:[#allocation2 + $0x2c1] sm:$0xff]  ;;  %v12024_v43 = vld [vmem:[%s12152_s4] ss:$0 sm:$0xff] }
 0x78e   : > { %v6628_v26 = vpop.f32.mrf.mxu1  ;;  %v6399_v34 = vadd.f32 %v6398_v35, %v6166_v20  ;;  %v5610_v22 = vsel %vm2773_vm2, %v3303_v58, %v8643_v25  ;;  %v3306_v29 = vld [vmem:[#allocation2 + $0x2e1] sm:$0xff]  ;;  %v6181_v25 = vadd.f32 %v12024_v43, %v11602_v21 }
 0x78f   : > { %v7137_v4 = vpack.c.bf16 %v7113_v28, %v7113_v28  ;;  %v6629_v46 = vadd.f32 %v6628_v26, %v6396_v7  ;;  %v8656_v28 = vpop.permute.xlu0 %8655  ;;  %v5682_v0 = vsel %vm5401_vm4, %v5610_v22, %v8648_v61 }
 0x790   : > { %v5754_v2 = vsel %vm5474_vm5, %v5682_v0, %v8653_v13  ;;  %v8658_v14 = vunpack.i.h.bf16 %v8656_v28 }
 0x791   : > { %7163 = vst.msk [vmem:[%s11696_s19 + $0x30] sm:$0xf] %vm7149_vm6, %v7137_v4  ;;  %v6760_v1 = vmax.f32 %v6629_v46, 0.0  ;;  %7584 = vmatmul.msk.f32.gmra.mxu1 %vm2773_vm2, %v3587_v62  ;;  %v8657_v4 = vunpack.i.l.bf16 %v8656_v28  ;;  %v3590_v62 = vld [vmem:[#allocation2 + $0x2ca] sm:$0xff]  ;;  %v5246_v28 = vpop.permute.xlu2 %5245 }
 0x792   : > { %v6916_v19 = vld [vmem:[#allocation3 + $0x148] ss:$2 sm:$0xf]  ;;  %v7012_v15 = vld [vmem:[#allocation3 + $0x149] ss:$2 sm:$0xf]  ;;  %6448 = vmatmul.f32.gmra.mxu2 %v5751_v50  ;;  %v6175_v50 = vadd.f32 %v11835_v52, %v11578_v54  ;;  %v8663_v54 = vunpack.i.h.bf16 %v8661_v6 }
 0x793   : > { %v7080_v36 = vmax.f32 %v6916_v19, %v7012_v15  ;;  %6832 = vst.msk [vmem:[#allocation3 + $0x150] sm:$0xff] %vm5401_vm4, %v6760_v1  ;;  %v3304_v1 = vld [vmem:[#allocation2 + $0x2c9] sm:$0xff] }
 0x794   : > { %v5611_v9 = vsel %vm2773_vm2, %v3304_v1, %v8657_v4 }
 0x795   : > { %v7114_v53 = vmax.f32 %v7078_v8, %v7080_v36  ;;  %v6401_v12 = vpop.f32.mrf.mxu2  ;;  %v5683_v8 = vsel %vm5401_vm4, %v5611_v9, %v8662_v18  ;;  %v8667_v36 = vunpack.i.l.bf16 %v8666_v17  ;;  %v3307_v9 = vld [vmem:[#allocation2 + $0x2e9] sm:$0xff] }
 0x796   : > { %v6631_v57 = vpop.f32.mrf.mxu1  ;;  %v6402_v47 = vadd.f32 %v6401_v12, %v6169_v23 }
 0x797   : > { %v7138_v41 = vpack.c.bf16 %v7114_v53, %v7114_v53  ;;  %v6632_v16 = vadd.f32 %v6631_v57, %v6399_v34  ;;  %v3591_v53 = vld [vmem:[#allocation2 + $0x2d2] sm:$0xff]  ;;  %v5755_v12 = vsel %vm5474_vm5, %v5683_v8, %v8667_v36  ;;  %v8671_v3 = vpop.permute.xlu0 %8670 }
 0x798   : > { %v3305_v57 = vld [vmem:[#allocation2 + $0x2d1] sm:$0xff]  ;;  %v8672_v44 = vunpack.i.l.bf16 %v8671_v3  ;;  %v8673_v21 = vunpack.i.h.bf16 %v8671_v3 }
 0x799   : > { %7164 = vst.msk [vmem:[%s11696_s19 + $0x34] sm:$0x3] %vm7151_vm7, %v7138_v41  ;;  %v6761_v48 = vmax.f32 %v6632_v16, 0.0  ;;  %7585 = vmatmul.msk.f32.gmra.mxu1 %vm2773_vm2, %v3588_v32  ;;  %v5612_v55 = vsel %vm2773_vm2, %v3305_v57, %v8658_v14  ;;  %v3308_v3 = vld [vmem:[#allocation2 + $0x2f1] sm:$0xff] }
 0x79a   : > { %6451 = vmatmul.f32.gmra.mxu2 %v5752_v49  ;;  %v5684_v32 = vsel %vm5401_vm4, %v5612_v55, %v8663_v54  ;;  %v8676_v49 = vpop.permute.xlu1 %8675 }
 0x79b   : > { %6833 = vst.msk [vmem:[#allocation3 + $0x158] sm:$0xff] %vm5401_vm4, %v6761_v48  ;;  %v8668_v48 = vunpack.i.h.bf16 %v8666_v17  ;;  %v8677_v52 = vunpack.i.l.bf16 %v8676_v49 }
 0x79d   : > { %v6404_v30 = vpop.f32.mrf.mxu2  ;;  %v5756_v60 = vsel %vm5474_vm5, %v5684_v32, %v8668_v48 }
 0x79e   : > { %v6634_v45 = vpop.f32.mrf.mxu1  ;;  %v6405_v7 = vadd.f32 %v6404_v30, %v6172_v5 }
 0x79f   : > { %v6635_v31 = vadd.f32 %v6634_v45, %v6402_v47  ;;  %v5248_v6 = vpop.permute.xlu0 %5247 }
 0x7a1   : > { %v6762_v63 = vmax.f32 %v6635_v31, 0.0  ;;  %7586 = vmatmul.msk.f32.gmra.mxu1 %vm2773_vm2, %v3589_v10 }
 0x7a2   : > { %6454 = vmatmul.f32.gmra.mxu2 %v5753_v37  ;;  %v6918_v23 = vld [vmem:[#allocation3 + $0x150] ss:$2 sm:$0xff]  ;;  %v7014_v11 = vld [vmem:[#allocation3 + $0x151] ss:$2 sm:$0xff]  ;;  %v8681_v17 = vpop.permute.xlu1 %8680 }
 0x7a3   : > { %6834 = vst.msk [vmem:[#allocation3 + $0x160] sm:$0xff] %vm5401_vm4, %v6762_v63  ;;  %v7081_v31 = vmax.f32 %v6918_v23, %v7014_v11  ;;  %v5613_v63 = vsel %vm2773_vm2, %v3306_v29, %v8672_v44  ;;  %v3595_v44 = vld [vmem:[#allocation2 + $0x302] sm:$0xff]  ;;  %v8683_v23 = vunpack.i.h.bf16 %v8681_v17 }
 0x7a4   : > { %v5685_v22 = vsel %vm5401_vm4, %v5613_v63, %v8677_v52  ;;  %v3596_v63 = vld [vmem:[#allocation2 + $0x30a] sm:$0xff] }
 0x7a5   : > { %v6407_v35 = vpop.f32.mrf.mxu2 }
 0x7a6   : > { %v6637_v26 = vpop.f32.mrf.mxu1  ;;  %v6408_v19 = vadd.f32 %v6407_v35, %v6175_v50  ;;  %v8678_v50 = vunpack.i.h.bf16 %v8676_v49 }
 0x7a7   : > { %v6638_v46 = vadd.f32 %v6637_v26, %v6405_v7  ;;  %v3593_v26 = vld [vmem:[#allocation2 + $0x2ea] sm:$0xff]  ;;  %v5250_v55 = vpop.permute.xlu0 %5249 }
 0x7a9   : > { %v6763_v42 = vmax.f32 %v6638_v46, 0.0  ;;  %7587 = vmatmul.msk.f32.gmra.mxu1 %vm2773_vm2, %v3590_v62  ;;  %v5757_v46 = vsel %vm5474_vm5, %v5685_v22, %v5246_v28 }
 0x7aa   : > { %6457 = vmatmul.f32.gmra.mxu2 %v5754_v2  ;;  %v6920_v0 = vld [vmem:[#allocation3 + $0x160] ss:$2 sm:$0xf]  ;;  %v7016_v13 = vld [vmem:[#allocation3 + $0x161] ss:$2 sm:$0xf]  ;;  %v6184_v2 = vadd.f32 %v12024_v43, %v11613_v24  ;;  %v4962_v24 = vpop.permute.xlu2 %4961  ;;  %v4964_v48 = vpop.permute.xlu1 %4963 }
 0x7ab   : > { %6835 = vst.msk [vmem:[#allocation3 + $0x168] sm:$0xff] %vm5401_vm4, %v6763_v42  ;;  %v7082_v18 = vmax.f32 %v6920_v0, %v7016_v13 }
 0x7ad   : > { %v6410_v15 = vpop.f32.mrf.mxu2 }
 0x7ae   : > { %v6640_v20 = vpop.f32.mrf.mxu1  ;;  %v6411_v56 = vadd.f32 %v6410_v15, %v6178_v40  ;;  %v6187_v40 = vadd.f32 %v12024_v43, %v11624_v38 }
 0x7af   : > { %v6641_v27 = vadd.f32 %v6640_v20, %v6408_v19  ;;  %v5614_v20 = vsel %vm2773_vm2, %v3307_v9, %v8673_v21 }
 0x7b1   : > { %v6764_v34 = vmax.f32 %v6641_v27, 0.0  ;;  %7588 = vmatmul.msk.f32.gmra.mxu1 %vm2773_vm2, %v3591_v53  ;;  %v3594_v53 = vld [vmem:[#allocation2 + $0x2f2] sm:$0xff] }
 0x7b2   : > { %6460 = vmatmul.f32.gmra.mxu2 %v5755_v12  ;;  %v8682_v12 = vunpack.i.l.bf16 %v8681_v17  ;;  %v5252_v11 = vpop.permute.xlu2 %5251 }
 0x7b3   : > { %6836 = vst.msk [vmem:[#allocation3 + $0x170] sm:$0xff] %vm5401_vm4, %v6764_v34  ;;  %v5686_v34 = vsel %vm5401_vm4, %v5614_v20, %v8678_v50 }
 0x7b4   : > { %v5758_v57 = vsel %vm5474_vm5, %v5686_v34, %v5248_v6  ;;  %v3597_v6 = vld [vmem:[#allocation2 + $0x312] sm:$0xff] }
 0x7b5   : > { %v6413_v41 = vpop.f32.mrf.mxu2 }
 0x7b6   : > { %v6643_v16 = vpop.f32.mrf.mxu1  ;;  %v6414_v61 = vadd.f32 %v6413_v41, %v6181_v25  ;;  %v5615_v41 = vsel %vm2773_vm2, %v3308_v3, %v8682_v12 }
 0x7b7   : > { %v6644_v51 = vadd.f32 %v6643_v16, %v6411_v56 }
 0x7b9   : > { %v6765_v47 = vmax.f32 %v6644_v51, 0.0  ;;  %7589 = vmatmul.msk.f32.gmra.mxu1 %vm2773_vm2, %v3592_v59  ;;  %v5687_v51 = vsel %vm5401_vm4, %v5615_v41, %v4962_v24  ;;  %v12200_v24 = vld [vmem:[#allocation18_spill] sm:$0xff] }
 0x7ba   : > { %v6922_v30 = vld [vmem:[#allocation3 + $0x168] ss:$2 sm:$0xff]  ;;  %v7018_v45 = vld [vmem:[#allocation3 + $0x169] ss:$2 sm:$0xff]  ;;  %6463 = vmatmul.f32.gmra.mxu2 %v5756_v60  ;;  %v5759_v38 = vsel %vm5474_vm5, %v5687_v51, %v5250_v55  ;;  %v5254_v28 = vpop.permute.xlu2 %5253  ;;  %v6199_v12 = vadd.f32 %v12024_v43, %v12200_v24 }
 0x7bb   : > { %v7083_v10 = vmax.f32 %v6922_v30, %v7018_v45  ;;  %6837 = vst.msk [vmem:[#allocation3 + $0x178] sm:$0xff] %vm5401_vm4, %v6765_v47  ;;  %v6190_v47 = vadd.f32 %v12024_v43, %v11633_v33  ;;  %v8692_v60 = vld [vmem:[#allocation2 + $0x301] sm:$0xff]  ;;  %v4678_v30 = vpop.permute.xlu0 %4677  ;;  %v6193_v33 = vadd.f32 %v12024_v43, %v11340_v39  ;;  %v3599_v41 = vld [vmem:[#allocation2 + $0x32a] sm:$0xff] }
 0x7bc   : > { %v5616_v52 = vsel %vm2773_vm2, %v8692_v60, %v8683_v23  ;;  %v12199_v39 = vld [vmem:[#allocation17_spill] sm:$0xff] }
 0x7bd   : > { %v7115_v37 = vmax.f32 %v7081_v31, %v7083_v10  ;;  %v6416_v58 = vpop.f32.mrf.mxu2  ;;  %v5688_v29 = vsel %vm5401_vm4, %v5616_v52, %v4964_v48 }
 0x7be   : > { %v6646_v5 = vpop.f32.mrf.mxu1  ;;  %v6417_v15 = vadd.f32 %v6416_v58, %v6184_v2  ;;  %v5760_v58 = vsel %vm5474_vm5, %v5688_v29, %v5252_v11  ;;  %v12201_v11 = vld [vmem:[#allocation19_spill] sm:$0xff] }
 0x7bf   : > { %v7139_v7 = vpack.c.bf16 %v7115_v37, %v7115_v37  ;;  %v6647_v35 = vadd.f32 %v6646_v5, %v6414_v61  ;;  %v4966_v37 = vpop.permute.xlu1 %4965  ;;  %v8693_v5 = vld [vmem:[#allocation2 + $0x309] sm:$0xff]  ;;  %v3600_v29 = vld [vmem:[#allocation2 + $0x332] sm:$0xff] }
 0x7c0   : > { %v5617_v22 = vsel %vm2773_vm2, %v8693_v5, %v4678_v30 }
 0x7c1   : > { %7165 = vst.msk [vmem:[%s11696_s19 + $0x38] sm:$0xf] %vm7149_vm6, %v7139_v7  ;;  %v6766_v4 = vmax.f32 %v6647_v35, 0.0  ;;  %7590 = vmatmul.msk.f32.gmra.mxu1 %vm2773_vm2, %v3593_v26  ;;  %v5689_v35 = vsel %vm5401_vm4, %v5617_v22, %v4966_v37 }
 0x7c2   : > { %v6924_v62 = vld [vmem:[#allocation3 + $0x178] ss:$2 sm:$0xf]  ;;  %v7020_v42 = vld [vmem:[#allocation3 + $0x179] ss:$2 sm:$0xf]  ;;  %6466 = vmatmul.f32.gmra.mxu2 %v5757_v46  ;;  %v5761_v46 = vsel %vm5474_vm5, %v5689_v35, %v5254_v28 }
 0x7c3   : > { %v7084_v1 = vmax.f32 %v6924_v62, %v7020_v42  ;;  %6838 = vst.msk [vmem:[#allocation3 + $0x180] sm:$0xff] %vm5401_vm4, %v6766_v4  ;;  %v4680_v21 = vpop.permute.xlu0 %4679  ;;  %v6196_v62 = vadd.f32 %v12024_v43, %v12199_v39  ;;  %v8694_v42 = vld [vmem:[#allocation2 + $0x311] sm:$0xff]  ;;  %v12203_v28 = vld [vmem:[#allocation21_spill] sm:$0xff] }
 0x7c4   : > { %v5618_v2 = vsel %vm2773_vm2, %v8694_v42, %v4680_v21 }
 0x7c5   : > { %v7116_v19 = vmax.f32 %v7082_v18, %v7084_v1  ;;  %v6419_v8 = vpop.f32.mrf.mxu2  ;;  %v5256_v1 = vpop.permute.xlu2 %5255 }
 0x7c6   : > { %v6649_v36 = vpop.f32.mrf.mxu1  ;;  %v6420_v56 = vadd.f32 %v6419_v8, %v6187_v40 }
 0x7c7   : > { %v7140_v14 = vpack.c.bf16 %v7116_v19, %v7116_v19  ;;  %v6650_v27 = vadd.f32 %v6649_v36, %v6417_v15  ;;  %v4968_v18 = vpop.permute.xlu1 %4967  ;;  %v3598_v15 = vld [vmem:[#allocation2 + $0x322] sm:$0xff] }
 0x7c8   : > { %v5690_v9 = vsel %vm5401_vm4, %v5618_v2, %v4968_v18  ;;  %v12205_v18 = vld [vmem:[#allocation23_spill] sm:$0xff] }
 0x7c9   : > { %7166 = vst.msk [vmem:[%s11696_s19 + $0x3c] sm:$0x3] %vm7151_vm7, %v7140_v14  ;;  %v6767_v54 = vmax.f32 %v6650_v27, 0.0  ;;  %7591 = vmatmul.msk.f32.gmra.mxu1 %vm2773_vm2, %v3594_v53  ;;  %v5762_v27 = vsel %vm5474_vm5, %v5690_v9, %v5256_v1  ;;  %v6214_v1 = vadd.f32 %v12024_v43, %v12205_v18 }
 0x7ca   : > { %6469 = vmatmul.f32.gmra.mxu2 %v5758_v57 }
 0x7cb   : > { %6839 = vst.msk [vmem:[#allocation3 + $0x188] sm:$0xff] %vm5401_vm4, %v6767_v54 }
 0x7cd   : > { %v6422_v16 = vpop.f32.mrf.mxu2 }
 0x7ce   : > { %v6652_v32 = vpop.f32.mrf.mxu1  ;;  %v6423_v45 = vadd.f32 %v6422_v16, %v6190_v47 }
 0x7cf   : > { %v6653_v49 = vadd.f32 %v6652_v32, %v6420_v56 }
 0x7d1   : > { %v6768_v59 = vmax.f32 %v6653_v49, 0.0  ;;  %7592 = vmatmul.msk.f32.gmra.mxu1 %vm2773_vm2, %v3595_v44 }
 0x7d2   : > { %6472 = vmatmul.f32.gmra.mxu2 %v5759_v38  ;;  %v6926_v8 = vld [vmem:[#allocation3 + $0x180] ss:$2 sm:$0xff]  ;;  %v7022_v36 = vld [vmem:[#allocation3 + $0x181] ss:$2 sm:$0xff] }
 0x7d3   : > { %6840 = vst.msk [vmem:[#allocation3 + $0x190] sm:$0xff] %vm5401_vm4, %v6768_v59  ;;  %v7085_v54 = vmax.f32 %v6926_v8, %v7022_v36  ;;  %v6202_v59 = vadd.f32 %v12024_v43, %v12201_v11 }
 0x7d5   : > { %v6425_v25 = vpop.f32.mrf.mxu2 }
 0x7d6   : > { %v6655_v31 = vpop.f32.mrf.mxu1  ;;  %v6426_v7 = vadd.f32 %v6425_v25, %v6193_v33 }
 0x7d7   : > { %v6656_v10 = vadd.f32 %v6655_v31, %v6423_v45 }
 0x7d9   : > { %v6769_v61 = vmax.f32 %v6656_v10, 0.0  ;;  %7593 = vmatmul.msk.f32.gmra.mxu1 %vm2773_vm2, %v3596_v63  ;;  %v12202_v63 = vld [vmem:[#allocation20_spill] sm:$0xff] }
 0x7da   : > { %6475 = vmatmul.f32.gmra.mxu2 %v5760_v58  ;;  %v6928_v48 = vld [vmem:[#allocation3 + $0x190] ss:$2 sm:$0xf]  ;;  %v7024_v49 = vld [vmem:[#allocation3 + $0x191] ss:$2 sm:$0xf]  ;;  %v6205_v37 = vadd.f32 %v12024_v43, %v12202_v63 }
 0x7db   : > { %6841 = vst.msk [vmem:[#allocation3 + $0x198] sm:$0xff] %vm5401_vm4, %v6769_v61  ;;  %v7086_v38 = vmax.f32 %v6928_v48, %v7024_v49  ;;  %v12207_v49 = vld [vmem:[#allocation25_spill] sm:$0xff] }
 0x7dd   : > { %v6428_v26 = vpop.f32.mrf.mxu2 }
 0x7de   : > { %v6658_v0 = vpop.f32.mrf.mxu1  ;;  %v6429_v50 = vadd.f32 %v6428_v26, %v6196_v62 }
 0x7df   : > { %v6659_v13 = vadd.f32 %v6658_v0, %v6426_v7  ;;  %v6208_v7 = vadd.f32 %v12024_v43, %v12203_v28 }
 0x7e1   : > { %v6770_v4 = vmax.f32 %v6659_v13, 0.0  ;;  %7594 = vmatmul.msk.f32.gmra.mxu1 %vm2773_vm2, %v3597_v6  ;;  %v12204_v6 = vld [vmem:[#allocation22_spill] sm:$0xff] }
 0x7e2   : > { %6478 = vmatmul.f32.gmra.mxu2 %v5761_v46 }
 0x7e3   : > { %6842 = vst.msk [vmem:[#allocation3 + $0x1a0] sm:$0xff] %vm5401_vm4, %v6770_v4  ;;  %v6211_v4 = vadd.f32 %v12024_v43, %v12204_v6 }
 0x7e5   : > { %v6431_v17 = vpop.f32.mrf.mxu2 }
 0x7e6   : > { %v6661_v19 = vpop.f32.mrf.mxu1  ;;  %v6432_v55 = vadd.f32 %v6431_v17, %v6199_v12 }
 0x7e7   : > { %v6662_v20 = vadd.f32 %v6661_v19, %v6429_v50 }
 0x7e9   : > { %v6771_v14 = vmax.f32 %v6662_v20, 0.0  ;;  %7595 = vmatmul.msk.f32.gmra.mxu1 %vm2773_vm2, %v3598_v15 }
 0x7ea   : > { %v6930_v53 = vld [vmem:[#allocation3 + $0x198] ss:$2 sm:$0xff]  ;;  %v7026_v34 = vld [vmem:[#allocation3 + $0x199] ss:$2 sm:$0xff]  ;;  %6481 = vmatmul.f32.gmra.mxu2 %v5762_v27 }
 0x7eb   : > { %v7087_v57 = vmax.f32 %v6930_v53, %v7026_v34  ;;  %6843 = vst.msk [vmem:[#allocation3 + $0x1a8] sm:$0xff] %vm5401_vm4, %v6771_v14  ;;  %v12206_v27 = vld [vmem:[#allocation24_spill] sm:$0xff] }
 0x7ec   : > { %v6217_v53 = vadd.f32 %v12024_v43, %v12206_v27 }
 0x7ed   : > { %v7117_v40 = vmax.f32 %v7085_v54, %v7087_v57  ;;  %v6434_v3 = vpop.f32.mrf.mxu2 }
 0x7ee   : > { %v6664_v56 = vpop.f32.mrf.mxu1  ;;  %v6435_v52 = vadd.f32 %v6434_v3, %v6202_v59 }
 0x7ef   : > { %v7141_v16 = vpack.c.bf16 %v7117_v40, %v7117_v40  ;;  %v6665_v32 = vadd.f32 %v6664_v56, %v6432_v55 }
 0x7f1   : > { %7167 = vst.msk [vmem:[%s11696_s19 + $0x40] sm:$0xf] %vm7149_vm6, %v7141_v16  ;;  %v6772_v44 = vmax.f32 %v6665_v32, 0.0  ;;  %7596 = vmatmul.msk.f32.gmra.mxu1 %vm2773_vm2, %v3599_v41 }
 0x7f2   : > { %v6932_v51 = vld [vmem:[#allocation3 + $0x1a8] ss:$2 sm:$0xf]  ;;  %v7028_v23 = vld [vmem:[#allocation3 + $0x1a9] ss:$2 sm:$0xf] }
 0x7f3   : > { %v7088_v47 = vmax.f32 %v6932_v51, %v7028_v23  ;;  %6844 = vst.msk [vmem:[#allocation3 + $0x1b0] sm:$0xff] %vm5401_vm4, %v6772_v44  ;;  %v6220_v44 = vadd.f32 %v12024_v43, %v12207_v49 }
 0x7f5   : > { %v7118_v60 = vmax.f32 %v7086_v38, %v7088_v47  ;;  %v6437_v30 = vpop.f32.mrf.mxu2 }
 0x7f6   : > { %v6667_v45 = vpop.f32.mrf.mxu1  ;;  %v6438_v61 = vadd.f32 %v6437_v30, %v6205_v37 }
 0x7f7   : > { %v7142_v25 = vpack.c.bf16 %v7118_v60, %v7118_v60  ;;  %v6668_v31 = vadd.f32 %v6667_v45, %v6435_v52  ;;  %v12208_v45 = vld [vmem:[#allocation26_spill] sm:$0xff] }
 0x7f9   : > { %7168 = vst.msk [vmem:[%s11696_s19 + $0x44] sm:$0x3] %vm7151_vm7, %v7142_v25  ;;  %v6773_v10 = vmax.f32 %v6668_v31, 0.0  ;;  %7597 = vmatmul.msk.f32.gmra.mxu1 %vm2773_vm2, %v3600_v29  ;;  %v6223_v29 = vadd.f32 %v12024_v43, %v12208_v45 }
 0x7fb   : > { %6845 = vst.msk [vmem:[#allocation3 + $0x1b8] sm:$0xff] %vm5401_vm4, %v6773_v10 }
 0x7fd   : > { %v6440_v58 = vpop.f32.mrf.mxu2 }
 0x7fe   : > { %v6670_v33 = vpop.f32.mrf.mxu1  ;;  %v6441_v35 = vadd.f32 %v6440_v58, %v6208_v7 }
 0x7ff   : > { %v6671_v5 = vadd.f32 %v6670_v33, %v6438_v61  ;;  %v12209_v61 = vld [vmem:[#allocation27_spill] sm:$0xff] }
 0x800   : > { %v6226_v58 = vadd.f32 %v12024_v43, %v12209_v61 }
 0x801   : > { %v6774_v22 = vmax.f32 %v6671_v5, 0.0 }
 0x802   : > { %v6934_v15 = vld [vmem:[#allocation3 + $0x1b0] ss:$2 sm:$0xff]  ;;  %v7030_v20 = vld [vmem:[#allocation3 + $0x1b1] ss:$2 sm:$0xff] }
 0x803   : > { %6846 = vst.msk [vmem:[#allocation3 + $0x1c0] sm:$0xff] %vm5401_vm4, %v6774_v22  ;;  %v7089_v34 = vmax.f32 %v6934_v15, %v7030_v20  ;;  %v12212_v15 = vld [vmem:[#allocation30_spill] sm:$0xff] }
 0x804   : > { %v6235_v20 = vadd.f32 %v12024_v43, %v12212_v15 }
 0x805   : > { %v6443_v26 = vpop.f32.mrf.mxu2 }
 0x806   : > { %v6673_v0 = vpop.f32.mrf.mxu1  ;;  %v6444_v46 = vadd.f32 %v6443_v26, %v6211_v4 }
 0x807   : > { %v6674_v13 = vadd.f32 %v6673_v0, %v6441_v35  ;;  %v12210_v35 = vld [vmem:[#allocation28_spill] sm:$0xff] }
 0x808   : > { %v6229_v26 = vadd.f32 %v12024_v43, %v12210_v35 }
 0x809   : > { %v6775_v21 = vmax.f32 %v6674_v13, 0.0 }
 0x80a   : > { %v6936_v56 = vld [vmem:[#allocation3 + $0x1c0] ss:$2 sm:$0xf]  ;;  %v7032_v41 = vld [vmem:[#allocation3 + $0x1c1] ss:$2 sm:$0xf] }
 0x80b   : > { %6847 = vst.msk [vmem:[#allocation3 + $0x1c8] sm:$0xff] %vm5401_vm4, %v6775_v21  ;;  %v7090_v51 = vmax.f32 %v6936_v56, %v7032_v41  ;;  %v12213_v56 = vld [vmem:[#allocation31_spill] sm:$0xff] }
 0x80c   : > { %v6238_v41 = vadd.f32 %v12024_v43, %v12213_v56 }
 0x80d   : > { %v6446_v39 = vpop.f32.mrf.mxu2 }
 0x80e   : > { %v6676_v62 = vpop.f32.mrf.mxu1  ;;  %v6447_v50 = vadd.f32 %v6446_v39, %v6214_v1 }
 0x80f   : > { %v6677_v42 = vadd.f32 %v6676_v62, %v6444_v46  ;;  %v12211_v46 = vld [vmem:[#allocation29_spill] sm:$0xff] }
 0x810   : > { %v6232_v39 = vadd.f32 %v12024_v43, %v12211_v46 }
 0x811   : > { %v6776_v2 = vmax.f32 %v6677_v42, 0.0 }
 0x813   : > { %6848 = vst.msk [vmem:[#allocation3 + $0x1d0] sm:$0xff] %vm5401_vm4, %v6776_v2 }
 0x815   : > { %v6449_v9 = vpop.f32.mrf.mxu2 }
 0x816   : > { %v6679_v17 = vpop.f32.mrf.mxu1  ;;  %v6450_v54 = vadd.f32 %v6449_v9, %v6217_v53 }
 0x817   : > { %v6680_v19 = vadd.f32 %v6679_v17, %v6447_v50 }
 0x819   : > { %v6777_v8 = vmax.f32 %v6680_v19, 0.0 }
 0x81a   : > { %v6938_v36 = vld [vmem:[#allocation3 + $0x1c8] ss:$2 sm:$0xff]  ;;  %v7034_v14 = vld [vmem:[#allocation3 + $0x1c9] ss:$2 sm:$0xff] }
 0x81b   : > { %v7091_v24 = vmax.f32 %v6938_v36, %v7034_v14  ;;  %6849 = vst.msk [vmem:[#allocation3 + $0x1d8] sm:$0xff] %vm5401_vm4, %v6777_v8 }
 0x81d   : > { %v7119_v12 = vmax.f32 %v7089_v34, %v7091_v24  ;;  %v6452_v57 = vpop.f32.mrf.mxu2 }
 0x81e   : > { %v6682_v40 = vpop.f32.mrf.mxu1  ;;  %v6453_v59 = vadd.f32 %v6452_v57, %v6220_v44 }
 0x81f   : > { %v7143_v55 = vpack.c.bf16 %v7119_v12, %v7119_v12  ;;  %v6683_v3 = vadd.f32 %v6682_v40, %v6450_v54 }
 0x821   : > { %7169 = vst.msk [vmem:[%s11696_s19 + $0x48] sm:$0xf] %vm7149_vm6, %v7143_v55  ;;  %v6778_v16 = vmax.f32 %v6683_v3, 0.0 }
 0x822   : > { %v6940_v32 = vld [vmem:[#allocation3 + $0x1d8] ss:$2 sm:$0xf]  ;;  %v7036_v48 = vld [vmem:[#allocation3 + $0x1d9] ss:$2 sm:$0xf] }
 0x823   : > { %v7092_v23 = vmax.f32 %v6940_v32, %v7036_v48  ;;  %6850 = vst.msk [vmem:[#allocation3 + $0x1e0] sm:$0xff] %vm5401_vm4, %v6778_v16 }
 0x825   : > { %v7120_v11 = vmax.f32 %v7090_v51, %v7092_v23  ;;  %v6455_v38 = vpop.f32.mrf.mxu2 }
 0x826   : > { %v6685_v47 = vpop.f32.mrf.mxu1  ;;  %v6456_v25 = vadd.f32 %v6455_v38, %v6223_v29  ;;  %v12214_v38 = vld [vmem:[#allocation32_spill] sm:$0xff] }
 0x827   : > { %v7144_v60 = vpack.c.bf16 %v7120_v11, %v7120_v11  ;;  %v6686_v52 = vadd.f32 %v6685_v47, %v6453_v59  ;;  %v6241_v47 = vadd.f32 %v12024_v43, %v12214_v38 }
 0x829   : > { %7170 = vst.msk [vmem:[%s11696_s19 + $0x4c] sm:$0x3] %vm7151_vm7, %v7144_v60  ;;  %v6779_v30 = vmax.f32 %v6686_v52, 0.0 }
 0x82b   : > { %6851 = vst.msk [vmem:[#allocation3 + $0x1e8] sm:$0xff] %vm5401_vm4, %v6779_v30 }
 0x82d   : > { %v6458_v31 = vpop.f32.mrf.mxu2 }
 0x82e   : > { %v6688_v10 = vpop.f32.mrf.mxu1  ;;  %v6459_v33 = vadd.f32 %v6458_v31, %v6226_v58 }
 0x82f   : > { %v6689_v63 = vadd.f32 %v6688_v10, %v6456_v25  ;;  %v12215_v25 = vld [vmem:[#allocation33_spill] sm:$0xff] }
 0x830   : > { %v6244_v31 = vadd.f32 %v12024_v43, %v12215_v25 }
 0x831   : > { %v6780_v37 = vmax.f32 %v6689_v63, 0.0 }
 0x832   : > { %v6942_v1 = vld [vmem:[#allocation3 + $0x1e0] ss:$2 sm:$0xff]  ;;  %v7038_v50 = vld [vmem:[#allocation3 + $0x1e1] ss:$2 sm:$0xff] }
 0x833   : > { %6852 = vst.msk [vmem:[#allocation3 + $0x1f0] sm:$0xff] %vm5401_vm4, %v6780_v37  ;;  %v7093_v8 = vmax.f32 %v6942_v1, %v7038_v50 }
 0x835   : > { %v6461_v5 = vpop.f32.mrf.mxu2 }
 0x836   : > { %v6691_v22 = vpop.f32.mrf.mxu1  ;;  %v6462_v0 = vadd.f32 %v6461_v5, %v6229_v26 }
 0x837   : > { %v6692_v28 = vadd.f32 %v6691_v22, %v6459_v33  ;;  %v12216_v33 = vld [vmem:[#allocation34_spill] sm:$0xff] }
 0x838   : > { %v6247_v5 = vadd.f32 %v12024_v43, %v12216_v33 }
 0x839   : > { %v6781_v7 = vmax.f32 %v6692_v28, 0.0 }
 0x83a   : > { %v6944_v54 = vld [vmem:[#allocation3 + $0x1f0] ss:$2 sm:$0xf]  ;;  %v7040_v57 = vld [vmem:[#allocation3 + $0x1f1] ss:$2 sm:$0xf] }
 0x83b   : > { %6853 = vst.msk [vmem:[#allocation3 + $0x1f8] sm:$0xff] %vm5401_vm4, %v6781_v7  ;;  %v7094_v16 = vmax.f32 %v6944_v54, %v7040_v57 }
 0x83d   : > { %v6464_v13 = vpop.f32.mrf.mxu2 }
 0x83e   : > { %v6694_v21 = vpop.f32.mrf.mxu1  ;;  %v6465_v62 = vadd.f32 %v6464_v13, %v6232_v39 }
 0x83f   : > { %v6695_v6 = vadd.f32 %v6694_v21, %v6462_v0  ;;  %v12217_v0 = vld [vmem:[#allocation35_spill] sm:$0xff] }
 0x840   : > { %v6250_v13 = vadd.f32 %v12024_v43, %v12217_v0 }
 0x841   : > { %v6782_v4 = vmax.f32 %v6695_v6, 0.0 }
 0x843   : > { %6854 = vst.msk [vmem:[#allocation3 + $0x200] sm:$0xff] %vm5401_vm4, %v6782_v4 }
 0x845   : > { %v6467_v42 = vpop.f32.mrf.mxu2 }
 0x846   : > { %v6697_v2 = vpop.f32.mrf.mxu1  ;;  %v6468_v27 = vadd.f32 %v6467_v42, %v6235_v20 }
 0x847   : > { %v6698_v18 = vadd.f32 %v6697_v2, %v6465_v62 }
 0x849   : > { %v6783_v9 = vmax.f32 %v6698_v18, 0.0 }
 0x84a   : > { %v6946_v17 = vld [vmem:[#allocation3 + $0x1f8] ss:$2 sm:$0xff]  ;;  %v7042_v19 = vld [vmem:[#allocation3 + $0x1f9] ss:$2 sm:$0xff] }
 0x84b   : > { %v7095_v36 = vmax.f32 %v6946_v17, %v7042_v19  ;;  %6855 = vst.msk [vmem:[#allocation3 + $0x208] sm:$0xff] %vm5401_vm4, %v6783_v9 }
 0x84d   : > { %v7121_v14 = vmax.f32 %v7093_v8, %v7095_v36  ;;  %v6470_v53 = vpop.f32.mrf.mxu2 }
 0x84e   : > { %v6700_v34 = vpop.f32.mrf.mxu1  ;;  %v6471_v49 = vadd.f32 %v6470_v53, %v6238_v41 }
 0x84f   : > { %v7145_v24 = vpack.c.bf16 %v7121_v14, %v7121_v14  ;;  %v6701_v12 = vadd.f32 %v6700_v34, %v6468_v27 }
 0x851   : > { %7171 = vst.msk [vmem:[%s11696_s19 + $0x50] sm:$0xf] %vm7149_vm6, %v7145_v24  ;;  %v6784_v40 = vmax.f32 %v6701_v12, 0.0 }
 0x852   : > { %v6948_v55 = vld [vmem:[#allocation3 + $0x208] ss:$2 sm:$0xf]  ;;  %v7044_v3 = vld [vmem:[#allocation3 + $0x209] ss:$2 sm:$0xf] }
 0x853   : > { %v7096_v32 = vmax.f32 %v6948_v55, %v7044_v3  ;;  %6856 = vst.msk [vmem:[#allocation3 + $0x210] sm:$0xff] %vm5401_vm4, %v6784_v40 }
 0x855   : > { %v7122_v48 = vmax.f32 %v7094_v16, %v7096_v32  ;;  %v6473_v44 = vpop.f32.mrf.mxu2 }
 0x856   : > { %v6703_v51 = vpop.f32.mrf.mxu1  ;;  %v6474_v60 = vadd.f32 %v6473_v44, %v6241_v47 }
 0x857   : > { %v7146_v23 = vpack.c.bf16 %v7122_v48, %v7122_v48  ;;  %v6704_v11 = vadd.f32 %v6703_v51, %v6471_v49 }
 0x859   : > { %7172 = vst.msk [vmem:[%s11696_s19 + $0x54] sm:$0x3] %vm7151_vm7, %v7146_v23  ;;  %v6785_v59 = vmax.f32 %v6704_v11, 0.0 }
 0x85b   : > { %6857 = vst.msk [vmem:[#allocation3 + $0x218] sm:$0xff] %vm5401_vm4, %v6785_v59 }
 0x85d   : > { %v6476_v52 = vpop.f32.mrf.mxu2 }
 0x85e   : > { %v6706_v30 = vpop.f32.mrf.mxu1  ;;  %v6477_v10 = vadd.f32 %v6476_v52, %v6244_v31 }
 0x85f   : > { %v6707_v45 = vadd.f32 %v6706_v30, %v6474_v60 }
 0x861   : > { %v6786_v29 = vmax.f32 %v6707_v45, 0.0 }
 0x862   : > { %v6950_v46 = vld [vmem:[#allocation3 + $0x210] ss:$2 sm:$0xff]  ;;  %v7046_v39 = vld [vmem:[#allocation3 + $0x211] ss:$2 sm:$0xff] }
 0x863   : > { %6858 = vst.msk [vmem:[#allocation3 + $0x220] sm:$0xff] %vm5401_vm4, %v6786_v29  ;;  %v7097_v18 = vmax.f32 %v6950_v46, %v7046_v39 }
 0x865   : > { %v6479_v61 = vpop.f32.mrf.mxu2 }
 0x866   : > { %v6709_v63 = vpop.f32.mrf.mxu1  ;;  %v6480_v22 = vadd.f32 %v6479_v61, %v6247_v5 }
 0x867   : > { %v6710_v37 = vadd.f32 %v6709_v63, %v6477_v10 }
 0x869   : > { %v6787_v58 = vmax.f32 %v6710_v37, 0.0 }
 0x86a   : > { %v6952_v17 = vld [vmem:[#allocation3 + $0x220] ss:$2 sm:$0xf]  ;;  %v7048_v43 = vld [vmem:[#allocation3 + $0x221] ss:$2 sm:$0xf] }
 0x86b   : > { %6859 = vst.msk [vmem:[#allocation3 + $0x228] sm:$0xff] %vm5401_vm4, %v6787_v58  ;;  %v7098_v20 = vmax.f32 %v6952_v17, %v7048_v43 }
 0x86d   : > { %v6482_v26 = vpop.f32.mrf.mxu2 }
 0x86e   : > { %v6712_v28 = vpop.f32.mrf.mxu1  ;;  %v6483_v21 = vadd.f32 %v6482_v26, %v6250_v13 }
 0x86f   : > { %v6713_v7 = vadd.f32 %v6712_v28, %v6480_v22 }
 0x871   : > { %v6788_v35 = vmax.f32 %v6713_v7, 0.0 }
 0x873   : > { %6860 = vst.msk [vmem:[#allocation3 + $0x230] sm:$0xff] %vm5401_vm4, %v6788_v35 }
 0x876   : > { %v6715_v6 = vpop.f32.mrf.mxu1 }
 0x877   : > { %v6716_v4 = vadd.f32 %v6715_v6, %v6483_v21 }
 0x879   : > { %v6789_v62 = vmax.f32 %v6716_v4, 0.0 }
 0x87a   : > { %v6954_v42 = vld [vmem:[#allocation3 + $0x228] ss:$2 sm:$0xff]  ;;  %v7050_v2 = vld [vmem:[#allocation3 + $0x229] ss:$2 sm:$0xff] }
 0x87b   : > { %v7099_v1 = vmax.f32 %v6954_v42, %v7050_v2  ;;  %6861 = vst.msk [vmem:[#allocation3 + $0x238] sm:$0xff] %vm5401_vm4, %v6789_v62 }
 0x87d   : > { %v7123_v50 = vmax.f32 %v7097_v18, %v7099_v1 }
 0x87f   : > { %v7147_v9 = vpack.c.bf16 %v7123_v50, %v7123_v50 }
 0x881   : > { %7173 = vst.msk [vmem:[%s11696_s19 + $0x58] sm:$0xf] %vm7149_vm6, %v7147_v9 }
 0x882   : > { %v6956_v19 = vld [vmem:[#allocation3 + $0x238] ss:$2 sm:$0xf]  ;;  %v7052_v15 = vld [vmem:[#allocation3 + $0x239] ss:$2 sm:$0xf] }
 0x883   : > { %v7100_v8 = vmax.f32 %v6956_v19, %v7052_v15 }
 0x885   : > { %v7124_v36 = vmax.f32 %v7098_v20, %v7100_v8 }
 0x887   : > { %v7148_v14 = vpack.c.bf16 %v7124_v36, %v7124_v36 }
 0x889   : > { %7174 = vst.msk [vmem:[%s11696_s19 + $0x5c] sm:$0x3] %vm7151_vm7, %v7148_v14 }
 0x88a PF: > { %s15_s18 = sadd.s32 1, %s8701_s18  }
 0x88b   : > { %p12_p4 = scmp.ge.s32.totalorder %s15_s18, 4  }
 0x88d   :  { %14 = sbr.rel (!%p12_p4) target bundleno = 1 (0x1), region = 167 }

</bundles_post_ra>
